<compile_context>
chip_gen: v5e
topology: v5e:2x2
jax: 0.10.0
libtpu: 0.0.40
codegen_flags: <defaults>
</compile_context>

<pallas_src>
import numpy as np
import jax
import jax.numpy as jnp
from jax import lax
from jax.experimental import pallas as pl
from jax.experimental.pallas import tpu as pltpu


def _pick_band_rows(H, Wp, Cout, band_rows=None):
    """Rows per band so the per-band f32 accumulator (Rb*Wp, Cout) is ~<=512 KiB."""
    if band_rows is not None:
        assert band_rows >= 2 and band_rows % 2 == 0 and H % band_rows == 0
        return band_rows
    target = max(2, min(H, 32, (512 * 1024) // (4 * max(Cout, 1) * Wp)))
    for cand in range(target, 1, -1):
        if cand % 2 == 0 and H % cand == 0:   # even (pool windows) and divides H
            return cand
    return 2


def _make_dblock_kernel(H, W, Cin, Cout, Rb, use_blur):
    Hp, Wp = H + 2, W + 2
    Lb = Rb * Wp                       # slab rows of one band (incl. seam cols)
    n_bands = H // Rb
    band_aligned = (Lb % 8 == 0)       # band starts are 8-sublane aligned
    NEG = 0.2                          # LeakyReLU slope

    def kernel(x_ref, w1_ref, b1_ref, w2_ref, b2_ref, o_ref, *scratch):
        # x_ref  : (1, (Hp+1)*Wp, Cin) bf16  zero-padded flat image + guard row
        # w1_ref : (9, Cin, Cout) bf16   tap-major (t = ky*3 + kx), pre-scaled
        # w2_ref : (9, Cout, Cout) bf16
        # b1_ref/b2_ref : (1, Cout) f32
        # o_ref  : (1, (H//2)*(W//2), Cout) f32
        # scratch: A slab (bf16), [B slab (bf16) if use_blur], band tmp (f32)
        if use_blur:
            a_ref, b_ref, tmp_ref = scratch
        else:
            a_ref, tmp_ref = scratch
            b_ref = a_ref                      # conv2 reads conv1 output directly

        zero_pair = jnp.zeros((2, Cout), jnp.bfloat16)
        zero_top = jnp.zeros((Wp + 1, Cout), jnp.bfloat16)
        zero_bot = jnp.zeros((Wp, Cout), jnp.bfloat16)

        def band_base(i):
            base = i * Lb
            if band_aligned and not isinstance(i, int):
                base = pl.multiple_of(base, 8)
            return base

        def run_bands(body):
            if n_bands <= 4:                   # short: unroll statically
                for i in range(n_bands):
                    body(i, 0)
            else:                              # long: keep live ranges bounded
                lax.fori_loop(0, n_bands, body, 0)

        def write_padded_band(dst, base, val):
            # Unmasked contiguous band write into the zero-bordered slab, then
            # re-zero the 2 seam elements per image row (right-pad col + next
            # row's left-pad col) — cheaper than a full-band mask multiply.
            dst[pl.ds(base + Wp + 1, Lb), :] = val.astype(dst.dtype)
            for r in range(Rb):
                dst[pl.ds(base + Wp + 1 + r * Wp + W, 2), :] = zero_pair

        # ---- stage 1: conv1 + bias + LeakyReLU -> bf16 padded slab A --------
        a_ref[pl.ds(0, Wp + 1), :] = zero_top              # top pad row (+ (1,0))
        a_ref[pl.ds((H + 1) * Wp, Wp), :] = zero_bot       # bottom pad row

        def conv1_band(i, carry):
            base = band_base(i)
            acc = jnp.zeros((Lb, Cout), jnp.float32)
            for t in range(9):                 # 9 shifted-tap bf16 MXU matmuls
                off = (t // 3) * Wp + (t % 3)
                acc = acc + jnp.dot(x_ref[0, pl.ds(base + off, Lb), :],
                                    w1_ref[t],
                                    preferred_element_type=jnp.float32)
            h = acc + b1_ref[...]
            h = jnp.where(h > 0, h, NEG * h)
            write_padded_band(a_ref, base, h)
            return carry

        run_bands(conv1_band)
        # TODO(synk): for conv1 with tiny Cin (first block) an im2col-lite
        # (L_band, 9*Cin) LHS would deepen K for the 256-wide MXU on v6e/v7x.

        # ---- stage 2 (optional): separable 3x3 blur -> bf16 padded slab B ----
        if use_blur:
            b_ref[pl.ds(0, Wp + 1), :] = zero_top
            b_ref[pl.ds((H + 1) * Wp, Wp), :] = zero_bot

            def blur_band(i, carry):
                base = band_base(i)
                # vertical [1,2,1] (rows are Wp apart in the flat slab)
                tmp_ref[...] = (
                    a_ref[pl.ds(base, Lb + 2), :].astype(jnp.float32)
                    + 2.0 * a_ref[pl.ds(base + Wp, Lb + 2), :].astype(jnp.float32)
                    + a_ref[pl.ds(base + 2 * Wp, Lb + 2), :].astype(jnp.float32))
                # horizontal [1,2,1]; the 1/16 is folded into conv2's scale
                bl = (tmp_ref[pl.ds(0, Lb), :]
                      + 2.0 * tmp_ref[pl.ds(1, Lb), :]
                      + tmp_ref[pl.ds(2, Lb), :])
                write_padded_band(b_ref, base, bl)
                return carry

            run_bands(blur_band)

        # ---- stage 3: conv2 + bias + LeakyReLU + 2x2 avg pool (per band) -----
        def conv2_band(i, carry):
            base = band_base(i)
            acc = jnp.zeros((Lb, Cout), jnp.float32)
            for t in range(9):
                off = (t // 3) * Wp + (t % 3)
                acc = acc + jnp.dot(b_ref[pl.ds(base + off, Lb), :],
                                    w2_ref[t],
                                    preferred_element_type=jnp.float32)
            h2 = acc + b2_ref[...]
            h2 = jnp.where(h2 > 0, h2, NEG * h2)
            tmp_ref[pl.ds(0, Lb), :] = h2      # f32 band-local pool input
            oy0 = i * (Rb // 2)
            for r in range(Rb // 2):           # stride-2 sublane reads, no reshapes
                r0 = (2 * r) * Wp
                r1 = r0 + Wp
                s = (tmp_ref[pl.ds(r0, W // 2, stride=2), :]
                     + tmp_ref[pl.ds(r0 + 1, W // 2, stride=2), :]
                     + tmp_ref[pl.ds(r1, W // 2, stride=2), :]
                     + tmp_ref[pl.ds(r1 + 1, W // 2, stride=2), :])
                o_ref[0, pl.ds((oy0 + r) * (W // 2), W // 2), :] = 0.25 * s
            return carry

        run_bands(conv2_band)

    return kernel


def dblock_pallas(x_nchw, w1_oihw, b1, w2_oihw, b2, *, use_blur, band_rows=None):
    """DBlock forward. x_nchw: (N, Cin, H, W) f32, weights OIHW. Returns NCHW."""
    N, Cin, H, W = x_nchw.shape
    Cout = w1_oihw.shape[0]
    assert H % 2 == 0 and W % 2 == 0
    Hp, Wp = H + 2, W + 2
    S = (Hp + 1) * Wp                 # padded slab + 1 guard row (keeps the last
                                      # band's shifted tap loads in-bounds)
    Rb = _pick_band_rows(H, Wp, Cout, band_rows)
    Lb = Rb * Wp

    # WSConv2d equalized-lr scaling: weight * sqrt(2 / fan_in)
    s1 = float(np.sqrt(2.0 / (Cin * 9)))
    s2 = float(np.sqrt(2.0 / (Cout * 9)))
    if use_blur:
        s2 /= 16.0                    # fold the blur's 1/16 into conv2's scale

    # Layout glue: NCHW -> NHWC, zero-pad (1 top/left/right, 2 bottom), flatten,
    # bf16 matmul operands.
    # TODO(synk): keep NHWC I/O end-to-end to drop these extra HBM passes.
    x_nhwc = jnp.transpose(x_nchw, (0, 2, 3, 1)).astype(jnp.float32)
    x_flat = jnp.pad(x_nhwc, ((0, 0), (1, 2), (1, 1), (0, 0))).reshape(
        N, S, Cin).astype(jnp.bfloat16)

    # Weights: OIHW -> (ky, kx, ci, co) -> tap-major (9, Cin/Cout, Cout), bf16.
    w1_t = jnp.transpose(w1_oihw.astype(jnp.float32) * s1,
                         (2, 3, 1, 0)).reshape(9, Cin, Cout).astype(jnp.bfloat16)
    w2_t = jnp.transpose(w2_oihw.astype(jnp.float32) * s2,
                         (2, 3, 1, 0)).reshape(9, Cout, Cout).astype(jnp.bfloat16)
    b1_2d = b1.reshape(1, Cout).astype(jnp.float32)
    b2_2d = b2.reshape(1, Cout).astype(jnp.float32)

    kernel = _make_dblock_kernel(H, W, Cin, Cout, Rb, use_blur)

    scratch = [pltpu.VMEM((S, Cout), jnp.bfloat16)]           # conv1-out slab
    if use_blur:
        scratch.append(pltpu.VMEM((S, Cout), jnp.bfloat16))   # blur-out slab
    scratch.append(pltpu.VMEM((Lb + 2, Cout), jnp.float32))   # band scratch (blur vz / pool in)

    conv_flops = 2 * H * W * 9 * (Cin * Cout + Cout * Cout)
    blur_flops = (8 * H * W * Cout) if use_blur else 0
    cost = pl.CostEstimate(
        flops=N * (conv_flops + blur_flops + 4 * H * W * Cout),
        transcendentals=0,
        bytes_accessed=(x_flat.size * 2 + (w1_t.size + w2_t.size) * 2
                        + (b1_2d.size + b2_2d.size) * 4
                        + N * (H // 2) * (W // 2) * Cout * 4))

    # Scoped-VMEM budget from the per-step footprint, clamped below the
    # physical VMEM of the current chip (64 MiB on v7x, 128 MiB on v5e/v6e).
    step_bytes = (2 * S * Cin * 2                             # x block x2, bf16
                  + S * Cout * 2                              # A slab
                  + (S * Cout * 2 if use_blur else 0)         # B slab
                  + (Lb + 2) * Cout * 4                       # band scratch
                  + 2 * 9 * (Cin + Cout) * Cout * 2           # w1+w2 x2, bf16
                  + 2 * (H // 2) * (W // 2) * Cout * 4        # out block x2
                  + 6 * Lb * Cout * 4)                        # band accumulators/temps
    try:
        phys = int(pltpu.get_tpu_info().vmem_capacity_bytes)
    except Exception:
        phys = 64 * 1024 * 1024
    vmem_limit = int(min(phys - (4 << 20),
                         max(32 << 20, int(1.25 * step_bytes) + (8 << 20))))

    out_flat = pl.pallas_call(
        kernel,
        out_shape=jax.ShapeDtypeStruct((N, (H // 2) * (W // 2), Cout), jnp.float32),
        grid=(N,),
        in_specs=[
            pl.BlockSpec((1, S, Cin), lambda n: (n, 0, 0)),
            pl.BlockSpec((9, Cin, Cout), lambda n: (0, 0, 0)),
            pl.BlockSpec((1, Cout), lambda n: (0, 0)),
            pl.BlockSpec((9, Cout, Cout), lambda n: (0, 0, 0)),
            pl.BlockSpec((1, Cout), lambda n: (0, 0)),
        ],
        out_specs=pl.BlockSpec((1, (H // 2) * (W // 2), Cout), lambda n: (n, 0, 0)),
        scratch_shapes=scratch,
        compiler_params=pltpu.CompilerParams(
            dimension_semantics=("parallel",),
            vmem_limit_bytes=vmem_limit),
        cost_estimate=cost,
    )(x_flat, w1_t, b1_2d, w2_t, b2_2d)

    out = out_flat.reshape(N, H // 2, W // 2, Cout)
    # TODO(synk): for very large H*W*Cout (beyond v7x's 64 MiB VMEM) add a
    # row-band *grid* axis with a 3-row input halo ("parallel" alongside N) so
    # both v7x TensorCores get work; also single-buffer the constant weight
    # operands (pipeline_mode=pl.Buffered(1)) once that knob is exercised.
    return jnp.transpose(out, (0, 3, 1, 2))   # back to NCHW


# ----------------------- pure-JAX reference (for verification) ---------------
def dblock_ref(x, w1, b1, w2, b2, *, use_blur):
    N, Cin, H, W = x.shape
    Cout = w1.shape[0]
    s1 = jnp.sqrt(2.0 / (Cin * 9))
    s2 = jnp.sqrt(2.0 / (Cout * 9))
    dn = ("NCHW", "OIHW", "NCHW")

    y = lax.conv_general_dilated(x, w1 * s1, (1, 1), [(1, 1), (1, 1)],
                                 dimension_numbers=dn) + b1[None, :, None, None]
    y = jnp.where(y > 0, y, 0.2 * y)
    if use_blur:
        bk = jnp.array([[1., 2., 1.], [2., 4., 2.], [1., 2., 1.]],
                       jnp.float32) / 16.0
        bk = jnp.tile(bk[None, None], (Cout, 1, 1, 1))
        y = lax.conv_general_dilated(y, bk, (1, 1), [(1, 1), (1, 1)],
                                     dimension_numbers=dn,
                                     feature_group_count=Cout)
    y = lax.conv_general_dilated(y, w2 * s2, (1, 1), [(1, 1), (1, 1)],
                                 dimension_numbers=dn) + b2[None, :, None, None]
    y = jnp.where(y > 0, y, 0.2 * y)
    y = y.reshape(N, Cout, H // 2, 2, W // 2, 2).mean(axis=(3, 5))
    return y


if __name__ == "__main__":
    key = jax.random.PRNGKey(0)

    # (N, Cin, Cout, H, W, band_rows): second config forces small bands to also
    # exercise the fori_loop multi-band path.
    configs = [
        (2, 4, 8, 16, 16, None),
        (2, 4, 8, 16, 16, 2),
    ]
    for (N, Cin, Cout, H, W, band_rows) in configs:
        key, kx, kw1, kb1, kw2, kb2 = jax.random.split(key, 6)
        x = jax.random.normal(kx, (N, Cin, H, W), jnp.float32)
        w1 = jax.random.normal(kw1, (Cout, Cin, 3, 3), jnp.float32)
        b1 = 0.1 * jax.random.normal(kb1, (Cout,), jnp.float32)
        w2 = jax.random.normal(kw2, (Cout, Cout, 3, 3), jnp.float32)
        b2 = 0.1 * jax.random.normal(kb2, (Cout,), jnp.float32)

        for use_blur in (True, False):
            out = dblock_pallas(x, w1, b1, w2, b2,
                                use_blur=use_blur, band_rows=band_rows)
            out = jax.block_until_ready(out)

            ref = dblock_ref(x, w1, b1, w2, b2, use_blur=use_blur)
            assert out.shape == (N, Cout, H // 2, W // 2), out.shape
            assert bool(jnp.all(jnp.isfinite(out)))
            max_err = float(jnp.max(jnp.abs(out - ref)))
            assert jnp.allclose(out, ref, rtol=2e-2, atol=2e-2), (
                use_blur, band_rows, max_err)

    print("KERNEL_OK")
</pallas_src>

<mosaic_0001>
module attributes {stable_mosaic.version = 11 : i64} {
  func.func @kernel(%arg0: i32, %arg1: memref<1x342x4xbf16, #tpu.memory_space<vmem>>, %arg2: memref<9x4x8xbf16, #tpu.memory_space<vmem>>, %arg3: memref<1x8xf32, #tpu.memory_space<vmem>>, %arg4: memref<9x8x8xbf16, #tpu.memory_space<vmem>>, %arg5: memref<1x8xf32, #tpu.memory_space<vmem>>, %arg6: memref<1x64x8xf32, #tpu.memory_space<vmem>>, %arg7: memref<342x8xbf16, #tpu.memory_space<vmem>>, %arg8: memref<342x8xbf16, #tpu.memory_space<vmem>>, %arg9: memref<290x8xf32, #tpu.memory_space<vmem>>) attributes {dimension_semantics = [#tpu.dimension_semantics<parallel>], iteration_bounds = array<i64: 2>, scalar_prefetch = 0 : i64, scratch_operands = 3 : i64, tpu.core_type = #tpu.core_type<tc>, window_params = [{transform_indices = @transform_0, window_bounds = array<i64: 1, 342, 4>}, {pipeline_mode = #tpu.pipeline_mode<synchronous>, transform_indices = @transform_1, window_bounds = array<i64: 9, 4, 8>}, {pipeline_mode = #tpu.pipeline_mode<synchronous>, transform_indices = @transform_2, window_bounds = array<i64: 1, 8>}, {pipeline_mode = #tpu.pipeline_mode<synchronous>, transform_indices = @transform_3, window_bounds = array<i64: 9, 8, 8>}, {pipeline_mode = #tpu.pipeline_mode<synchronous>, transform_indices = @transform_4, window_bounds = array<i64: 1, 8>}, {transform_indices = @transform_5, window_bounds = array<i64: 1, 64, 8>}]} {
    %cst = arith.constant 0.000000e+00 : bf16
    %0 = vector.broadcast %cst : bf16 to vector<2x8xbf16>
    %cst_0 = arith.constant 0.000000e+00 : bf16
    %1 = vector.broadcast %cst_0 : bf16 to vector<19x8xbf16>
    %cst_1 = arith.constant 0.000000e+00 : bf16
    %2 = vector.broadcast %cst_1 : bf16 to vector<18x8xbf16>
    %c0 = arith.constant 0 : index
    %c0_2 = arith.constant 0 : index
    %3 = vector.load %arg7[%c0, %c0_2] : memref<342x8xbf16, #tpu.memory_space<vmem>>, vector<19x8xbf16>
    tpu.vector_store %arg7[%c0, %c0_2], %1 {strides = array<i32>} : memref<342x8xbf16, #tpu.memory_space<vmem>>, vector<19x8xbf16>,
    %c306 = arith.constant 306 : index
    %c0_3 = arith.constant 0 : index
    %4 = vector.load %arg7[%c306, %c0_3] : memref<342x8xbf16, #tpu.memory_space<vmem>>, vector<18x8xbf16>
    tpu.vector_store %arg7[%c306, %c0_3], %2 {strides = array<i32>} : memref<342x8xbf16, #tpu.memory_space<vmem>>, vector<18x8xbf16>,
    %cst_4 = arith.constant 0.000000e+00 : f32
    %5 = vector.broadcast %cst_4 : f32 to vector<288x8xf32>
    %c0_5 = arith.constant 0 : index
    %c0_6 = arith.constant 0 : index
    %c0_7 = arith.constant 0 : index
    %6 = vector.load %arg1[%c0_5, %c0_6, %c0_7] : memref<1x342x4xbf16, #tpu.memory_space<vmem>>, vector<1x288x4xbf16>
    %7 = vector.shape_cast %6 : vector<1x288x4xbf16> to vector<288x4xbf16>
    %c0_8 = arith.constant 0 : index
    %c0_9 = arith.constant 0 : index
    %c0_10 = arith.constant 0 : index
    %8 = vector.load %arg2[%c0_8, %c0_9, %c0_10] : memref<9x4x8xbf16, #tpu.memory_space<vmem>>, vector<1x4x8xbf16>
    %9 = vector.shape_cast %8 : vector<1x4x8xbf16> to vector<4x8xbf16>
    %cst_11 = arith.constant dense<0.000000e+00> : vector<288x8xf32>
    %10 = tpu.matmul %7, %9, %cst_11 {dimension_numbers = #tpu.dot_dimension_numbers<[1], [0], [0], [1], [0, 0, 1, 1], [], []>} : vector<288x4xbf16>, vector<4x8xbf16>, vector<288x8xf32> -> vector<288x8xf32>
    %11 = arith.addf %5, %10 : vector<288x8xf32>
    %c0_12 = arith.constant 0 : index
    %c1 = arith.constant 1 : index
    %c0_13 = arith.constant 0 : index
    %12 = vector.load %arg1[%c0_12, %c1, %c0_13] : memref<1x342x4xbf16, #tpu.memory_space<vmem>>, vector<1x288x4xbf16>
    %13 = vector.shape_cast %12 : vector<1x288x4xbf16> to vector<288x4xbf16>
    %c1_14 = arith.constant 1 : index
    %c0_15 = arith.constant 0 : index
    %c0_16 = arith.constant 0 : index
    %14 = vector.load %arg2[%c1_14, %c0_15, %c0_16] : memref<9x4x8xbf16, #tpu.memory_space<vmem>>, vector<1x4x8xbf16>
    %15 = vector.shape_cast %14 : vector<1x4x8xbf16> to vector<4x8xbf16>
    %cst_17 = arith.constant dense<0.000000e+00> : vector<288x8xf32>
    %16 = tpu.matmul %13, %15, %cst_17 {dimension_numbers = #tpu.dot_dimension_numbers<[1], [0], [0], [1], [0, 0, 1, 1], [], []>} : vector<288x4xbf16>, vector<4x8xbf16>, vector<288x8xf32> -> vector<288x8xf32>
    %17 = arith.addf %11, %16 : vector<288x8xf32>
    %c0_18 = arith.constant 0 : index
    %c2 = arith.constant 2 : index
    %c0_19 = arith.constant 0 : index
    %18 = vector.load %arg1[%c0_18, %c2, %c0_19] : memref<1x342x4xbf16, #tpu.memory_space<vmem>>, vector<1x288x4xbf16>
    %19 = vector.shape_cast %18 : vector<1x288x4xbf16> to vector<288x4xbf16>
    %c2_20 = arith.constant 2 : index
    %c0_21 = arith.constant 0 : index
    %c0_22 = arith.constant 0 : index
    %20 = vector.load %arg2[%c2_20, %c0_21, %c0_22] : memref<9x4x8xbf16, #tpu.memory_space<vmem>>, vector<1x4x8xbf16>
    %21 = vector.shape_cast %20 : vector<1x4x8xbf16> to vector<4x8xbf16>
    %cst_23 = arith.constant dense<0.000000e+00> : vector<288x8xf32>
    %22 = tpu.matmul %19, %21, %cst_23 {dimension_numbers = #tpu.dot_dimension_numbers<[1], [0], [0], [1], [0, 0, 1, 1], [], []>} : vector<288x4xbf16>, vector<4x8xbf16>, vector<288x8xf32> -> vector<288x8xf32>
    %23 = arith.addf %17, %22 : vector<288x8xf32>
    %c0_24 = arith.constant 0 : index
    %c18 = arith.constant 18 : index
    %c0_25 = arith.constant 0 : index
    %24 = vector.load %arg1[%c0_24, %c18, %c0_25] : memref<1x342x4xbf16, #tpu.memory_space<vmem>>, vector<1x288x4xbf16>
    %25 = vector.shape_cast %24 : vector<1x288x4xbf16> to vector<288x4xbf16>
    %c3 = arith.constant 3 : index
    %c0_26 = arith.constant 0 : index
    %c0_27 = arith.constant 0 : index
    %26 = vector.load %arg2[%c3, %c0_26, %c0_27] : memref<9x4x8xbf16, #tpu.memory_space<vmem>>, vector<1x4x8xbf16>
    %27 = vector.shape_cast %26 : vector<1x4x8xbf16> to vector<4x8xbf16>
    %cst_28 = arith.constant dense<0.000000e+00> : vector<288x8xf32>
    %28 = tpu.matmul %25, %27, %cst_28 {dimension_numbers = #tpu.dot_dimension_numbers<[1], [0], [0], [1], [0, 0, 1, 1], [], []>} : vector<288x4xbf16>, vector<4x8xbf16>, vector<288x8xf32> -> vector<288x8xf32>
    %29 = arith.addf %23, %28 : vector<288x8xf32>
    %c0_29 = arith.constant 0 : index
    %c19 = arith.constant 19 : index
    %c0_30 = arith.constant 0 : index
    %30 = vector.load %arg1[%c0_29, %c19, %c0_30] : memref<1x342x4xbf16, #tpu.memory_space<vmem>>, vector<1x288x4xbf16>
    %31 = vector.shape_cast %30 : vector<1x288x4xbf16> to vector<288x4xbf16>
    %c4 = arith.constant 4 : index
    %c0_31 = arith.constant 0 : index
    %c0_32 = arith.constant 0 : index
    %32 = vector.load %arg2[%c4, %c0_31, %c0_32] : memref<9x4x8xbf16, #tpu.memory_space<vmem>>, vector<1x4x8xbf16>
    %33 = vector.shape_cast %32 : vector<1x4x8xbf16> to vector<4x8xbf16>
    %cst_33 = arith.constant dense<0.000000e+00> : vector<288x8xf32>
    %34 = tpu.matmul %31, %33, %cst_33 {dimension_numbers = #tpu.dot_dimension_numbers<[1], [0], [0], [1], [0, 0, 1, 1], [], []>} : vector<288x4xbf16>, vector<4x8xbf16>, vector<288x8xf32> -> vector<288x8xf32>
    %35 = arith.addf %29, %34 : vector<288x8xf32>
    %c0_34 = arith.constant 0 : index
    %c20 = arith.constant 20 : index
    %c0_35 = arith.constant 0 : index
    %36 = vector.load %arg1[%c0_34, %c20, %c0_35] : memref<1x342x4xbf16, #tpu.memory_space<vmem>>, vector<1x288x4xbf16>
    %37 = vector.shape_cast %36 : vector<1x288x4xbf16> to vector<288x4xbf16>
    %c5 = arith.constant 5 : index
    %c0_36 = arith.constant 0 : index
    %c0_37 = arith.constant 0 : index
    %38 = vector.load %arg2[%c5, %c0_36, %c0_37] : memref<9x4x8xbf16, #tpu.memory_space<vmem>>, vector<1x4x8xbf16>
    %39 = vector.shape_cast %38 : vector<1x4x8xbf16> to vector<4x8xbf16>
    %cst_38 = arith.constant dense<0.000000e+00> : vector<288x8xf32>
    %40 = tpu.matmul %37, %39, %cst_38 {dimension_numbers = #tpu.dot_dimension_numbers<[1], [0], [0], [1], [0, 0, 1, 1], [], []>} : vector<288x4xbf16>, vector<4x8xbf16>, vector<288x8xf32> -> vector<288x8xf32>
    %41 = arith.addf %35, %40 : vector<288x8xf32>
    %c0_39 = arith.constant 0 : index
    %c36 = arith.constant 36 : index
    %c0_40 = arith.constant 0 : index
    %42 = vector.load %arg1[%c0_39, %c36, %c0_40] : memref<1x342x4xbf16, #tpu.memory_space<vmem>>, vector<1x288x4xbf16>
    %43 = vector.shape_cast %42 : vector<1x288x4xbf16> to vector<288x4xbf16>
    %c6 = arith.constant 6 : index
    %c0_41 = arith.constant 0 : index
    %c0_42 = arith.constant 0 : index
    %44 = vector.load %arg2[%c6, %c0_41, %c0_42] : memref<9x4x8xbf16, #tpu.memory_space<vmem>>, vector<1x4x8xbf16>
    %45 = vector.shape_cast %44 : vector<1x4x8xbf16> to vector<4x8xbf16>
    %cst_43 = arith.constant dense<0.000000e+00> : vector<288x8xf32>
    %46 = tpu.matmul %43, %45, %cst_43 {dimension_numbers = #tpu.dot_dimension_numbers<[1], [0], [0], [1], [0, 0, 1, 1], [], []>} : vector<288x4xbf16>, vector<4x8xbf16>, vector<288x8xf32> -> vector<288x8xf32>
    %47 = arith.addf %41, %46 : vector<288x8xf32>
    %c0_44 = arith.constant 0 : index
    %c37 = arith.constant 37 : index
    %c0_45 = arith.constant 0 : index
    %48 = vector.load %arg1[%c0_44, %c37, %c0_45] : memref<1x342x4xbf16, #tpu.memory_space<vmem>>, vector<1x288x4xbf16>
    %49 = vector.shape_cast %48 : vector<1x288x4xbf16> to vector<288x4xbf16>
    %c7 = arith.constant 7 : index
    %c0_46 = arith.constant 0 : index
    %c0_47 = arith.constant 0 : index
    %50 = vector.load %arg2[%c7, %c0_46, %c0_47] : memref<9x4x8xbf16, #tpu.memory_space<vmem>>, vector<1x4x8xbf16>
    %51 = vector.shape_cast %50 : vector<1x4x8xbf16> to vector<4x8xbf16>
    %cst_48 = arith.constant dense<0.000000e+00> : vector<288x8xf32>
    %52 = tpu.matmul %49, %51, %cst_48 {dimension_numbers = #tpu.dot_dimension_numbers<[1], [0], [0], [1], [0, 0, 1, 1], [], []>} : vector<288x4xbf16>, vector<4x8xbf16>, vector<288x8xf32> -> vector<288x8xf32>
    %53 = arith.addf %47, %52 : vector<288x8xf32>
    %c0_49 = arith.constant 0 : index
    %c38 = arith.constant 38 : index
    %c0_50 = arith.constant 0 : index
    %54 = vector.load %arg1[%c0_49, %c38, %c0_50] : memref<1x342x4xbf16, #tpu.memory_space<vmem>>, vector<1x288x4xbf16>
    %55 = vector.shape_cast %54 : vector<1x288x4xbf16> to vector<288x4xbf16>
    %c8 = arith.constant 8 : index
    %c0_51 = arith.constant 0 : index
    %c0_52 = arith.constant 0 : index
    %56 = vector.load %arg2[%c8, %c0_51, %c0_52] : memref<9x4x8xbf16, #tpu.memory_space<vmem>>, vector<1x4x8xbf16>
    %57 = vector.shape_cast %56 : vector<1x4x8xbf16> to vector<4x8xbf16>
    %cst_53 = arith.constant dense<0.000000e+00> : vector<288x8xf32>
    %58 = tpu.matmul %55, %57, %cst_53 {dimension_numbers = #tpu.dot_dimension_numbers<[1], [0], [0], [1], [0, 0, 1, 1], [], []>} : vector<288x4xbf16>, vector<4x8xbf16>, vector<288x8xf32> -> vector<288x8xf32>
    %59 = arith.addf %53, %58 : vector<288x8xf32>
    %c0_54 = arith.constant 0 : index
    %c0_55 = arith.constant 0 : index
    %60 = vector.load %arg3[%c0_54, %c0_55] : memref<1x8xf32, #tpu.memory_space<vmem>>, vector<1x8xf32>
    %61 = vector.broadcast %60 : vector<1x8xf32> to vector<288x8xf32>
    %62 = arith.addf %59, %61 : vector<288x8xf32>
    %cst_56 = arith.constant 0.000000e+00 : f32
    %63 = vector.broadcast %cst_56 : f32 to vector<288x8xf32>
    %64 = arith.cmpf ogt, %62, %63 : vector<288x8xf32>
    %cst_57 = arith.constant 2.000000e-01 : f32
    %65 = vector.broadcast %cst_57 : f32 to vector<288x8xf32>
    %66 = arith.mulf %65, %62 : vector<288x8xf32>
    %67 = arith.select %64, %62, %66 : vector<288x8xi1>, vector<288x8xf32>
    %68 = arith.truncf %67 : vector<288x8xf32> to vector<288x8xbf16>
    %c19_58 = arith.constant 19 : index
    %c0_59 = arith.constant 0 : index
    %69 = vector.load %arg7[%c19_58, %c0_59] : memref<342x8xbf16, #tpu.memory_space<vmem>>, vector<288x8xbf16>
    tpu.vector_store %arg7[%c19_58, %c0_59], %68 {strides = array<i32>} : memref<342x8xbf16, #tpu.memory_space<vmem>>, vector<288x8xbf16>,
    %c35 = arith.constant 35 : index
    %c0_60 = arith.constant 0 : index
    %70 = vector.load %arg7[%c35, %c0_60] : memref<342x8xbf16, #tpu.memory_space<vmem>>, vector<2x8xbf16>
    tpu.vector_store %arg7[%c35, %c0_60], %0 {strides = array<i32>} : memref<342x8xbf16, #tpu.memory_space<vmem>>, vector<2x8xbf16>,
    %c53 = arith.constant 53 : index
    %c0_61 = arith.constant 0 : index
    %71 = vector.load %arg7[%c53, %c0_61] : memref<342x8xbf16, #tpu.memory_space<vmem>>, vector<2x8xbf16>
    tpu.vector_store %arg7[%c53, %c0_61], %0 {strides = array<i32>} : memref<342x8xbf16, #tpu.memory_space<vmem>>, vector<2x8xbf16>,
    %c71 = arith.constant 71 : index
    %c0_62 = arith.constant 0 : index
    %72 = vector.load %arg7[%c71, %c0_62] : memref<342x8xbf16, #tpu.memory_space<vmem>>, vector<2x8xbf16>
    tpu.vector_store %arg7[%c71, %c0_62], %0 {strides = array<i32>} : memref<342x8xbf16, #tpu.memory_space<vmem>>, vector<2x8xbf16>,
    %c89 = arith.constant 89 : index
    %c0_63 = arith.constant 0 : index
    %73 = vector.load %arg7[%c89, %c0_63] : memref<342x8xbf16, #tpu.memory_space<vmem>>, vector<2x8xbf16>
    tpu.vector_store %arg7[%c89, %c0_63], %0 {strides = array<i32>} : memref<342x8xbf16, #tpu.memory_space<vmem>>, vector<2x8xbf16>,
    %c107 = arith.constant 107 : index
    %c0_64 = arith.constant 0 : index
    %74 = vector.load %arg7[%c107, %c0_64] : memref<342x8xbf16, #tpu.memory_space<vmem>>, vector<2x8xbf16>
    tpu.vector_store %arg7[%c107, %c0_64], %0 {strides = array<i32>} : memref<342x8xbf16, #tpu.memory_space<vmem>>, vector<2x8xbf16>,
    %c125 = arith.constant 125 : index
    %c0_65 = arith.constant 0 : index
    %75 = vector.load %arg7[%c125, %c0_65] : memref<342x8xbf16, #tpu.memory_space<vmem>>, vector<2x8xbf16>
    tpu.vector_store %arg7[%c125, %c0_65], %0 {strides = array<i32>} : memref<342x8xbf16, #tpu.memory_space<vmem>>, vector<2x8xbf16>,
    %c143 = arith.constant 143 : index
    %c0_66 = arith.constant 0 : index
    %76 = vector.load %arg7[%c143, %c0_66] : memref<342x8xbf16, #tpu.memory_space<vmem>>, vector<2x8xbf16>
    tpu.vector_store %arg7[%c143, %c0_66], %0 {strides = array<i32>} : memref<342x8xbf16, #tpu.memory_space<vmem>>, vector<2x8xbf16>,
    %c161 = arith.constant 161 : index
    %c0_67 = arith.constant 0 : index
    %77 = vector.load %arg7[%c161, %c0_67] : memref<342x8xbf16, #tpu.memory_space<vmem>>, vector<2x8xbf16>
    tpu.vector_store %arg7[%c161, %c0_67], %0 {strides = array<i32>} : memref<342x8xbf16, #tpu.memory_space<vmem>>, vector<2x8xbf16>,
    %c179 = arith.constant 179 : index
    %c0_68 = arith.constant 0 : index
    %78 = vector.load %arg7[%c179, %c0_68] : memref<342x8xbf16, #tpu.memory_space<vmem>>, vector<2x8xbf16>
    tpu.vector_store %arg7[%c179, %c0_68], %0 {strides = array<i32>} : memref<342x8xbf16, #tpu.memory_space<vmem>>, vector<2x8xbf16>,
    %c197 = arith.constant 197 : index
    %c0_69 = arith.constant 0 : index
    %79 = vector.load %arg7[%c197, %c0_69] : memref<342x8xbf16, #tpu.memory_space<vmem>>, vector<2x8xbf16>
    tpu.vector_store %arg7[%c197, %c0_69], %0 {strides = array<i32>} : memref<342x8xbf16, #tpu.memory_space<vmem>>, vector<2x8xbf16>,
    %c215 = arith.constant 215 : index
    %c0_70 = arith.constant 0 : index
    %80 = vector.load %arg7[%c215, %c0_70] : memref<342x8xbf16, #tpu.memory_space<vmem>>, vector<2x8xbf16>
    tpu.vector_store %arg7[%c215, %c0_70], %0 {strides = array<i32>} : memref<342x8xbf16, #tpu.memory_space<vmem>>, vector<2x8xbf16>,
    %c233 = arith.constant 233 : index
    %c0_71 = arith.constant 0 : index
    %81 = vector.load %arg7[%c233, %c0_71] : memref<342x8xbf16, #tpu.memory_space<vmem>>, vector<2x8xbf16>
    tpu.vector_store %arg7[%c233, %c0_71], %0 {strides = array<i32>} : memref<342x8xbf16, #tpu.memory_space<vmem>>, vector<2x8xbf16>,
    %c251 = arith.constant 251 : index
    %c0_72 = arith.constant 0 : index
    %82 = vector.load %arg7[%c251, %c0_72] : memref<342x8xbf16, #tpu.memory_space<vmem>>, vector<2x8xbf16>
    tpu.vector_store %arg7[%c251, %c0_72], %0 {strides = array<i32>} : memref<342x8xbf16, #tpu.memory_space<vmem>>, vector<2x8xbf16>,
    %c269 = arith.constant 269 : index
    %c0_73 = arith.constant 0 : index
    %83 = vector.load %arg7[%c269, %c0_73] : memref<342x8xbf16, #tpu.memory_space<vmem>>, vector<2x8xbf16>
    tpu.vector_store %arg7[%c269, %c0_73], %0 {strides = array<i32>} : memref<342x8xbf16, #tpu.memory_space<vmem>>, vector<2x8xbf16>,
    %c287 = arith.constant 287 : index
    %c0_74 = arith.constant 0 : index
    %84 = vector.load %arg7[%c287, %c0_74] : memref<342x8xbf16, #tpu.memory_space<vmem>>, vector<2x8xbf16>
    tpu.vector_store %arg7[%c287, %c0_74], %0 {strides = array<i32>} : memref<342x8xbf16, #tpu.memory_space<vmem>>, vector<2x8xbf16>,
    %c305 = arith.constant 305 : index
    %c0_75 = arith.constant 0 : index
    %85 = vector.load %arg7[%c305, %c0_75] : memref<342x8xbf16, #tpu.memory_space<vmem>>, vector<2x8xbf16>
    tpu.vector_store %arg7[%c305, %c0_75], %0 {strides = array<i32>} : memref<342x8xbf16, #tpu.memory_space<vmem>>, vector<2x8xbf16>,
    %c0_76 = arith.constant 0 : index
    %c0_77 = arith.constant 0 : index
    %86 = vector.load %arg8[%c0_76, %c0_77] : memref<342x8xbf16, #tpu.memory_space<vmem>>, vector<19x8xbf16>
    tpu.vector_store %arg8[%c0_76, %c0_77], %1 {strides = array<i32>} : memref<342x8xbf16, #tpu.memory_space<vmem>>, vector<19x8xbf16>,
    %c306_78 = arith.constant 306 : index
    %c0_79 = arith.constant 0 : index
    %87 = vector.load %arg8[%c306_78, %c0_79] : memref<342x8xbf16, #tpu.memory_space<vmem>>, vector<18x8xbf16>
    tpu.vector_store %arg8[%c306_78, %c0_79], %2 {strides = array<i32>} : memref<342x8xbf16, #tpu.memory_space<vmem>>, vector<18x8xbf16>,
    %c0_80 = arith.constant 0 : index
    %c0_81 = arith.constant 0 : index
    %88 = vector.load %arg7[%c0_80, %c0_81] : memref<342x8xbf16, #tpu.memory_space<vmem>>, vector<290x8xbf16>
    %89 = arith.extf %88 : vector<290x8xbf16> to vector<290x8xf32>
    %c18_82 = arith.constant 18 : index
    %c0_83 = arith.constant 0 : index
    %90 = vector.load %arg7[%c18_82, %c0_83] : memref<342x8xbf16, #tpu.memory_space<vmem>>, vector<290x8xbf16>
    %91 = arith.extf %90 : vector<290x8xbf16> to vector<290x8xf32>
    %cst_84 = arith.constant 2.000000e+00 : f32
    %92 = vector.broadcast %cst_84 : f32 to vector<290x8xf32>
    %93 = arith.mulf %92, %91 : vector<290x8xf32>
    %94 = arith.addf %89, %93 : vector<290x8xf32>
    %c36_85 = arith.constant 36 : index
    %c0_86 = arith.constant 0 : index
    %95 = vector.load %arg7[%c36_85, %c0_86] : memref<342x8xbf16, #tpu.memory_space<vmem>>, vector<290x8xbf16>
    %96 = arith.extf %95 : vector<290x8xbf16> to vector<290x8xf32>
    %97 = arith.addf %94, %96 : vector<290x8xf32>
    %c0_87 = arith.constant 0 : index
    %c0_88 = arith.constant 0 : index
    %98 = vector.load %arg9[%c0_87, %c0_88] : memref<290x8xf32, #tpu.memory_space<vmem>>, vector<290x8xf32>
    tpu.vector_store %arg9[%c0_87, %c0_88], %97 {strides = array<i32>} : memref<290x8xf32, #tpu.memory_space<vmem>>, vector<290x8xf32>,
    %c0_89 = arith.constant 0 : index
    %c0_90 = arith.constant 0 : index
    %99 = vector.load %arg9[%c0_89, %c0_90] : memref<290x8xf32, #tpu.memory_space<vmem>>, vector<288x8xf32>
    %c1_91 = arith.constant 1 : index
    %c0_92 = arith.constant 0 : index
    %100 = vector.load %arg9[%c1_91, %c0_92] : memref<290x8xf32, #tpu.memory_space<vmem>>, vector<288x8xf32>
    %cst_93 = arith.constant 2.000000e+00 : f32
    %101 = vector.broadcast %cst_93 : f32 to vector<288x8xf32>
    %102 = arith.mulf %101, %100 : vector<288x8xf32>
    %103 = arith.addf %99, %102 : vector<288x8xf32>
    %c2_94 = arith.constant 2 : index
    %c0_95 = arith.constant 0 : index
    %104 = vector.load %arg9[%c2_94, %c0_95] : memref<290x8xf32, #tpu.memory_space<vmem>>, vector<288x8xf32>
    %105 = arith.addf %103, %104 : vector<288x8xf32>
    %106 = arith.truncf %105 : vector<288x8xf32> to vector<288x8xbf16>
    %c19_96 = arith.constant 19 : index
    %c0_97 = arith.constant 0 : index
    %107 = vector.load %arg8[%c19_96, %c0_97] : memref<342x8xbf16, #tpu.memory_space<vmem>>, vector<288x8xbf16>
    tpu.vector_store %arg8[%c19_96, %c0_97], %106 {strides = array<i32>} : memref<342x8xbf16, #tpu.memory_space<vmem>>, vector<288x8xbf16>,
    %c35_98 = arith.constant 35 : index
    %c0_99 = arith.constant 0 : index
    %108 = vector.load %arg8[%c35_98, %c0_99] : memref<342x8xbf16, #tpu.memory_space<vmem>>, vector<2x8xbf16>
    tpu.vector_store %arg8[%c35_98, %c0_99], %0 {strides = array<i32>} : memref<342x8xbf16, #tpu.memory_space<vmem>>, vector<2x8xbf16>,
    %c53_100 = arith.constant 53 : index
    %c0_101 = arith.constant 0 : index
    %109 = vector.load %arg8[%c53_100, %c0_101] : memref<342x8xbf16, #tpu.memory_space<vmem>>, vector<2x8xbf16>
    tpu.vector_store %arg8[%c53_100, %c0_101], %0 {strides = array<i32>} : memref<342x8xbf16, #tpu.memory_space<vmem>>, vector<2x8xbf16>,
    %c71_102 = arith.constant 71 : index
    %c0_103 = arith.constant 0 : index
    %110 = vector.load %arg8[%c71_102, %c0_103] : memref<342x8xbf16, #tpu.memory_space<vmem>>, vector<2x8xbf16>
    tpu.vector_store %arg8[%c71_102, %c0_103], %0 {strides = array<i32>} : memref<342x8xbf16, #tpu.memory_space<vmem>>, vector<2x8xbf16>,
    %c89_104 = arith.constant 89 : index
    %c0_105 = arith.constant 0 : index
    %111 = vector.load %arg8[%c89_104, %c0_105] : memref<342x8xbf16, #tpu.memory_space<vmem>>, vector<2x8xbf16>
    tpu.vector_store %arg8[%c89_104, %c0_105], %0 {strides = array<i32>} : memref<342x8xbf16, #tpu.memory_space<vmem>>, vector<2x8xbf16>,
    %c107_106 = arith.constant 107 : index
    %c0_107 = arith.constant 0 : index
    %112 = vector.load %arg8[%c107_106, %c0_107] : memref<342x8xbf16, #tpu.memory_space<vmem>>, vector<2x8xbf16>
    tpu.vector_store %arg8[%c107_106, %c0_107], %0 {strides = array<i32>} : memref<342x8xbf16, #tpu.memory_space<vmem>>, vector<2x8xbf16>,
    %c125_108 = arith.constant 125 : index
    %c0_109 = arith.constant 0 : index
    %113 = vector.load %arg8[%c125_108, %c0_109] : memref<342x8xbf16, #tpu.memory_space<vmem>>, vector<2x8xbf16>
    tpu.vector_store %arg8[%c125_108, %c0_109], %0 {strides = array<i32>} : memref<342x8xbf16, #tpu.memory_space<vmem>>, vector<2x8xbf16>,
    %c143_110 = arith.constant 143 : index
    %c0_111 = arith.constant 0 : index
    %114 = vector.load %arg8[%c143_110, %c0_111] : memref<342x8xbf16, #tpu.memory_space<vmem>>, vector<2x8xbf16>
    tpu.vector_store %arg8[%c143_110, %c0_111], %0 {strides = array<i32>} : memref<342x8xbf16, #tpu.memory_space<vmem>>, vector<2x8xbf16>,
    %c161_112 = arith.constant 161 : index
    %c0_113 = arith.constant 0 : index
    %115 = vector.load %arg8[%c161_112, %c0_113] : memref<342x8xbf16, #tpu.memory_space<vmem>>, vector<2x8xbf16>
    tpu.vector_store %arg8[%c161_112, %c0_113], %0 {strides = array<i32>} : memref<342x8xbf16, #tpu.memory_space<vmem>>, vector<2x8xbf16>,
    %c179_114 = arith.constant 179 : index
    %c0_115 = arith.constant 0 : index
    %116 = vector.load %arg8[%c179_114, %c0_115] : memref<342x8xbf16, #tpu.memory_space<vmem>>, vector<2x8xbf16>
    tpu.vector_store %arg8[%c179_114, %c0_115], %0 {strides = array<i32>} : memref<342x8xbf16, #tpu.memory_space<vmem>>, vector<2x8xbf16>,
    %c197_116 = arith.constant 197 : index
    %c0_117 = arith.constant 0 : index
    %117 = vector.load %arg8[%c197_116, %c0_117] : memref<342x8xbf16, #tpu.memory_space<vmem>>, vector<2x8xbf16>
    tpu.vector_store %arg8[%c197_116, %c0_117], %0 {strides = array<i32>} : memref<342x8xbf16, #tpu.memory_space<vmem>>, vector<2x8xbf16>,
    %c215_118 = arith.constant 215 : index
    %c0_119 = arith.constant 0 : index
    %118 = vector.load %arg8[%c215_118, %c0_119] : memref<342x8xbf16, #tpu.memory_space<vmem>>, vector<2x8xbf16>
    tpu.vector_store %arg8[%c215_118, %c0_119], %0 {strides = array<i32>} : memref<342x8xbf16, #tpu.memory_space<vmem>>, vector<2x8xbf16>,
    %c233_120 = arith.constant 233 : index
    %c0_121 = arith.constant 0 : index
    %119 = vector.load %arg8[%c233_120, %c0_121] : memref<342x8xbf16, #tpu.memory_space<vmem>>, vector<2x8xbf16>
    tpu.vector_store %arg8[%c233_120, %c0_121], %0 {strides = array<i32>} : memref<342x8xbf16, #tpu.memory_space<vmem>>, vector<2x8xbf16>,
    %c251_122 = arith.constant 251 : index
    %c0_123 = arith.constant 0 : index
    %120 = vector.load %arg8[%c251_122, %c0_123] : memref<342x8xbf16, #tpu.memory_space<vmem>>, vector<2x8xbf16>
    tpu.vector_store %arg8[%c251_122, %c0_123], %0 {strides = array<i32>} : memref<342x8xbf16, #tpu.memory_space<vmem>>, vector<2x8xbf16>,
    %c269_124 = arith.constant 269 : index
    %c0_125 = arith.constant 0 : index
    %121 = vector.load %arg8[%c269_124, %c0_125] : memref<342x8xbf16, #tpu.memory_space<vmem>>, vector<2x8xbf16>
    tpu.vector_store %arg8[%c269_124, %c0_125], %0 {strides = array<i32>} : memref<342x8xbf16, #tpu.memory_space<vmem>>, vector<2x8xbf16>,
    %c287_126 = arith.constant 287 : index
    %c0_127 = arith.constant 0 : index
    %122 = vector.load %arg8[%c287_126, %c0_127] : memref<342x8xbf16, #tpu.memory_space<vmem>>, vector<2x8xbf16>
    tpu.vector_store %arg8[%c287_126, %c0_127], %0 {strides = array<i32>} : memref<342x8xbf16, #tpu.memory_space<vmem>>, vector<2x8xbf16>,
    %c305_128 = arith.constant 305 : index
    %c0_129 = arith.constant 0 : index
    %123 = vector.load %arg8[%c305_128, %c0_129] : memref<342x8xbf16, #tpu.memory_space<vmem>>, vector<2x8xbf16>
    tpu.vector_store %arg8[%c305_128, %c0_129], %0 {strides = array<i32>} : memref<342x8xbf16, #tpu.memory_space<vmem>>, vector<2x8xbf16>,
    %cst_130 = arith.constant 0.000000e+00 : f32
    %124 = vector.broadcast %cst_130 : f32 to vector<288x8xf32>
    %c0_131 = arith.constant 0 : index
    %c0_132 = arith.constant 0 : index
    %125 = vector.load %arg8[%c0_131, %c0_132] : memref<342x8xbf16, #tpu.memory_space<vmem>>, vector<288x8xbf16>
    %c0_133 = arith.constant 0 : index
    %c0_134 = arith.constant 0 : index
    %c0_135 = arith.constant 0 : index
    %126 = vector.load %arg4[%c0_133, %c0_134, %c0_135] : memref<9x8x8xbf16, #tpu.memory_space<vmem>>, vector<1x8x8xbf16>
    %127 = vector.shape_cast %126 : vector<1x8x8xbf16> to vector<8x8xbf16>
    %cst_136 = arith.constant dense<0.000000e+00> : vector<288x8xf32>
    %128 = tpu.matmul %125, %127, %cst_136 {dimension_numbers = #tpu.dot_dimension_numbers<[1], [0], [0], [1], [0, 0, 1, 1], [], []>} : vector<288x8xbf16>, vector<8x8xbf16>, vector<288x8xf32> -> vector<288x8xf32>
    %129 = arith.addf %124, %128 : vector<288x8xf32>
    %c1_137 = arith.constant 1 : index
    %c0_138 = arith.constant 0 : index
    %130 = vector.load %arg8[%c1_137, %c0_138] : memref<342x8xbf16, #tpu.memory_space<vmem>>, vector<288x8xbf16>
    %c1_139 = arith.constant 1 : index
    %c0_140 = arith.constant 0 : index
    %c0_141 = arith.constant 0 : index
    %131 = vector.load %arg4[%c1_139, %c0_140, %c0_141] : memref<9x8x8xbf16, #tpu.memory_space<vmem>>, vector<1x8x8xbf16>
    %132 = vector.shape_cast %131 : vector<1x8x8xbf16> to vector<8x8xbf16>
    %cst_142 = arith.constant dense<0.000000e+00> : vector<288x8xf32>
    %133 = tpu.matmul %130, %132, %cst_142 {dimension_numbers = #tpu.dot_dimension_numbers<[1], [0], [0], [1], [0, 0, 1, 1], [], []>} : vector<288x8xbf16>, vector<8x8xbf16>, vector<288x8xf32> -> vector<288x8xf32>
    %134 = arith.addf %129, %133 : vector<288x8xf32>
    %c2_143 = arith.constant 2 : index
    %c0_144 = arith.constant 0 : index
    %135 = vector.load %arg8[%c2_143, %c0_144] : memref<342x8xbf16, #tpu.memory_space<vmem>>, vector<288x8xbf16>
    %c2_145 = arith.constant 2 : index
    %c0_146 = arith.constant 0 : index
    %c0_147 = arith.constant 0 : index
    %136 = vector.load %arg4[%c2_145, %c0_146, %c0_147] : memref<9x8x8xbf16, #tpu.memory_space<vmem>>, vector<1x8x8xbf16>
    %137 = vector.shape_cast %136 : vector<1x8x8xbf16> to vector<8x8xbf16>
    %cst_148 = arith.constant dense<0.000000e+00> : vector<288x8xf32>
    %138 = tpu.matmul %135, %137, %cst_148 {dimension_numbers = #tpu.dot_dimension_numbers<[1], [0], [0], [1], [0, 0, 1, 1], [], []>} : vector<288x8xbf16>, vector<8x8xbf16>, vector<288x8xf32> -> vector<288x8xf32>
    %139 = arith.addf %134, %138 : vector<288x8xf32>
    %c18_149 = arith.constant 18 : index
    %c0_150 = arith.constant 0 : index
    %140 = vector.load %arg8[%c18_149, %c0_150] : memref<342x8xbf16, #tpu.memory_space<vmem>>, vector<288x8xbf16>
    %c3_151 = arith.constant 3 : index
    %c0_152 = arith.constant 0 : index
    %c0_153 = arith.constant 0 : index
    %141 = vector.load %arg4[%c3_151, %c0_152, %c0_153] : memref<9x8x8xbf16, #tpu.memory_space<vmem>>, vector<1x8x8xbf16>
    %142 = vector.shape_cast %141 : vector<1x8x8xbf16> to vector<8x8xbf16>
    %cst_154 = arith.constant dense<0.000000e+00> : vector<288x8xf32>
    %143 = tpu.matmul %140, %142, %cst_154 {dimension_numbers = #tpu.dot_dimension_numbers<[1], [0], [0], [1], [0, 0, 1, 1], [], []>} : vector<288x8xbf16>, vector<8x8xbf16>, vector<288x8xf32> -> vector<288x8xf32>
    %144 = arith.addf %139, %143 : vector<288x8xf32>
    %c19_155 = arith.constant 19 : index
    %c0_156 = arith.constant 0 : index
    %145 = vector.load %arg8[%c19_155, %c0_156] : memref<342x8xbf16, #tpu.memory_space<vmem>>, vector<288x8xbf16>
    %c4_157 = arith.constant 4 : index
    %c0_158 = arith.constant 0 : index
    %c0_159 = arith.constant 0 : index
    %146 = vector.load %arg4[%c4_157, %c0_158, %c0_159] : memref<9x8x8xbf16, #tpu.memory_space<vmem>>, vector<1x8x8xbf16>
    %147 = vector.shape_cast %146 : vector<1x8x8xbf16> to vector<8x8xbf16>
    %cst_160 = arith.constant dense<0.000000e+00> : vector<288x8xf32>
    %148 = tpu.matmul %145, %147, %cst_160 {dimension_numbers = #tpu.dot_dimension_numbers<[1], [0], [0], [1], [0, 0, 1, 1], [], []>} : vector<288x8xbf16>, vector<8x8xbf16>, vector<288x8xf32> -> vector<288x8xf32>
    %149 = arith.addf %144, %148 : vector<288x8xf32>
    %c20_161 = arith.constant 20 : index
    %c0_162 = arith.constant 0 : index
    %150 = vector.load %arg8[%c20_161, %c0_162] : memref<342x8xbf16, #tpu.memory_space<vmem>>, vector<288x8xbf16>
    %c5_163 = arith.constant 5 : index
    %c0_164 = arith.constant 0 : index
    %c0_165 = arith.constant 0 : index
    %151 = vector.load %arg4[%c5_163, %c0_164, %c0_165] : memref<9x8x8xbf16, #tpu.memory_space<vmem>>, vector<1x8x8xbf16>
    %152 = vector.shape_cast %151 : vector<1x8x8xbf16> to vector<8x8xbf16>
    %cst_166 = arith.constant dense<0.000000e+00> : vector<288x8xf32>
    %153 = tpu.matmul %150, %152, %cst_166 {dimension_numbers = #tpu.dot_dimension_numbers<[1], [0], [0], [1], [0, 0, 1, 1], [], []>} : vector<288x8xbf16>, vector<8x8xbf16>, vector<288x8xf32> -> vector<288x8xf32>
    %154 = arith.addf %149, %153 : vector<288x8xf32>
    %c36_167 = arith.constant 36 : index
    %c0_168 = arith.constant 0 : index
    %155 = vector.load %arg8[%c36_167, %c0_168] : memref<342x8xbf16, #tpu.memory_space<vmem>>, vector<288x8xbf16>
    %c6_169 = arith.constant 6 : index
    %c0_170 = arith.constant 0 : index
    %c0_171 = arith.constant 0 : index
    %156 = vector.load %arg4[%c6_169, %c0_170, %c0_171] : memref<9x8x8xbf16, #tpu.memory_space<vmem>>, vector<1x8x8xbf16>
    %157 = vector.shape_cast %156 : vector<1x8x8xbf16> to vector<8x8xbf16>
    %cst_172 = arith.constant dense<0.000000e+00> : vector<288x8xf32>
    %158 = tpu.matmul %155, %157, %cst_172 {dimension_numbers = #tpu.dot_dimension_numbers<[1], [0], [0], [1], [0, 0, 1, 1], [], []>} : vector<288x8xbf16>, vector<8x8xbf16>, vector<288x8xf32> -> vector<288x8xf32>
    %159 = arith.addf %154, %158 : vector<288x8xf32>
    %c37_173 = arith.constant 37 : index
    %c0_174 = arith.constant 0 : index
    %160 = vector.load %arg8[%c37_173, %c0_174] : memref<342x8xbf16, #tpu.memory_space<vmem>>, vector<288x8xbf16>
    %c7_175 = arith.constant 7 : index
    %c0_176 = arith.constant 0 : index
    %c0_177 = arith.constant 0 : index
    %161 = vector.load %arg4[%c7_175, %c0_176, %c0_177] : memref<9x8x8xbf16, #tpu.memory_space<vmem>>, vector<1x8x8xbf16>
    %162 = vector.shape_cast %161 : vector<1x8x8xbf16> to vector<8x8xbf16>
    %cst_178 = arith.constant dense<0.000000e+00> : vector<288x8xf32>
    %163 = tpu.matmul %160, %162, %cst_178 {dimension_numbers = #tpu.dot_dimension_numbers<[1], [0], [0], [1], [0, 0, 1, 1], [], []>} : vector<288x8xbf16>, vector<8x8xbf16>, vector<288x8xf32> -> vector<288x8xf32>
    %164 = arith.addf %159, %163 : vector<288x8xf32>
    %c38_179 = arith.constant 38 : index
    %c0_180 = arith.constant 0 : index
    %165 = vector.load %arg8[%c38_179, %c0_180] : memref<342x8xbf16, #tpu.memory_space<vmem>>, vector<288x8xbf16>
    %c8_181 = arith.constant 8 : index
    %c0_182 = arith.constant 0 : index
    %c0_183 = arith.constant 0 : index
    %166 = vector.load %arg4[%c8_181, %c0_182, %c0_183] : memref<9x8x8xbf16, #tpu.memory_space<vmem>>, vector<1x8x8xbf16>
    %167 = vector.shape_cast %166 : vector<1x8x8xbf16> to vector<8x8xbf16>
    %cst_184 = arith.constant dense<0.000000e+00> : vector<288x8xf32>
    %168 = tpu.matmul %165, %167, %cst_184 {dimension_numbers = #tpu.dot_dimension_numbers<[1], [0], [0], [1], [0, 0, 1, 1], [], []>} : vector<288x8xbf16>, vector<8x8xbf16>, vector<288x8xf32> -> vector<288x8xf32>
    %169 = arith.addf %164, %168 : vector<288x8xf32>
    %c0_185 = arith.constant 0 : index
    %c0_186 = arith.constant 0 : index
    %170 = vector.load %arg5[%c0_185, %c0_186] : memref<1x8xf32, #tpu.memory_space<vmem>>, vector<1x8xf32>
    %171 = vector.broadcast %170 : vector<1x8xf32> to vector<288x8xf32>
    %172 = arith.addf %169, %171 : vector<288x8xf32>
    %cst_187 = arith.constant 0.000000e+00 : f32
    %173 = vector.broadcast %cst_187 : f32 to vector<288x8xf32>
    %174 = arith.cmpf ogt, %172, %173 : vector<288x8xf32>
    %cst_188 = arith.constant 2.000000e-01 : f32
    %175 = vector.broadcast %cst_188 : f32 to vector<288x8xf32>
    %176 = arith.mulf %175, %172 : vector<288x8xf32>
    %177 = arith.select %174, %172, %176 : vector<288x8xi1>, vector<288x8xf32>
    %c0_189 = arith.constant 0 : index
    %c0_190 = arith.constant 0 : index
    %178 = vector.load %arg9[%c0_189, %c0_190] : memref<290x8xf32, #tpu.memory_space<vmem>>, vector<288x8xf32>
    tpu.vector_store %arg9[%c0_189, %c0_190], %177 {strides = array<i32>} : memref<290x8xf32, #tpu.memory_space<vmem>>, vector<288x8xf32>,
    %c0_191 = arith.constant 0 : index
    %c0_192 = arith.constant 0 : index
    %179 = tpu.strided_load %arg9[%c0_191, %c0_192] {strides = array<i32: 2, 1>} : memref<290x8xf32, #tpu.memory_space<vmem>>, vector<8x8xf32>
    %c1_193 = arith.constant 1 : index
    %c0_194 = arith.constant 0 : index
    %180 = tpu.strided_load %arg9[%c1_193, %c0_194] {strides = array<i32: 2, 1>} : memref<290x8xf32, #tpu.memory_space<vmem>>, vector<8x8xf32>
    %181 = arith.addf %179, %180 : vector<8x8xf32>
    %c18_195 = arith.constant 18 : index
    %c0_196 = arith.constant 0 : index
    %182 = tpu.strided_load %arg9[%c18_195, %c0_196] {strides = array<i32: 2, 1>} : memref<290x8xf32, #tpu.memory_space<vmem>>, vector<8x8xf32>
    %183 = arith.addf %181, %182 : vector<8x8xf32>
    %c19_197 = arith.constant 19 : index
    %c0_198 = arith.constant 0 : index
    %184 = tpu.strided_load %arg9[%c19_197, %c0_198] {strides = array<i32: 2, 1>} : memref<290x8xf32, #tpu.memory_space<vmem>>, vector<8x8xf32>
    %185 = arith.addf %183, %184 : vector<8x8xf32>
    %cst_199 = arith.constant 2.500000e-01 : f32
    %186 = vector.broadcast %cst_199 : f32 to vector<8x8xf32>
    %187 = arith.mulf %186, %185 : vector<8x8xf32>
    %c0_200 = arith.constant 0 : index
    %c0_201 = arith.constant 0 : index
    %c0_202 = arith.constant 0 : index
    %188 = vector.load %arg6[%c0_200, %c0_201, %c0_202] : memref<1x64x8xf32, #tpu.memory_space<vmem>>, vector<1x8x8xf32>
    %189 = vector.shape_cast %188 : vector<1x8x8xf32> to vector<8x8xf32>
    %190 = vector.shape_cast %187 : vector<8x8xf32> to vector<1x8x8xf32>
    tpu.vector_store %arg6[%c0_200, %c0_201, %c0_202], %190 {strides = array<i32>} : memref<1x64x8xf32, #tpu.memory_space<vmem>>, vector<1x8x8xf32>,
    %c36_203 = arith.constant 36 : index
    %c0_204 = arith.constant 0 : index
    %191 = tpu.strided_load %arg9[%c36_203, %c0_204] {strides = array<i32: 2, 1>} : memref<290x8xf32, #tpu.memory_space<vmem>>, vector<8x8xf32>
    %c37_205 = arith.constant 37 : index
    %c0_206 = arith.constant 0 : index
    %192 = tpu.strided_load %arg9[%c37_205, %c0_206] {strides = array<i32: 2, 1>} : memref<290x8xf32, #tpu.memory_space<vmem>>, vector<8x8xf32>
    %193 = arith.addf %191, %192 : vector<8x8xf32>
    %c54 = arith.constant 54 : index
    %c0_207 = arith.constant 0 : index
    %194 = tpu.strided_load %arg9[%c54, %c0_207] {strides = array<i32: 2, 1>} : memref<290x8xf32, #tpu.memory_space<vmem>>, vector<8x8xf32>
    %195 = arith.addf %193, %194 : vector<8x8xf32>
    %c55 = arith.constant 55 : index
    %c0_208 = arith.constant 0 : index
    %196 = tpu.strided_load %arg9[%c55, %c0_208] {strides = array<i32: 2, 1>} : memref<290x8xf32, #tpu.memory_space<vmem>>, vector<8x8xf32>
    %197 = arith.addf %195, %196 : vector<8x8xf32>
    %cst_209 = arith.constant 2.500000e-01 : f32
    %198 = vector.broadcast %cst_209 : f32 to vector<8x8xf32>
    %199 = arith.mulf %198, %197 : vector<8x8xf32>
    %c0_210 = arith.constant 0 : index
    %c8_211 = arith.constant 8 : index
    %c0_212 = arith.constant 0 : index
    %200 = vector.load %arg6[%c0_210, %c8_211, %c0_212] : memref<1x64x8xf32, #tpu.memory_space<vmem>>, vector<1x8x8xf32>
    %201 = vector.shape_cast %200 : vector<1x8x8xf32> to vector<8x8xf32>
    %202 = vector.shape_cast %199 : vector<8x8xf32> to vector<1x8x8xf32>
    tpu.vector_store %arg6[%c0_210, %c8_211, %c0_212], %202 {strides = array<i32>} : memref<1x64x8xf32, #tpu.memory_space<vmem>>, vector<1x8x8xf32>,
    %c72 = arith.constant 72 : index
    %c0_213 = arith.constant 0 : index
    %203 = tpu.strided_load %arg9[%c72, %c0_213] {strides = array<i32: 2, 1>} : memref<290x8xf32, #tpu.memory_space<vmem>>, vector<8x8xf32>
    %c73 = arith.constant 73 : index
    %c0_214 = arith.constant 0 : index
    %204 = tpu.strided_load %arg9[%c73, %c0_214] {strides = array<i32: 2, 1>} : memref<290x8xf32, #tpu.memory_space<vmem>>, vector<8x8xf32>
    %205 = arith.addf %203, %204 : vector<8x8xf32>
    %c90 = arith.constant 90 : index
    %c0_215 = arith.constant 0 : index
    %206 = tpu.strided_load %arg9[%c90, %c0_215] {strides = array<i32: 2, 1>} : memref<290x8xf32, #tpu.memory_space<vmem>>, vector<8x8xf32>
    %207 = arith.addf %205, %206 : vector<8x8xf32>
    %c91 = arith.constant 91 : index
    %c0_216 = arith.constant 0 : index
    %208 = tpu.strided_load %arg9[%c91, %c0_216] {strides = array<i32: 2, 1>} : memref<290x8xf32, #tpu.memory_space<vmem>>, vector<8x8xf32>
    %209 = arith.addf %207, %208 : vector<8x8xf32>
    %cst_217 = arith.constant 2.500000e-01 : f32
    %210 = vector.broadcast %cst_217 : f32 to vector<8x8xf32>
    %211 = arith.mulf %210, %209 : vector<8x8xf32>
    %c0_218 = arith.constant 0 : index
    %c16 = arith.constant 16 : index
    %c0_219 = arith.constant 0 : index
    %212 = vector.load %arg6[%c0_218, %c16, %c0_219] : memref<1x64x8xf32, #tpu.memory_space<vmem>>, vector<1x8x8xf32>
    %213 = vector.shape_cast %212 : vector<1x8x8xf32> to vector<8x8xf32>
    %214 = vector.shape_cast %211 : vector<8x8xf32> to vector<1x8x8xf32>
    tpu.vector_store %arg6[%c0_218, %c16, %c0_219], %214 {strides = array<i32>} : memref<1x64x8xf32, #tpu.memory_space<vmem>>, vector<1x8x8xf32>,
    %c108 = arith.constant 108 : index
    %c0_220 = arith.constant 0 : index
    %215 = tpu.strided_load %arg9[%c108, %c0_220] {strides = array<i32: 2, 1>} : memref<290x8xf32, #tpu.memory_space<vmem>>, vector<8x8xf32>
    %c109 = arith.constant 109 : index
    %c0_221 = arith.constant 0 : index
    %216 = tpu.strided_load %arg9[%c109, %c0_221] {strides = array<i32: 2, 1>} : memref<290x8xf32, #tpu.memory_space<vmem>>, vector<8x8xf32>
    %217 = arith.addf %215, %216 : vector<8x8xf32>
    %c126 = arith.constant 126 : index
    %c0_222 = arith.constant 0 : index
    %218 = tpu.strided_load %arg9[%c126, %c0_222] {strides = array<i32: 2, 1>} : memref<290x8xf32, #tpu.memory_space<vmem>>, vector<8x8xf32>
    %219 = arith.addf %217, %218 : vector<8x8xf32>
    %c127 = arith.constant 127 : index
    %c0_223 = arith.constant 0 : index
    %220 = tpu.strided_load %arg9[%c127, %c0_223] {strides = array<i32: 2, 1>} : memref<290x8xf32, #tpu.memory_space<vmem>>, vector<8x8xf32>
    %221 = arith.addf %219, %220 : vector<8x8xf32>
    %cst_224 = arith.constant 2.500000e-01 : f32
    %222 = vector.broadcast %cst_224 : f32 to vector<8x8xf32>
    %223 = arith.mulf %222, %221 : vector<8x8xf32>
    %c0_225 = arith.constant 0 : index
    %c24 = arith.constant 24 : index
    %c0_226 = arith.constant 0 : index
    %224 = vector.load %arg6[%c0_225, %c24, %c0_226] : memref<1x64x8xf32, #tpu.memory_space<vmem>>, vector<1x8x8xf32>
    %225 = vector.shape_cast %224 : vector<1x8x8xf32> to vector<8x8xf32>
    %226 = vector.shape_cast %223 : vector<8x8xf32> to vector<1x8x8xf32>
    tpu.vector_store %arg6[%c0_225, %c24, %c0_226], %226 {strides = array<i32>} : memref<1x64x8xf32, #tpu.memory_space<vmem>>, vector<1x8x8xf32>,
    %c144 = arith.constant 144 : index
    %c0_227 = arith.constant 0 : index
    %227 = tpu.strided_load %arg9[%c144, %c0_227] {strides = array<i32: 2, 1>} : memref<290x8xf32, #tpu.memory_space<vmem>>, vector<8x8xf32>
    %c145 = arith.constant 145 : index
    %c0_228 = arith.constant 0 : index
    %228 = tpu.strided_load %arg9[%c145, %c0_228] {strides = array<i32: 2, 1>} : memref<290x8xf32, #tpu.memory_space<vmem>>, vector<8x8xf32>
    %229 = arith.addf %227, %228 : vector<8x8xf32>
    %c162 = arith.constant 162 : index
    %c0_229 = arith.constant 0 : index
    %230 = tpu.strided_load %arg9[%c162, %c0_229] {strides = array<i32: 2, 1>} : memref<290x8xf32, #tpu.memory_space<vmem>>, vector<8x8xf32>
    %231 = arith.addf %229, %230 : vector<8x8xf32>
    %c163 = arith.constant 163 : index
    %c0_230 = arith.constant 0 : index
    %232 = tpu.strided_load %arg9[%c163, %c0_230] {strides = array<i32: 2, 1>} : memref<290x8xf32, #tpu.memory_space<vmem>>, vector<8x8xf32>
    %233 = arith.addf %231, %232 : vector<8x8xf32>
    %cst_231 = arith.constant 2.500000e-01 : f32
    %234 = vector.broadcast %cst_231 : f32 to vector<8x8xf32>
    %235 = arith.mulf %234, %233 : vector<8x8xf32>
    %c0_232 = arith.constant 0 : index
    %c32 = arith.constant 32 : index
    %c0_233 = arith.constant 0 : index
    %236 = vector.load %arg6[%c0_232, %c32, %c0_233] : memref<1x64x8xf32, #tpu.memory_space<vmem>>, vector<1x8x8xf32>
    %237 = vector.shape_cast %236 : vector<1x8x8xf32> to vector<8x8xf32>
    %238 = vector.shape_cast %235 : vector<8x8xf32> to vector<1x8x8xf32>
    tpu.vector_store %arg6[%c0_232, %c32, %c0_233], %238 {strides = array<i32>} : memref<1x64x8xf32, #tpu.memory_space<vmem>>, vector<1x8x8xf32>,
    %c180 = arith.constant 180 : index
    %c0_234 = arith.constant 0 : index
    %239 = tpu.strided_load %arg9[%c180, %c0_234] {strides = array<i32: 2, 1>} : memref<290x8xf32, #tpu.memory_space<vmem>>, vector<8x8xf32>
    %c181 = arith.constant 181 : index
    %c0_235 = arith.constant 0 : index
    %240 = tpu.strided_load %arg9[%c181, %c0_235] {strides = array<i32: 2, 1>} : memref<290x8xf32, #tpu.memory_space<vmem>>, vector<8x8xf32>
    %241 = arith.addf %239, %240 : vector<8x8xf32>
    %c198 = arith.constant 198 : index
    %c0_236 = arith.constant 0 : index
    %242 = tpu.strided_load %arg9[%c198, %c0_236] {strides = array<i32: 2, 1>} : memref<290x8xf32, #tpu.memory_space<vmem>>, vector<8x8xf32>
    %243 = arith.addf %241, %242 : vector<8x8xf32>
    %c199 = arith.constant 199 : index
    %c0_237 = arith.constant 0 : index
    %244 = tpu.strided_load %arg9[%c199, %c0_237] {strides = array<i32: 2, 1>} : memref<290x8xf32, #tpu.memory_space<vmem>>, vector<8x8xf32>
    %245 = arith.addf %243, %244 : vector<8x8xf32>
    %cst_238 = arith.constant 2.500000e-01 : f32
    %246 = vector.broadcast %cst_238 : f32 to vector<8x8xf32>
    %247 = arith.mulf %246, %245 : vector<8x8xf32>
    %c0_239 = arith.constant 0 : index
    %c40 = arith.constant 40 : index
    %c0_240 = arith.constant 0 : index
    %248 = vector.load %arg6[%c0_239, %c40, %c0_240] : memref<1x64x8xf32, #tpu.memory_space<vmem>>, vector<1x8x8xf32>
    %249 = vector.shape_cast %248 : vector<1x8x8xf32> to vector<8x8xf32>
    %250 = vector.shape_cast %247 : vector<8x8xf32> to vector<1x8x8xf32>
    tpu.vector_store %arg6[%c0_239, %c40, %c0_240], %250 {strides = array<i32>} : memref<1x64x8xf32, #tpu.memory_space<vmem>>, vector<1x8x8xf32>,
    %c216 = arith.constant 216 : index
    %c0_241 = arith.constant 0 : index
    %251 = tpu.strided_load %arg9[%c216, %c0_241] {strides = array<i32: 2, 1>} : memref<290x8xf32, #tpu.memory_space<vmem>>, vector<8x8xf32>
    %c217 = arith.constant 217 : index
    %c0_242 = arith.constant 0 : index
    %252 = tpu.strided_load %arg9[%c217, %c0_242] {strides = array<i32: 2, 1>} : memref<290x8xf32, #tpu.memory_space<vmem>>, vector<8x8xf32>
    %253 = arith.addf %251, %252 : vector<8x8xf32>
    %c234 = arith.constant 234 : index
    %c0_243 = arith.constant 0 : index
    %254 = tpu.strided_load %arg9[%c234, %c0_243] {strides = array<i32: 2, 1>} : memref<290x8xf32, #tpu.memory_space<vmem>>, vector<8x8xf32>
    %255 = arith.addf %253, %254 : vector<8x8xf32>
    %c235 = arith.constant 235 : index
    %c0_244 = arith.constant 0 : index
    %256 = tpu.strided_load %arg9[%c235, %c0_244] {strides = array<i32: 2, 1>} : memref<290x8xf32, #tpu.memory_space<vmem>>, vector<8x8xf32>
    %257 = arith.addf %255, %256 : vector<8x8xf32>
    %cst_245 = arith.constant 2.500000e-01 : f32
    %258 = vector.broadcast %cst_245 : f32 to vector<8x8xf32>
    %259 = arith.mulf %258, %257 : vector<8x8xf32>
    %c0_246 = arith.constant 0 : index
    %c48 = arith.constant 48 : index
    %c0_247 = arith.constant 0 : index
    %260 = vector.load %arg6[%c0_246, %c48, %c0_247] : memref<1x64x8xf32, #tpu.memory_space<vmem>>, vector<1x8x8xf32>
    %261 = vector.shape_cast %260 : vector<1x8x8xf32> to vector<8x8xf32>
    %262 = vector.shape_cast %259 : vector<8x8xf32> to vector<1x8x8xf32>
    tpu.vector_store %arg6[%c0_246, %c48, %c0_247], %262 {strides = array<i32>} : memref<1x64x8xf32, #tpu.memory_space<vmem>>, vector<1x8x8xf32>,
    %c252 = arith.constant 252 : index
    %c0_248 = arith.constant 0 : index
    %263 = tpu.strided_load %arg9[%c252, %c0_248] {strides = array<i32: 2, 1>} : memref<290x8xf32, #tpu.memory_space<vmem>>, vector<8x8xf32>
    %c253 = arith.constant 253 : index
    %c0_249 = arith.constant 0 : index
    %264 = tpu.strided_load %arg9[%c253, %c0_249] {strides = array<i32: 2, 1>} : memref<290x8xf32, #tpu.memory_space<vmem>>, vector<8x8xf32>
    %265 = arith.addf %263, %264 : vector<8x8xf32>
    %c270 = arith.constant 270 : index
    %c0_250 = arith.constant 0 : index
    %266 = tpu.strided_load %arg9[%c270, %c0_250] {strides = array<i32: 2, 1>} : memref<290x8xf32, #tpu.memory_space<vmem>>, vector<8x8xf32>
    %267 = arith.addf %265, %266 : vector<8x8xf32>
    %c271 = arith.constant 271 : index
    %c0_251 = arith.constant 0 : index
    %268 = tpu.strided_load %arg9[%c271, %c0_251] {strides = array<i32: 2, 1>} : memref<290x8xf32, #tpu.memory_space<vmem>>, vector<8x8xf32>
    %269 = arith.addf %267, %268 : vector<8x8xf32>
    %cst_252 = arith.constant 2.500000e-01 : f32
    %270 = vector.broadcast %cst_252 : f32 to vector<8x8xf32>
    %271 = arith.mulf %270, %269 : vector<8x8xf32>
    %c0_253 = arith.constant 0 : index
    %c56 = arith.constant 56 : index
    %c0_254 = arith.constant 0 : index
    %272 = vector.load %arg6[%c0_253, %c56, %c0_254] : memref<1x64x8xf32, #tpu.memory_space<vmem>>, vector<1x8x8xf32>
    %273 = vector.shape_cast %272 : vector<1x8x8xf32> to vector<8x8xf32>
    %274 = vector.shape_cast %271 : vector<8x8xf32> to vector<1x8x8xf32>
    tpu.vector_store %arg6[%c0_253, %c56, %c0_254], %274 {strides = array<i32>} : memref<1x64x8xf32, #tpu.memory_space<vmem>>, vector<1x8x8xf32>,
    return
  }
  func.func @transform_0(%arg0: i32) -> (i32, i32, i32) {
    %c0_i32 = arith.constant 0 : i32
    %c0_i32_0 = arith.constant 0 : i32
    %c0_i32_1 = arith.constant 0 : i32
    return %arg0, %c0_i32, %c0_i32_0 : i32, i32, i32
  }
  func.func @transform_1(%arg0: i32) -> (i32, i32, i32) {
    %c0_i32 = arith.constant 0 : i32
    %c0_i32_0 = arith.constant 0 : i32
    %c0_i32_1 = arith.constant 0 : i32
    %c0_i32_2 = arith.constant 0 : i32
    return %c0_i32, %c0_i32_0, %c0_i32_1 : i32, i32, i32
  }
  func.func @transform_2(%arg0: i32) -> (i32, i32) {
    %c0_i32 = arith.constant 0 : i32
    %c0_i32_0 = arith.constant 0 : i32
    %c0_i32_1 = arith.constant 0 : i32
    return %c0_i32, %c0_i32_0 : i32, i32
  }
  func.func @transform_3(%arg0: i32) -> (i32, i32, i32) {
    %c0_i32 = arith.constant 0 : i32
    %c0_i32_0 = arith.constant 0 : i32
    %c0_i32_1 = arith.constant 0 : i32
    %c0_i32_2 = arith.constant 0 : i32
    return %c0_i32, %c0_i32_0, %c0_i32_1 : i32, i32, i32
  }
  func.func @transform_4(%arg0: i32) -> (i32, i32) {
    %c0_i32 = arith.constant 0 : i32
    %c0_i32_0 = arith.constant 0 : i32
    %c0_i32_1 = arith.constant 0 : i32
    return %c0_i32, %c0_i32_0 : i32, i32
  }
  func.func @transform_5(%arg0: i32) -> (i32, i32, i32) {
    %c0_i32 = arith.constant 0 : i32
    %c0_i32_0 = arith.constant 0 : i32
    %c0_i32_1 = arith.constant 0 : i32
    return %arg0, %c0_i32, %c0_i32_0 : i32, i32, i32
  }
}

</mosaic_0001>

<bundles_post_ra>
// kernel: tpu_custom_call.1
= control target key start
LH: loop header
LB: loop body
LE: loop exit
PB: predicated region body
PF: predicated region fallthrough
CT: control target
= control target key end

     0   :  { %s9109_s18 = smov 0   ;;  %s12702_s0 = inlined_call_operand.vmem [shape: bf16[2,342,4], index: 0, kind: input, shape index: {}]   ;;  %s12703_s1 = inlined_call_operand.vmem [shape: bf16[9,4,8], index: 1, kind: input, shape index: {}]   ;;  %s12704_s2 = inlined_call_operand.vmem [shape: f32[1,8], index: 2, kind: input, shape index: {}]   ;;  %s12705_s3 = inlined_call_operand.vmem [shape: bf16[9,8,8], index: 3, kind: input, shape index: {}]   ;;  %s12706_s4 = inlined_call_operand.vmem [shape: f32[1,8], index: 4, kind: input, shape index: {}]   ;;  %s12707_s5 = inlined_call_operand.vmem [shape: f32[2,64,8], index: 5, kind: output, shape index: {}]  }
   0x1 LB: > { %s8058_s19 = sadd.s32 4294967295, %s9076_s18   ;;  %p8062_p0 = scmp.ge.s32.totalorder %s9076_s18, 1  ;;  %s9076_s18 = sphi %s9109_s18, %s15_s18  }
   0x2   : > { %p187_p1 = scmp.lt.s32.totalorder %s9076_s18, 3 }
   0x4   : > { %p188_p2 = pnand %p8062_p0, %p187_p1 }
   0x6   : > { %191 = sbr.rel (%p188_p2) target bundleno = 1811 (0x713), region = 40 }
   0xb   : > { %v276_v0 = vld [vmem:[%s12703_s1] sm:$0x3]  ;;  %vm577_vm0 = vcmask 1041408   ;;  %p215_p3 = scmp.lt.s32.totalorder %s8058_s19, 1  ;;  %v8066_v2 = vld [vmem:[%s12703_s1 + $0x2] sm:$0x3] }
   0xc   : > { %v717_v1 = vsel %vm577_vm0, %v276_v0, 0  ;;  %v579_v3 = vsel %vm577_vm0, %v8066_v2, 0  ;;  %v8171_v4 = vld [vmem:[%s12703_s1 + $0x4] sm:$0x3]  ;;  %v8190_v5 = vld [vmem:[%s12703_s1 + $0x6] sm:$0x3] }
   0xd   : > { %9033 = vmatpush.bf16.msra.mxu3 %v717_v1  ;;  %s13218_s19 = smov (!%p215_p3, %s8058_s19), 1  ;;  %726 = vmatpush.bf16.msra.mxu1 %v717_v1  ;;  %v917_v6 = vsel %vm577_vm0, %v8171_v4, 0  ;;  %v1278_v7 = vsel %vm577_vm0, %v8190_v5, 0  ;;  %v8277_v8 = vld [vmem:[%s12703_s1 + $0x8] sm:$0x3]  ;;  %vm522_vm1 = vcmask 31744  }
   0xe   : > { %588 = vmatpush.bf16.msra.mxu0 %v579_v3  ;;  %9032 = vmatpush.bf16.msra.mxu2 %v579_v3  ;;  %s9034_s30 = smul.u32 172, %s13218_s19  ;;  %v1647_v9 = vsel %vm577_vm0, %v8277_v8, 0  ;;  %vm12717_vm2 = vsmask.f32 7424  ;;  %vm1790_vm3 = vcmask 1045504   ;;  %vm12715_vm4 = vcmask 1046528  }
   0xf   : > { %vm12713_vm5 = vsmask.f32 6400  ;;  %vm12726_vm6 = vcmask 1043456   ;;  %vm2387_vm7 = vsmask.f32 5376  ;;  %vm2756_vm8 = vcmask 1044480  }
  0x10   : > { %s9143_s8 = scalar_lea.vmem %s12702_s0, %s9034_s30  ;;  %vm226_vm9 = vcmask 60416   ;;  %vm12721_vm10 = vcmask 58368   ;;  %vm230_vm11 = vsmask.f32 1280  ;;  %vm235_vm13 = vcmask 60417   ;;  %s8816_s24 = sshll.u32 %s13218_s19, 6 }
  0x11   : > { %1287 = vmatpush.bf16.msrb.mxu3 %v1278_v7  ;;  %v9146_v10 = vld [vmem:[%s9143_s8 + $0x48] sm:$0xff]  ;;  %v8920_v11 = vld [vmem:[%s9143_s8] sm:$0xff]   ;;  %v9153_v15 = vld [vmem:[%s9143_s8 + $0x50] sm:$0xff]  ;;  %vm3569_vm15 = vsmask.f32 7942  ;;  %s12509_s27 = scalar_lea.vmem %s12707_s5, %s8816_s24 }
  0x12   : > { %926 = vmatpush.bf16.msrb.mxu2 %v917_v6  ;;  %1656 = vmatpush.bf16.msrb.mxu0 %v1647_v9  ;;  %v9150_v12 = vld [vmem:[%s9143_s8 + $0x8] sm:$0xff]  ;;  %v375_v13 = vshrl.u32 %v8920_v11, 16  ;;  %v377_v14 = vshll.u32 %v8920_v11, 16  ;;  %v446_v17 = vshll.u32 %v9146_v10, 16  ;;  %v450_v18 = vshrl.u32 %v9146_v10, 16  ;;  %v9170_v28 = vld [vmem:[%s9143_s8 + $0x10] sm:$0xff]  ;;  %vm9778_vm12 = vmand %vm12721_vm10, %vm230_vm11 }
  0x13   : > { %8153 = vmatmul.msk.bf16.vlgmr.msra.gmra.mxu1 %vm522_vm1, %v8920_v11  ;;  %8162 = vmatmul.msk.bf16.vlgmr.msra.gmra.mxu3 %vm522_vm1, %v9146_v10  ;;  %v382_v16 = vshll.u32 %v9150_v12, 16  ;;  %v454_v20 = vshll.u32 %v9153_v15, 16  ;;  %v9173_v29 = vld [vmem:[%s9143_s8 + $0x58] sm:$0xff]  ;;  %v386_v30 = vshrl.u32 %v9150_v12, 16  ;;  %v390_v31 = vshll.u32 %v9170_v28, 16  ;;  %v9191_v41 = vld [vmem:[%s9143_s8 + $0x60] sm:$0xff] }
  0x14   : > { %v379_v19 = vrot.slane %v377_v14, 1  ;;  %v9162_v22 = vrot.slane %v446_v17, 1  ;;  %v458_v32 = vshrl.u32 %v9153_v15, 16  ;;  %v462_v33 = vshll.u32 %v9173_v29, 16  ;;  %v9188_v40 = vld [vmem:[%s9143_s8 + $0x18] sm:$0xff]  ;;  %v9206_v52 = vld [vmem:[%s9143_s8 + $0x20] sm:$0xff] }
  0x15   : > { %v384_v21 = vrot.slane %v382_v16, 1  ;;  %v456_v24 = vrot.slane %v454_v20, 1  ;;  %v392_v35 = vrot.slane %v390_v31, 1  ;;  %v394_v42 = vshrl.u32 %v9170_v28, 16  ;;  %v9209_v53 = vld [vmem:[%s9143_s8 + $0x68] sm:$0xff]  ;;  %v8830_v1 = vld [vmem:[%s9143_s8 + $0x70] sm:$0xff] }
  0x16   : > { %v380_v23 = vor.u32 %v379_v19, %v375_v13  ;;  %v452_v25 = vor.u32 %v450_v18, %v9162_v22  ;;  %v464_v37 = vrot.slane %v462_v33, 1  ;;  %v398_v43 = vshll.u32 %v9188_v40, 16  ;;  %v9224_v0 = vld [vmem:[%s9143_s8 + $0x28] sm:$0xff]  ;;  %v9239_v14 = vld [vmem:[%s9143_s8 + $0x30] sm:$0xff]  ;;  %v8831_v16 = vld [vmem:[%s9143_s8 + $0x78] sm:$0xff] }
  0x17   : > { %v388_v34 = vor.u32 %v386_v30, %v384_v21  ;;  %v460_v36 = vor.u32 %v458_v32, %v456_v24  ;;  %v466_v44 = vshrl.u32 %v9173_v29, 16  ;;  %v470_v45 = vshll.u32 %v9191_v41, 16  ;;  %v9252_v30 = vld [vmem:[%s9143_s8 + $0x38] sm:$0xff]  ;;  %v8832_v31 = vld [vmem:[%s9143_s8 + $0x80] sm:$0xff] }
  0x18   : > { %v385_v26 = vsel %vm12717_vm2, %v380_v23, %v384_v21  ;;  %v457_v27 = vsel %vm12717_vm2, %v452_v25, %v456_v24  ;;  %v396_v46 = vor.u32 %v394_v42, %v392_v35  ;;  %v400_v47 = vrot.slane %v398_v43, 1 }
  0x19   : > { %8135 = vmatmul.msk.bf16.vlgmr.msra.gmra.mxu0 %vm522_vm1, %v385_v26  ;;  %8144 = vmatmul.msk.bf16.vlgmr.msra.gmra.mxu2 %vm522_vm1, %v457_v27  ;;  %v393_v38 = vsel %vm12717_vm2, %v388_v34, %v392_v35  ;;  %v465_v39 = vsel %vm12717_vm2, %v460_v36, %v464_v37  ;;  %v468_v48 = vor.u32 %v466_v44, %v464_v37  ;;  %v472_v49 = vrot.slane %v470_v45, 1  ;;  %v9265_v44 = vld [vmem:[%s9143_s8 + $0x40] sm:$0xff]  ;;  %v8833_v45 = vld [vmem:[%s9143_s8 + $0x88] sm:$0xff] }
  0x1a   : > { %v401_v50 = vsel %vm12717_vm2, %v396_v46, %v400_v47  ;;  %v402_v54 = vshrl.u32 %v9188_v40, 16  ;;  %v406_v55 = vshll.u32 %v9206_v52, 16  ;;  %v474_v56 = vshrl.u32 %v9191_v41, 16 }
  0x1b   : > { %v473_v51 = vsel %vm12717_vm2, %v468_v48, %v472_v49  ;;  %v478_v57 = vshll.u32 %v9209_v53, 16  ;;  %v410_v2 = vshrl.u32 %v9206_v52, 16  ;;  %v414_v3 = vshll.u32 %v9224_v0, 16 }
  0x1c   : > { %v404_v58 = vor.u32 %v402_v54, %v400_v47  ;;  %v408_v59 = vrot.slane %v406_v55, 1  ;;  %v476_v60 = vor.u32 %v474_v56, %v472_v49  ;;  %v482_v4 = vshrl.u32 %v9209_v53, 16  ;;  %v277_v56 = vld [vmem:[%s9143_s8 + $0x90] sm:$0x1] }
  0x1d   : > { %v480_v61 = vrot.slane %v478_v57, 1  ;;  %v486_v5 = vshll.u32 %v8830_v1, 16  ;;  %v416_v7 = vrot.slane %v414_v3, 1  ;;  %v418_v17 = vshrl.u32 %v9224_v0, 16 }
  0x1e   : > { %v409_v62 = vsel %vm12717_vm2, %v404_v58, %v408_v59  ;;  %v412_v6 = vor.u32 %v410_v2, %v408_v59  ;;  %v422_v18 = vshll.u32 %v9239_v14, 16  ;;  %v490_v19 = vshrl.u32 %v8830_v1, 16 }
  0x1f   : > { %v481_v63 = vsel %vm12717_vm2, %v476_v60, %v480_v61  ;;  %v484_v8 = vor.u32 %v482_v4, %v480_v61  ;;  %v488_v9 = vrot.slane %v486_v5, 1  ;;  %v494_v20 = vshll.u32 %v8831_v16, 16  ;;  %v8315_v60 = vld [vmem:[%s12703_s1 + $0xc] sm:$0x3]  ;;  %v8402_v61 = vld [vmem:[%s12703_s1 + $0xe] sm:$0x3] }
  0x20   : > { %v417_v11 = vsel %vm12717_vm2, %v412_v6, %v416_v7  ;;  %v420_v21 = vor.u32 %v418_v17, %v416_v7  ;;  %v424_v23 = vrot.slane %v422_v18, 1  ;;  %v426_v32 = vshrl.u32 %v9239_v14, 16  ;;  %v1054_v6 = vld [vmem:[%s9143_s8 + $0x8] sm:$0xe]  ;;  %v1055_v7 = vld [vmem:[%s9143_s8 + $0xc] sm:$0xf] }
  0x21   : > { %v489_v13 = vsel %vm12717_vm2, %v484_v8, %v488_v9  ;;  %v492_v24 = vor.u32 %v490_v19, %v488_v9  ;;  %v496_v25 = vrot.slane %v494_v20, 1  ;;  %v430_v33 = vshll.u32 %v9252_v30, 16  ;;  %v1784_v8 = vld [vmem:[%s9143_s8 + $0x8] sm:$0xc]  ;;  %v8421_v20 = vld [vmem:[%s12703_s1 + $0x10] sm:$0x3] }
  0x22   : > { %v425_v26 = vsel %vm12717_vm2, %v420_v21, %v424_v23  ;;  %v498_v34 = vshrl.u32 %v8831_v16, 16  ;;  %v502_v35 = vshll.u32 %v8832_v31, 16  ;;  %v428_v36 = vor.u32 %v426_v32, %v424_v23  ;;  %v8296_v9 = vld [vmem:[%s12703_s1 + $0xa] sm:$0x3] }
  0x23   : > { %8154 = vmatmul.msk.bf16.gmra.mxu1 %vm522_vm1, %v9150_v12  ;;  %8163 = vmatmul.msk.bf16.gmra.mxu3 %vm522_vm1, %v9153_v15  ;;  %v497_v27 = vsel %vm12717_vm2, %v492_v24, %v496_v25  ;;  %v432_v37 = vrot.slane %v430_v33, 1  ;;  %v434_v46 = vshrl.u32 %v9252_v30, 16  ;;  %v438_v47 = vshll.u32 %v9265_v44, 16 }
  0x24   : > { %v506_v48 = vshrl.u32 %v8832_v31, 16  ;;  %v510_v49 = vshll.u32 %v8833_v45, 16  ;;  %v353_v59 = vunpack.c.l.b16 %v277_v56  ;;  %v442_v2 = vshrl.u32 %v9265_v44, 16 }
  0x25   : > { %v433_v42 = vsel %vm12717_vm2, %v428_v36, %v432_v37  ;;  %v514_v3 = vshrl.u32 %v8833_v45, 16  ;;  %v1130_v18 = vunpack.c.l.b16 %v1054_v6  ;;  %v1131_v19 = vunpack.c.l.b16 %v1055_v7 }
  0x26   : > { %v512_v55 = vrot.slane %v510_v49, 1  ;;  %v1788_v21 = vunpack.c.l.b16 %v1784_v8  ;;  %v2849_v23 = vsel %vm577_vm0, %v8421_v20, 0 }
  0x27   : > { %2858 = vmatpush.bf16.msra.mxu0 %v2849_v23  ;;  %v1167_v33 = vpack.c.b16 %v1131_v19, %v1130_v18 }
  0x29   : > { %8136 = vmatmul.msk.bf16.gmra.mxu0 %vm522_vm1, %v393_v38  ;;  %8145 = vmatmul.msk.bf16.gmra.mxu2 %vm522_vm1, %v465_v39  ;;  %v500_v38 = vor.u32 %v498_v34, %v496_v25  ;;  %v504_v39 = vrot.slane %v502_v35, 1  ;;  %v1789_v34 = vpack.c.b16 %v1131_v19, %v1788_v21  ;;  %v8834_v35 = vld [vmem:[%s9143_s8 + $0x10] sm:$0xff]  ;;  %v1423_v36 = vshrl.u32 %v1167_v33, 16 }
  0x2b   : > { %v505_v43 = vsel %vm12717_vm2, %v500_v38, %v504_v39  ;;  %v508_v54 = vor.u32 %v506_v48, %v504_v39  ;;  %v1431_v38 = vshrl.u32 %v8834_v35, 16  ;;  %v1434_v39 = vshll.u32 %v8834_v35, 16 }
  0x2c   : > { %v1425_v49 = vrot.slane %v1423_v36, 1 }
  0x2d   : > { %v513_v58 = vsel %vm12717_vm2, %v508_v54, %v512_v55  ;;  %v1433_v56 = vrot.slane %v1431_v38, 1 }
  0x33   : > { %8155 = vmatmul.msk.bf16.gmra.mxu1 %vm522_vm1, %v9170_v28  ;;  %8164 = vmatmul.msk.bf16.gmra.mxu3 %vm522_vm1, %v9173_v29 }
  0x39   : > { %8137 = vmatmul.msk.bf16.gmra.mxu0 %vm522_vm1, %v401_v50  ;;  %8146 = vmatmul.msk.bf16.gmra.mxu2 %vm522_vm1, %v473_v51  ;;  %v436_v50 = vor.u32 %v434_v46, %v432_v37  ;;  %v440_v51 = vrot.slane %v438_v47, 1  ;;  %v1426_v37 = vshll.u32 %v1167_v33, 16  ;;  %v9007_v46 = vld [vmem:[%s9143_s8] sm:$0xf0]  ;;  %v9008_v47 = vld [vmem:[%s9143_s8] sm:$0xe] }
  0x3b   : > { %v441_v57 = vsel %vm12717_vm2, %v436_v50, %v440_v51 }
  0x43   : > { %8156 = vmatmul.msk.bf16.gmra.mxu1 %vm522_vm1, %v9188_v40  ;;  %8165 = vmatmul.msk.bf16.gmra.mxu3 %vm522_vm1, %v9191_v41 }
  0x49   : > { %8138 = vmatmul.msk.bf16.gmra.mxu0 %vm522_vm1, %v409_v62  ;;  %8147 = vmatmul.msk.bf16.gmra.mxu2 %vm522_vm1, %v481_v63  ;;  %v9284_v62 = vpack.c.b16 %v353_v59, %v353_v59  ;;  %v2244_v63 = vsel %vm577_vm0, %v8315_v60, 0  ;;  %v9009_v60 = vor.u32 %v9008_v47, %v9007_v46 }
  0x4a   : > { %2253 = vmatpush.bf16.msra.mxu2 %v2244_v63 }
  0x4b   : > { %v518_v5 = vshll.u32 %v9284_v62, 16 }
  0x4d   : > { %v520_v17 = vrot.slane %v518_v5, 1 }
  0x53   : > { %8157 = vmatmul.msk.bf16.gmra.mxu1 %vm522_vm1, %v9206_v52  ;;  %8166 = vmatmul.msk.bf16.gmra.mxu3 %vm522_vm1, %v9209_v53 }
  0x59   : > { %8139 = vmatmul.msk.bf16.gmra.mxu0 %vm522_vm1, %v417_v11  ;;  %8148 = vmatmul.msk.bf16.gmra.mxu2 %vm522_vm1, %v489_v13  ;;  %v444_v11 = vor.u32 %v442_v2, %v440_v51  ;;  %v516_v13 = vor.u32 %v514_v3, %v512_v55  ;;  %v1428_v55 = vrot.slane %v1426_v37, 2  ;;  %v825_v3 = vrot.slane %v9009_v60, 1 }
  0x5a   : > { %v828_v37 = vrot.slane %v9170_v28, 1 }
  0x63   : > { %8158 = vmatmul.msk.bf16.gmra.mxu1 %vm522_vm1, %v9224_v0  ;;  %8167 = vmatmul.msk.bf16.gmra.mxu3 %vm522_vm1, %v8830_v1  ;;  %v2613_v1 = vsel %vm577_vm0, %v8402_v61, 0 }
  0x64   : > { %2622 = vmatpush.bf16.msra.mxu3 %v2613_v1  ;;  %v1429_v1 = vor.u32 %v1428_v55, %v1425_v49 }
  0x69   : > { %8140 = vmatmul.msk.bf16.gmra.mxu0 %vm522_vm1, %v425_v26  ;;  %8149 = vmatmul.msk.bf16.gmra.mxu2 %vm522_vm1, %v497_v27  ;;  %v449_v26 = vsel %vm12717_vm2, %v444_v11, %v9162_v22  ;;  %v1791_v22 = vrot.slane %v1789_v34, 2 }
  0x73   : > { %8159 = vmatmul.msk.bf16.gmra.mxu1 %vm522_vm1, %v9239_v14  ;;  %8168 = vmatmul.msk.bf16.gmra.mxu3 %vm522_vm1, %v8831_v16  ;;  %v1883_v16 = vsel %vm577_vm0, %v8296_v9, 0  ;;  %vm9870_vm0 = vmand %vm235_vm13, %vm3569_vm15 }
  0x74   : > { %1892 = vmatpush.bf16.msrb.mxu1 %v1883_v16 }
  0x79   : > { %8141 = vmatmul.msk.bf16.gmra.mxu0 %vm522_vm1, %v433_v42  ;;  %8150 = vmatmul.msk.bf16.gmra.mxu2 %vm522_vm1, %v505_v43  ;;  %v1186_v42 = vrot.slane %v1167_v33, 1  ;;  %v1792_v43 = vrot.slane %v8834_v35, 2 }
  0x7b   : > { %v1793_v61 = vsel %vm1790_vm3, %v1791_v22, %v1792_v43 }
  0x83   : > { %8160 = vmatmul.msk.bf16.gmra.mxu1 %vm522_vm1, %v9252_v30  ;;  %8169 = vmatmul.msk.bf16.gmra.mxu3 %vm522_vm1, %v8832_v31  ;;  %v521_v31 = vsel %vm12717_vm2, %v516_v13, %v520_v17  ;;  %v8835_v17 = vld [vmem:[%s9143_s8 + $0x18] sm:$0xff] }
  0x84   : > { %v1440_v18 = vshrl.u32 %v8835_v17, 16  ;;  %v1443_v19 = vshll.u32 %v8835_v17, 16  ;;  %v1189_v20 = vrot.slane %v8835_v17, 1 }
  0x89   : > { %8142 = vmatmul.msk.bf16.gmra.mxu0 %vm522_vm1, %v441_v57  ;;  %8151 = vmatmul.msk.bf16.gmra.mxu2 %vm522_vm1, %v513_v58  ;;  %v1436_v57 = vrot.slane %v1434_v39, 2 }
  0x8b   : > { %v1437_v2 = vor.u32 %v1436_v57, %v1433_v56 }
  0x8d   : > { %v1438_v9 = vsel %vm12713_vm5, %v1429_v1, %v1437_v2 }
  0x90   : > { %v728_v4 = vpop.f32.mrf.mxu1 }
  0x93   : > { %8161 = vmatmul.msk.bf16.gmra.mxu1 %vm522_vm1, %v9265_v44  ;;  %8170 = vmatmul.msk.bf16.gmra.mxu3 %vm522_vm1, %v8833_v45  ;;  %v1187_v45 = vrot.slane %v8834_v35, 1 }
  0x95   : > { %v1188_v63 = vsel %vm12715_vm4, %v1186_v42, %v1187_v45  ;;  %v1190_v35 = vsel %vm12715_vm4, %v1187_v45, %v1189_v20  ;;  %v8836_v45 = vld [vmem:[%s9143_s8 + $0x20] sm:$0xff] }
  0x96   : > { %v590_v24 = vpop.f32.mrf.mxu0  ;;  %v773_v25 = vpop.f32.mrf.mxu3  ;;  %v1449_v49 = vshrl.u32 %v8836_v45, 16  ;;  %v1796_v28 = vrot.slane %v8836_v45, 2 }
  0x97   : > { %v9306_v27 = vadd.f32 %v728_v4, %v590_v24  ;;  %v826_v4 = vrot.slane %v9150_v12, 1  ;;  %v1794_v12 = vrot.slane %v8835_v17, 2 }
  0x98   : > { %v730_v32 = vpop.f32.mrf.mxu1  ;;  %v1451_v60 = vrot.slane %v1449_v49, 1 }
  0x99   : > { %8143 = vmatmul.msk.bf16.gmra.mxu0 %vm522_vm1, %v449_v26  ;;  %8152 = vmatmul.msk.bf16.gmra.mxu2 %vm522_vm1, %v521_v31  ;;  %v827_v13 = vsel %vm12715_vm4, %v825_v3, %v826_v4  ;;  %v1442_v26 = vrot.slane %v1440_v18, 1  ;;  %v1445_v31 = vrot.slane %v1443_v19, 2  ;;  %v1795_v34 = vsel %vm1790_vm3, %v1792_v43, %v1794_v12 }
  0x9a   : > { %v829_v43 = vsel %vm12715_vm4, %v826_v4, %v828_v37 }
  0x9b   : > { %v1446_v36 = vor.u32 %v1445_v31, %v1442_v26 }
  0x9c   : > { %v635_v48 = vpop.f32.mrf.mxu2 }
  0x9d   : > { %v9314_v51 = vadd.f32 %v773_v25, %v635_v48  ;;  %v1447_v46 = vsel %vm12713_vm5, %v1437_v2, %v1446_v36  ;;  %v1797_v2 = vsel %vm1790_vm3, %v1794_v12, %v1796_v28  ;;  %v8837_v12 = vld [vmem:[%s9143_s8 + $0x28] sm:$0xff] }
  0x9e   : > { %v592_v50 = vpop.f32.mrf.mxu0  ;;  %v775_v54 = vpop.f32.mrf.mxu3 }
  0x9f   : > { %v9316_v58 = vadd.f32 %v730_v32, %v592_v50  ;;  %v1452_v50 = vshll.u32 %v8836_v45, 16 }
  0xa0   : > { %v733_v59 = vpop.f32.mrf.mxu1 }
  0xa3   : > { %8297 = vmatmul.msk.bf16.vlgmr.msrb.gmra.mxu1 %vm522_vm1, %v1793_v61  ;;  %8259 = vmatmul.msk.bf16.vlgmr.msrb.gmra.mxu3 %vm522_vm1, %v1188_v63  ;;  %v1454_v61 = vrot.slane %v1452_v50, 2 }
  0xa4   : > { %v637_v5 = vpop.f32.mrf.mxu2 }
  0xa5   : > { %v9323_v7 = vadd.f32 %v775_v54, %v637_v5  ;;  %v1191_v54 = vrot.slane %v8836_v45, 1  ;;  %v1455_v4 = vor.u32 %v1454_v61, %v1451_v60  ;;  %v830_v5 = vrot.slane %v9188_v40, 1 }
  0xa6   : > { %v595_v6 = vpop.f32.mrf.mxu0  ;;  %v778_v8 = vpop.f32.mrf.mxu3  ;;  %v1798_v40 = vrot.slane %v8837_v12, 2 }
  0xa7   : > { %v9326_v11 = vadd.f32 %v733_v59, %v595_v6  ;;  %v1192_v3 = vsel %vm12715_vm4, %v1189_v20, %v1191_v54  ;;  %v831_v18 = vsel %vm12715_vm4, %v828_v37, %v830_v5  ;;  %v1458_v20 = vshrl.u32 %v8837_v12, 16 }
  0xa8   : > { %v735_v16 = vpop.f32.mrf.mxu1 }
  0xa9   : > { %8278 = vmatmul.msk.bf16.vlgmr.msrb.gmra.mxu0 %vm522_vm1, %v1438_v9  ;;  %8172 = vmatmul.msk.bf16.vlgmr.msrb.gmra.mxu2 %vm522_vm1, %v827_v13 }
  0xac   : > { %v640_v21 = vpop.f32.mrf.mxu2 }
  0xad   : > { %v9332_v24 = vadd.f32 %v778_v8, %v640_v21  ;;  %v1461_v21 = vshll.u32 %v8837_v12, 16 }
  0xae   : > { %v597_v23 = vpop.f32.mrf.mxu0  ;;  %v780_v25 = vpop.f32.mrf.mxu3 }
  0xaf   : > { %v9334_v32 = vadd.f32 %v735_v16, %v597_v23  ;;  %v1456_v16 = vsel %vm12713_vm5, %v1446_v36, %v1455_v4  ;;  %v1193_v23 = vrot.slane %v8837_v12, 1  ;;  %v834_v12 = vrot.slane %v9224_v0, 1 }
  0xb0   : > { %v738_v33 = vpop.f32.mrf.mxu1 }
  0xb3   : > { %8298 = vmatmul.msk.bf16.gmra.mxu1 %vm522_vm1, %v1795_v34  ;;  %8260 = vmatmul.msk.bf16.gmra.mxu3 %vm522_vm1, %v1190_v35  ;;  %v1460_v34 = vrot.slane %v1458_v20, 1  ;;  %v1463_v35 = vrot.slane %v1461_v21, 2 }
  0xb4   : > { %v642_v38 = vpop.f32.mrf.mxu2 }
  0xb5   : > { %v9341_v42 = vadd.f32 %v780_v25, %v642_v38  ;;  %v1799_v38 = vsel %vm1790_vm3, %v1796_v28, %v1798_v40 }
  0xb6   : > { %v600_v39 = vpop.f32.mrf.mxu0  ;;  %v783_v22 = vpop.f32.mrf.mxu3 }
  0xb7   : > { %v9344_v47 = vadd.f32 %v738_v33, %v600_v39  ;;  %v1194_v39 = vsel %vm12715_vm4, %v1191_v54, %v1193_v23  ;;  %v8838_v54 = vld [vmem:[%s9143_s8 + $0x30] sm:$0xff] }
  0xb8   : > { %v740_v48 = vpop.f32.mrf.mxu1  ;;  %v1470_v60 = vshll.u32 %v8838_v54, 16  ;;  %v1195_v61 = vrot.slane %v8838_v54, 1 }
  0xb9   : > { %8279 = vmatmul.msk.bf16.gmra.mxu0 %vm522_vm1, %v1447_v46  ;;  %8173 = vmatmul.msk.bf16.gmra.mxu2 %vm522_vm1, %v829_v43  ;;  %v832_v46 = vrot.slane %v9206_v52, 1  ;;  %v1800_v52 = vrot.slane %v8838_v54, 2 }
  0xbb   : > { %v833_v28 = vsel %vm12715_vm4, %v830_v5, %v832_v46 }
  0xbc   : > { %v645_v55 = vpop.f32.mrf.mxu2 }
  0xbd   : > { %v9350_v57 = vadd.f32 %v783_v22, %v645_v55  ;;  %v1464_v22 = vor.u32 %v1463_v35, %v1460_v34 }
  0xbe   : > { %v602_v56 = vpop.f32.mrf.mxu0  ;;  %v785_v59 = vpop.f32.mrf.mxu3 }
  0xbf   : > { %v9352_v63 = vadd.f32 %v740_v48, %v602_v56  ;;  %v1465_v50 = vsel %vm12713_vm5, %v1455_v4, %v1464_v22 }
  0xc0   : > { %v743_v1 = vpop.f32.mrf.mxu1 }
  0xc3   : > { %8299 = vmatmul.msk.bf16.gmra.mxu1 %vm522_vm1, %v1797_v2  ;;  %8261 = vmatmul.msk.bf16.gmra.mxu3 %vm522_vm1, %v1192_v3 }
  0xc4   : > { %v647_v6 = vpop.f32.mrf.mxu2 }
  0xc5   : > { %v9359_v9 = vadd.f32 %v785_v59, %v647_v6  ;;  %v1467_v59 = vshrl.u32 %v8838_v54, 16 }
  0xc6   : > { %v605_v8 = vpop.f32.mrf.mxu0  ;;  %v788_v13 = vpop.f32.mrf.mxu3 }
  0xc7   : > { %v9362_v17 = vadd.f32 %v743_v1, %v605_v8  ;;  %v1469_v4 = vrot.slane %v1467_v59, 1  ;;  %v1472_v8 = vrot.slane %v1470_v60, 2 }
  0xc8   : > { %v745_v19 = vpop.f32.mrf.mxu1 }
  0xc9   : > { %8280 = vmatmul.msk.bf16.gmra.mxu0 %vm522_vm1, %v1456_v16  ;;  %8174 = vmatmul.msk.bf16.gmra.mxu2 %vm522_vm1, %v831_v18  ;;  %v1801_v16 = vsel %vm1790_vm3, %v1798_v40, %v1800_v52  ;;  %v1196_v18 = vsel %vm12715_vm4, %v1193_v23, %v1195_v61  ;;  %v835_v40 = vsel %vm12715_vm4, %v832_v46, %v834_v12  ;;  %v8839_v23 = vld [vmem:[%s9143_s8 + $0x38] sm:$0xff] }
  0xca   : > { %v1802_v0 = vrot.slane %v8839_v23, 2 }
  0xcc   : > { %v650_v25 = vpop.f32.mrf.mxu2  ;;  %v1803_v54 = vsel %vm1790_vm3, %v1800_v52, %v1802_v0 }
  0xcd   : > { %v9368_v31 = vadd.f32 %v788_v13, %v650_v25 }
  0xce   : > { %v607_v26 = vpop.f32.mrf.mxu0  ;;  %v790_v33 = vpop.f32.mrf.mxu3 }
  0xcf   : > { %v9370_v36 = vadd.f32 %v745_v19, %v607_v26  ;;  %v1473_v19 = vor.u32 %v1472_v8, %v1469_v4 }
  0xd0   : > { %v748_v37 = vpop.f32.mrf.mxu1 }
  0xd3   : > { %8300 = vmatmul.msk.bf16.gmra.mxu1 %vm522_vm1, %v1799_v38  ;;  %8262 = vmatmul.msk.bf16.gmra.mxu3 %vm522_vm1, %v1194_v39  ;;  %v1479_v38 = vshll.u32 %v8839_v23, 16  ;;  %v1197_v39 = vrot.slane %v8839_v23, 1 }
  0xd4   : > { %v652_v43 = vpop.f32.mrf.mxu2 }
  0xd5   : > { %v9377_v45 = vadd.f32 %v790_v33, %v652_v43  ;;  %v1474_v33 = vsel %vm12713_vm5, %v1464_v22, %v1473_v19  ;;  %v1198_v59 = vsel %vm12715_vm4, %v1195_v61, %v1197_v39  ;;  %v8840_v61 = vld [vmem:[%s9143_s8 + $0x40] sm:$0xff] }
  0xd6   : > { %v610_v48 = vpop.f32.mrf.mxu0  ;;  %v793_v49 = vpop.f32.mrf.mxu3 }
  0xd7   : > { %v9380_v55 = vadd.f32 %v748_v37, %v610_v48  ;;  %v1476_v37 = vshrl.u32 %v8839_v23, 16 }
  0xd8   : > { %v750_v56 = vpop.f32.mrf.mxu1 }
  0xd9   : > { %8281 = vmatmul.msk.bf16.gmra.mxu0 %vm522_vm1, %v1465_v50  ;;  %8175 = vmatmul.msk.bf16.gmra.mxu2 %vm522_vm1, %v833_v28  ;;  %v1478_v22 = vrot.slane %v1476_v37, 1  ;;  %v1481_v28 = vrot.slane %v1479_v38, 2 }
  0xdb   : > { %v1482_v60 = vor.u32 %v1481_v28, %v1478_v22  ;;  %v838_v22 = vrot.slane %v9252_v30, 1 }
  0xdc   : > { %v655_v1 = vpop.f32.mrf.mxu2 }
  0xdd   : > { %v9386_v3 = vadd.f32 %v793_v49, %v655_v1  ;;  %v836_v1 = vrot.slane %v9239_v14, 1  ;;  %v1804_v14 = vrot.slane %v8840_v61, 2 }
  0xde   : > { %v612_v2 = vpop.f32.mrf.mxu0  ;;  %v795_v6 = vpop.f32.mrf.mxu3 }
  0xdf   : > { %v9388_v13 = vadd.f32 %v750_v56, %v612_v2  ;;  %v837_v52 = vsel %vm12715_vm4, %v834_v12, %v836_v1 }
  0xe0   : > { %v753_v5 = vpop.f32.mrf.mxu1 }
  0xe3   : > { %8301 = vmatmul.msk.bf16.gmra.mxu1 %vm522_vm1, %v1801_v16  ;;  %8263 = vmatmul.msk.bf16.gmra.mxu3 %vm522_vm1, %v1196_v18 }
  0xe4   : > { %v657_v20 = vpop.f32.mrf.mxu2 }
  0xe5   : > { %v9395_v25 = vadd.f32 %v795_v6, %v657_v20  ;;  %v1485_v20 = vshrl.u32 %v8840_v61, 16 }
  0xe6   : > { %v615_v21 = vpop.f32.mrf.mxu0  ;;  %v798_v26 = vpop.f32.mrf.mxu3 }
  0xe7   : > { %v9398_v34 = vadd.f32 %v753_v5, %v615_v21  ;;  %v1483_v5 = vsel %vm12713_vm5, %v1473_v19, %v1482_v60  ;;  %v1488_v21 = vshll.u32 %v8840_v61, 16  ;;  %v1487_v19 = vrot.slane %v1485_v20, 1 }
  0xe8   : > { %v755_v35 = vpop.f32.mrf.mxu1 }
  0xe9   : > { %8282 = vmatmul.msk.bf16.gmra.mxu0 %vm522_vm1, %v1474_v33  ;;  %8176 = vmatmul.msk.bf16.gmra.mxu2 %vm522_vm1, %v835_v40  ;;  %v1490_v37 = vrot.slane %v1488_v21, 2 }
  0xec   : > { %v660_v43 = vpop.f32.mrf.mxu2 }
  0xed   : > { %v9404_v49 = vadd.f32 %v798_v26, %v660_v43  ;;  %v1199_v26 = vrot.slane %v8840_v61, 1  ;;  %v1805_v43 = vsel %vm1790_vm3, %v1802_v0, %v1804_v14  ;;  %v839_v0 = vsel %vm12715_vm4, %v836_v1, %v838_v22 }
  0xee   : > { %v617_v48 = vpop.f32.mrf.mxu0  ;;  %v800_v50 = vpop.f32.mrf.mxu3 }
  0xef   : > { %v9406_v56 = vadd.f32 %v755_v35, %v617_v48  ;;  %v1200_v48 = vsel %vm12715_vm4, %v1197_v39, %v1199_v26  ;;  %v8841_v39 = vld [vmem:[%s9143_s8 + $0x48] sm:$0xff] }
  0xf0   : > { %v758_v46 = vpop.f32.mrf.mxu1  ;;  %v1806_v30 = vrot.slane %v8841_v39, 2 }
  0xf3   : > { %8302 = vmatmul.msk.bf16.gmra.mxu1 %vm522_vm1, %v1803_v54  ;;  %8264 = vmatmul.msk.bf16.gmra.mxu3 %vm522_vm1, %v1198_v59 }
  0xf4   : > { %v662_v2 = vpop.f32.mrf.mxu2 }
  0xf5   : > { %v9413_v4 = vadd.f32 %v800_v50, %v662_v2  ;;  %v1491_v50 = vor.u32 %v1490_v37, %v1487_v19  ;;  %v1807_v19 = vsel %vm1790_vm3, %v1804_v14, %v1806_v30 }
  0xf6   : > { %v620_v6 = vpop.f32.mrf.mxu0  ;;  %v803_v8 = vpop.f32.mrf.mxu3 }
  0xf7   : > { %v9416_v16 = vadd.f32 %v758_v46, %v620_v6  ;;  %v1492_v2 = vsel %vm12713_vm5, %v1482_v60, %v1491_v50 }
  0xf8   : > { %v760_v18 = vpop.f32.mrf.mxu1 }
  0xf9   : > { %8283 = vmatmul.msk.bf16.gmra.mxu0 %vm522_vm1, %v1483_v5  ;;  %8177 = vmatmul.msk.bf16.gmra.mxu2 %vm522_vm1, %v837_v52  ;;  %v1494_v5 = vshrl.u32 %v8841_v39, 16  ;;  %v1497_v52 = vshll.u32 %v8841_v39, 16 }
  0xfb   : > { %v1496_v60 = vrot.slane %v1494_v5, 1 }
  0xfc   : > { %v665_v33 = vpop.f32.mrf.mxu2 }
  0xfd   : > { %v9422_v35 = vadd.f32 %v803_v8, %v665_v33 }
  0xfe   : > { %v622_v40 = vpop.f32.mrf.mxu0  ;;  %v805_v23 = vpop.f32.mrf.mxu3 }
  0xff   : > { %v9424_v38 = vadd.f32 %v760_v18, %v622_v40  ;;  %v1201_v18 = vrot.slane %v8841_v39, 1  ;;  %v1499_v40 = vrot.slane %v1497_v52, 2 }
 0x100   : > { %v763_v12 = vpop.f32.mrf.mxu1 }
 0x101   : > { %v1202_v37 = vsel %vm12715_vm4, %v1199_v26, %v1201_v18  ;;  %v8842_v26 = vld [vmem:[%s9143_s8 + $0x50] sm:$0xff] }
 0x102   : > { %v1503_v39 = vshrl.u32 %v8842_v26, 16  ;;  %v1506_v5 = vshll.u32 %v8842_v26, 16  ;;  %v1203_v52 = vrot.slane %v8842_v26, 1 }
 0x103   : > { %8303 = vmatmul.msk.bf16.gmra.mxu1 %vm522_vm1, %v1805_v43  ;;  %8265 = vmatmul.msk.bf16.gmra.mxu3 %vm522_vm1, %v1200_v48  ;;  %v840_v43 = vrot.slane %v9265_v44, 1  ;;  %v1808_v44 = vrot.slane %v8842_v26, 2 }
 0x104   : > { %v667_v28 = vpop.f32.mrf.mxu2 }
 0x105   : > { %v9431_v54 = vadd.f32 %v805_v23, %v667_v28  ;;  %v841_v14 = vsel %vm12715_vm4, %v838_v22, %v840_v43 }
 0x106   : > { %v625_v46 = vpop.f32.mrf.mxu0  ;;  %v808_v59 = vpop.f32.mrf.mxu3 }
 0x107   : > { %v9434_v6 = vadd.f32 %v763_v12, %v625_v46  ;;  %v1500_v12 = vor.u32 %v1499_v40, %v1496_v60  ;;  %v1508_v40 = vrot.slane %v1506_v5, 2 }
 0x108   : > { %v765_v8 = vpop.f32.mrf.mxu1 }
 0x109   : > { %8284 = vmatmul.msk.bf16.gmra.mxu0 %vm522_vm1, %v1492_v2  ;;  %8178 = vmatmul.msk.bf16.gmra.mxu2 %vm522_vm1, %v839_v0  ;;  %v1501_v2 = vsel %vm12713_vm5, %v1491_v50, %v1500_v12  ;;  %v1505_v50 = vrot.slane %v1503_v39, 1 }
 0x10c   : > { %v670_v61 = vpop.f32.mrf.mxu2 }
 0x10d   : > { %v9440_v21 = vadd.f32 %v808_v59, %v670_v61 }
 0x10e   : > { %v627_v20 = vpop.f32.mrf.mxu0  ;;  %v810_v33 = vpop.f32.mrf.mxu3 }
 0x10f   : > { %v9442_v23 = vadd.f32 %v765_v8, %v627_v20 }
 0x110   : > { %v768_v1 = vpop.f32.mrf.mxu1 }
 0x113   : > { %8304 = vmatmul.msk.bf16.gmra.mxu1 %vm522_vm1, %v1807_v19  ;;  %8266 = vmatmul.msk.bf16.gmra.mxu3 %vm522_vm1, %v1202_v37  ;;  %v1809_v19 = vsel %vm1790_vm3, %v1806_v30, %v1808_v44  ;;  %v1204_v37 = vsel %vm12715_vm4, %v1201_v18, %v1203_v52  ;;  %v8843_v30 = vld [vmem:[%s9143_s8 + $0x58] sm:$0xff] }
 0x114   : > { %v672_v48 = vpop.f32.mrf.mxu2  ;;  %v1512_v18 = vshrl.u32 %v8843_v30, 16 }
 0x115   : > { %v9449_v46 = vadd.f32 %v810_v33, %v672_v48  ;;  %v1509_v48 = vor.u32 %v1508_v40, %v1505_v50  ;;  %v1205_v50 = vrot.slane %v8843_v30, 1 }
 0x116   : > { %v630_v28 = vpop.f32.mrf.mxu0  ;;  %v813_v59 = vpop.f32.mrf.mxu3 }
 0x117   : > { %12730 = vst [vmem:[#allocation5_spill] sm:$0xff] %v9449_v46  ;;  %v9452_v0 = vadd.f32 %v768_v1, %v630_v28  ;;  %v842_v28 = vrot.slane %v9146_v10, 1 }
 0x118   : > { %v770_v8 = vpop.f32.mrf.mxu1 }
 0x119   : > { %8285 = vmatmul.msk.bf16.gmra.mxu0 %vm522_vm1, %v1501_v2  ;;  %8179 = vmatmul.msk.bf16.gmra.mxu2 %vm522_vm1, %v841_v14  ;;  %v843_v39 = vsel %vm12715_vm4, %v840_v43, %v842_v28 }
 0x11c   : > { %v675_v61 = vpop.f32.mrf.mxu2 }
 0x11d   : > { %v9458_v33 = vadd.f32 %v813_v59, %v675_v61  ;;  %v1515_v61 = vshll.u32 %v8843_v30, 16 }
 0x11e   : > { %v632_v20 = vpop.f32.mrf.mxu0  ;;  %v815_v60 = vpop.f32.mrf.mxu3 }
 0x11f   : > { %12731 = vst [vmem:[#allocation6_spill] sm:$0xff] %v9458_v33  ;;  %v9460_v1 = vadd.f32 %v770_v8, %v632_v20  ;;  %v1510_v8 = vsel %vm12713_vm5, %v1500_v12, %v1509_v48  ;;  %v1810_v20 = vrot.slane %v8843_v30, 2  ;;  %v844_v30 = vrot.slane %v9153_v15, 1 }
 0x120   : > { %v1894_v22 = vpop.f32.mrf.mxu1 }
 0x121   : > { %v1811_v43 = vsel %vm1790_vm3, %v1808_v44, %v1810_v20 }
 0x123   : > { %8305 = vmatmul.msk.bf16.gmra.mxu1 %vm522_vm1, %v1809_v19  ;;  %8267 = vmatmul.msk.bf16.gmra.mxu3 %vm522_vm1, %v1204_v37  ;;  %v1514_v37 = vrot.slane %v1512_v18, 1 }
 0x124   : > { %v677_v59 = vpop.f32.mrf.mxu2 }
 0x125   : > { %v9467_v2 = vadd.f32 %v815_v60, %v677_v59  ;;  %v1517_v59 = vrot.slane %v1515_v61, 2 }
 0x126   : > { %v1658_v14 = vpop.f32.mrf.mxu0  ;;  %v1289_v26 = vpop.f32.mrf.mxu3 }
 0x127   : > { %12732 = vst [vmem:[#allocation7_spill] sm:$0xff] %v9467_v2 }
 0x128   : > { %v1896_v5 = vpop.f32.mrf.mxu1 }
 0x129   : > { %8286 = vmatmul.msk.bf16.gmra.mxu0 %vm522_vm1, %v1510_v8  ;;  %8180 = vmatmul.msk.bf16.gmra.mxu2 %vm522_vm1, %v843_v39  ;;  %v1206_v8 = vsel %vm12715_vm4, %v1203_v52, %v1205_v50  ;;  %v1518_v39 = vor.u32 %v1517_v59, %v1514_v37 }
 0x12b   : > { %v1519_v44 = vsel %vm12713_vm5, %v1509_v48, %v1518_v39 }
 0x12c   : > { %v928_v10 = vpop.f32.mrf.mxu2 }
 0x12d   : > { %v1018_v60 = vadd.f32 %v928_v10, %v9306_v27 }
 0x12e   : > { %v1660_v40 = vpop.f32.mrf.mxu0  ;;  %v1291_v19 = vpop.f32.mrf.mxu3 }
 0x12f   : > { %v1379_v2 = vadd.f32 %v1289_v26, %v1018_v60  ;;  %v845_v26 = vsel %vm12715_vm4, %v842_v28, %v844_v30 }
 0x130   : > { %v1899_v12 = vpop.f32.mrf.mxu1 }
 0x131   : > { %v1748_v33 = vadd.f32 %v1658_v14, %v1379_v2  ;;  %v8844_v2 = vld [vmem:[%s9143_s8 + $0x60] sm:$0xff] }
 0x132   : > { %v1521_v15 = vshrl.u32 %v8844_v2, 16 }
 0x133   : > { %8306 = vmatmul.msk.bf16.gmra.mxu1 %vm522_vm1, %v1811_v43  ;;  %8268 = vmatmul.msk.bf16.gmra.mxu3 %vm522_vm1, %v1206_v8  ;;  %v9480_v27 = vadd.f32 %v1894_v22, %v1748_v33  ;;  %v1524_v33 = vshll.u32 %v8844_v2, 16  ;;  %v1812_v22 = vrot.slane %v8844_v2, 2 }
 0x134   : > { %v930_v10 = vpop.f32.mrf.mxu2  ;;  %v1523_v28 = vrot.slane %v1521_v15, 1 }
 0x135   : > { %v1019_v18 = vadd.f32 %v930_v10, %v9316_v58  ;;  %v1207_v58 = vrot.slane %v8844_v2, 1  ;;  %v1813_v10 = vsel %vm1790_vm3, %v1810_v20, %v1812_v22 }
 0x136   : > { %v1663_v61 = vpop.f32.mrf.mxu0  ;;  %v1294_v46 = vpop.f32.mrf.mxu3 }
 0x137   : > { %v1380_v52 = vadd.f32 %v1291_v19, %v1019_v18  ;;  %v1526_v19 = vrot.slane %v1524_v33, 2  ;;  %v8845_v33 = vld [vmem:[%s9143_s8 + $0x68] sm:$0xff] }
 0x138   : > { %v1901_v14 = vpop.f32.mrf.mxu1 }
 0x139   : > { %8287 = vmatmul.msk.bf16.gmra.mxu0 %vm522_vm1, %v1519_v44  ;;  %8181 = vmatmul.msk.bf16.gmra.mxu2 %vm522_vm1, %v845_v26  ;;  %v1749_v60 = vadd.f32 %v1660_v40, %v1380_v52  ;;  %v1208_v44 = vsel %vm12715_vm4, %v1205_v50, %v1207_v58  ;;  %v1527_v26 = vor.u32 %v1526_v19, %v1523_v28  ;;  %v1209_v19 = vrot.slane %v8845_v33, 1 }
 0x13b   : > { %v9488_v37 = vadd.f32 %v1896_v5, %v1749_v60  ;;  %v846_v5 = vrot.slane %v9173_v29, 1  ;;  %v1530_v29 = vshrl.u32 %v8845_v33, 16 }
 0x13c   : > { %v933_v59 = vpop.f32.mrf.mxu2 }
 0x13d   : > { %v1020_v43 = vadd.f32 %v933_v59, %v9326_v11  ;;  %v847_v50 = vsel %vm12715_vm4, %v844_v30, %v846_v5  ;;  %v1532_v30 = vrot.slane %v1530_v29, 1  ;;  %v8846_v29 = vld [vmem:[%s9143_s8 + $0x70] sm:$0xff] }
 0x13e   : > { %v1665_v48 = vpop.f32.mrf.mxu0  ;;  %v1296_v8 = vpop.f32.mrf.mxu3 }
 0x13f   : > { %v1381_v18 = vadd.f32 %v1294_v46, %v1020_v43  ;;  %v1528_v46 = vsel %vm12713_vm5, %v1518_v39, %v1527_v26  ;;  %v1533_v43 = vshll.u32 %v8845_v33, 16 }
 0x140   : > { %v1904_v52 = vpop.f32.mrf.mxu1 }
 0x141   : > { %v1750_v40 = vadd.f32 %v1663_v61, %v1381_v18 }
 0x143   : > { %8307 = vmatmul.msk.bf16.gmra.mxu1 %vm522_vm1, %v1813_v10  ;;  %8269 = vmatmul.msk.bf16.gmra.mxu3 %vm522_vm1, %v1208_v44  ;;  %v9496_v11 = vadd.f32 %v1899_v12, %v1750_v40  ;;  %v1814_v12 = vrot.slane %v8845_v33, 2 }
 0x144   : > { %v935_v2 = vpop.f32.mrf.mxu2 }
 0x145   : > { %v1021_v60 = vadd.f32 %v935_v2, %v9334_v32  ;;  %v1815_v40 = vsel %vm1790_vm3, %v1812_v22, %v1814_v12 }
 0x146   : > { %v1668_v15 = vpop.f32.mrf.mxu0  ;;  %v1299_v20 = vpop.f32.mrf.mxu3 }
 0x147   : > { %v1382_v61 = vadd.f32 %v1296_v8, %v1021_v60  ;;  %v1535_v8 = vrot.slane %v1533_v43, 2 }
 0x148   : > { %v1906_v10 = vpop.f32.mrf.mxu1 }
 0x149   : > { %8288 = vmatmul.msk.bf16.gmra.mxu0 %vm522_vm1, %v1528_v46  ;;  %8182 = vmatmul.msk.bf16.gmra.mxu2 %vm522_vm1, %v847_v50  ;;  %v1751_v59 = vadd.f32 %v1665_v48, %v1382_v61  ;;  %v1210_v48 = vsel %vm12715_vm4, %v1207_v58, %v1209_v19  ;;  %v1536_v46 = vor.u32 %v1535_v8, %v1532_v30 }
 0x14b   : > { %v9504_v28 = vadd.f32 %v1901_v14, %v1751_v59  ;;  %v848_v14 = vrot.slane %v9191_v41, 1  ;;  %v1537_v22 = vsel %vm12713_vm5, %v1527_v26, %v1536_v46  ;;  %v1539_v41 = vshrl.u32 %v8846_v29, 16 }
 0x14c   : > { %v938_v32 = vpop.f32.mrf.mxu2 }
 0x14d   : > { %v1022_v18 = vadd.f32 %v938_v32, %v9344_v47  ;;  %v1816_v32 = vrot.slane %v8846_v29, 2 }
 0x14e   : > { %v1670_v39 = vpop.f32.mrf.mxu0  ;;  %v1301_v44 = vpop.f32.mrf.mxu3 }
 0x14f   : > { %v1383_v2 = vadd.f32 %v1299_v20, %v1022_v18  ;;  %v849_v20 = vsel %vm12715_vm4, %v846_v5, %v848_v14  ;;  %v1541_v5 = vrot.slane %v1539_v41, 1 }
 0x150   : > { %v1909_v58 = vpop.f32.mrf.mxu1 }
 0x151   : > { %v1752_v60 = vadd.f32 %v1668_v15, %v1383_v2 }
 0x153   : > { %8308 = vmatmul.msk.bf16.gmra.mxu1 %vm522_vm1, %v1815_v40  ;;  %8270 = vmatmul.msk.bf16.gmra.mxu3 %vm522_vm1, %v1210_v48  ;;  %v9512_v50 = vadd.f32 %v1904_v52, %v1752_v60  ;;  %v1542_v52 = vshll.u32 %v8846_v29, 16 }
 0x154   : > { %v940_v47 = vpop.f32.mrf.mxu2 }
 0x155   : > { %v1023_v61 = vadd.f32 %v940_v47, %v9352_v63  ;;  %v1211_v63 = vrot.slane %v8846_v29, 1  ;;  %v1544_v2 = vrot.slane %v1542_v52, 2 }
 0x156   : > { %v1673_v33 = vpop.f32.mrf.mxu0  ;;  %v1304_v59 = vpop.f32.mrf.mxu3 }
 0x157   : > { %v1384_v15 = vadd.f32 %v1301_v44, %v1023_v61  ;;  %v1817_v44 = vsel %vm1790_vm3, %v1814_v12, %v1816_v32  ;;  %v1212_v60 = vsel %vm12715_vm4, %v1209_v19, %v1211_v63  ;;  %v1545_v61 = vor.u32 %v1544_v2, %v1541_v5 }
 0x159   : > { %8289 = vmatmul.msk.bf16.gmra.mxu0 %vm522_vm1, %v1537_v22  ;;  %8183 = vmatmul.msk.bf16.gmra.mxu2 %vm522_vm1, %v849_v20  ;;  %v1753_v43 = vadd.f32 %v1670_v39, %v1384_v15  ;;  %v1911_v39 = vpop.f32.mrf.mxu1 }
 0x15b   : > { %v9520_v18 = vadd.f32 %v1906_v10, %v1753_v43  ;;  %v850_v10 = vrot.slane %v9209_v53, 1 }
 0x15c   : > { %v943_v30 = vpop.f32.mrf.mxu2 }
 0x15d   : > { %v1024_v8 = vadd.f32 %v943_v30, %v9362_v17  ;;  %v851_v19 = vsel %vm12715_vm4, %v848_v14, %v850_v10 }
 0x15e   : > { %v1675_v26 = vpop.f32.mrf.mxu0  ;;  %v1306_v40 = vpop.f32.mrf.mxu3 }
 0x15f   : > { %v1385_v48 = vadd.f32 %v1304_v59, %v1024_v8  ;;  %v1546_v59 = vsel %vm12713_vm5, %v1536_v46, %v1545_v61 }
 0x161   : > { %v1754_v47 = vadd.f32 %v1673_v33, %v1385_v48  ;;  %v8847_v33 = vld [vmem:[%s9143_s8 + $0x78] sm:$0xff] }
 0x162   : > { %v1548_v41 = vshrl.u32 %v8847_v33, 16  ;;  %v1551_v53 = vshll.u32 %v8847_v33, 16  ;;  %v1818_v52 = vrot.slane %v8847_v33, 2 }
 0x163   : > { %8309 = vmatmul.msk.bf16.gmra.mxu1 %vm522_vm1, %v1817_v44  ;;  %8271 = vmatmul.msk.bf16.gmra.mxu3 %vm522_vm1, %v1212_v60  ;;  %v9528_v17 = vadd.f32 %v1909_v58, %v1754_v47  ;;  %v1914_v58 = vpop.f32.mrf.mxu1 }
 0x164   : > { %v945_v22 = vpop.f32.mrf.mxu2  ;;  %v1553_v2 = vrot.slane %v1551_v53, 2  ;;  %v1819_v44 = vsel %vm1790_vm3, %v1816_v32, %v1818_v52 }
 0x165   : > { %v1025_v20 = vadd.f32 %v945_v22, %v9370_v36  ;;  %v1213_v36 = vrot.slane %v8847_v33, 1  ;;  %v8848_v33 = vld [vmem:[%s9143_s8 + $0x80] sm:$0xff] }
 0x166   : > { %v1678_v15 = vpop.f32.mrf.mxu0  ;;  %v1309_v12 = vpop.f32.mrf.mxu3  ;;  %v1560_v53 = vshll.u32 %v8848_v33, 16 }
 0x167   : > { %v1386_v29 = vadd.f32 %v1306_v40, %v1025_v20  ;;  %v1550_v40 = vrot.slane %v1548_v41, 1  ;;  %v1557_v41 = vshrl.u32 %v8848_v33, 16 }
 0x169   : > { %8290 = vmatmul.msk.bf16.gmra.mxu0 %vm522_vm1, %v1546_v59  ;;  %8184 = vmatmul.msk.bf16.gmra.mxu2 %vm522_vm1, %v851_v19  ;;  %v1755_v43 = vadd.f32 %v1675_v26, %v1386_v29  ;;  %v1214_v26 = vsel %vm12715_vm4, %v1211_v63, %v1213_v36  ;;  %v1554_v47 = vor.u32 %v1553_v2, %v1550_v40 }
 0x16b   : > { %v9536_v30 = vadd.f32 %v1911_v39, %v1755_v43  ;;  %v9046_v39 = vld [vmem:[%s9143_s8 + $0x70] sm:$0xff]  ;;  %v1916_v59 = vpop.f32.mrf.mxu1 }
 0x16c   : > { %v948_v8 = vpop.f32.mrf.mxu2  ;;  %v852_v22 = vrot.slane %v9046_v39, 1 }
 0x16d   : > { %v1026_v46 = vadd.f32 %v948_v8, %v9380_v55 }
 0x16e   : > { %v1680_v5 = vpop.f32.mrf.mxu0  ;;  %v1311_v14 = vpop.f32.mrf.mxu3  ;;  %v853_v63 = vsel %vm12715_vm4, %v850_v10, %v852_v22  ;;  %v1559_v10 = vrot.slane %v1557_v41, 1 }
 0x16f   : > { %v1387_v48 = vadd.f32 %v1309_v12, %v1026_v46  ;;  %v1555_v12 = vsel %vm12713_vm5, %v1545_v61, %v1554_v47 }
 0x171   : > { %v1756_v60 = vadd.f32 %v1678_v15, %v1387_v48 }
 0x173   : > { %8310 = vmatmul.msk.bf16.gmra.mxu1 %vm522_vm1, %v1819_v44  ;;  %8272 = vmatmul.msk.bf16.gmra.mxu3 %vm522_vm1, %v1214_v26  ;;  %v9544_v20 = vadd.f32 %v1914_v58, %v1756_v60  ;;  %v1820_v58 = vrot.slane %v8848_v33, 2  ;;  %v1919_v44 = vpop.f32.mrf.mxu1 }
 0x174   : > { %v950_v55 = vpop.f32.mrf.mxu2 }
 0x175   : > { %v1027_v19 = vadd.f32 %v950_v55, %v9388_v13  ;;  %v1215_v13 = vrot.slane %v8848_v33, 1  ;;  %v1821_v48 = vsel %vm1790_vm3, %v1818_v52, %v1820_v58  ;;  %v9047_v55 = vld [vmem:[%s9143_s8 + $0x78] sm:$0xff] }
 0x176   : > { %v1683_v29 = vpop.f32.mrf.mxu0  ;;  %v1314_v32 = vpop.f32.mrf.mxu3 }
 0x177   : > { %v1388_v15 = vadd.f32 %v1311_v14, %v1027_v19  ;;  %v1562_v14 = vrot.slane %v1560_v53, 2 }
 0x179   : > { %8291 = vmatmul.msk.bf16.gmra.mxu0 %vm522_vm1, %v1555_v12  ;;  %8185 = vmatmul.msk.bf16.gmra.mxu2 %vm522_vm1, %v853_v63  ;;  %v1757_v43 = vadd.f32 %v1680_v5, %v1388_v15  ;;  %v1216_v5 = vsel %vm12715_vm4, %v1213_v36, %v1215_v13  ;;  %v1563_v39 = vor.u32 %v1562_v14, %v1559_v10 }
 0x17b   : > { %v9552_v8 = vadd.f32 %v1916_v59, %v1757_v43  ;;  %v854_v59 = vrot.slane %v9047_v55, 1  ;;  %v1564_v52 = vsel %vm12713_vm5, %v1554_v47, %v1563_v39  ;;  %v1921_v33 = vpop.f32.mrf.mxu1  ;;  %v9048_v55 = vld [vmem:[%s9143_s8 + $0x80] sm:$0xff] }
 0x17c   : > { %v953_v46 = vpop.f32.mrf.mxu2 }
 0x17d   : > { %12733 = vst [vmem:[#allocation8_spill] sm:$0xff] %v9552_v8  ;;  %v1028_v40 = vadd.f32 %v953_v46, %v9398_v34 }
 0x17e   : > { %v1685_v61 = vpop.f32.mrf.mxu0  ;;  %v1316_v2 = vpop.f32.mrf.mxu3 }
 0x17f   : > { %v1389_v26 = vadd.f32 %v1314_v32, %v1028_v40  ;;  %v855_v32 = vsel %vm12715_vm4, %v852_v22, %v854_v59 }
 0x181   : > { %v1758_v60 = vadd.f32 %v1683_v29, %v1389_v26  ;;  %v8849_v29 = vld [vmem:[%s9143_s8 + $0x88] sm:$0xff] }
 0x182   : > { %v1566_v41 = vshrl.u32 %v8849_v29, 16  ;;  %v1569_v53 = vshll.u32 %v8849_v29, 16  ;;  %v1822_v46 = vrot.slane %v8849_v29, 2 }
 0x183   : > { %8311 = vmatmul.msk.bf16.gmra.mxu1 %vm522_vm1, %v1821_v48  ;;  %8273 = vmatmul.msk.bf16.gmra.mxu3 %vm522_vm1, %v1216_v5  ;;  %v9560_v34 = vadd.f32 %v1919_v44, %v1758_v60 }
 0x184   : > { %v955_v19 = vpop.f32.mrf.mxu2  ;;  %v1571_v44 = vrot.slane %v1569_v53, 2  ;;  %v1823_v48 = vsel %vm1790_vm3, %v1820_v58, %v1822_v46 }
 0x185   : > { %12734 = vst [vmem:[#allocation9_spill] sm:$0xff] %v9560_v34  ;;  %v1029_v12 = vadd.f32 %v955_v19, %v9406_v56  ;;  %v1217_v56 = vrot.slane %v8849_v29, 1  ;;  %v856_v19 = vrot.slane %v9048_v55, 1  ;;  %v8850_v29 = vld [vmem:[%s9143_s8 + $0x90] sm:$0xff] }
 0x186   : > { %v1688_v63 = vpop.f32.mrf.mxu0  ;;  %v1319_v15 = vpop.f32.mrf.mxu3  ;;  %v1219_v53 = vrot.slane %v8850_v29, 1 }
 0x187   : > { %v1390_v36 = vadd.f32 %v1316_v2, %v1029_v12  ;;  %v1568_v2 = vrot.slane %v1566_v41, 1  ;;  %v1218_v5 = vsel %vm12715_vm4, %v1215_v13, %v1217_v56  ;;  %v1578_v41 = vshll.u32 %v8850_v29, 16 }
 0x189   : > { %8292 = vmatmul.msk.bf16.gmra.mxu0 %vm522_vm1, %v1564_v52  ;;  %8186 = vmatmul.msk.bf16.gmra.mxu2 %vm522_vm1, %v855_v32  ;;  %v1759_v43 = vadd.f32 %v1685_v61, %v1390_v36  ;;  %v1572_v60 = vor.u32 %v1571_v44, %v1568_v2  ;;  %v857_v32 = vsel %vm12715_vm4, %v854_v59, %v856_v19  ;;  %v1580_v2 = vrot.slane %v1578_v41, 2  ;;  %v2020_v41 = vld [vmem:[%s9143_s8 + $0x10] sm:$0xc] }
 0x18b   : > { %v9568_v40 = vadd.f32 %v1921_v33, %v1759_v43  ;;  %v1573_v52 = vsel %vm12713_vm5, %v1563_v39, %v1572_v60  ;;  %v1575_v43 = vshrl.u32 %v8850_v29, 16 }
 0x18c   : > { %v958_v10 = vpop.f32.mrf.mxu2 }
 0x18d   : > { %12735 = vst [vmem:[#allocation10_spill] sm:$0xff] %v9568_v40  ;;  %v1030_v47 = vadd.f32 %v958_v10, %v9416_v16  ;;  %v8440_v16 = vld [vmem:[%s12705_s3 + $0x4] sm:$0xf] }
 0x18e   : > { %v1690_v14 = vpop.f32.mrf.mxu0  ;;  %v1321_v22 = vpop.f32.mrf.mxu3  ;;  %v5314_v58 = vsel %vm12726_vm6, %v8440_v16, 0 }
 0x18f   : > { %v1391_v26 = vadd.f32 %v1319_v15, %v1030_v47  ;;  %5323 = vmatpush.bf16.msra.mxu1 %v5314_v58 }
 0x191   : > { %v9573_v61 = vadd.f32 %v1688_v63, %v1391_v26 }
 0x193   : > { %8312 = vmatmul.msk.bf16.gmra.mxu1 %vm522_vm1, %v1823_v48  ;;  %8274 = vmatmul.msk.bf16.gmra.mxu3 %vm522_vm1, %v1218_v5  ;;  %v1415_v48 = vld [vmem:[%s9143_s8 + $0x98] sm:$0x3]  ;;  %v1220_v5 = vsel %vm12715_vm4, %v1217_v56, %v1219_v53 }
 0x194   : > { %v960_v12 = vpop.f32.mrf.mxu2 }
 0x195   : > { %v1031_v13 = vadd.f32 %v960_v12, %v9424_v38  ;;  %v1824_v38 = vrot.slane %v8850_v29, 2  ;;  %v1419_v12 = vunpack.c.l.b16 %v1415_v48 }
 0x196   : > { %v1693_v63 = vpop.f32.mrf.mxu0  ;;  %v1324_v15 = vpop.f32.mrf.mxu3 }
 0x197   : > { %v1392_v36 = vadd.f32 %v1321_v22, %v1031_v13  ;;  %v1577_v22 = vrot.slane %v1575_v43, 1  ;;  %v1825_v44 = vsel %vm1790_vm3, %v1822_v46, %v1824_v38 }
 0x199   : > { %8293 = vmatmul.msk.bf16.gmra.mxu0 %vm522_vm1, %v1573_v52  ;;  %8187 = vmatmul.msk.bf16.gmra.mxu2 %vm522_vm1, %v857_v32  ;;  %v9588_v33 = vadd.f32 %v1690_v14, %v1392_v36  ;;  %v1090_v14 = vld [vmem:[%s9143_s8 + $0x98] sm:$0x1]  ;;  %v1581_v16 = vor.u32 %v1580_v2, %v1577_v22  ;;  %v2096_v2 = vunpack.c.l.b16 %v2020_v41 }
 0x19a   : > { %v1166_v13 = vunpack.c.l.b16 %v1090_v14 }
 0x19b   : > { %v1582_v56 = vsel %vm12713_vm5, %v1572_v60, %v1581_v16 }
 0x19c   : > { %v963_v10 = vpop.f32.mrf.mxu2  ;;  %v1185_v43 = vpack.c.b16 %v1166_v13, %v1166_v13 }
 0x19d   : > { %v1032_v39 = vadd.f32 %v963_v10, %v9434_v6  ;;  %v9049_v6 = vld [vmem:[%s9143_s8 + $0x88] sm:$0xff]  ;;  %v2021_v10 = vld [vmem:[%s9143_s8 + $0x14] sm:$0xf] }
 0x19e   : > { %v1695_v47 = vpop.f32.mrf.mxu0  ;;  %v1326_v59 = vpop.f32.mrf.mxu3  ;;  %v858_v58 = vrot.slane %v9049_v6, 1  ;;  %v1221_v60 = vrot.slane %v1185_v43, 1 }
 0x19f   : > { %v1393_v26 = vadd.f32 %v1324_v15, %v1032_v39 }
 0x1a0   : > { %v859_v36 = vsel %vm12715_vm4, %v856_v19, %v858_v58 }
 0x1a1   : > { %v9595_v55 = vadd.f32 %v1693_v63, %v1393_v26  ;;  %v1420_v63 = vpack.c.b16 %v1419_v12, %v1419_v12 }
 0x1a3   : > { %8313 = vmatmul.msk.bf16.gmra.mxu1 %vm522_vm1, %v1825_v44  ;;  %8275 = vmatmul.msk.bf16.gmra.mxu3 %vm522_vm1, %v1220_v5  ;;  %v1584_v22 = vshrl.u32 %v1420_v63, 16  ;;  %v2097_v44 = vunpack.c.l.b16 %v2021_v10  ;;  %v1826_v48 = vrot.slane %v1420_v63, 2 }
 0x1a4   : > { %v965_v52 = vpop.f32.mrf.mxu2 }
 0x1a5   : > { %v1033_v46 = vadd.f32 %v965_v52, %v9442_v23  ;;  %v1587_v23 = vshll.u32 %v1420_v63, 16  ;;  %v1586_v14 = vrot.slane %v1584_v22, 1  ;;  %v2133_v6 = vpack.c.b16 %v2097_v44, %v2096_v2  ;;  %v2750_v2 = vld [vmem:[%s9143_s8 + $0x10] sm:$0x8] }
 0x1a6   : > { %v1698_v15 = vpop.f32.mrf.mxu0  ;;  %v1329_v32 = vpop.f32.mrf.mxu3  ;;  %v1827_v13 = vsel %vm1790_vm3, %v1824_v38, %v1826_v48 }
 0x1a7   : > { %v1394_v29 = vadd.f32 %v1326_v59, %v1033_v46  ;;  %v1589_v12 = vrot.slane %v1587_v23, 2  ;;  %v9613_v46 = vld [vmem:[%s9143_s8 + $0x18] sm:$0xff] }
 0x1a8   : > { %v2397_v43 = vshrl.u32 %v9613_v46, 16  ;;  %v2400_v38 = vshll.u32 %v9613_v46, 16 }
 0x1a9   : > { %8294 = vmatmul.msk.bf16.gmra.mxu0 %vm522_vm1, %v1582_v56  ;;  %8188 = vmatmul.msk.bf16.gmra.mxu2 %vm522_vm1, %v859_v36  ;;  %v9607_v39 = vadd.f32 %v1695_v47, %v1394_v29  ;;  %v1222_v47 = vsel %vm12715_vm4, %v1219_v53, %v1221_v60  ;;  %v1590_v63 = vor.u32 %v1589_v12, %v1586_v14  ;;  %v2389_v36 = vshrl.u32 %v2133_v6, 16 }
 0x1aa   : > { %v2392_v29 = vshll.u32 %v2133_v6, 16 }
 0x1ab   : > { %v1591_v10 = vsel %vm12713_vm5, %v1581_v16, %v1590_v63  ;;  %v2391_v23 = vrot.slane %v2389_v36, 2 }
 0x1ac   : > { %v968_v26 = vpop.f32.mrf.mxu2  ;;  %v2394_v60 = vrot.slane %v2392_v29, 3 }
 0x1ad   : > { %v1034_v19 = vadd.f32 %v968_v26, %v9452_v0  ;;  %v860_v0 = vrot.slane %v9284_v62, 1  ;;  %v2399_v62 = vrot.slane %v2397_v43, 2  ;;  %v2402_v26 = vrot.slane %v2400_v38, 3 }
 0x1ae   : > { %v1700_v59 = vpop.f32.mrf.mxu0  ;;  %v1331_v5 = vpop.f32.mrf.mxu3  ;;  %v2395_v14 = vor.u32 %v2394_v60, %v2391_v23  ;;  %v2152_v43 = vrot.slane %v2133_v6, 2  ;;  %v2153_v38 = vrot.slane %v9613_v46, 2 }
 0x1af   : > { %v1395_v52 = vadd.f32 %v1329_v32, %v1034_v19  ;;  %v861_v22 = vsel %vm12715_vm4, %v858_v58, %v860_v0  ;;  %v2403_v12 = vor.u32 %v2402_v26, %v2399_v62  ;;  %v9633_v0 = vld [vmem:[%s9143_s8 + $0x20] sm:$0xff]  ;;  %vm3619_vm4 = vsmask.f32 3338 }
 0x1b1   : > { %v9615_v56 = vadd.f32 %v1698_v15, %v1395_v52  ;;  %v2404_v63 = vsel %vm2387_vm7, %v2395_v14, %v2403_v12 }
 0x1b3   : > { %8314 = vmatmul.msk.bf16.gmra.mxu1 %vm522_vm1, %v1827_v13  ;;  %8276 = vmatmul.msk.bf16.gmra.mxu3 %vm522_vm1, %v1222_v47 }
 0x1b4   : > { %v970_v32 = vpop.f32.mrf.mxu2 }
 0x1b5   : > { %v1035_v53 = vadd.f32 %v970_v32, %v9460_v1  ;;  %v2754_v1 = vunpack.c.l.b16 %v2750_v2 }
 0x1b6   : > { %v1703_v41 = vpop.f32.mrf.mxu0  ;;  %v1334_v15 = vpop.f32.mrf.mxu3 }
 0x1b7   : > { %v1396_v48 = vadd.f32 %v1331_v5, %v1035_v53  ;;  %v2755_v5 = vpack.c.b16 %v2097_v44, %v2754_v1  ;;  %v2409_v44 = vshll.u32 %v9633_v0, 16 }
 0x1b9   : > { %8295 = vmatmul.msk.bf16.gmra.mxu0 %vm522_vm1, %v1591_v10  ;;  %8189 = vmatmul.msk.bf16.gmra.mxu2 %vm522_vm1, %v861_v22  ;;  %v9628_v19 = vadd.f32 %v1700_v59, %v1396_v48  ;;  %v2757_v29 = vrot.slane %v2755_v5, 3  ;;  %v2758_v59 = vrot.slane %v9613_v46, 3  ;;  %v2154_v22 = vsel %vm1790_vm3, %v2152_v43, %v2153_v38 }
 0x1ba   : > { %v2411_v48 = vrot.slane %v2409_v44, 3 }
 0x1bc   : > { %v973_v13 = vpop.f32.mrf.mxu2 }
 0x1bd   : > { %v1036_v16 = vadd.f32 %v973_v13, %v9314_v51  ;;  %v2406_v51 = vshrl.u32 %v9633_v0, 16  ;;  %v9652_v13 = vld [vmem:[%s9143_s8 + $0x28] sm:$0xff] }
 0x1be   : > { %v1705_v58 = vpop.f32.mrf.mxu0  ;;  %v1336_v52 = vpop.f32.mrf.mxu3  ;;  %v2415_v5 = vshrl.u32 %v9652_v13, 16 }
 0x1bf   : > { %v1397_v47 = vadd.f32 %v1334_v15, %v1036_v16  ;;  %v2408_v2 = vrot.slane %v2406_v51, 2 }
 0x1c1   : > { %v9635_v36 = vadd.f32 %v1703_v41, %v1397_v47  ;;  %v2759_v41 = vsel %vm2756_vm8, %v2757_v29, %v2758_v59  ;;  %v2412_v46 = vor.u32 %v2411_v48, %v2408_v2  ;;  %v2418_v47 = vshll.u32 %v9652_v13, 16  ;;  %v9671_v2 = vld [vmem:[%s9143_s8 + $0x30] sm:$0xff] }
 0x1c2   : > { %v2762_v48 = vrot.slane %v9652_v13, 3 }
 0x1c3   : > { %8403 = vmatmul.msk.bf16.vlgmr.msra.gmra.mxu3 %vm522_vm1, %v2404_v63  ;;  %v2413_v14 = vsel %vm2387_vm7, %v2403_v12, %v2412_v46 }
 0x1c4   : > { %v975_v32 = vpop.f32.mrf.mxu2 }
 0x1c5   : > { %v1037_v53 = vadd.f32 %v975_v32, %v9323_v7  ;;  %v2417_v32 = vrot.slane %v2415_v5, 2 }
 0x1c6   : > { %v1708_v15 = vpop.f32.mrf.mxu0  ;;  %v1339_v10 = vpop.f32.mrf.mxu3 }
 0x1c7   : > { %v1398_v23 = vadd.f32 %v1336_v52, %v1037_v53  ;;  %v2760_v52 = vrot.slane %v9633_v0, 3  ;;  %v2420_v53 = vrot.slane %v2418_v47, 3 }
 0x1c9   : > { %8422 = vmatmul.msk.bf16.vlgmr.msra.gmra.mxu0 %vm522_vm1, %v2759_v41  ;;  %8384 = vmatmul.msk.bf16.vlgmr.msra.gmra.mxu2 %vm522_vm1, %v2154_v22  ;;  %v9647_v6 = vadd.f32 %v1705_v58, %v1398_v23  ;;  %v2155_v58 = vrot.slane %v9633_v0, 2  ;;  %v2761_v12 = vsel %vm2756_vm8, %v2758_v59, %v2760_v52 }
 0x1cb   : > { %v2156_v51 = vsel %vm1790_vm3, %v2153_v38, %v2155_v58 }
 0x1cc   : > { %v978_v60 = vpop.f32.mrf.mxu2 }
 0x1cd   : > { %v1038_v7 = vadd.f32 %v978_v60, %v9332_v24  ;;  %v2157_v60 = vrot.slane %v9652_v13, 2 }
 0x1ce   : > { %v1710_v62 = vpop.f32.mrf.mxu0  ;;  %v1341_v26 = vpop.f32.mrf.mxu3 }
 0x1cf   : > { %v1399_v1 = vadd.f32 %v1339_v10, %v1038_v7  ;;  %v2424_v7 = vshrl.u32 %v9671_v2, 16  ;;  %v2158_v5 = vsel %vm1790_vm3, %v2155_v58, %v2157_v60 }
 0x1d1   : > { %v9654_v16 = vadd.f32 %v1708_v15, %v1399_v1  ;;  %v2421_v15 = vor.u32 %v2420_v53, %v2417_v32  ;;  %v9690_v32 = vld [vmem:[%s9143_s8 + $0x38] sm:$0xff]  ;;  %v2764_v53 = vrot.slane %v9671_v2, 3 }
 0x1d3   : > { %8404 = vmatmul.msk.bf16.gmra.mxu3 %vm522_vm1, %v2413_v14  ;;  %v2422_v59 = vsel %vm2387_vm7, %v2412_v46, %v2421_v15  ;;  %v2763_v46 = vsel %vm2756_vm8, %v2760_v52, %v2762_v48 }
 0x1d4   : > { %v980_v24 = vpop.f32.mrf.mxu2 }
 0x1d5   : > { %v1039_v63 = vadd.f32 %v980_v24, %v9341_v42  ;;  %v2426_v24 = vrot.slane %v2424_v7, 2 }
 0x1d6   : > { %v1713_v29 = vpop.f32.mrf.mxu0  ;;  %v1344_v43 = vpop.f32.mrf.mxu3 }
 0x1d7   : > { %v1400_v44 = vadd.f32 %v1341_v26, %v1039_v63 }
 0x1d9   : > { %8423 = vmatmul.msk.bf16.gmra.mxu0 %vm522_vm1, %v2761_v12  ;;  %8385 = vmatmul.msk.bf16.gmra.mxu2 %vm522_vm1, %v2156_v51  ;;  %v9666_v0 = vadd.f32 %v1710_v62, %v1400_v44  ;;  %v2427_v62 = vshll.u32 %v9671_v2, 16 }
 0x1db   : > { %v2429_v63 = vrot.slane %v2427_v62, 3 }
 0x1dc   : > { %v983_v10 = vpop.f32.mrf.mxu2 }
 0x1dd   : > { %v1040_v42 = vadd.f32 %v983_v10, %v9350_v57  ;;  %v2159_v10 = vrot.slane %v9671_v2, 2 }
 0x1de   : > { %v1715_v41 = vpop.f32.mrf.mxu0  ;;  %v1346_v22 = vpop.f32.mrf.mxu3 }
 0x1df   : > { %v1401_v23 = vadd.f32 %v1344_v43, %v1040_v42  ;;  %v2433_v42 = vshrl.u32 %v9690_v32, 16  ;;  %v2160_v7 = vsel %vm1790_vm3, %v2157_v60, %v2159_v10 }
 0x1e1   : > { %v9673_v38 = vadd.f32 %v1713_v29, %v1401_v23  ;;  %v2430_v29 = vor.u32 %v2429_v63, %v2426_v24  ;;  %v9711_v24 = vld [vmem:[%s9143_s8 + $0x40] sm:$0xff] }
 0x1e3   : > { %8405 = vmatmul.msk.bf16.gmra.mxu3 %vm522_vm1, %v2422_v59  ;;  %v2431_v52 = vsel %vm2387_vm7, %v2421_v15, %v2430_v29  ;;  %v2765_v15 = vsel %vm2756_vm8, %v2762_v48, %v2764_v53 }
 0x1e4   : > { %v985_v57 = vpop.f32.mrf.mxu2 }
 0x1e5   : > { %v1041_v26 = vadd.f32 %v985_v57, %v9359_v9  ;;  %v2435_v57 = vrot.slane %v2433_v42, 2 }
 0x1e6   : > { %v1718_v1 = vpop.f32.mrf.mxu0  ;;  %v1349_v14 = vpop.f32.mrf.mxu3 }
 0x1e7   : > { %v1402_v47 = vadd.f32 %v1346_v22, %v1041_v26 }
 0x1e9   : > { %8424 = vmatmul.msk.bf16.gmra.mxu0 %vm522_vm1, %v2763_v46  ;;  %8386 = vmatmul.msk.bf16.gmra.mxu2 %vm522_vm1, %v2158_v5  ;;  %v9685_v13 = vadd.f32 %v1715_v41, %v1402_v47  ;;  %v2436_v41 = vshll.u32 %v9690_v32, 16 }
 0x1eb   : > { %v2438_v26 = vrot.slane %v2436_v41, 3 }
 0x1ec   : > { %v988_v43 = vpop.f32.mrf.mxu2 }
 0x1ed   : > { %v1042_v9 = vadd.f32 %v988_v43, %v9368_v31  ;;  %v2766_v43 = vrot.slane %v9690_v32, 3 }
 0x1ee   : > { %v1720_v12 = vpop.f32.mrf.mxu0  ;;  %v1351_v51 = vpop.f32.mrf.mxu3 }
 0x1ef   : > { %v1403_v44 = vadd.f32 %v1349_v14, %v1042_v9  ;;  %v9706_v14 = vpop.f32.mrf.mxu1  ;;  %v2161_v9 = vrot.slane %v9690_v32, 2 }
 0x1f1   : > { %v9692_v58 = vadd.f32 %v1718_v1, %v1403_v44  ;;  %v2439_v1 = vor.u32 %v2438_v26, %v2435_v57 }
 0x1f3   : > { %8406 = vmatmul.msk.bf16.gmra.mxu3 %vm522_vm1, %v2431_v52  ;;  %v2440_v60 = vsel %vm2387_vm7, %v2430_v29, %v2439_v1  ;;  %v2767_v29 = vsel %vm2756_vm8, %v2764_v53, %v2766_v43 }
 0x1f4   : > { %v990_v31 = vpop.f32.mrf.mxu2 }
 0x1f5   : > { %v1043_v22 = vadd.f32 %v990_v31, %v9377_v45  ;;  %v2162_v31 = vsel %vm1790_vm3, %v2159_v10, %v2161_v9 }
 0x1f6   : > { %v1723_v23 = vpop.f32.mrf.mxu0  ;;  %v1354_v59 = vpop.f32.mrf.mxu3 }
 0x1f7   : > { %v1404_v62 = vadd.f32 %v1351_v51, %v1043_v22  ;;  %v2445_v51 = vshll.u32 %v9711_v24, 16  ;;  %v9722_v41 = vpop.f32.mrf.mxu1 }
 0x1f9   : > { %8425 = vmatmul.msk.bf16.gmra.mxu0 %vm522_vm1, %v2765_v15  ;;  %8387 = vmatmul.msk.bf16.gmra.mxu2 %vm522_vm1, %v2160_v7  ;;  %v9704_v2 = vadd.f32 %v1720_v12, %v1404_v62  ;;  %v2442_v12 = vshrl.u32 %v9711_v24, 16 }
 0x1fc   : > { %v993_v45 = vpop.f32.mrf.mxu2 }
 0x1fd   : > { %v1044_v46 = vadd.f32 %v993_v45, %v9386_v3  ;;  %v9732_v45 = vld [vmem:[%s9143_s8 + $0x48] sm:$0xff] }
 0x1fe   : > { %v1725_v5 = vpop.f32.mrf.mxu0  ;;  %v1356_v48 = vpop.f32.mrf.mxu3 }
 0x1ff   : > { %v1405_v47 = vadd.f32 %v1354_v59, %v1044_v46  ;;  %v2447_v59 = vrot.slane %v2445_v51, 3  ;;  %v9734_v10 = vpop.f32.mrf.mxu1 }
 0x201   : > { %v9713_v63 = vadd.f32 %v1723_v23, %v1405_v47  ;;  %v2444_v23 = vrot.slane %v2442_v12, 2  ;;  %v2451_v47 = vshrl.u32 %v9732_v45, 16 }
 0x203   : > { %12736 = vst [vmem:[#allocation11_spill] sm:$0xff] %v9713_v63  ;;  %8407 = vmatmul.msk.bf16.gmra.mxu3 %vm522_vm1, %v2440_v60  ;;  %v2448_v15 = vor.u32 %v2447_v59, %v2444_v23 }
 0x204   : > { %v995_v3 = vpop.f32.mrf.mxu2 }
 0x205   : > { %v1045_v44 = vadd.f32 %v995_v3, %v9395_v25  ;;  %v2449_v26 = vsel %vm2387_vm7, %v2439_v1, %v2448_v15 }
 0x206   : > { %v1728_v52 = vpop.f32.mrf.mxu0  ;;  %v1359_v42 = vpop.f32.mrf.mxu3 }
 0x207   : > { %v1406_v22 = vadd.f32 %v1356_v48, %v1045_v44  ;;  %v2768_v48 = vrot.slane %v9711_v24, 3 }
 0x209   : > { %8426 = vmatmul.msk.bf16.gmra.mxu0 %vm522_vm1, %v2767_v29  ;;  %8388 = vmatmul.msk.bf16.gmra.mxu2 %vm522_vm1, %v2162_v31  ;;  %v9727_v32 = vadd.f32 %v1725_v5, %v1406_v22  ;;  %v2163_v5 = vrot.slane %v9711_v24, 2  ;;  %v2769_v3 = vsel %vm2756_vm8, %v2766_v43, %v2768_v48  ;;  %v9750_v31 = vpop.f32.mrf.mxu1 }
 0x20b   : > { %12737 = vst [vmem:[#allocation12_spill] sm:$0xff] %v9727_v32  ;;  %v2164_v44 = vsel %vm1790_vm3, %v2161_v9, %v2163_v5 }
 0x20c   : > { %v998_v25 = vpop.f32.mrf.mxu2 }
 0x20d   : > { %v1046_v7 = vadd.f32 %v998_v25, %v9404_v49  ;;  %v2454_v49 = vshll.u32 %v9732_v45, 16 }
 0x20e   : > { %v1730_v62 = vpop.f32.mrf.mxu0  ;;  %v1361_v53 = vpop.f32.mrf.mxu3 }
 0x20f   : > { %v1407_v57 = vadd.f32 %v1359_v42, %v1046_v7  ;;  %v2453_v42 = vrot.slane %v2451_v47, 2  ;;  %v2456_v29 = vrot.slane %v2454_v49, 3  ;;  %v9755_v7 = vld [vmem:[%s9143_s8 + $0x50] sm:$0xff] }
 0x210   : > { %v2463_v47 = vshll.u32 %v9755_v7, 16 }
 0x211   : > { %v9736_v46 = vadd.f32 %v1728_v52, %v1407_v57  ;;  %v2457_v22 = vor.u32 %v2456_v29, %v2453_v42  ;;  %v2770_v57 = vrot.slane %v9732_v45, 3  ;;  %v232_v29 = vld [vmem:[#allocation2 + $0x8] sm:$0x3] }
 0x213   : > { %12738 = vst [vmem:[#allocation13_spill] sm:$0xff] %v9736_v46  ;;  %8408 = vmatmul.msk.bf16.gmra.mxu3 %vm522_vm1, %v2449_v26  ;;  %v2458_v9 = vsel %vm2387_vm7, %v2448_v15, %v2457_v22  ;;  %v2460_v26 = vshrl.u32 %v9755_v7, 16 }
 0x214   : > { %v1000_v60 = vpop.f32.mrf.mxu2 }
 0x215   : > { %v1047_v12 = vadd.f32 %v1000_v60, %v9413_v4 }
 0x216   : > { %v1733_v1 = vpop.f32.mrf.mxu0  ;;  %v1364_v51 = vpop.f32.mrf.mxu3 }
 0x217   : > { %v1408_v52 = vadd.f32 %v1361_v53, %v1047_v12 }
 0x219   : > { %8427 = vmatmul.msk.bf16.gmra.mxu0 %vm522_vm1, %v2769_v3  ;;  %8389 = vmatmul.msk.bf16.gmra.mxu2 %vm522_vm1, %v2164_v44  ;;  %v9748_v24 = vadd.f32 %v1730_v62, %v1408_v52  ;;  %v2165_v62 = vrot.slane %v9732_v45, 2  ;;  %v2462_v44 = vrot.slane %v2460_v26, 2  ;;  %v2465_v52 = vrot.slane %v2463_v47, 3  ;;  %v9789_v26 = vld [vmem:[%s9143_s8 + $0x58] sm:$0xff] }
 0x21b   : > { %12739 = vst [vmem:[#allocation14_spill] sm:$0xff] %v9748_v24  ;;  %v2466_v42 = vor.u32 %v2465_v52, %v2462_v44 }
 0x21c   : > { %v1003_v4 = vpop.f32.mrf.mxu2 }
 0x21d   : > { %v1048_v23 = vadd.f32 %v1003_v4, %v9422_v35  ;;  %v9764_v35 = vpop.f32.mrf.mxu1  ;;  %v9078_v4 = vmov 0  }
 0x21e   : > { %v1735_v59 = vpop.f32.mrf.mxu0  ;;  %v1366_v43 = vpop.f32.mrf.mxu3  ;;  %227 = vst.msk [vmem:[#allocation2] sm:$0xf] %vm226_vm9, %v9078_v4 }
 0x21f   : > { %v1409_v25 = vadd.f32 %v1364_v51, %v1048_v23  ;;  %v2166_v51 = vsel %vm1790_vm3, %v2163_v5, %v2165_v62  ;;  %228 = vst.msk [vmem:[#allocation2 + $0x4] sm:$0xf] %vm226_vm9, %v9078_v4 }
 0x220   : > { %236 = vst.msk [vmem:[#allocation2 + $0x98] sm:$0xe] %vm235_vm13, %v9078_v4 }
 0x221   : > { %v9757_v53 = vadd.f32 %v1733_v1, %v1409_v25  ;;  %v2771_v1 = vsel %vm2756_vm8, %v2768_v48, %v2770_v57  ;;  %v233_v25 = vsel %vm9778_vm12, 0, %v232_v29  ;;  %237 = vst.msk [vmem:[#allocation2 + $0x9c] sm:$0xf] %vm226_vm9, %v9078_v4 }
 0x222   : > { %234 = vst [vmem:[#allocation2 + $0x8] sm:$0x3] %v233_v25 }
 0x223   : > { %12740 = vst [vmem:[#allocation15_spill] sm:$0xff] %v9757_v53  ;;  %8409 = vmatmul.msk.bf16.gmra.mxu3 %vm522_vm1, %v2458_v9 }
 0x224   : > { %v1005_v49 = vpop.f32.mrf.mxu2  ;;  %239 = vst.msk [vmem:[#allocation2 + $0xa0] sm:$0x3] %vm12721_vm10, %v9078_v4 }
 0x225   : > { %v1049_v60 = vadd.f32 %v1005_v49, %v9431_v54  ;;  %v2772_v49 = vrot.slane %v9755_v7, 3  ;;  %3691 = vst.msk [vmem:[#allocation3 + $0x98] sm:$0xe] %vm235_vm13, %v9078_v4  ;;  %vm3170_vm13 = vsmask.f32 5392 }
 0x226   : > { %v1738_v15 = vpop.f32.mrf.mxu0  ;;  %v1369_v12 = vpop.f32.mrf.mxu3  ;;  %3686 = vst.msk [vmem:[#allocation3] sm:$0xf] %vm226_vm9, %v9078_v4  ;;  %vm9891_vm15 = vmor %vm230_vm11, %vm3170_vm13  ;;  %vm3612_vm13 = vcmask 59393   ;;  %v9959_v8 = vld [vmem:[#allocation2] sm:$0xff]  }
 0x227   : > { %v1410_v3 = vadd.f32 %v1366_v43, %v1049_v60  ;;  %v9782_v43 = vpop.f32.mrf.mxu1  ;;  %v2167_v60 = vrot.slane %v9755_v7, 2  ;;  %3687 = vst.msk [vmem:[#allocation3 + $0x4] sm:$0xf] %vm226_vm9, %v9078_v4  ;;  %v2773_v52 = vsel %vm2756_vm8, %v2770_v57, %v2772_v49 }
 0x228   : > { %3692 = vst.msk [vmem:[#allocation3 + $0x9c] sm:$0xf] %vm226_vm9, %v9078_v4 }
 0x229   : > { %8428 = vmatmul.msk.bf16.gmra.mxu0 %vm522_vm1, %v2771_v1  ;;  %8390 = vmatmul.msk.bf16.gmra.mxu2 %vm522_vm1, %v2166_v51  ;;  %v9771_v45 = vadd.f32 %v1735_v59, %v1410_v3  ;;  %v12742_v59 = vmov 0  ;;  %v2168_v7 = vsel %vm1790_vm3, %v2165_v62, %v2167_v60  ;;  %3693 = vst.msk [vmem:[#allocation3 + $0xa0] sm:$0x3] %vm12721_vm10, %v9078_v4 }
 0x22a   : > { %v12743_v59 = vsel %vm9778_vm12, 4294967295, %v12742_v59 }
 0x22b   : > { %12741 = vst [vmem:[#allocation16_spill] sm:$0xff] %v9771_v45 }
 0x22c   : > { %v1008_v54 = vpop.f32.mrf.mxu2  ;;  %12744 = vst [vmem:[#allocation17_spill] sm:$0xff] %v12743_v59 }
 0x22d   : > { %v1050_v48 = vadd.f32 %v1008_v54, %v9440_v21  ;;  %v2467_v21 = vsel %vm2387_vm7, %v2457_v22, %v2466_v42  ;;  %v2472_v22 = vshll.u32 %v9789_v26, 16 }
 0x22e   : > { %v1740_v5 = vpop.f32.mrf.mxu0  ;;  %v1371_v23 = vpop.f32.mrf.mxu3 }
 0x22f   : > { %v1411_v9 = vadd.f32 %v1369_v12, %v1050_v48  ;;  %v2469_v12 = vshrl.u32 %v9789_v26, 16  ;;  %v2474_v48 = vrot.slane %v2472_v22, 3  ;;  %v9808_v25 = vpop.f32.mrf.mxu1  ;;  %v2774_v22 = vrot.slane %v9789_v26, 3 }
 0x231   : > { %v9792_v47 = vadd.f32 %v1738_v15, %v1411_v9  ;;  %v12746_v15 = vld [vmem:[#allocation5_spill] sm:$0xff]  ;;  %v2471_v54 = vrot.slane %v2469_v12, 2 }
 0x233   : > { %12745 = vst [vmem:[#allocation18_spill] sm:$0xff] %v9792_v47  ;;  %8410 = vmatmul.msk.bf16.gmra.mxu3 %vm522_vm1, %v2467_v21  ;;  %v2475_v21 = vor.u32 %v2474_v48, %v2471_v54 }
 0x234   : > { %v1010_v1 = vpop.f32.mrf.mxu2 }
 0x235   : > { %v1051_v51 = vadd.f32 %v1010_v1, %v12746_v15  ;;  %v12748_v1 = vld [vmem:[#allocation6_spill] sm:$0xff]  ;;  %v2476_v4 = vsel %vm2387_vm7, %v2466_v42, %v2475_v21 }
 0x236   : > { %v1743_v3 = vpop.f32.mrf.mxu0  ;;  %v1374_v44 = vpop.f32.mrf.mxu3 }
 0x237   : > { %v1412_v29 = vadd.f32 %v1371_v23, %v1051_v51  ;;  %v9817_v23 = vld [vmem:[%s9143_s8 + $0x60] sm:$0xff]  ;;  %v3688_v51 = vld [vmem:[#allocation3 + $0x8] sm:$0x3] }
 0x238   : > { %v2481_v42 = vshll.u32 %v9817_v23, 16 }
 0x239   : > { %8429 = vmatmul.msk.bf16.gmra.mxu0 %vm522_vm1, %v2773_v52  ;;  %8391 = vmatmul.msk.bf16.gmra.mxu2 %vm522_vm1, %v2168_v7  ;;  %v9812_v9 = vadd.f32 %v1740_v5, %v1412_v29  ;;  %v9822_v52 = vpop.f32.mrf.mxu1  ;;  %v2169_v5 = vrot.slane %v9789_v26, 2  ;;  %v3689_v7 = vsel %vm9778_vm12, 0, %v3688_v51 }
 0x23a   : > { %3690 = vst [vmem:[#allocation3 + $0x8] sm:$0x3] %v3689_v7 }
 0x23b   : > { %12747 = vst [vmem:[#allocation5_spill] sm:$0xff] %v9812_v9 }
 0x23c   : > { %v1013_v57 = vpop.f32.mrf.mxu2 }
 0x23d   : > { %v1052_v15 = vadd.f32 %v1013_v57, %v12748_v1  ;;  %v2775_v57 = vsel %vm2756_vm8, %v2772_v49, %v2774_v22  ;;  %v2170_v1 = vsel %vm1790_vm3, %v2167_v60, %v2169_v5  ;;  %v9843_v60 = vld [vmem:[%s12704_s2] ss:$0 sm:$0xff] }
 0x23e   : > { %v1745_v47 = vpop.f32.mrf.mxu0  ;;  %v1376_v62 = vpop.f32.mrf.mxu3 }
 0x23f   : > { %v1413_v45 = vadd.f32 %v1374_v44, %v1052_v15  ;;  %v2478_v44 = vshrl.u32 %v9817_v23, 16 }
 0x241   : > { %v9819_v12 = vadd.f32 %v1743_v3, %v1413_v45  ;;  %v12750_v45 = vld [vmem:[#allocation7_spill] sm:$0xff]  ;;  %v2480_v26 = vrot.slane %v2478_v44, 2  ;;  %v9837_v59 = vpop.f32.mrf.mxu1  ;;  %v9847_v44 = vld [vmem:[%s9143_s8 + $0x68] sm:$0xff] }
 0x243   : > { %12749 = vst [vmem:[#allocation6_spill] sm:$0xff] %v9819_v12  ;;  %8411 = vmatmul.msk.bf16.gmra.mxu3 %vm522_vm1, %v2476_v4  ;;  %v2483_v4 = vrot.slane %v2481_v42, 3  ;;  %v12710_v42 = vrot.slane %v9817_v23, 3 }
 0x244   : > { %v1015_v29 = vpop.f32.mrf.mxu2 }
 0x245   : > { %v1053_v3 = vadd.f32 %v1015_v29, %v12750_v45  ;;  %v2484_v7 = vor.u32 %v2483_v4, %v2480_v26 }
 0x246   : > { %v2860_v54 = vpop.f32.mrf.mxu0  ;;  %v2624_v48 = vpop.f32.mrf.mxu3 }
 0x247   : > { %v1414_v15 = vadd.f32 %v1376_v62, %v1053_v3  ;;  %v2485_v62 = vsel %vm2387_vm7, %v2475_v21, %v2484_v7  ;;  %v2171_v3 = vrot.slane %v9817_v23, 2 }
 0x249   : > { %8430 = vmatmul.msk.bf16.gmra.mxu0 %vm522_vm1, %v2775_v57  ;;  %8392 = vmatmul.msk.bf16.gmra.mxu2 %vm522_vm1, %v2170_v1  ;;  %v9835_v51 = vadd.f32 %v1745_v47, %v1414_v15  ;;  %v2490_v57 = vshll.u32 %v9847_v44, 16 }
 0x24b   : > { %12751 = vst [vmem:[#allocation7_spill] sm:$0xff] %v9835_v51  ;;  %v2492_v51 = vrot.slane %v2490_v57, 3 }
 0x24c   : > { %v2255_v29 = vpop.f32.mrf.mxu2 }
 0x24d   : > { %v2345_v45 = vadd.f32 %v2255_v29, %v9480_v27  ;;  %v2172_v29 = vsel %vm1790_vm3, %v2169_v5, %v2171_v3 }
 0x24e   : > { %v2862_v12 = vpop.f32.mrf.mxu0  ;;  %v2626_v49 = vpop.f32.mrf.mxu3 }
 0x24f   : > { %v2714_v9 = vadd.f32 %v2624_v48, %v2345_v45  ;;  %v2487_v48 = vshrl.u32 %v9847_v44, 16 }
 0x251   : > { %v2950_v47 = vadd.f32 %v2860_v54, %v2714_v9  ;;  %v2777_v9 = vsel %vm2756_vm8, %v2774_v22, %v12710_v42  ;;  %v9859_v54 = vpop.f32.mrf.mxu1 }
 0x253   : > { %8412 = vmatmul.msk.bf16.gmra.mxu3 %vm522_vm1, %v2485_v62  ;;  %v2990_v27 = vadd.f32 %v9843_v60, %v2950_v47  ;;  %v2489_v47 = vrot.slane %v2487_v48, 2  ;;  %v3571_v48 = vld [vmem:[#allocation2 + $0x8] sm:$0xe] }
 0x254   : > { %v2257_v1 = vpop.f32.mrf.mxu2 }
 0x255   : > { %vm3026_vm14 = vcmp.gt.f32.partialorder %v2990_v27, 0.0  ;;  %v3062_v15 = vmul.f32 0.2, %v2990_v27  ;;  %v2346_v21 = vadd.f32 %v2257_v1, %v9488_v37  ;;  %v9867_v42 = vor.u32 %v2492_v51, %v2489_v47 }
 0x256   : > { %v2865_v26 = vpop.f32.mrf.mxu0  ;;  %v2629_v4 = vpop.f32.mrf.mxu3 }
 0x257   : > { %v3098_v45 = vsel %vm3026_vm14, %v2990_v27, %v3062_v15  ;;  %v2715_v62 = vadd.f32 %v2626_v49, %v2346_v21  ;;  %v12752_v49 = vmov 0  ;;  %v2494_v51 = vsel %vm2387_vm7, %v2484_v7, %v9867_v42 }
 0x258   : > { %v3134_v53 = vpack.c.bf16 %v3098_v45, %v3098_v45  ;;  %v12753_v49 = vsel %vm9870_vm0, 4294967295, %v12752_v49 }
 0x259   : > { %8431 = vmatmul.msk.bf16.gmra.mxu0 %vm522_vm1, %v2777_v9  ;;  %v2951_v37 = vadd.f32 %v2862_v12, %v2715_v62  ;;  %8393 = vmatmul.msk.bf16.gmra.mxu2 %vm522_vm1, %v2172_v29  ;;  %12754 = vst [vmem:[#allocation19_spill] sm:$0xff] %v12753_v49  ;;  %v9880_v45 = vpop.f32.mrf.mxu1 }
 0x25a   : > { %v3173_v1 = vshrl.u32 %v3134_v53, 16  ;;  %v3176_v24 = vshll.u32 %v3134_v53, 16 }
 0x25b   : > { %v2991_v22 = vadd.f32 %v9843_v60, %v2951_v37 }
 0x25c   : > { %v3175_v40 = vrot.slane %v3173_v1, 6  ;;  %v3178_v5 = vrot.slane %v3176_v24, 7  ;;  %v2260_v27 = vpop.f32.mrf.mxu2  ;;  %v9878_v24 = vld [vmem:[%s9143_s8 + $0x70] sm:$0xff] }
 0x25d   : > { %vm3027_vm14 = vcmp.gt.f32.partialorder %v2991_v22, 0.0  ;;  %v3063_v12 = vmul.f32 0.2, %v2991_v22  ;;  %v2347_v57 = vadd.f32 %v2260_v27, %v9496_v11  ;;  %v2778_v11 = vrot.slane %v9847_v44, 3 }
 0x25e   : > { %v2867_v53 = vpop.f32.mrf.mxu0  ;;  %v2631_v15 = vpop.f32.mrf.mxu3  ;;  %v3179_v21 = vor.u32 %v3178_v5, %v3175_v40  ;;  %v2499_v5 = vshll.u32 %v9878_v24, 16 }
 0x25f   : > { %v3099_v9 = vsel %vm3027_vm14, %v2991_v22, %v3063_v12  ;;  %v2716_v29 = vadd.f32 %v2629_v4, %v2347_v57  ;;  %v12712_v4 = vrot.slane %v9847_v44, 2  ;;  %v2496_v22 = vshrl.u32 %v9878_v24, 16 }
 0x260   : > { %v3572_v62 = vsel %vm9870_vm0, %v3179_v21, %v3571_v48  ;;  %v3135_v47 = vpack.c.bf16 %v3099_v9, %v3099_v9 }
 0x261   : > { %3573 = vst [vmem:[#allocation2 + $0x8] sm:$0xe] %v3572_v62  ;;  %v2952_v37 = vadd.f32 %v2865_v26, %v2716_v29  ;;  %v12757_v62 = vrot.slane %v9817_v23, 3  ;;  %v2498_v32 = vrot.slane %v2496_v22, 2 }
 0x262   : > { %v3182_v1 = vshrl.u32 %v3135_v47, 16  ;;  %v3185_v40 = vshll.u32 %v3135_v47, 16 }
 0x263   : > { %8413 = vmatmul.msk.bf16.gmra.mxu3 %vm522_vm1, %v2494_v51  ;;  %v2992_v7 = vadd.f32 %v9843_v60, %v2952_v37  ;;  %v2779_v47 = vsel %vm2756_vm8, %v12757_v62, %v2778_v11  ;;  %v3180_v37 = vrot.slane %v3179_v21, 4 }
 0x264   : > { %v3184_v27 = vrot.slane %v3182_v1, 6  ;;  %v3187_v48 = vrot.slane %v3185_v40, 7  ;;  %v2262_v12 = vpop.f32.mrf.mxu2  ;;  %v2174_v40 = vsel %vm1790_vm3, %v2171_v3, %v12712_v4 }
 0x265   : > { %vm3028_vm14 = vcmp.gt.f32.partialorder %v2992_v7, 0.0  ;;  %v3064_v57 = vmul.f32 0.2, %v2992_v7  ;;  %v2348_v9 = vadd.f32 %v2262_v12, %v9504_v28  ;;  %v2501_v28 = vrot.slane %v2499_v5, 3 }
 0x266   : > { %v2870_v29 = vpop.f32.mrf.mxu0  ;;  %v2634_v51 = vpop.f32.mrf.mxu3  ;;  %v3188_v1 = vor.u32 %v3187_v48, %v3184_v27 }
 0x267   : > { %v3100_v49 = vsel %vm3028_vm14, %v2992_v7, %v3064_v57  ;;  %v2717_v46 = vadd.f32 %v2631_v15, %v2348_v9  ;;  %v9911_v27 = vpop.f32.mrf.mxu1  ;;  %v9914_v7 = vor.u32 %v2501_v28, %v2498_v32  ;;  %v9917_v57 = vld [vmem:[%s9143_s8 + $0x78] sm:$0xff]  ;;  %v12714_v32 = vrot.slane %v9878_v24, 3 }
 0x268   : > { %v3189_v12 = vsel %vm9891_vm15, %v3180_v37, %v3188_v1  ;;  %v3136_v63 = vpack.c.bf16 %v3100_v49, %v3100_v49  ;;  %v3190_v62 = vrot.slane %v3188_v1, 4  ;;  %vm3613_vm14 = vsmask.f32 2310 }
 0x269   : > { %8432 = vmatmul.msk.bf16.gmra.mxu0 %vm522_vm1, %v2779_v47  ;;  %3574 = vst.msk [vmem:[#allocation2 + $0xc] sm:$0xf] %vm226_vm9, %v3189_v12  ;;  %v2953_v21 = vadd.f32 %v2867_v53, %v2717_v46  ;;  %8394 = vmatmul.msk.bf16.gmra.mxu2 %vm522_vm1, %v2174_v40  ;;  %vm9945_vm5 = vmand %vm3612_vm13, %vm3613_vm14  ;;  %vm3618_vm14 = vcmask 60418  }
 0x26a   : > { %v3192_v23 = vshrl.u32 %v3136_v63, 16  ;;  %v3195_v3 = vshll.u32 %v3136_v63, 16  ;;  %v2503_v63 = vsel %vm2387_vm7, %v9867_v42, %v9914_v7  ;;  %v2175_v42 = vrot.slane %v9878_v24, 2  ;;  %vm10037_vm2 = vmand %vm3618_vm14, %vm3619_vm4 }
 0x26b   : > { %v2993_v15 = vadd.f32 %v9843_v60, %v2953_v21  ;;  %v2505_v21 = vshrl.u32 %v9917_v57, 16  ;;  %vm3624_vm14 = vcmask 60419  }
 0x26c   : > { %v3194_v22 = vrot.slane %v3192_v23, 6  ;;  %v3197_v5 = vrot.slane %v3195_v3, 7  ;;  %v2265_v48 = vpop.f32.mrf.mxu2 }
 0x26d   : > { %vm3029_vm11 = vcmp.gt.f32.partialorder %v2993_v15, 0.0  ;;  %v3065_v49 = vmul.f32 0.2, %v2993_v15  ;;  %v2349_v9 = vadd.f32 %v2265_v48, %v9512_v50  ;;  %v2508_v50 = vshll.u32 %v9917_v57, 16 }
 0x26e   : > { %v2872_v46 = vpop.f32.mrf.mxu0  ;;  %v2636_v53 = vpop.f32.mrf.mxu3  ;;  %v3198_v47 = vor.u32 %v3197_v5, %v3194_v22  ;;  %v2781_v22 = vsel %vm2756_vm8, %v2778_v11, %v12714_v32 }
 0x26f   : > { %v3101_v37 = vsel %vm3029_vm11, %v2993_v15, %v3065_v49  ;;  %v2718_v40 = vadd.f32 %v2634_v51, %v2349_v9  ;;  %v9939_v5 = vpop.f32.mrf.mxu1 }
 0x270   : > { %v3199_v28 = vsel %vm9891_vm15, %v3190_v62, %v3198_v47  ;;  %v3137_v12 = vpack.c.bf16 %v3101_v37, %v3101_v37  ;;  %v9929_v23 = vld [vmem:[#allocation2 + $0x8] sm:$0xff]   ;;  %v2507_v62 = vrot.slane %v2505_v21, 2  ;;  %v2510_v37 = vrot.slane %v2508_v50, 3 }
 0x271   : > { %3575 = vst.msk [vmem:[#allocation2 + $0x10] sm:$0xf] %vm226_vm9, %v3199_v28  ;;  %v2954_v1 = vadd.f32 %v2870_v29, %v2718_v40  ;;  %v3768_v29 = vld [vmem:[#allocation2 + $0x8] sm:$0xe]  ;;  %v3200_v4 = vrot.slane %v3198_v47, 4  ;;  %v12760_v21 = vrot.slane %v9847_v44, 2 }
 0x272   : > { %v3202_v51 = vshrl.u32 %v3137_v12, 16  ;;  %v3205_v3 = vshll.u32 %v3137_v12, 16  ;;  %v9957_v34 = vor.u32 %v2510_v37, %v2507_v62 }
 0x273   : > { %8414 = vmatmul.msk.bf16.gmra.mxu3 %vm522_vm1, %v2503_v63  ;;  %v2994_v15 = vadd.f32 %v9843_v60, %v2954_v1  ;;  %v2176_v50 = vsel %vm1790_vm3, %v12760_v21, %v2175_v42 }
 0x274   : > { %v3204_v48 = vrot.slane %v3202_v51, 6  ;;  %v3207_v49 = vrot.slane %v3205_v3, 7  ;;  %v2267_v9 = vpop.f32.mrf.mxu2  ;;  %v3772_v3 = vunpack.c.l.bf16 %v3768_v29  ;;  %v9979_v29 = vadd.f32 %v9734_v10, %v9595_v55 }
 0x275   : > { %vm3030_vm11 = vcmp.gt.f32.partialorder %v2994_v15, 0.0  ;;  %v3066_v63 = vmul.f32 0.2, %v2994_v15  ;;  %v2350_v28 = vadd.f32 %v2267_v9, %v9520_v18 }
 0x276   : > { %v2875_v12 = vpop.f32.mrf.mxu0  ;;  %v2639_v1 = vpop.f32.mrf.mxu3  ;;  %v3208_v51 = vor.u32 %v3207_v49, %v3204_v48  ;;  %v12761_v48 = vunpack.c.h.bf16 %v9929_v23  ;;  %v3776_v62 = vmul.f32 2.0, %v3772_v3 }
 0x277   : > { %v3102_v32 = vsel %vm3030_vm11, %v2994_v15, %v3066_v63  ;;  %v2719_v40 = vadd.f32 %v2636_v53, %v2350_v28  ;;  %v9995_v28 = vld [vmem:[%s9143_s8 + $0x80] sm:$0xff]  ;;  %v9997_v21 = vpop.f32.mrf.mxu1  ;;  %vm12722_vm11 = vcmask 64512  }
 0x278   : > { %v3615_v18 = vld [vmem:[#allocation2 + $0x10] sm:$0x6]  ;;  %v3209_v47 = vsel %vm9891_vm15, %v3200_v4, %v3208_v51  ;;  %v3138_v9 = vpack.c.bf16 %v3102_v32, %v3102_v32  ;;  %v9963_v49 = vmul.f32 2.0, %v12761_v48  ;;  %v9971_v4 = vadd.f32 %v9706_v14, %v9573_v61 }
 0x279   : > { %8433 = vmatmul.msk.bf16.gmra.mxu0 %vm522_vm1, %v2781_v22  ;;  %v3616_v44 = vsel %vm9945_vm5, 0, %v3615_v18  ;;  %3576 = vst.msk [vmem:[#allocation2 + $0x14] sm:$0xf] %vm226_vm9, %v3209_v47  ;;  %v2955_v53 = vadd.f32 %v2872_v46, %v2719_v40  ;;  %8395 = vmatmul.msk.bf16.gmra.mxu2 %vm522_vm1, %v2176_v50  ;;  %v9975_v32 = vadd.f32 %v9722_v41, %v9588_v33  ;;  %v8925_v14 = vunpack.c.l.bf16 %v9959_v8 }
 0x27a   : > { %3617 = vst [vmem:[#allocation2 + $0x10] sm:$0x6] %v3616_v44  ;;  %v3212_v15 = vshrl.u32 %v3138_v9, 16  ;;  %v3215_v22 = vshll.u32 %v3138_v9, 16  ;;  %v9983_v46 = vadd.f32 %v9750_v31, %v9607_v39  ;;  %v2512_v40 = vsel %vm2387_vm7, %v9914_v7, %v9957_v34 }
 0x27b   : > { %v2995_v61 = vadd.f32 %v9843_v60, %v2955_v53  ;;  %v12716_v63 = vrot.slane %v9963_v49, 2  ;;  %v3210_v50 = vrot.slane %v3208_v51, 4  ;;  %v12719_v18 = vrot.slane %v9917_v57, 3 }
 0x27c   : > { %12762 = vst [vmem:[#allocation20_spill] sm:$0xff] %v9983_v46  ;;  %v3214_v37 = vrot.slane %v3212_v15, 6  ;;  %v3217_v33 = vrot.slane %v3215_v22, 7  ;;  %v2270_v41 = vpop.f32.mrf.mxu2  ;;  %v3851_v47 = vrot.slane %v3776_v62, 2  ;;  %v12718_v48 = vrot.slane %v9917_v57, 2 }
 0x27d   : > { %vm3031_vm13 = vcmp.gt.f32.partialorder %v2995_v61, 0.0  ;;  %v3067_v55 = vmul.f32 0.2, %v2995_v61  ;;  %v2351_v10 = vadd.f32 %v2270_v41, %v9528_v17  ;;  %v10005_v53 = vadd.f32 %v9764_v35, %v9615_v56 }
 0x27e   : > { %v9992_v39 = vpop.f32.mrf.mxu0  ;;  %v2641_v31 = vpop.f32.mrf.mxu3  ;;  %v3218_v3 = vor.u32 %v3217_v33, %v3214_v37  ;;  %v3853_v51 = vsel %vm1790_vm3, %v3851_v47, %v12716_v63  ;;  %v2514_v62 = vshrl.u32 %v9995_v28, 16  ;;  %v2517_v56 = vshll.u32 %v9995_v28, 16 }
 0x27f   : > { %v3103_v7 = vsel %vm3031_vm13, %v2995_v61, %v3067_v55  ;;  %v2720_v9 = vadd.f32 %v2639_v1, %v2351_v10  ;;  %12763 = vst [vmem:[#allocation21_spill] sm:$0xff] %v10005_v53  ;;  %v12764_v55 = vrot.slane %v9878_v24, 3  ;;  %v2178_v10 = vsel %vm1790_vm3, %v2175_v42, %v12718_v48 }
 0x280   : > { %v3219_v17 = vsel %vm9891_vm15, %v3210_v50, %v3218_v3  ;;  %v3139_v44 = vpack.c.bf16 %v3103_v7, %v3103_v7  ;;  %v3961_v50 = vadd.f32 %v8925_v14, %v3853_v51  ;;  %v2516_v14 = vrot.slane %v2514_v62, 2 }
 0x281   : > { %v3998_v15 = vld [vmem:[#allocation2 + $0x10] sm:$0xc]  ;;  %3577 = vst.msk [vmem:[#allocation2 + $0x18] sm:$0xf] %vm226_vm9, %v3219_v17  ;;  %v2956_v1 = vadd.f32 %v2875_v12, %v2720_v9  ;;  %v2783_v12 = vsel %vm2756_vm8, %v12764_v55, %v12719_v18  ;;  %v2519_v51 = vrot.slane %v2517_v56, 3  ;;  %v10044_v18 = vadd.f32 %v9782_v43, %v9628_v19 }
 0x282   : > { %v10010_v22 = vld [vmem:[#allocation2 + $0x10] sm:$0xff]   ;;  %v4002_v61 = vunpack.c.l.bf16 %v3998_v15  ;;  %v3222_v33 = vshrl.u32 %v3139_v44, 16  ;;  %v3225_v35 = vshll.u32 %v3139_v44, 16  ;;  %v10066_v43 = vadd.f32 %v9822_v52, %v9647_v6 }
 0x283   : > { %v10015_v37 = vunpack.c.h.bf16 %v10010_v22  ;;  %8415 = vmatmul.msk.bf16.gmra.mxu3 %vm522_vm1, %v2512_v40  ;;  %v2996_v41 = vadd.f32 %v9843_v60, %v2956_v1  ;;  %v10071_v56 = vadd.f32 %v9837_v59, %v9654_v16  ;;  %v10082_v6 = vor.u32 %v2519_v51, %v2516_v14 }
 0x284   : > { %v4044_v47 = vrot.slane %v4002_v61, 4  ;;  %v2272_v9 = vpop.f32.mrf.mxu2  ;;  %v3224_v17 = vrot.slane %v3222_v33, 6  ;;  %v3227_v44 = vrot.slane %v3225_v35, 7  ;;  %v3220_v33 = vrot.slane %v3218_v3, 4 }
 0x285   : > { %v12720_v7 = vrot.slane %v10015_v37, 4  ;;  %vm3032_vm13 = vcmp.gt.f32.partialorder %v2996_v41, 0.0  ;;  %v3068_v15 = vmul.f32 0.2, %v2996_v41  ;;  %v2352_v42 = vadd.f32 %v2272_v9, %v9536_v30 }
 0x286   : > { %v2880_v1 = vpop.f32.mrf.mxu0  ;;  %v2644_v63 = vpop.f32.mrf.mxu3  ;;  %v3228_v35 = vor.u32 %v3227_v44, %v3224_v17  ;;  %v12767_v30 = vunpack.c.l.bf16 %v10010_v22  ;;  %v10056_v62 = vmul.f32 2.0, %v10015_v37  ;;  %v10086_v52 = vadd.f32 %v9911_v27, %v9685_v13 }
 0x287   : > { %v4046_v55 = vsel %vm12726_vm6, %v4044_v47, %v12720_v7  ;;  %v3104_v48 = vsel %vm3032_vm13, %v2996_v41, %v3068_v15  ;;  %v10048_v47 = vadd.f32 %v9808_v25, %v9635_v36  ;;  %v10050_v7 = vpop.f32.mrf.mxu1  ;;  %v2721_v46 = vadd.f32 %v2641_v31, %v2352_v42 }
 0x288   : > { %v4154_v61 = vadd.f32 %v4046_v55, %v3961_v50  ;;  %v3621_v40 = vld [vmem:[#allocation2 + $0x18] sm:$0xc]  ;;  %v3140_v53 = vpack.c.bf16 %v3104_v48, %v3104_v48  ;;  %v3778_v3 = vmul.f32 2.0, %v12767_v30  ;;  %v3229_v36 = vsel %vm9891_vm15, %v3220_v33, %v3228_v35 }
 0x289   : > { %8434 = vmatmul.msk.bf16.gmra.mxu0 %vm522_vm1, %v2783_v12  ;;  %v3622_v19 = vsel %vm10037_vm2, 0, %v3621_v40  ;;  %8396 = vmatmul.msk.bf16.gmra.mxu2 %vm522_vm1, %v2178_v10  ;;  %v2957_v48 = vadd.f32 %v9992_v39, %v2721_v46  ;;  %v10075_v41 = vadd.f32 %v9859_v54, %v9666_v0  ;;  %v10079_v12 = vadd.f32 %v9880_v45, %v9673_v38 }
 0x28a   : > { %4192 = vst.msk [vmem:[#allocation4] sm:$0xff] %vm12722_vm11, %v4154_v61  ;;  %v3232_v25 = vshrl.u32 %v3140_v53, 16  ;;  %v3235_v31 = vshll.u32 %v3140_v53, 16  ;;  %v10090_v53 = vld [vmem:[%s9143_s8 + $0x88] sm:$0xff]  ;;  %v3854_v0 = vrot.slane %v3778_v3, 2  ;;  %v3856_v54 = vrot.slane %v10056_v62, 2 }
 0x28b   : > { %3623 = vst [vmem:[#allocation2 + $0x18] sm:$0xc] %v3622_v19  ;;  %v2997_v16 = vadd.f32 %v9843_v60, %v2957_v48  ;;  %v2784_v50 = vrot.slane %v9995_v28, 3  ;;  %v3230_v13 = vrot.slane %v3228_v35, 4  ;;  %v8929_v9 = vunpack.c.l.bf16 %v9929_v23 }
 0x28c   : > { %3578 = vst.msk [vmem:[#allocation2 + $0x1c] sm:$0xf] %vm226_vm9, %v3229_v36  ;;  %v3234_v46 = vrot.slane %v3232_v25, 6  ;;  %v3237_v39 = vrot.slane %v3235_v31, 7  ;;  %v2275_v59 = vpop.f32.mrf.mxu2  ;;  %v8926_v17 = vunpack.c.h.bf16 %v9959_v8  ;;  %v2179_v42 = vrot.slane %v9995_v28, 2 }
 0x28d   : > { %v2353_v38 = vadd.f32 %v2275_v59, %v9544_v20  ;;  %vm3033_vm4 = vcmp.gt.f32.partialorder %v2997_v16, 0.0  ;;  %v3069_v40 = vmul.f32 0.2, %v2997_v16  ;;  %v2521_v20 = vsel %vm2387_vm7, %v9957_v34, %v10082_v6 }
 0x28e   : > { %v10094_v45 = vpop.f32.mrf.mxu0  ;;  %v10096_v10 = vpop.f32.mrf.mxu3  ;;  %v10099_v27 = vor.u32 %v3237_v39, %v3234_v46  ;;  %v2523_v14 = vshrl.u32 %v10090_v53, 16  ;;  %v12768_v51 = vrot.slane %v9963_v49, 2  ;;  %v2526_v33 = vshll.u32 %v10090_v53, 16 }
 0x28f   : > { %v2722_v44 = vadd.f32 %v2644_v63, %v2353_v38  ;;  %v3105_v55 = vsel %vm3033_vm4, %v2997_v16, %v3069_v40  ;;  %v10116_v34 = vpop.f32.mrf.mxu1  ;;  %v3857_v35 = vsel %vm1790_vm3, %v3854_v0, %v3856_v54  ;;  %vm3625_vm13 = vsmask.f32 7950 }
 0x290   : > { %v3239_v15 = vsel %vm9891_vm15, %v3230_v13, %v10099_v27  ;;  %v3855_v61 = vsel %vm1790_vm3, %v12768_v51, %v3854_v0  ;;  %v3141_v8 = vpack.c.bf16 %v3105_v55, %v3105_v55  ;;  %v12769_v49 = vrot.slane %v9917_v57, 3  ;;  %vm10141_vm4 = vmand %vm3624_vm14, %vm3625_vm13  ;;  %v10146_v51 = vld [vmem:[%s9143_s8 + $0x90] sm:$0xff] }
 0x291   : > { %3579 = vst.msk [vmem:[#allocation2 + $0x20] sm:$0xf] %vm226_vm9, %v3239_v15  ;;  %v2958_v63 = vadd.f32 %v2880_v1, %v2722_v44  ;;  %v3962_v31 = vadd.f32 %v8926_v17, %v3855_v61  ;;  %v12770_v39 = vrot.slane %v9917_v57, 2  ;;  %v2525_v59 = vrot.slane %v2523_v14, 2 }
 0x292   : > { %v2785_v3 = vsel %vm2756_vm8, %v12769_v49, %v2784_v50  ;;  %v3242_v36 = vshrl.u32 %v3141_v8, 16  ;;  %v3245_v25 = vshll.u32 %v3141_v8, 16  ;;  %v3963_v0 = vadd.f32 %v8929_v9, %v3857_v35 }
 0x293   : > { %v9012_v30 = vld [vmem:[#allocation2 + $0x18] sm:$0xff]   ;;  %8416 = vmatmul.msk.bf16.gmra.mxu3 %vm522_vm1, %v2521_v20  ;;  %v2998_v48 = vadd.f32 %v9843_v60, %v2958_v63  ;;  %v2180_v16 = vsel %vm1790_vm3, %v12770_v39, %v2179_v42  ;;  %v2528_v20 = vrot.slane %v2526_v33, 3  ;;  %v10150_v9 = vadd.f32 %v9939_v5, %v9692_v58 }
 0x294   : > { %v10127_v1 = vunpack.c.l.bf16 %v9012_v30  ;;  %v10129_v19 = vunpack.c.h.bf16 %v9012_v30  ;;  %v2277_v46 = vpop.f32.mrf.mxu2  ;;  %v3244_v15 = vrot.slane %v3242_v36, 6  ;;  %v3247_v55 = vrot.slane %v3245_v25, 7 }
 0x295   : > { %vm3034_vm10 = vcmp.gt.f32.partialorder %v2998_v48, 0.0  ;;  %v3070_v57 = vmul.f32 0.2, %v2998_v48  ;;  %v12773_v14 = vrot.slane %v10015_v37, 4  ;;  %v3240_v63 = vrot.slane %v10099_v27, 4 }
 0x296   : > { %v4047_v38 = vrot.slane %v10127_v1, 4  ;;  %v12724_v13 = vrot.slane %v10129_v19, 4  ;;  %v2885_v40 = vpop.f32.mrf.mxu0  ;;  %v2649_v44 = vpop.f32.mrf.mxu3  ;;  %v3248_v49 = vor.u32 %v3247_v55, %v3244_v15  ;;  %v10162_v58 = vadd.f32 %v9997_v21, %v9704_v2 }
 0x297   : > { %v3106_v36 = vsel %vm3034_vm10, %v2998_v48, %v3070_v57  ;;  %v10167_v39 = vor.u32 %v2528_v20, %v2525_v59  ;;  %v3780_v27 = vmul.f32 2.0, %v10127_v1  ;;  %v2535_v2 = vshll.u32 %v10146_v51, 16  ;;  %v1964_v59 = vpop.f32.mrf.mxu1 }
 0x298   : > { %v4048_v61 = vsel %vm12726_vm6, %v12773_v14, %v4047_v38  ;;  %v4050_v8 = vsel %vm12726_vm6, %v4047_v38, %v12724_v13  ;;  %v3627_v30 = vld [vmem:[#allocation2 + $0x20] sm:$0x8]  ;;  %v3142_v25 = vpack.c.bf16 %v3106_v36, %v3106_v36  ;;  %vm3631_vm10 = vsmask.f32 256 }
 0x299   : > { %v4155_v33 = vadd.f32 %v4048_v61, %v3962_v31  ;;  %v4156_v35 = vadd.f32 %v4050_v8, %v3963_v0  ;;  %8435 = vmatmul.msk.bf16.gmra.mxu0 %vm522_vm1, %v2785_v3  ;;  %v3628_v5 = vsel %vm10141_vm4, 0, %v3627_v30  ;;  %8397 = vmatmul.msk.bf16.gmra.mxu2 %vm522_vm1, %v2180_v16  ;;  %v3249_v31 = vsel %vm9891_vm15, %v3240_v63, %v3248_v49  ;;  %v12774_v0 = vld [vmem:[#allocation8_spill] sm:$0xff]  ;;  %v12775_v8 = vld [vmem:[#allocation9_spill] sm:$0xff] }
 0x29a   : > { %v2532_v3 = vshrl.u32 %v10146_v51, 16  ;;  %v3252_v21 = vshrl.u32 %v3142_v25, 16  ;;  %v3255_v48 = vshll.u32 %v3142_v25, 16  ;;  %v2354_v16 = vadd.f32 %v2277_v46, %v12774_v0  ;;  %3629 = vst [vmem:[#allocation2 + $0x20] sm:$0x8] %v3628_v5 }
 0x29b   : > { %4193 = vst.msk [vmem:[#allocation4 + $0x8] sm:$0xff] %vm12722_vm11, %v4155_v33  ;;  %v10178_v38 = vmul.f32 2.0, %v10129_v19  ;;  %vm3630_vm14 = vcmask 57344   ;;  %v2786_v15 = vrot.slane %v10090_v53, 3  ;;  %v12725_v55 = vrot.slane %v10090_v53, 2 }
 0x29c   : > { %4194 = vst.msk [vmem:[#allocation4 + $0x10] sm:$0xff] %vm12722_vm11, %v4156_v35  ;;  %v2280_v20 = vpop.f32.mrf.mxu2  ;;  %v3254_v57 = vrot.slane %v3252_v21, 6  ;;  %v3257_v14 = vrot.slane %v3255_v48, 7  ;;  %v2723_v61 = vadd.f32 %v10096_v10, %v2354_v16  ;;  %v3858_v35 = vrot.slane %v3780_v27, 2  ;;  %v12776_v48 = vld [vmem:[#allocation11_spill] sm:$0xff]  ;;  %v12777_v16 = vld [vmem:[#allocation12_spill] sm:$0xff]  ;;  %vm10219_vm13 = vmand %vm3630_vm14, %vm3631_vm10 }
 0x29d   : > { %3580 = vst.msk [vmem:[#allocation2 + $0x24] sm:$0xf] %vm226_vm9, %v3249_v31  ;;  %v2355_v63 = vadd.f32 %v2280_v20, %v12775_v8  ;;  %v2530_v30 = vsel %vm2387_vm7, %v10082_v6, %v10167_v39  ;;  %v2534_v36 = vrot.slane %v2532_v3, 2  ;;  %v2537_v5 = vrot.slane %v2535_v2, 3  ;;  %v12778_v27 = vld [vmem:[#allocation13_spill] sm:$0xff] }
 0x29e   : > { %v10185_v46 = vpop.f32.mrf.mxu0  ;;  %v2651_v33 = vpop.f32.mrf.mxu3  ;;  %v3250_v25 = vrot.slane %v3248_v49, 4  ;;  %v10190_v0 = vor.u32 %v3257_v14, %v3254_v57  ;;  %v2959_v31 = vadd.f32 %v10094_v45, %v2723_v61  ;;  %v10195_v10 = vadd.f32 %v10050_v7, %v12776_v48  ;;  %v4229_v14 = vld [vmem:[#allocation4] sm:$0xff] }
 0x29f   : > { %v2724_v21 = vadd.f32 %v2649_v44, %v2355_v63  ;;  %v10199_v20 = vadd.f32 %v10116_v34, %v12777_v16  ;;  %v10202_v8 = vadd.f32 %v1964_v59, %v12778_v27  ;;  %v12723_v6 = vrot.slane %v10178_v38, 2 }
 0x2a0   : > { %v3259_v49 = vsel %vm9891_vm15, %v3250_v25, %v10190_v0  ;;  %v2999_v45 = vadd.f32 %v9843_v60, %v2959_v31  ;;  %v2787_v7 = vsel %vm2756_vm8, %v2784_v50, %v2786_v15  ;;  %v3859_v3 = vsel %vm1790_vm3, %v3856_v54, %v3858_v35 }
 0x2a1   : > { %v2960_v44 = vadd.f32 %v2885_v40, %v2724_v21  ;;  %3581 = vst.msk [vmem:[#allocation2 + $0x28] sm:$0xf] %vm226_vm9, %v3259_v49  ;;  %v2182_v50 = vsel %vm1790_vm3, %v2179_v42, %v12725_v55  ;;  %v10230_v40 = vor.u32 %v2537_v5, %v2534_v36  ;;  %v3861_v63 = vsel %vm1790_vm3, %v3858_v35, %v12723_v6 }
 0x2a2   : > { %v4265_v34 = vld [vmem:[#allocation4 + $0x1] sm:$0xff]  ;;  %vm3035_vm11 = vcmp.gt.f32.partialorder %v2999_v45, 0.0  ;;  %v3071_v59 = vmul.f32 0.2, %v2999_v45  ;;  %v2788_v28 = vrot.slane %v10146_v51, 3  ;;  %v12782_v13 = vunpack.c.h.bf16 %v9929_v23 }
 0x2a3   : > { %8417 = vmatmul.msk.bf16.gmra.mxu3 %vm522_vm1, %v2530_v30  ;;  %v4266_v62 = vld [vmem:[#allocation4 + $0x9] sm:$0xff]  ;;  %v4301_v54 = vmul.f32 2.0, %v4265_v34  ;;  %v3000_v57 = vadd.f32 %v9843_v60, %v2960_v44 }
 0x2a4   : > { %v4302_v61 = vmul.f32 2.0, %v4266_v62  ;;  %v3633_v30 = vld [vmem:[#allocation2 + $0x24] sm:$0x1]  ;;  %v2282_v25 = vpop.f32.mrf.mxu2  ;;  %v3107_v31 = vsel %vm3035_vm11, %v2999_v45, %v3071_v59  ;;  %v4373_v27 = vld [vmem:[#allocation4 + $0x2] sm:$0xff]  ;;  %v12781_v44 = vld [vmem:[#allocation10_spill] sm:$0xff]  ;;  %v3964_v55 = vadd.f32 %v12782_v13, %v3859_v3  ;;  %v2539_v45 = vsel %vm2387_vm7, %v10167_v39, %v10230_v40 }
 0x2a5   : > { %v4337_v36 = vadd.f32 %v4301_v54, %v4229_v14  ;;  %v3634_v5 = vsel %vm10219_vm13, 0, %v3633_v30  ;;  %vm3036_vm10 = vcmp.gt.f32.partialorder %v3000_v57, 0.0  ;;  %v3072_v21 = vmul.f32 0.2, %v3000_v57  ;;  %v4230_v16 = vld [vmem:[#allocation4 + $0x8] sm:$0xff] }
 0x2a6   : > { %v2654_v48 = vpop.f32.mrf.mxu3  ;;  %3635 = vst [vmem:[#allocation2 + $0x24] sm:$0x1] %v3634_v5  ;;  %v3143_v49 = vpack.c.bf16 %v3107_v31, %v3107_v31  ;;  %v2356_v35 = vadd.f32 %v2282_v25, %v12781_v44  ;;  %v2890_v34 = vpop.f32.mrf.mxu0  ;;  %v4338_v62 = vadd.f32 %v4302_v61, %v4230_v16  ;;  %v12783_v54 = vunpack.c.l.bf16 %v10010_v22  ;;  %v4374_v25 = vld [vmem:[#allocation4 + $0xa] sm:$0xff] }
 0x2a7   : > { %v4409_v6 = vadd.f32 %v4373_v27, %v4337_v36  ;;  %v3108_v30 = vsel %vm3036_vm10, %v3000_v57, %v3072_v21  ;;  %vm3636_vm11 = vsmask.f32 1282  ;;  %v10255_v23 = vsel %vm2756_vm8, %v2786_v15, %v2788_v28 }
 0x2a8   : > { %v3965_v14 = vadd.f32 %v12783_v54, %v3861_v63  ;;  %v3262_v59 = vshrl.u32 %v3143_v49, 16  ;;  %v3265_v42 = vshll.u32 %v3143_v49, 16  ;;  %v3144_v5 = vpack.c.bf16 %v3108_v30, %v3108_v30 }
 0x2a9   : > { %v2725_v31 = vadd.f32 %v2651_v33, %v2356_v35  ;;  %8436 = vmatmul.msk.bf16.gmra.mxu0 %vm522_vm1, %v2787_v7  ;;  %8398 = vmatmul.msk.bf16.gmra.mxu2 %vm522_vm1, %v2182_v50  ;;  %v12784_v22 = vrot.slane %v10146_v51, 2  ;;  %v12785_v13 = vrot.slane %v10090_v53, 2  ;;  %v4410_v33 = vadd.f32 %v4374_v25, %v4338_v62 }
 0x2aa   : > { %v4445_v7 = vpack.c.bf16 %v4409_v6, %v4409_v6  ;;  %v3264_v3 = vrot.slane %v3262_v59, 6  ;;  %v3267_v57 = vrot.slane %v3265_v42, 7  ;;  %v3272_v61 = vshrl.u32 %v3144_v5, 16 }
 0x2ab   : > { %v10262_v39 = vsel %vm1790_vm3, %v12785_v13, %v12784_v22  ;;  %v3275_v50 = vshll.u32 %v3144_v5, 16  ;;  %v3260_v63 = vrot.slane %v10190_v0, 4  ;;  %v2961_v36 = vadd.f32 %v10185_v46, %v2725_v31  ;;  %v10276_v5 = vld [vmem:[#allocation3] sm:$0xff]  }
 0x2ac   : > { %v4482_v21 = vshrl.u32 %v4445_v7, 16  ;;  %v4485_v15 = vshll.u32 %v4445_v7, 16  ;;  %v3268_v16 = vor.u32 %v3267_v57, %v3264_v3  ;;  %v3274_v27 = vrot.slane %v3272_v61, 6  ;;  %v2285_v44 = vpop.f32.mrf.mxu2 }
 0x2ad   : > { %v3277_v49 = vrot.slane %v3275_v50, 7  ;;  %v10266_v53 = vpack.c.bf16 %v4410_v33, %v4410_v33  ;;  %v9013_v35 = vld [vmem:[#allocation2 + $0x20] sm:$0xff]   ;;  %v3001_v62 = vadd.f32 %v9843_v60, %v2961_v36  ;;  %v2357_v6 = vadd.f32 %v2285_v44, %v9971_v4 }
 0x2ae   : > { %v4484_v42 = vrot.slane %v4482_v21, 6  ;;  %v4487_v54 = vrot.slane %v4485_v15, 7  ;;  %v10270_v30 = vunpack.c.l.bf16 %v9013_v35  ;;  %v10272_v0 = vunpack.c.h.bf16 %v9013_v35  ;;  %v2656_v4 = vpop.f32.mrf.mxu3  ;;  %v2892_v57 = vpop.f32.mrf.mxu0 }
 0x2af   : > { %v3269_v46 = vsel %vm9891_vm15, %v3260_v63, %v3268_v16  ;;  %v3270_v59 = vrot.slane %v3268_v16, 4  ;;  %v10279_v31 = vor.u32 %v3277_v49, %v3274_v27  ;;  %vm3037_vm14 = vcmp.gt.f32.partialorder %v3001_v62, 0.0 }
 0x2b0   : > { %3582 = vst.msk [vmem:[#allocation2 + $0x2c] sm:$0xf] %vm226_vm9, %v3269_v46  ;;  %v3073_v25 = vmul.f32 0.2, %v3001_v62  ;;  %v2726_v22 = vadd.f32 %v2654_v48, %v2357_v6  ;;  %v3782_v13 = vmul.f32 2.0, %v10270_v30  ;;  %v10283_v33 = vmul.f32 2.0, %v10272_v0 }
 0x2b1   : > { %v4051_v7 = vrot.slane %v10270_v30, 4  ;;  %v4053_v3 = vrot.slane %v10272_v0, 4  ;;  %v3279_v61 = vsel %vm9891_vm15, %v3270_v59, %v10279_v31  ;;  %v5114_v36 = vshll.u32 %v10276_v5, 16 }
 0x2b2   : > { %v3109_v50 = vsel %vm3037_vm14, %v3001_v62, %v3073_v25  ;;  %v2962_v63 = vadd.f32 %v2890_v34, %v2726_v22  ;;  %v3862_v48 = vrot.slane %v3782_v13, 2  ;;  %v3864_v21 = vrot.slane %v10283_v33, 2  ;;  %3583 = vst.msk [vmem:[#allocation2 + $0x30] sm:$0xf] %vm226_vm9, %v3279_v61  ;;  %v4877_v62 = vld [vmem:[#allocation3 + $0x8] sm:$0xe] }
 0x2b3   : > { %v12786_v15 = vrot.slane %v10129_v19, 4  ;;  %v4054_v27 = vsel %vm12726_vm6, %v4051_v7, %v4053_v3  ;;  %8418 = vmatmul.msk.bf16.gmra.mxu3 %vm522_vm1, %v2539_v45  ;;  %v3145_v44 = vpack.c.bf16 %v3109_v50, %v3109_v50  ;;  %v12787_v6 = vrot.slane %v10178_v38, 2  ;;  %v10318_v61 = vld [vmem:[%s9143_s8 + $0x98] sm:$0xff] }
 0x2b4   : > { %v4158_v34 = vadd.f32 %v4054_v27, %v3965_v14  ;;  %v3002_v35 = vadd.f32 %v9843_v60, %v2962_v63  ;;  %vm12788_vm10 = vcmask 58368   ;;  %v2287_v25 = vpop.f32.mrf.mxu2  ;;  %v4488_v22 = vor.u32 %v4487_v54, %v4484_v42 }
 0x2b5   : > { %v4052_v16 = vsel %vm12726_vm6, %v12786_v15, %v4051_v7  ;;  %v3863_v46 = vsel %vm1790_vm3, %v12787_v6, %v3862_v48  ;;  %vm10306_vm14 = vmand %vm12788_vm10, %vm3636_vm11  ;;  %v5112_v14 = vshrl.u32 %v10276_v5, 16  ;;  %v3865_v45 = vsel %vm1790_vm3, %v3862_v48, %v3864_v21 }
 0x2b6   : > { %v4157_v49 = vadd.f32 %v4052_v16, %v3964_v55  ;;  %v4491_v55 = vshrl.u32 %v10266_v53, 16  ;;  %vm12791_vm6 = vcmask 64512   ;;  %v3280_v38 = vrot.slane %v10279_v31, 4 }
 0x2b7   : > { %v3282_v13 = vshrl.u32 %v3145_v44, 16  ;;  %v3285_v7 = vshll.u32 %v3145_v44, 16  ;;  %vm12792_vm11 = vmmov %vm12791_vm6  ;;  %v3638_v50 = vld [vmem:[#allocation2 + $0x2c] sm:$0x3]  ;;  %vm3038_vm10 = vcmp.gt.f32.partialorder %v3002_v35, 0.0  ;;  %v2358_v54 = vadd.f32 %v2287_v25, %v9975_v32 }
 0x2b8   : > { %4195 = vst.msk [vmem:[#allocation4 + $0x18] sm:$0xff] %vm12791_vm6, %v4157_v49  ;;  %v3074_v42 = vmul.f32 0.2, %v3002_v35  ;;  %v4878_v15 = vsel %vm9870_vm0, %v4488_v22, %v4877_v62  ;;  %v10325_v48 = vadd.f32 %v10015_v37, %v3863_v46  ;;  %v3639_v31 = vsel %vm10306_vm14, 0, %v3638_v50  ;;  %v2659_v46 = vpop.f32.mrf.mxu3 }
 0x2b9   : > { %4196 = vst.msk [vmem:[#allocation4 + $0x20] sm:$0xff] %vm12792_vm11, %v4158_v34  ;;  %v3284_v16 = vrot.slane %v3282_v13, 6  ;;  %v3287_v27 = vrot.slane %v3285_v7, 7  ;;  %v2727_v34 = vadd.f32 %v2656_v4, %v2358_v54  ;;  %8437 = vmatmul.msk.bf16.gmra.mxu0 %vm522_vm1, %v10255_v23  ;;  %v4493_v44 = vrot.slane %v4491_v55, 6  ;;  %8399 = vmatmul.msk.bf16.gmra.mxu2 %vm522_vm1, %v10262_v39 }
 0x2ba   : > { %4879 = vst [vmem:[#allocation3 + $0x8] sm:$0xe] %v4878_v15  ;;  %v3110_v49 = vsel %vm3038_vm10, %v3002_v35, %v3074_v42  ;;  %v4494_v32 = vshll.u32 %v10266_v53, 16  ;;  %v10333_v62 = vadd.f32 %v10127_v1, %v3865_v45  ;;  %v2541_v25 = vshrl.u32 %v10318_v61, 16  ;;  %v2895_v35 = vpop.f32.mrf.mxu0 }
 0x2bb   : > { %3640 = vst [vmem:[#allocation2 + $0x2c] sm:$0x3] %v3639_v31  ;;  %v3288_v37 = vor.u32 %v3287_v27, %v3284_v16  ;;  %v3146_v6 = vpack.c.bf16 %v3110_v49, %v3110_v49  ;;  %v2963_v13 = vadd.f32 %v2892_v57, %v2727_v34  ;;  %v4489_v4 = vrot.slane %v4488_v22, 4  ;;  %v2381_v49 = vld [vmem:[%s9143_s8 + $0xa0] sm:$0x7] }
 0x2bc   : > { %v4496_v7 = vrot.slane %v4494_v32, 7  ;;  %v2544_v23 = vshll.u32 %v10318_v61, 16  ;;  %v2790_v45 = vrot.slane %v10318_v61, 3  ;;  %v2290_v50 = vpop.f32.mrf.mxu2  ;;  %v5116_v57 = vrot.slane %v5114_v36, 1 }
 0x2bd   : > { %v3289_v53 = vsel %vm9891_vm15, %v3280_v38, %v3288_v37  ;;  %v3292_v55 = vshrl.u32 %v3146_v6, 16  ;;  %v3295_v1 = vshll.u32 %v3146_v6, 16  ;;  %v3003_v39 = vadd.f32 %v9843_v60, %v2963_v13 }
 0x2be   : > { %3584 = vst.msk [vmem:[#allocation2 + $0x34] sm:$0xf] %vm226_vm9, %v3289_v53  ;;  %v10344_v42 = vor.u32 %v4496_v7, %v4493_v44  ;;  %v2543_v22 = vrot.slane %v2541_v25, 2  ;;  %v2359_v15 = vadd.f32 %v2290_v50, %v9979_v29  ;;  %v2546_v31 = vrot.slane %v2544_v23, 3 }
 0x2bf   : > { %v3294_v54 = vrot.slane %v3292_v55, 6  ;;  %v3297_v63 = vrot.slane %v3295_v1, 7  ;;  %v3290_v38 = vrot.slane %v3288_v37, 4  ;;  %vm3039_vm6 = vcmp.gt.f32.partialorder %v3003_v39, 0.0 }
 0x2c0   : > { %v3075_v16 = vmul.f32 0.2, %v3003_v39  ;;  %v4498_v27 = vsel %vm9891_vm15, %v4489_v4, %v10344_v42  ;;  %v2728_v32 = vadd.f32 %v2659_v46, %v2359_v15  ;;  %v10352_v36 = vor.u32 %v2546_v31, %v2543_v22  ;;  %v10376_v22 = vld [vmem:[%s12704_s2] ss:$0 sm:$0xff] }
 0x2c1   : > { %v3298_v60 = vor.u32 %v3297_v63, %v3294_v54  ;;  %4880 = vst.msk [vmem:[#allocation3 + $0xc] sm:$0xf] %vm226_vm9, %v4498_v27  ;;  %v2791_v29 = vsel %vm2756_vm8, %v2788_v28, %v2790_v45  ;;  %v2185_v25 = vrot.slane %v10318_v61, 2  ;;  %v2385_v7 = vunpack.c.l.b16 %v2381_v49  ;;  %v2661_v54 = vpop.f32.mrf.mxu3 }
 0x2c2   : > { %v9014_v34 = vld [vmem:[#allocation2 + $0x28] sm:$0xff]   ;;  %v3111_v6 = vsel %vm3039_vm6, %v3003_v39, %v3075_v16  ;;  %v2964_v4 = vadd.f32 %v2895_v35, %v2728_v32  ;;  %v2548_v63 = vsel %vm2387_vm7, %v10230_v40, %v10352_v36  ;;  %vm12794_vm0 = vcmask 1043456   ;;  %v2897_v27 = vpop.f32.mrf.mxu0 }
 0x2c3   : > { %v10359_v44 = vunpack.c.l.bf16 %v9014_v34  ;;  %v10361_v37 = vunpack.c.h.bf16 %v9014_v34  ;;  %v3299_v46 = vsel %vm9891_vm15, %v3290_v38, %v3298_v60  ;;  %v3147_v13 = vpack.c.bf16 %v3111_v6, %v3111_v6  ;;  %vm12795_vm11 = vmmov %vm12794_vm0  ;;  %8419 = vmatmul.msk.bf16.gmra.mxu3 %vm522_vm1, %v2548_v63 }
 0x2c4   : > { %3585 = vst.msk [vmem:[#allocation2 + $0x38] sm:$0xf] %vm226_vm9, %v3299_v46  ;;  %v3004_v35 = vadd.f32 %v10376_v22, %v2964_v4  ;;  %v2292_v49 = vpop.f32.mrf.mxu2  ;;  %vm12796_vm6 = vcmask 64512   ;;  %v10417_v63 = vpack.c.b16 %v2385_v7, %v2385_v7 }
 0x2c5   : > { %v3784_v23 = vmul.f32 2.0, %v10359_v44  ;;  %v10368_v53 = vmul.f32 2.0, %v10361_v37  ;;  %v4055_v28 = vrot.slane %v10359_v44, 4  ;;  %v4057_v55 = vrot.slane %v10361_v37, 4  ;;  %v3641_v1 = vld [vmem:[#allocation2 + $0x34] sm:$0x6] }
 0x2c6   : > { %v3302_v39 = vshrl.u32 %v3147_v13, 16  ;;  %v3305_v50 = vshll.u32 %v3147_v13, 16  ;;  %v3642_v32 = vsel %vm9945_vm5, 0, %v3641_v1  ;;  %vm3040_vm10 = vcmp.gt.f32.partialorder %v3004_v35, 0.0  ;;  %v10407_v1 = vld [vmem:[%s9143_s8 + $0xa0] sm:$0x3] }
 0x2c7   : > { %v3866_v15 = vrot.slane %v3784_v23, 2  ;;  %v3868_v31 = vrot.slane %v10368_v53, 2  ;;  %v4056_v38 = vsel %vm12794_vm0, %v4053_v3, %v4055_v28  ;;  %v4058_v16 = vsel %vm12795_vm11, %v4055_v28, %v4057_v55  ;;  %3643 = vst [vmem:[#allocation2 + $0x34] sm:$0x6] %v3642_v32  ;;  %v12797_v28 = vld [vmem:[#allocation20_spill] sm:$0xff]  ;;  %vm12798_vm0 = vmmov %vm12796_vm6 }
 0x2c8   : > { %v4159_v34 = vadd.f32 %v4056_v38, %v10325_v48  ;;  %v4160_v40 = vadd.f32 %v4058_v16, %v10333_v62  ;;  %v3304_v6 = vrot.slane %v3302_v39, 6  ;;  %v3307_v13 = vrot.slane %v3305_v50, 7  ;;  %v10400_v4 = vld [vmem:[#allocation3 + $0x8] sm:$0xff] }
 0x2c9   : > { %v3867_v3 = vsel %vm1790_vm3, %v3864_v21, %v3866_v15  ;;  %v3869_v46 = vsel %vm1790_vm3, %v3866_v15, %v3868_v31  ;;  %v3300_v48 = vrot.slane %v3298_v60, 4  ;;  %v3076_v62 = vmul.f32 0.2, %v3004_v35  ;;  %8438 = vmatmul.msk.bf16.gmra.mxu0 %vm522_vm1, %v2791_v29 }
 0x2ca   : > { %4197 = vst.msk [vmem:[#allocation4 + $0x28] sm:$0xff] %vm12796_vm6, %v4159_v34  ;;  %v5117_v23 = vor.u32 %v5116_v57, %v5112_v14  ;;  %v2360_v33 = vadd.f32 %v2292_v49, %v12797_v28  ;;  %v3308_v21 = vor.u32 %v3307_v13, %v3304_v6  ;;  %v5119_v39 = vshll.u32 %v10400_v4, 16  ;;  %v4267_v14 = vld [vmem:[#allocation4 + $0x11] sm:$0xff]  ;;  %v12803_v28 = vld [vmem:[#allocation21_spill] sm:$0xff] }
 0x2cb   : > { %4198 = vst.msk [vmem:[#allocation4 + $0x30] sm:$0xff] %vm12798_vm0, %v4160_v40  ;;  %v12799_v50 = vrot.slane %v10146_v51, 2  ;;  %v3968_v57 = vadd.f32 %v10129_v19, %v3867_v3  ;;  %v3969_v15 = vadd.f32 %v10270_v30, %v3869_v46  ;;  %v3112_v38 = vsel %vm3040_vm10, %v3004_v35, %v3076_v62  ;;  %v8545_v3 = vld [vmem:[%s12705_s3 + $0x8] sm:$0xf]  ;;  %vm12801_vm10 = vmmov %vm12798_vm0 }
 0x2cc   : > { %v2729_v16 = vadd.f32 %v2661_v54, %v2360_v33  ;;  %v3309_v29 = vsel %vm9891_vm15, %v3300_v48, %v3308_v21  ;;  %v3148_v49 = vpack.c.bf16 %v3112_v38, %v3112_v38  ;;  %v10425_v34 = vrot.slane %v5119_v39, 1  ;;  %v2295_v46 = vpop.f32.mrf.mxu2  ;;  %v2664_v48 = vpop.f32.mrf.mxu3 }
 0x2cd   : > { %v2186_v60 = vsel %vm1790_vm3, %v12799_v50, %v2185_v25  ;;  %v2132_v51 = vunpack.c.l.b16 %v10407_v1  ;;  %3586 = vst.msk [vmem:[#allocation2 + $0x3c] sm:$0xf] %vm226_vm9, %v3309_v29  ;;  %v2550_v19 = vshrl.u32 %v10417_v63, 16  ;;  %v2553_v30 = vshll.u32 %v10417_v63, 16 }
 0x2ce   : > { %8400 = vmatmul.msk.bf16.gmra.mxu2 %vm522_vm1, %v2186_v60  ;;  %v2965_v7 = vadd.f32 %v2897_v27, %v2729_v16  ;;  %v10431_v40 = vmul.f32 2.0, %v4267_v14  ;;  %v3310_v35 = vrot.slane %v3308_v21, 4  ;;  %v3312_v54 = vshrl.u32 %v3148_v49, 16  ;;  %v9015_v13 = vld [vmem:[#allocation2 + $0x30] sm:$0xff]   ;;  %v2900_v60 = vpop.f32.mrf.mxu0 }
 0x2cf   : > { %v3315_v32 = vshll.u32 %v3148_v49, 16  ;;  %vm12800_vm11 = vsmask.f32 7424  ;;  %vm12802_vm6 = vcmask 1043456   ;;  %v2361_v33 = vadd.f32 %v2295_v46, %v12803_v28 }
 0x2d0   : > { %v5122_v6 = vsel %vm12800_vm11, %v5117_v23, %v10425_v34  ;;  %v3005_v27 = vadd.f32 %v10376_v22, %v2965_v7  ;;  %v5651_v62 = vsel %vm12802_vm6, %v8545_v3, 0  ;;  %v2552_v1 = vrot.slane %v2550_v19, 2  ;;  %vm12804_vm11 = vmmov %vm12802_vm6 }
 0x2d1   : > { %8509 = vmatmul.msk.bf16.vlgmr.msra.gmra.mxu1 %vm12801_vm10, %v5122_v6  ;;  %v10442_v21 = vunpack.c.l.bf16 %v9015_v13  ;;  %v10444_v39 = vunpack.c.h.bf16 %v9015_v13  ;;  %v3314_v23 = vrot.slane %v3312_v54, 6  ;;  %v3317_v50 = vrot.slane %v3315_v32, 7  ;;  %5660 = vmatpush.bf16.msrb.mxu3 %v5651_v62  ;;  %vm12805_vm10 = vmmov %vm12802_vm6 }
 0x2d2   : > { %vm3041_vm0 = vcmp.gt.f32.partialorder %v3005_v27, 0.0  ;;  %v3077_v14 = vmul.f32 0.2, %v3005_v27  ;;  %v2730_v38 = vadd.f32 %v2664_v48, %v2361_v33  ;;  %v2555_v16 = vrot.slane %v2553_v30, 3 }
 0x2d3   : > { %v3786_v29 = vmul.f32 2.0, %v10442_v21  ;;  %v10448_v49 = vmul.f32 2.0, %v10444_v39  ;;  %v4059_v7 = vrot.slane %v10442_v21, 4  ;;  %v4061_v19 = vrot.slane %v10444_v39, 4 }
 0x2d4   : > { %v10452_v6 = vor.u32 %v3317_v50, %v3314_v23  ;;  %v3113_v3 = vsel %vm3041_vm0, %v3005_v27, %v3077_v14  ;;  %v2966_v54 = vadd.f32 %v2900_v60, %v2730_v38  ;;  %v2556_v32 = vor.u32 %v2555_v16, %v2552_v1  ;;  %v3644_v62 = vld [vmem:[#allocation2 + $0x3c] sm:$0xc]  ;;  %v5014_v1 = vld [vmem:[%s12705_s3] sm:$0xf]  ;;  %v2297_v50 = vpop.f32.mrf.mxu2  ;;  %v10476_v38 = vpop.f32.mrf.mxu1  ;;  %vm12807_vm0 = vmmov %vm12805_vm10 }
 0x2d5   : > { %v3870_v46 = vrot.slane %v3786_v29, 2  ;;  %v3872_v13 = vrot.slane %v10448_v49, 2  ;;  %v4060_v30 = vsel %vm12804_vm11, %v4057_v55, %v4059_v7  ;;  %v4062_v48 = vsel %vm12805_vm10, %v4059_v7, %v4061_v19  ;;  %v8564_v55 = vld [vmem:[%s12705_s3 + $0xc] sm:$0xf]  ;;  %v4268_v29 = vld [vmem:[#allocation4 + $0x19] sm:$0xff]  ;;  %vm12809_vm10 = vmmov %vm12807_vm0 }
 0x2d6   : > { %v4161_v28 = vadd.f32 %v4060_v30, %v3968_v57  ;;  %v4162_v33 = vadd.f32 %v4062_v48, %v3969_v15  ;;  %v3645_v23 = vsel %vm10037_vm2, 0, %v3644_v62  ;;  %v3319_v27 = vsel %vm9891_vm15, %v3310_v35, %v10452_v6 }
 0x2d7   : > { %v3871_v57 = vsel %vm1790_vm3, %v3868_v31, %v3870_v46  ;;  %3646 = vst [vmem:[#allocation2 + $0x3c] sm:$0xc] %v3645_v23  ;;  %v3149_v15 = vpack.c.bf16 %v3113_v3, %v3113_v3  ;;  %v2792_v60 = vrot.slane %v10417_v63, 3  ;;  %v2151_v14 = vpack.c.b16 %v2132_v51, %v2132_v51  ;;  %v4231_v23 = vld [vmem:[#allocation4 + $0x10] sm:$0xff] }
 0x2d8   : > { %v3873_v35 = vsel %vm1790_vm3, %v3870_v46, %v3872_v13  ;;  %vm12806_vm6 = vcmask 64512   ;;  %v3320_v16 = vrot.slane %v10452_v6, 4  ;;  %v5452_v53 = vsel %vm12807_vm0, %v5014_v1, 0  ;;  %v8651_v46 = vld [vmem:[%s12705_s3 + $0x10] sm:$0xf] }
 0x2d9   : > { %4199 = vst.msk [vmem:[#allocation4 + $0x38] sm:$0xff] %vm12806_vm6, %v4161_v28  ;;  %v3006_v31 = vadd.f32 %v10376_v22, %v2966_v54  ;;  %vm12808_vm11 = vmmov %vm12806_vm6  ;;  %v3322_v7 = vshrl.u32 %v3149_v15, 16  ;;  %v3325_v63 = vshll.u32 %v3149_v15, 16  ;;  %5461 = vmatpush.bf16.msrb.mxu2 %v5452_v53  ;;  %v6012_v51 = vsel %vm12809_vm10, %v8564_v55, 0  ;;  %v2666_v54 = vpop.f32.mrf.mxu3 }
 0x2da   : > { %4200 = vst.msk [vmem:[#allocation4 + $0x40] sm:$0xff] %vm12808_vm11, %v4162_v33  ;;  %v2557_v3 = vsel %vm2387_vm7, %v10352_v36, %v2556_v32  ;;  %6021 = vmatpush.bf16.msrb.mxu0 %v6012_v51  ;;  %v6380_v30 = vsel %vm12807_vm0, %v8651_v46, 0  ;;  %v2362_v48 = vadd.f32 %v2297_v50, %v10044_v18  ;;  %v2902_v33 = vpop.f32.mrf.mxu0  ;;  %v2793_v36 = vsel %vm2756_vm8, %v2790_v45, %v2792_v60  ;;  %v4375_v51 = vld [vmem:[#allocation4 + $0x12] sm:$0xff]  ;;  %vm12810_vm11 = vmmov %vm12807_vm0 }
 0x2db   : > { %3587 = vst.msk [vmem:[#allocation2 + $0x40] sm:$0xf] %vm226_vm9, %v3319_v27  ;;  %vm3042_vm6 = vcmp.gt.f32.partialorder %v3006_v31, 0.0  ;;  %v3078_v6 = vmul.f32 0.2, %v3006_v31  ;;  %8420 = vmatmul.msk.bf16.gmra.mxu3 %vm522_vm1, %v2557_v3  ;;  %v3324_v62 = vrot.slane %v3322_v7, 6  ;;  %6389 = vmatpush.bf16.msrb.mxu1 %v6380_v30  ;;  %v4339_v15 = vadd.f32 %v10431_v40, %v4231_v23  ;;  %vm12811_vm10 = vmmov %vm12807_vm0 }
 0x2dc   : > { %v3327_v28 = vrot.slane %v3325_v63, 7  ;;  %v2187_v32 = vrot.slane %v2151_v14, 2  ;;  %v2731_v1 = vadd.f32 %v2666_v54, %v2362_v48  ;;  %8439 = vmatmul.msk.bf16.gmra.mxu0 %vm522_vm1, %v2793_v36  ;;  %v4304_v55 = vmul.f32 2.0, %v4268_v29  ;;  %v4232_v63 = vld [vmem:[#allocation4 + $0x18] sm:$0xff] }
 0x2dd   : > { %v3114_v27 = vsel %vm3042_vm6, %v3006_v31, %v3078_v6  ;;  %v3970_v53 = vadd.f32 %v10272_v0, %v3871_v57  ;;  %v3971_v45 = vadd.f32 %v10359_v44, %v3873_v35  ;;  %v4411_v29 = vadd.f32 %v4375_v51, %v4339_v15  ;;  %v2300_v57 = vpop.f32.mrf.mxu2 }
 0x2de   : > { %v3328_v18 = vor.u32 %v3327_v28, %v3324_v62  ;;  %v3150_v50 = vpack.c.bf16 %v3114_v27, %v3114_v27  ;;  %v2188_v7 = vsel %vm1790_vm3, %v2185_v25, %v2187_v32  ;;  %v9016_v60 = vld [vmem:[#allocation2 + $0x38] sm:$0xff]   ;;  %v2967_v14 = vadd.f32 %v2902_v33, %v2731_v1 }
 0x2df   : > { %8401 = vmatmul.msk.bf16.gmra.mxu2 %vm522_vm1, %v2188_v7  ;;  %v4340_v31 = vadd.f32 %v4304_v55, %v4232_v63  ;;  %v10507_v3 = vunpack.c.l.bf16 %v9016_v60  ;;  %v10509_v40 = vunpack.c.h.bf16 %v9016_v60  ;;  %v2363_v35 = vadd.f32 %v2300_v57, %v10048_v47  ;;  %v12813_v63 = vld [vmem:[#allocation15_spill] sm:$0xff]  ;;  %v9030_v57 = vld [vmem:[#allocation3] sm:$0xe] }
 0x2e0   : > { %v3329_v0 = vsel %vm9891_vm15, %v3320_v16, %v3328_v18  ;;  %v3330_v61 = vrot.slane %v3328_v18, 4  ;;  %v3332_v25 = vshrl.u32 %v3150_v50, 16  ;;  %v3335_v46 = vshll.u32 %v3150_v50, 16  ;;  %v1969_v16 = vpop.f32.mrf.mxu1  ;;  %v12812_v50 = vld [vmem:[#allocation14_spill] sm:$0xff] }
 0x2e1   : > { %3588 = vst.msk [vmem:[#allocation2 + $0x44] sm:$0xf] %vm226_vm9, %v3329_v0  ;;  %v3007_v44 = vadd.f32 %v10376_v22, %v2967_v14  ;;  %v3788_v6 = vmul.f32 2.0, %v10507_v3  ;;  %v10518_v54 = vmul.f32 2.0, %v10509_v40  ;;  %v4063_v30 = vrot.slane %v10507_v3, 4  ;;  %v2669_v18 = vpop.f32.mrf.mxu3 }
 0x2e2   : > { %v4065_v48 = vrot.slane %v10509_v40, 4  ;;  %v3334_v62 = vrot.slane %v3332_v25, 6  ;;  %v3337_v28 = vrot.slane %v3335_v46, 7  ;;  %v10531_v7 = vadd.f32 %v10476_v38, %v12812_v50  ;;  %v2905_v14 = vpop.f32.mrf.mxu0  ;;  %v4376_v25 = vld [vmem:[#allocation4 + $0x1a] sm:$0xff] }
 0x2e3   : > { %vm3043_vm1 = vcmp.gt.f32.partialorder %v3007_v44, 0.0  ;;  %v3079_v33 = vmul.f32 0.2, %v3007_v44  ;;  %v3874_v36 = vrot.slane %v3788_v6, 2  ;;  %v3876_v32 = vrot.slane %v10518_v54, 2 }
 0x2e4   : > { %v4064_v47 = vsel %vm12810_vm11, %v4061_v19, %v4063_v30  ;;  %v4066_v23 = vsel %vm12811_vm10, %v4063_v30, %v4065_v48  ;;  %v3338_v55 = vor.u32 %v3337_v28, %v3334_v62  ;;  %v10534_v51 = vadd.f32 %v1969_v16, %v12813_v63  ;;  %v9029_v19 = vld [vmem:[#allocation3] sm:$0xf0]  ;;  %v10554_v50 = vld [vmem:[#allocation3 + $0x8] sm:$0xe] }
 0x2e5   : > { %v4163_v27 = vadd.f32 %v4064_v47, %v3970_v53  ;;  %v4164_v1 = vadd.f32 %v4066_v23, %v3971_v45  ;;  %v3115_v15 = vsel %vm3043_vm1, %v3007_v44, %v3079_v33  ;;  %v2732_v0 = vadd.f32 %v2669_v18, %v2363_v35  ;;  %v2302_v18 = vpop.f32.mrf.mxu2 }
 0x2e6   : > { %v3151_v60 = vpack.c.bf16 %v3115_v15, %v3115_v15  ;;  %v3875_v53 = vsel %vm1790_vm3, %v3872_v13, %v3874_v36  ;;  %v3877_v45 = vsel %vm1790_vm3, %v3874_v36, %v3876_v32  ;;  %vm12814_vm6 = vcmask 64512  }
 0x2e7   : > { %4201 = vst.msk [vmem:[#allocation4 + $0x48] sm:$0xff] %vm12814_vm6, %v4163_v27  ;;  %v3339_v38 = vsel %vm9891_vm15, %v3330_v61, %v3338_v55  ;;  %v4499_v46 = vrot.slane %v10344_v42, 4  ;;  %vm12815_vm0 = vmmov %vm12814_vm6  ;;  %v2968_v49 = vadd.f32 %v2905_v14, %v2732_v0  ;;  %v4412_v30 = vadd.f32 %v4376_v25, %v4340_v31  ;;  %v10559_v0 = vld [vmem:[#allocation3 + $0xc] sm:$0xf] }
 0x2e8   : > { %4202 = vst.msk [vmem:[#allocation4 + $0x50] sm:$0xff] %vm12815_vm0, %v4164_v1  ;;  %v3647_v44 = vld [vmem:[#allocation2 + $0x44] sm:$0x8]  ;;  %v3342_v35 = vshrl.u32 %v3151_v60, 16  ;;  %v3345_v6 = vshll.u32 %v3151_v60, 16  ;;  %v3340_v16 = vrot.slane %v3338_v55, 4  ;;  %v4447_v62 = vpack.c.bf16 %v4411_v29, %v4411_v29  ;;  %vm12817_vm10 = vmmov %vm12815_vm0 }
 0x2e9   : > { %v3648_v13 = vsel %vm10141_vm4, 0, %v3647_v44  ;;  %3589 = vst.msk [vmem:[#allocation2 + $0x48] sm:$0xf] %vm226_vm9, %v3339_v38  ;;  %v9031_v28 = vor.u32 %v9030_v57, %v9029_v19  ;;  %v3008_v42 = vadd.f32 %v10376_v22, %v2968_v49  ;;  %v4448_v36 = vpack.c.bf16 %v4412_v30, %v4412_v30  ;;  %vm12818_vm6 = vmmov %vm12815_vm0  ;;  %v4269_v30 = vld [vmem:[#allocation4 + $0x21] sm:$0xff] }
 0x2ea   : > { %3649 = vst [vmem:[#allocation2 + $0x44] sm:$0x8] %v3648_v13  ;;  %v3344_v61 = vrot.slane %v3342_v35, 6  ;;  %v3347_v33 = vrot.slane %v3345_v6, 7  ;;  %v4501_v47 = vshrl.u32 %v4447_v62, 16  ;;  %v4504_v23 = vshll.u32 %v4447_v62, 16  ;;  %v2671_v62 = vpop.f32.mrf.mxu3 }
 0x2eb   : > { %v5559_v27 = vrot.slane %v9031_v28, 1  ;;  %v5560_v1 = vrot.slane %v10400_v4, 1  ;;  %vm3044_vm1 = vcmp.gt.f32.partialorder %v3008_v42, 0.0  ;;  %v3080_v15 = vmul.f32 0.2, %v3008_v42 }
 0x2ec   : > { %v10552_v31 = vor.u32 %v3347_v33, %v3344_v61  ;;  %v4511_v55 = vshrl.u32 %v4448_v36, 16  ;;  %v4503_v29 = vrot.slane %v4501_v47, 6  ;;  %v4506_v63 = vrot.slane %v4504_v23, 7  ;;  %v4270_v23 = vld [vmem:[#allocation4 + $0x29] sm:$0xff] }
 0x2ed   : > { %v4514_v60 = vshll.u32 %v4448_v36, 16  ;;  %vm12816_vm11 = vcmask 1046528   ;;  %v3972_v19 = vadd.f32 %v10361_v37, %v3875_v53  ;;  %v3116_v38 = vsel %vm3044_vm1, %v3008_v42, %v3080_v15 }
 0x2ee   : > { %v5561_v14 = vsel %vm12816_vm11, %v5559_v27, %v5560_v1  ;;  %v3349_v57 = vsel %vm9891_vm15, %v3340_v16, %v10552_v31  ;;  %v4513_v25 = vrot.slane %v4511_v55, 6  ;;  %v3152_v44 = vpack.c.bf16 %v3116_v38, %v3116_v38  ;;  %v2907_v16 = vpop.f32.mrf.mxu0  ;;  %vm12821_vm11 = vmmov %vm12818_vm6 }
 0x2ef   : > { %8546 = vmatmul.msk.bf16.vlgmr.msrb.gmra.mxu3 %vm12817_vm10, %v5561_v14  ;;  %3590 = vst.msk [vmem:[#allocation2 + $0x4c] sm:$0xf] %vm226_vm9, %v3349_v57  ;;  %v4507_v35 = vor.u32 %v4506_v63, %v4503_v29  ;;  %v4516_v6 = vrot.slane %v4514_v60, 7  ;;  %v2364_v49 = vadd.f32 %v2302_v18, %v10066_v43  ;;  %8527 = vmatmul.msk.bf16.vlgmr.msrb.gmra.mxu2 %vm12818_vm6, %v10276_v5  ;;  %v3350_v13 = vrot.slane %v10552_v31, 4  ;;  %vm12822_vm10 = vmmov %vm12818_vm6 }
 0x2f0   : > { %v3973_v37 = vadd.f32 %v10442_v21, %v3877_v45  ;;  %v3650_v53 = vld [vmem:[#allocation2 + $0x48] sm:$0x1]  ;;  %v5864_v28 = vunpack.c.l.b16 %v10554_v50  ;;  %v12727_v61 = vunpack.c.l.b16 %v10559_v0  ;;  %v3352_v43 = vshrl.u32 %v3152_v44, 16 }
 0x2f1   : > { %v9017_v33 = vld [vmem:[#allocation2 + $0x40] sm:$0xff]   ;;  %v3651_v42 = vsel %vm10219_vm13, 0, %v3650_v53  ;;  %v3355_v36 = vshll.u32 %v3152_v44, 16  ;;  %v4508_v5 = vsel %vm9891_vm15, %v4499_v46, %v4507_v35  ;;  %v4509_v45 = vrot.slane %v4507_v35, 4 }
 0x2f2   : > { %v10578_v47 = vunpack.c.l.bf16 %v9017_v33  ;;  %v10580_v21 = vunpack.c.h.bf16 %v9017_v33  ;;  %3652 = vst [vmem:[#allocation2 + $0x48] sm:$0x1] %v3651_v42  ;;  %v4305_v27 = vmul.f32 2.0, %v4269_v30  ;;  %v3354_v31 = vrot.slane %v3352_v43, 6 }
 0x2f3   : > { %v3357_v15 = vrot.slane %v3355_v36, 7  ;;  %v10582_v55 = vor.u32 %v4516_v6, %v4513_v25  ;;  %4881 = vst.msk [vmem:[#allocation3 + $0x10] sm:$0xf] %vm226_vm9, %v4508_v5  ;;  %v2733_v18 = vadd.f32 %v2671_v62, %v2364_v49  ;;  %v4306_v38 = vmul.f32 2.0, %v4270_v23  ;;  %v4233_v62 = vld [vmem:[#allocation4 + $0x20] sm:$0xff]  ;;  %v4378_v23 = vld [vmem:[#allocation4 + $0x2a] sm:$0xff] }
 0x2f4   : > { %v3790_v50 = vmul.f32 2.0, %v10578_v47  ;;  %v10587_v29 = vmul.f32 2.0, %v10580_v21  ;;  %v4067_v46 = vrot.slane %v10578_v47, 4  ;;  %v4069_v63 = vrot.slane %v10580_v21, 4 }
 0x2f5   : > { %v10591_v60 = vor.u32 %v3357_v15, %v3354_v31  ;;  %v4518_v14 = vsel %vm9891_vm15, %v4509_v45, %v10582_v55  ;;  %v2969_v57 = vadd.f32 %v2907_v16, %v2733_v18  ;;  %vm12819_vm0 = vcmask 1043456   ;;  %v4377_v45 = vld [vmem:[#allocation4 + $0x22] sm:$0xff] }
 0x2f6   : > { %v3878_v25 = vrot.slane %v3790_v50, 2  ;;  %v3880_v44 = vrot.slane %v10587_v29, 2  ;;  %v4068_v35 = vsel %vm12819_vm0, %v4065_v48, %v4067_v46  ;;  %vm12820_vm1 = vmmov %vm12819_vm0  ;;  %4882 = vst.msk [vmem:[#allocation3 + $0x14] sm:$0xf] %vm226_vm9, %v4518_v14  ;;  %v5123_v16 = vshrl.u32 %v10400_v4, 16  ;;  %v2910_v18 = vpop.f32.mrf.mxu0  ;;  %v2674_v50 = vpop.f32.mrf.mxu3 }
 0x2f7   : > { %v4070_v6 = vsel %vm12820_vm1, %v4067_v46, %v4069_v63  ;;  %v4165_v49 = vadd.f32 %v4068_v35, %v3972_v19  ;;  %v3359_v53 = vsel %vm9891_vm15, %v3350_v13, %v10591_v60  ;;  %v3009_v48 = vadd.f32 %v10376_v22, %v2969_v57  ;;  %v2305_v19 = vpop.f32.mrf.mxu2  ;;  %vm12823_vm1 = vmmov %vm12819_vm0 }
 0x2f8   : > { %v4166_v30 = vadd.f32 %v4070_v6, %v3973_v37  ;;  %v3879_v33 = vsel %vm1790_vm3, %v3876_v32, %v3878_v25  ;;  %3591 = vst.msk [vmem:[#allocation2 + $0x50] sm:$0xf] %vm226_vm9, %v3359_v53  ;;  %v10613_v42 = vpack.c.b16 %v12727_v61, %v5864_v28  ;;  %v4234_v37 = vld [vmem:[#allocation4 + $0x28] sm:$0xff]  ;;  %v4341_v43 = vadd.f32 %v4305_v27, %v4233_v62  ;;  %v1971_v6 = vpop.f32.mrf.mxu1 }
 0x2f9   : > { %v3881_v13 = vsel %vm1790_vm3, %v3878_v25, %v3880_v44  ;;  %v3974_v36 = vadd.f32 %v10444_v39, %v3879_v33  ;;  %4203 = vst.msk [vmem:[#allocation4 + $0x58] sm:$0xff] %vm12821_vm11, %v4165_v49  ;;  %v9018_v54 = vld [vmem:[#allocation2 + $0x48] sm:$0xff]   ;;  %v2365_v32 = vadd.f32 %v2305_v19, %v10071_v56  ;;  %v4342_v5 = vadd.f32 %v4306_v38, %v4234_v37  ;;  %vm12824_vm11 = vmmov %vm12822_vm10 }
 0x2fa   : > { %4204 = vst.msk [vmem:[#allocation4 + $0x60] sm:$0xff] %vm12822_vm10, %v4166_v30  ;;  %v10622_v28 = vunpack.c.l.bf16 %v9018_v54  ;;  %v10624_v31 = vunpack.c.h.bf16 %v9018_v54  ;;  %v4918_v27 = vld [vmem:[#allocation3 + $0x10] sm:$0x6]  ;;  %vm3045_vm6 = vcmp.gt.f32.partialorder %v3009_v48, 0.0  ;;  %v3081_v15 = vmul.f32 0.2, %v3009_v48 }
 0x2fb   : > { %v4919_v39 = vsel %vm9945_vm5, 0, %v4918_v27  ;;  %v2734_v46 = vadd.f32 %v2674_v50, %v2365_v32  ;;  %v4413_v14 = vadd.f32 %v4377_v45, %v4341_v43  ;;  %v4414_v56 = vadd.f32 %v4378_v23, %v4342_v5 }
 0x2fc   : > { %v3792_v57 = vmul.f32 2.0, %v10622_v28  ;;  %v10630_v38 = vmul.f32 2.0, %v10624_v31  ;;  %v4071_v25 = vrot.slane %v10622_v28, 4  ;;  %v4073_v35 = vrot.slane %v10624_v31, 4  ;;  %4920 = vst [vmem:[#allocation3 + $0x10] sm:$0x6] %v4919_v39 }
 0x2fd   : > { %v3975_v49 = vadd.f32 %v10507_v3, %v3881_v13  ;;  %v3117_v30 = vsel %vm3045_vm6, %v3009_v48, %v3081_v15  ;;  %v2970_v53 = vadd.f32 %v2910_v18, %v2734_v46  ;;  %v4449_v62 = vpack.c.bf16 %v4413_v14, %v4413_v14  ;;  %v12825_v3 = vld [vmem:[#allocation16_spill] sm:$0xff]  ;;  %vm12826_vm6 = vmmov %vm12822_vm10 }
 0x2fe   : > { %v3882_v33 = vrot.slane %v3792_v57, 2  ;;  %v3884_v19 = vrot.slane %v10630_v38, 2  ;;  %v4072_v37 = vsel %vm12819_vm0, %v4069_v63, %v4071_v25  ;;  %v4074_v43 = vsel %vm12823_vm1, %v4071_v25, %v4073_v35 }
 0x2ff   : > { %v4167_v54 = vadd.f32 %v4072_v37, %v3974_v36  ;;  %v4168_v32 = vadd.f32 %v4074_v43, %v3975_v49  ;;  %v3653_v5 = vld [vmem:[#allocation2 + $0x50] sm:$0x3]  ;;  %v3153_v45 = vpack.c.bf16 %v3117_v30, %v3117_v30  ;;  %v3010_v23 = vadd.f32 %v10376_v22, %v2970_v53  ;;  %8528 = vmatmul.msk.bf16.gmra.mxu2 %vm12824_vm11, %v10400_v4  ;;  %v2912_v30 = vpop.f32.mrf.mxu0  ;;  %v2676_v53 = vpop.f32.mrf.mxu3  ;;  %vm12828_vm11 = vmmov %vm12826_vm6 }
 0x300   : > { %v10644_v48 = vadd.f32 %v1971_v6, %v12825_v3  ;;  %v3654_v13 = vsel %vm10306_vm14, 0, %v3653_v5  ;;  %v5125_v63 = vor.u32 %v5123_v16, %v10425_v34  ;;  %v4450_v27 = vpack.c.bf16 %v4414_v56, %v4414_v56  ;;  %v2307_v6 = vpop.f32.mrf.mxu2 }
 0x301   : > { %4205 = vst.msk [vmem:[#allocation4 + $0x68] sm:$0xff] %vm12822_vm10, %v4167_v54  ;;  %v3360_v36 = vrot.slane %v10591_v60, 4  ;;  %v3362_v15 = vshrl.u32 %v3153_v45, 16  ;;  %v3365_v18 = vshll.u32 %v3153_v45, 16  ;;  %v5920_v50 = vrot.slane %v10613_v42, 1 }
 0x302   : > { %4206 = vst.msk [vmem:[#allocation4 + $0x70] sm:$0xff] %vm12826_vm6, %v4168_v32  ;;  %vm3046_vm0 = vcmp.gt.f32.partialorder %v3010_v23, 0.0  ;;  %v3082_v39 = vmul.f32 0.2, %v3010_v23  ;;  %v4521_v46 = vshrl.u32 %v4449_v62, 16  ;;  %v4524_v14 = vshll.u32 %v4449_v62, 16 }
 0x303   : > { %v3883_v57 = vsel %vm1790_vm3, %v3880_v44, %v3882_v33  ;;  %v3885_v34 = vsel %vm1790_vm3, %v3882_v33, %v3884_v19  ;;  %3655 = vst [vmem:[#allocation2 + $0x50] sm:$0x3] %v3654_v13  ;;  %v10659_v60 = vld [vmem:[#allocation3 + $0x10] sm:$0xff]  ;;  %v3364_v16 = vrot.slane %v3362_v15, 6  ;;  %v3367_v56 = vrot.slane %v3365_v18, 7 }
 0x304   : > { %v10661_v25 = vld [vmem:[#allocation3 + $0x10] sm:$0xff]  ;;  %v3118_v49 = vsel %vm3046_vm0, %v3010_v23, %v3082_v39  ;;  %v4523_v62 = vrot.slane %v4521_v46, 6  ;;  %v4526_v37 = vrot.slane %v4524_v14, 7  ;;  %v4531_v29 = vshrl.u32 %v4450_v27, 16  ;;  %v4271_v39 = vld [vmem:[#allocation4 + $0x31] sm:$0xff]  ;;  %v4272_v14 = vld [vmem:[#allocation4 + $0x39] sm:$0xff] }
 0x305   : > { %v5127_v44 = vshll.u32 %v10659_v60, 16  ;;  %v3368_v43 = vor.u32 %v3367_v56, %v3364_v16  ;;  %v5921_v54 = vrot.slane %v10661_v25, 1  ;;  %v3154_v33 = vpack.c.bf16 %v3118_v49, %v3118_v49  ;;  %v6752_v59 = vld [vmem:[#allocation3 + $0x10] sm:$0xc] }
 0x306   : > { %v4519_v32 = vrot.slane %v10582_v55, 4  ;;  %v4527_v5 = vor.u32 %v4526_v37, %v4523_v62  ;;  %v4534_v45 = vshll.u32 %v4450_v27, 16  ;;  %v2366_v3 = vadd.f32 %v2307_v6, %v10075_v41  ;;  %v4274_v37 = vld [vmem:[#allocation4 + $0x49] sm:$0xff] }
 0x307   : > { %v5129_v13 = vrot.slane %v5127_v44, 1  ;;  %v3369_v23 = vsel %vm9891_vm15, %v3360_v36, %v3368_v43  ;;  %vm12827_vm1 = vcmask 1046528   ;;  %v4533_v18 = vrot.slane %v4531_v29, 6  ;;  %v4273_v36 = vld [vmem:[#allocation4 + $0x41] sm:$0xff]  ;;  %v4235_v44 = vld [vmem:[#allocation4 + $0x30] sm:$0xff] }
 0x308   : > { %v5922_v15 = vsel %vm12827_vm1, %v5920_v50, %v5921_v54  ;;  %v10673_v46 = vadd.f32 %v10509_v40, %v3883_v57  ;;  %3592 = vst.msk [vmem:[#allocation2 + $0x54] sm:$0xf] %vm226_vm9, %v3369_v23  ;;  %v3372_v55 = vshrl.u32 %v3154_v33, 16  ;;  %v3375_v27 = vshll.u32 %v3154_v33, 16  ;;  %vm12830_vm0 = vmmov %vm12827_vm1 }
 0x309   : > { %8633 = vmatmul.msk.bf16.vlgmr.msrb.gmra.mxu0 %vm12828_vm11, %v5922_v15  ;;  %v4528_v41 = vsel %vm9891_vm15, %v4519_v32, %v4527_v5  ;;  %vm12829_vm10 = vsmask.f32 7424  ;;  %v4529_v56 = vrot.slane %v4527_v5, 4  ;;  %v4536_v50 = vrot.slane %v4534_v45, 7  ;;  %vm12831_vm1 = vmmov %vm12826_vm6 }
 0x30a   : > { %v5130_v16 = vsel %vm12829_vm10, %v5125_v63, %v5129_v13  ;;  %4883 = vst.msk [vmem:[#allocation3 + $0x18] sm:$0xf] %vm226_vm9, %v4528_v41  ;;  %v5562_v40 = vrot.slane %v10659_v60, 1  ;;  %v3374_v57 = vrot.slane %v3372_v55, 6  ;;  %v3377_v6 = vrot.slane %v3375_v27, 7  ;;  %v2915_v27 = vpop.f32.mrf.mxu0  ;;  %v2679_v41 = vpop.f32.mrf.mxu3  ;;  %vm12832_vm11 = vmmov %vm12831_vm1 }
 0x30b   : > { %8510 = vmatmul.msk.bf16.gmra.mxu1 %vm12826_vm6, %v5130_v16  ;;  %v2735_v49 = vadd.f32 %v2676_v53, %v2366_v3  ;;  %v4307_v62 = vmul.f32 2.0, %v4271_v39  ;;  %v10683_v29 = vor.u32 %v4536_v50, %v4533_v18  ;;  %v4308_v33 = vmul.f32 2.0, %v4272_v14  ;;  %v4236_v53 = vld [vmem:[#allocation4 + $0x38] sm:$0xff]  ;;  %v4237_v16 = vld [vmem:[#allocation4 + $0x40] sm:$0xff] }
 0x30c   : > { %v5563_v63 = vsel %vm12830_vm0, %v5560_v1, %v5562_v40  ;;  %v4309_v32 = vmul.f32 2.0, %v4273_v36  ;;  %v3370_v5 = vrot.slane %v3368_v43, 4  ;;  %v10690_v45 = vor.u32 %v3377_v6, %v3374_v57  ;;  %v4379_v39 = vld [vmem:[#allocation4 + $0x32] sm:$0xff]  ;;  %v4380_v14 = vld [vmem:[#allocation4 + $0x3a] sm:$0xff]  ;;  %v2310_v57 = vpop.f32.mrf.mxu2 }
 0x30d   : > { %8547 = vmatmul.msk.bf16.gmra.mxu3 %vm12831_vm1, %v5563_v63  ;;  %v2971_v23 = vadd.f32 %v2912_v30, %v2735_v49  ;;  %v4343_v3 = vadd.f32 %v4307_v62, %v4235_v44  ;;  %v4538_v15 = vsel %vm9891_vm15, %v4529_v56, %v10683_v29  ;;  %v5131_v18 = vshrl.u32 %v10659_v60, 16  ;;  %v4238_v63 = vld [vmem:[#allocation4 + $0x48] sm:$0xff] }
 0x30e   : > { %v4344_v4 = vadd.f32 %v4308_v33, %v4236_v53  ;;  %v4310_v1 = vmul.f32 2.0, %v4274_v37  ;;  %v3977_v55 = vadd.f32 %v10578_v47, %v3885_v34  ;;  %v3379_v43 = vsel %vm9891_vm15, %v3370_v5, %v10690_v45  ;;  %4884 = vst.msk [vmem:[#allocation3 + $0x1c] sm:$0xf] %vm226_vm9, %v4538_v15 }
 0x30f   : > { %v3011_v30 = vadd.f32 %v10376_v22, %v2971_v23  ;;  %v4415_v36 = vadd.f32 %v4379_v39, %v4343_v3  ;;  %v9019_v56 = vld [vmem:[#allocation2 + $0x50] sm:$0xff]   ;;  %3593 = vst.msk [vmem:[#allocation2 + $0x58] sm:$0xf] %vm226_vm9, %v3379_v43  ;;  %v10704_v50 = vor.u32 %v5131_v18, %v5129_v13  ;;  %8529 = vmatmul.msk.bf16.gmra.mxu2 %vm12832_vm11, %v10659_v60  ;;  %vm12833_vm6 = vcmask 1043456   ;;  %vm12835_vm11 = vmmov %vm12831_vm1 }
 0x310   : > { %v4416_v47 = vadd.f32 %v4380_v14, %v4344_v4  ;;  %v4345_v34 = vadd.f32 %v4309_v32, %v4237_v16  ;;  %v10708_v6 = vunpack.c.l.bf16 %v9019_v56  ;;  %v10710_v49 = vunpack.c.h.bf16 %v9019_v56  ;;  %vm12834_vm0 = vmmov %vm12833_vm6  ;;  %v4276_v60 = vld [vmem:[#allocation4 + $0x59] sm:$0xff] }
 0x311   : > { %v4921_v62 = vld [vmem:[#allocation3 + $0x18] sm:$0xc]  ;;  %vm3047_vm10 = vcmp.gt.f32.partialorder %v3011_v30, 0.0  ;;  %v3083_v37 = vmul.f32 0.2, %v3011_v30  ;;  %v2367_v13 = vadd.f32 %v2310_v57, %v10079_v12  ;;  %v4451_v33 = vpack.c.bf16 %v4415_v36, %v4415_v36 }
 0x312   : > { %v4922_v44 = vsel %vm10037_vm2, 0, %v4921_v62  ;;  %v4346_v5 = vadd.f32 %v4310_v1, %v4238_v63  ;;  %v10716_v23 = vmul.f32 2.0, %v10708_v6  ;;  %v10719_v32 = vmul.f32 2.0, %v10710_v49  ;;  %v2681_v63 = vpop.f32.mrf.mxu3 }
 0x313   : > { %v4075_v53 = vrot.slane %v10708_v6, 4  ;;  %v4077_v3 = vrot.slane %v10710_v49, 4  ;;  %4923 = vst [vmem:[#allocation3 + $0x18] sm:$0xc] %v4922_v44  ;;  %v3119_v15 = vsel %vm3047_vm10, %v3011_v30, %v3083_v37  ;;  %v2736_v18 = vadd.f32 %v2679_v41, %v2367_v13  ;;  %v4381_v30 = vld [vmem:[#allocation4 + $0x42] sm:$0xff]  ;;  %v10732_v37 = vpop.f32.mrf.mxu0 }
 0x314   : > { %v4541_v4 = vshrl.u32 %v4451_v33, 16  ;;  %v4544_v39 = vshll.u32 %v4451_v33, 16  ;;  %v3886_v43 = vrot.slane %v10716_v23, 2  ;;  %v4452_v14 = vpack.c.bf16 %v4416_v47, %v4416_v47 }
 0x315   : > { %v4076_v12 = vsel %vm12833_vm6, %v4073_v35, %v4075_v53  ;;  %v4078_v1 = vsel %vm12834_vm0, %v4075_v53, %v4077_v3  ;;  %v3155_v56 = vpack.c.bf16 %v3119_v15, %v3119_v15  ;;  %v2972_v57 = vadd.f32 %v2915_v27, %v2736_v18  ;;  %v4382_v15 = vld [vmem:[#allocation4 + $0x4a] sm:$0xff]  ;;  %vm12837_vm0 = vmmov %vm12831_vm1 }
 0x316   : > { %v4169_v36 = vadd.f32 %v4076_v12, %v10673_v46  ;;  %v4170_v16 = vadd.f32 %v4078_v1, %v3977_v55  ;;  %v3380_v41 = vrot.slane %v10690_v45, 4  ;;  %v3656_v62 = vld [vmem:[#allocation2 + $0x58] sm:$0x6]  ;;  %v4539_v44 = vrot.slane %v10683_v29, 4 }
 0x317   : > { %v4543_v35 = vrot.slane %v4541_v4, 6  ;;  %v4546_v13 = vrot.slane %v4544_v39, 7  ;;  %v3888_v33 = vrot.slane %v10719_v32, 2  ;;  %v3657_v46 = vsel %vm9945_vm5, 0, %v3656_v62  ;;  %v4277_v32 = vld [vmem:[#allocation4 + $0x61] sm:$0xff] }
 0x318   : > { %4207 = vst.msk [vmem:[#allocation4 + $0x78] sm:$0xff] %vm12831_vm1, %v4169_v36  ;;  %v3382_v55 = vshrl.u32 %v3155_v56, 16  ;;  %v4417_v27 = vadd.f32 %v4381_v30, %v4345_v34  ;;  %v3385_v45 = vshll.u32 %v3155_v56, 16  ;;  %v3012_v47 = vadd.f32 %v10376_v22, %v2972_v57 }
 0x319   : > { %4208 = vst.msk [vmem:[#allocation4 + $0x80] sm:$0xff] %vm12835_vm11, %v4170_v16  ;;  %v4547_v23 = vor.u32 %v4546_v13, %v4543_v35  ;;  %v4551_v53 = vshrl.u32 %v4452_v14, 16  ;;  %v3887_v29 = vsel %vm1790_vm3, %v3884_v19, %v3886_v43  ;;  %v4554_v12 = vshll.u32 %v4452_v14, 16  ;;  %v2312_v16 = vpop.f32.mrf.mxu2  ;;  %vm12839_vm11 = vmmov %vm12837_vm0 }
 0x31a   : > { %3658 = vst [vmem:[#allocation2 + $0x58] sm:$0x6] %v3657_v46  ;;  %v10744_v18 = vld [vmem:[#allocation3 + $0x18] sm:$0xff]  ;;  %v3384_v4 = vrot.slane %v3382_v55, 6  ;;  %v4418_v34 = vadd.f32 %v4382_v15, %v4346_v5  ;;  %v3387_v1 = vrot.slane %v3385_v45, 7  ;;  %vm3048_vm10 = vcmp.gt.f32.partialorder %v3012_v47, 0.0  ;;  %v2684_v15 = vpop.f32.mrf.mxu3 }
 0x31b   : > { %v10746_v39 = vld [vmem:[#allocation3 + $0x18] sm:$0xff]  ;;  %v3084_v36 = vmul.f32 0.2, %v3012_v47  ;;  %v4548_v22 = vsel %vm9891_vm15, %v4539_v44, %v4547_v23  ;;  %v5135_v56 = vshll.u32 %v10744_v18, 16  ;;  %v4553_v19 = vrot.slane %v4551_v53, 6 }
 0x31c   : > { %v5923_v38 = vrot.slane %v10746_v39, 1  ;;  %4885 = vst.msk [vmem:[#allocation3 + $0x20] sm:$0xf] %vm226_vm9, %v4548_v22  ;;  %v4453_v57 = vpack.c.bf16 %v4417_v27, %v4417_v27  ;;  %v3388_v30 = vor.u32 %v3387_v1, %v3384_v4  ;;  %v4549_v35 = vrot.slane %v4547_v23, 4 }
 0x31d   : > { %v3120_v62 = vsel %vm3048_vm10, %v3012_v47, %v3084_v36  ;;  %v4556_v14 = vrot.slane %v4554_v12, 7  ;;  %v10753_v5 = vrot.slane %v5135_v56, 1  ;;  %vm12836_vm6 = vcmask 1046528   ;;  %vm12840_vm10 = vmmov %vm12837_vm0 }
 0x31e   : > { %v5924_v44 = vsel %vm12836_vm6, %v5921_v54, %v5923_v38  ;;  %v3156_v13 = vpack.c.bf16 %v3120_v62, %v3120_v62  ;;  %v5564_v46 = vrot.slane %v10744_v18, 1  ;;  %v3889_v55 = vsel %vm1790_vm3, %v3886_v43, %v3888_v33  ;;  %v2920_v43 = vpop.f32.mrf.mxu0 }
 0x31f   : > { %v3389_v27 = vsel %vm9891_vm15, %v3380_v41, %v3388_v30  ;;  %8634 = vmatmul.msk.bf16.gmra.mxu0 %vm12837_vm0, %v5924_v44  ;;  %v4557_v45 = vor.u32 %v4556_v14, %v4553_v19  ;;  %v2368_v47 = vadd.f32 %v2312_v16, %v10086_v52  ;;  %v10769_v23 = vadd.f32 %v10580_v21, %v3887_v29  ;;  %v4275_v29 = vld [vmem:[#allocation4 + $0x51] sm:$0xff] }
 0x320   : > { %vm12838_vm1 = vsmask.f32 7424  ;;  %3594 = vst.msk [vmem:[#allocation2 + $0x5c] sm:$0xf] %vm226_vm9, %v3389_v27  ;;  %v3392_v54 = vshrl.u32 %v3156_v13, 16  ;;  %v3395_v53 = vshll.u32 %v3156_v13, 16  ;;  %8530 = vmatmul.msk.bf16.gmra.mxu2 %vm12839_vm11, %v10744_v18  ;;  %v5565_v21 = vsel %vm12836_vm6, %v5562_v40, %v5564_v46  ;;  %vm12843_vm6 = vmmov %vm12837_vm0 }
 0x321   : > { %v5138_v25 = vsel %vm12838_vm1, %v10704_v50, %v10753_v5  ;;  %v4558_v52 = vsel %vm9891_vm15, %v4549_v35, %v4557_v45  ;;  %v2737_v50 = vadd.f32 %v2681_v63, %v2368_v47  ;;  %v4454_v41 = vpack.c.bf16 %v4418_v34, %v4418_v34  ;;  %8548 = vmatmul.msk.bf16.gmra.mxu3 %vm12837_vm0, %v5565_v21 }
 0x322   : > { %8511 = vmatmul.msk.bf16.gmra.mxu1 %vm12840_vm10, %v5138_v25  ;;  %v3390_v4 = vrot.slane %v3388_v30, 4  ;;  %v3394_v12 = vrot.slane %v3392_v54, 6  ;;  %v3397_v1 = vrot.slane %v3395_v53, 7  ;;  %4886 = vst.msk [vmem:[#allocation3 + $0x24] sm:$0xf] %vm226_vm9, %v4558_v52  ;;  %v4561_v36 = vshrl.u32 %v4453_v57, 16 }
 0x323   : > { %v4924_v22 = vld [vmem:[#allocation3 + $0x20] sm:$0x8]  ;;  %v2973_v16 = vadd.f32 %v10732_v37, %v2737_v50  ;;  %v4564_v56 = vshll.u32 %v4453_v57, 16  ;;  %v4571_v19 = vshrl.u32 %v4454_v41, 16  ;;  %v4574_v62 = vshll.u32 %v4454_v41, 16  ;;  %v2315_v37 = vpop.f32.mrf.mxu2 }
 0x324   : > { %v10788_v35 = vor.u32 %v3397_v1, %v3394_v12  ;;  %v4925_v40 = vsel %vm10141_vm4, 0, %v4924_v22  ;;  %v4563_v63 = vrot.slane %v4561_v36, 6  ;;  %v4311_v34 = vmul.f32 2.0, %v4275_v29  ;;  %v10795_v30 = vld [vmem:[%s12704_s2] ss:$0 sm:$0xff] }
 0x325   : > { %4926 = vst [vmem:[#allocation3 + $0x20] sm:$0x8] %v4925_v40  ;;  %v3013_v14 = vadd.f32 %v10795_v30, %v2973_v16  ;;  %v4566_v57 = vrot.slane %v4564_v56, 7  ;;  %v4573_v44 = vrot.slane %v4571_v19, 6  ;;  %v4576_v13 = vrot.slane %v4574_v62, 7  ;;  %v2686_v62 = vpop.f32.mrf.mxu3 }
 0x326   : > { %v3399_v27 = vsel %vm9891_vm15, %v3390_v4, %v10788_v35  ;;  %v2369_v47 = vadd.f32 %v2315_v37, %v10150_v9  ;;  %v4559_v25 = vrot.slane %v4557_v45, 4  ;;  %v4312_v54 = vmul.f32 2.0, %v4276_v60  ;;  %v4239_v4 = vld [vmem:[#allocation4 + $0x50] sm:$0xff] }
 0x327   : > { %v3979_v53 = vadd.f32 %v10622_v28, %v3889_v55  ;;  %v9020_v52 = vld [vmem:[#allocation2 + $0x58] sm:$0xff]   ;;  %3595 = vst.msk [vmem:[#allocation2 + $0x60] sm:$0xf] %vm226_vm9, %v3399_v27  ;;  %vm3049_vm1 = vcmp.gt.f32.partialorder %v3013_v14, 0.0  ;;  %v3085_v21 = vmul.f32 0.2, %v3013_v14  ;;  %v4567_v50 = vor.u32 %v4566_v57, %v4563_v63 }
 0x328   : > { %v10804_v41 = vunpack.c.l.bf16 %v9020_v52  ;;  %v10806_v29 = vunpack.c.h.bf16 %v9020_v52  ;;  %v2738_v12 = vadd.f32 %v2684_v15, %v2369_v47  ;;  %v10808_v1 = vor.u32 %v4576_v13, %v4573_v44  ;;  %v2922_v15 = vpop.f32.mrf.mxu0  ;;  %v4240_v52 = vld [vmem:[#allocation4 + $0x58] sm:$0xff] }
 0x329   : > { %v4927_v36 = vld [vmem:[#allocation3 + $0x24] sm:$0x1]  ;;  %v3121_v9 = vsel %vm3049_vm1, %v3013_v14, %v3085_v21  ;;  %v4568_v45 = vsel %vm9891_vm15, %v4559_v25, %v4567_v50  ;;  %v4569_v28 = vrot.slane %v4567_v50, 4  ;;  %v4347_v55 = vadd.f32 %v4311_v34, %v4239_v4  ;;  %v1974_v21 = vpop.f32.mrf.mxu1 }
 0x32a   : > { %v3796_v22 = vmul.f32 2.0, %v10804_v41  ;;  %v10814_v16 = vmul.f32 2.0, %v10806_v29  ;;  %v4079_v56 = vrot.slane %v10804_v41, 4  ;;  %v4081_v19 = vrot.slane %v10806_v29, 4  ;;  %4887 = vst.msk [vmem:[#allocation3 + $0x28] sm:$0xf] %vm226_vm9, %v4568_v45 }
 0x32b   : > { %v4928_v60 = vsel %vm10219_vm13, 0, %v4927_v36  ;;  %v3157_v40 = vpack.c.bf16 %v3121_v9, %v3121_v9  ;;  %v2974_v63 = vadd.f32 %v2920_v43, %v2738_v12  ;;  %v4578_v34 = vsel %vm9891_vm15, %v4569_v28, %v10808_v1  ;;  %v2317_v25 = vpop.f32.mrf.mxu2  ;;  %v4383_v28 = vld [vmem:[#allocation4 + $0x52] sm:$0xff] }
 0x32c   : > { %v3890_v14 = vrot.slane %v3796_v22, 2  ;;  %v3892_v37 = vrot.slane %v10814_v16, 2  ;;  %vm12841_vm11 = vcmask 1043456   ;;  %4929 = vst [vmem:[#allocation3 + $0x24] sm:$0x1] %v4928_v60  ;;  %v5139_v12 = vshrl.u32 %v10744_v18, 16 }
 0x32d   : > { %v4080_v57 = vsel %vm12841_vm11, %v4077_v3, %v4079_v56  ;;  %vm12842_vm10 = vmmov %vm12841_vm11  ;;  %v3402_v43 = vshrl.u32 %v3157_v40, 16  ;;  %v3405_v47 = vshll.u32 %v3157_v40, 16  ;;  %4888 = vst.msk [vmem:[#allocation3 + $0x2c] sm:$0xf] %vm226_vm9, %v4578_v34  ;;  %v3014_v3 = vadd.f32 %v10795_v30, %v2974_v63  ;;  %v4384_v63 = vld [vmem:[#allocation4 + $0x5a] sm:$0xff] }
 0x32e   : > { %v4082_v44 = vsel %vm12842_vm10, %v4079_v56, %v4081_v19  ;;  %v4171_v13 = vadd.f32 %v4080_v57, %v10769_v23  ;;  %v3659_v50 = vld [vmem:[#allocation2 + $0x60] sm:$0xc]  ;;  %v2370_v4 = vadd.f32 %v2317_v25, %v10162_v58  ;;  %v4348_v36 = vadd.f32 %v4312_v54, %v4240_v52  ;;  %v12844_v56 = vld [vmem:[#allocation18_spill] sm:$0xff]  ;;  %vm12845_vm11 = vmmov %vm12837_vm0 }
 0x32f   : > { %v4172_v27 = vadd.f32 %v4082_v44, %v3979_v53  ;;  %v3891_v23 = vsel %vm1790_vm3, %v3888_v33, %v3890_v14  ;;  %v3893_v53 = vsel %vm1790_vm3, %v3890_v14, %v3892_v37  ;;  %v3660_v9 = vsel %vm10037_vm2, 0, %v3659_v50  ;;  %v4278_v14 = vld [vmem:[#allocation4 + $0x69] sm:$0xff]  ;;  %v2689_v50 = vpop.f32.mrf.mxu3 }
 0x330   : > { %4209 = vst.msk [vmem:[#allocation4 + $0x88] sm:$0xff] %vm12843_vm6, %v4171_v13  ;;  %v3404_v45 = vrot.slane %v3402_v43, 6  ;;  %v3407_v22 = vrot.slane %v3405_v47, 7  ;;  %vm3050_vm1 = vcmp.gt.f32.partialorder %v3014_v3, 0.0  ;;  %v3086_v58 = vmul.f32 0.2, %v3014_v3 }
 0x331   : > { %4210 = vst.msk [vmem:[#allocation4 + $0x90] sm:$0xff] %vm12837_vm0, %v4172_v27  ;;  %v2739_v54 = vadd.f32 %v2686_v62, %v2370_v4  ;;  %v10847_v33 = vadd.f32 %v1974_v21, %v12844_v56  ;;  %v3400_v60 = vrot.slane %v10788_v35, 4  ;;  %v5141_v40 = vor.u32 %v5139_v12, %v10753_v5 }
 0x332   : > { %3661 = vst [vmem:[#allocation2 + $0x60] sm:$0xc] %v3660_v9  ;;  %v4419_v34 = vadd.f32 %v4383_v28, %v4347_v55  ;;  %v3408_v57 = vor.u32 %v3407_v22, %v3404_v45  ;;  %v3122_v44 = vsel %vm3050_vm1, %v3014_v3, %v3086_v58  ;;  %v4420_v27 = vadd.f32 %v4384_v63, %v4348_v36 }
 0x333   : > { %v2975_v13 = vadd.f32 %v2922_v15, %v2739_v54  ;;  %v10852_v43 = vadd.f32 %v10624_v31, %v3891_v23  ;;  %v10855_v62 = vadd.f32 %v10708_v6, %v3893_v53  ;;  %v10857_v47 = vld [vmem:[#allocation3 + $0x20] sm:$0xff]  ;;  %v3158_v35 = vpack.c.bf16 %v3122_v44, %v3122_v44  ;;  %v2925_v15 = vpop.f32.mrf.mxu0  ;;  %v2320_v54 = vpop.f32.mrf.mxu2 }
 0x334   : > { %v10859_v25 = vld [vmem:[#allocation3 + $0x20] sm:$0xff]  ;;  %v4313_v52 = vmul.f32 2.0, %v4277_v32  ;;  %v3409_v5 = vsel %vm9891_vm15, %v3400_v60, %v3408_v57  ;;  %v4930_v55 = vld [vmem:[#allocation3 + $0x2c] sm:$0x3]  ;;  %v4455_v12 = vpack.c.bf16 %v4419_v34, %v4419_v34  ;;  %v4314_v31 = vmul.f32 2.0, %v4278_v14  ;;  %8531 = vmatmul.msk.bf16.gmra.mxu2 %vm12845_vm11, %v10857_v47 }
 0x335   : > { %v3015_v21 = vadd.f32 %v10795_v30, %v2975_v13  ;;  %v5143_v3 = vshll.u32 %v10857_v47, 16  ;;  %3596 = vst.msk [vmem:[#allocation2 + $0x64] sm:$0xf] %vm226_vm9, %v3409_v5  ;;  %v5925_v6 = vrot.slane %v10859_v25, 1  ;;  %v3412_v4 = vshrl.u32 %v3158_v35, 16  ;;  %v4242_v5 = vld [vmem:[#allocation4 + $0x68] sm:$0xff] }
 0x336   : > { %v3415_v36 = vshll.u32 %v3158_v35, 16  ;;  %v4931_v23 = vsel %vm10306_vm14, 0, %v4930_v55  ;;  %v5566_v53 = vrot.slane %v10857_v47, 1  ;;  %v4456_v9 = vpack.c.bf16 %v4420_v27, %v4420_v27  ;;  %v4241_v35 = vld [vmem:[#allocation4 + $0x60] sm:$0xff] }
 0x337   : > { %vm3051_vm10 = vcmp.gt.f32.partialorder %v3015_v21, 0.0  ;;  %v10872_v45 = vrot.slane %v5143_v3, 1  ;;  %vm12846_vm6 = vcmask 1046528   ;;  %v3414_v22 = vrot.slane %v3412_v4, 6  ;;  %4932 = vst [vmem:[#allocation3 + $0x2c] sm:$0x3] %v4931_v23 }
 0x338   : > { %v5926_v28 = vsel %vm12846_vm6, %v5923_v38, %v5925_v6  ;;  %v3417_v58 = vrot.slane %v3415_v36, 7  ;;  %vm12847_vm1 = vmmov %vm12846_vm6  ;;  %v3087_v56 = vmul.f32 0.2, %v3015_v21  ;;  %v2371_v60 = vadd.f32 %v2320_v54, %v10195_v10 }
 0x339   : > { %8635 = vmatmul.msk.bf16.gmra.mxu0 %vm12837_vm0, %v5926_v28  ;;  %v5567_v32 = vsel %vm12847_vm1, %v5564_v46, %v5566_v53  ;;  %v4581_v63 = vshrl.u32 %v4455_v12, 16  ;;  %vm12848_vm11 = vsmask.f32 7424  ;;  %v3410_v38 = vrot.slane %v3408_v57, 4  ;;  %vm12849_vm6 = vmmov %vm12837_vm0 }
 0x33a   : > { %v5146_v39 = vsel %vm12848_vm11, %v5141_v40, %v10872_v45  ;;  %v10888_v34 = vor.u32 %v3417_v58, %v3414_v22  ;;  %8549 = vmatmul.msk.bf16.gmra.mxu3 %vm12849_vm6, %v5567_v32  ;;  %v4584_v14 = vshll.u32 %v4455_v12, 16  ;;  %v3123_v44 = vsel %vm3051_vm10, %v3015_v21, %v3087_v56  ;;  %vm12852_vm11 = vmmov %vm12837_vm0 }
 0x33b   : > { %8512 = vmatmul.msk.bf16.gmra.mxu1 %vm12837_vm0, %v5146_v39  ;;  %v2740_v18 = vadd.f32 %v2689_v50, %v2371_v60  ;;  %v4583_v13 = vrot.slane %v4581_v63, 6  ;;  %v4591_v46 = vshrl.u32 %v4456_v9, 16  ;;  %v3159_v27 = vpack.c.bf16 %v3123_v44, %v3123_v44  ;;  %v10908_v32 = vpop.f32.mrf.mxu0 }
 0x33c   : > { %v3419_v10 = vsel %vm9891_vm15, %v3410_v38, %v10888_v34  ;;  %v4579_v40 = vrot.slane %v10808_v1, 4  ;;  %v4586_v57 = vrot.slane %v4584_v14, 7  ;;  %v9021_v55 = vld [vmem:[#allocation2 + $0x60] sm:$0xff]   ;;  %v4594_v3 = vshll.u32 %v4456_v9, 16 }
 0x33d   : > { %3597 = vst.msk [vmem:[#allocation2 + $0x68] sm:$0xf] %vm226_vm9, %v3419_v10  ;;  %v2976_v12 = vadd.f32 %v2925_v15, %v2740_v18  ;;  %v4349_v4 = vadd.f32 %v4313_v52, %v4241_v35  ;;  %v4350_v21 = vadd.f32 %v4314_v31, %v4242_v5  ;;  %v10898_v50 = vunpack.c.l.bf16 %v9021_v55  ;;  %v2691_v15 = vpop.f32.mrf.mxu3 }
 0x33e   : > { %v10900_v36 = vunpack.c.h.bf16 %v9021_v55  ;;  %v3422_v23 = vshrl.u32 %v3159_v27, 16  ;;  %v3425_v28 = vshll.u32 %v3159_v27, 16  ;;  %v10902_v22 = vld [vmem:[#allocation3 + $0x28] sm:$0xff]  ;;  %v5147_v1 = vshrl.u32 %v10857_v47, 16 }
 0x33f   : > { %v10905_v58 = vld [vmem:[#allocation3 + $0x28] sm:$0xff]  ;;  %v3016_v54 = vadd.f32 %v10795_v30, %v2976_v12  ;;  %v4587_v9 = vor.u32 %v4586_v57, %v4583_v13  ;;  %v4593_v52 = vrot.slane %v4591_v46, 6  ;;  %v3798_v31 = vmul.f32 2.0, %v10898_v50  ;;  %v4386_v12 = vld [vmem:[#allocation4 + $0x6a] sm:$0xff] }
 0x340   : > { %v4083_v56 = vrot.slane %v10898_v50, 4  ;;  %v4085_v60 = vrot.slane %v10900_v36, 4  ;;  %v4596_v63 = vrot.slane %v4594_v3, 7  ;;  %v10914_v39 = vmul.f32 2.0, %v10900_v36  ;;  %v4385_v55 = vld [vmem:[#allocation4 + $0x62] sm:$0xff] }
 0x341   : > { %v5151_v38 = vshll.u32 %v10902_v22, 16  ;;  %v3424_v14 = vrot.slane %v3422_v23, 6  ;;  %v3427_v44 = vrot.slane %v3425_v28, 7  ;;  %v3894_v18 = vrot.slane %v3798_v31, 2  ;;  %v2322_v28 = vpop.f32.mrf.mxu2 }
 0x342   : > { %vm12850_vm10 = vcmask 1043456   ;;  %v5927_v10 = vrot.slane %v10905_v58, 1  ;;  %v3420_v3 = vrot.slane %v10888_v34, 4  ;;  %v4421_v31 = vadd.f32 %v4385_v55, %v4349_v4 }
 0x343   : > { %v4084_v13 = vsel %vm12850_vm10, %v4081_v19, %v4083_v56  ;;  %vm12851_vm1 = vmmov %vm12850_vm10  ;;  %v10926_v35 = vrot.slane %v5151_v38, 1  ;;  %v10928_v5 = vor.u32 %v3427_v44, %v3424_v14  ;;  %v5149_v19 = vor.u32 %v5147_v1, %v10872_v45 }
 0x344   : > { %v4086_v46 = vsel %vm12851_vm1, %v4083_v56, %v4085_v60  ;;  %v4173_v27 = vadd.f32 %v4084_v13, %v10852_v43  ;;  %v3662_v23 = vld [vmem:[#allocation2 + $0x68] sm:$0x8]  ;;  %v4422_v56 = vadd.f32 %v4386_v12, %v4350_v21  ;;  %v10935_v43 = vsel %vm1790_vm3, %v3892_v37, %v3894_v18  ;;  %vm12854_vm1 = vmmov %vm12837_vm0 }
 0x345   : > { %v4174_v57 = vadd.f32 %v4086_v46, %v10855_v62  ;;  %v3896_v62 = vrot.slane %v10914_v39, 2  ;;  %v3663_v38 = vsel %vm10141_vm4, 0, %v3662_v23  ;;  %vm3052_vm6 = vcmp.gt.f32.partialorder %v3016_v54, 0.0  ;;  %8532 = vmatmul.msk.bf16.gmra.mxu2 %vm12854_vm1, %v10902_v22  ;;  %vm12858_vm1 = vmmov %vm12837_vm0 }
 0x346   : > { %4211 = vst.msk [vmem:[#allocation4 + $0x98] sm:$0xff] %vm12852_vm11, %v4173_v27  ;;  %v3429_v45 = vsel %vm9891_vm15, %v3420_v3, %v10928_v5  ;;  %vm12853_vm10 = vcmask 1046528   ;;  %v3088_v37 = vmul.f32 0.2, %v3016_v54  ;;  %v4588_v34 = vsel %vm9891_vm15, %v4579_v40, %v4587_v9 }
 0x347   : > { %4212 = vst.msk [vmem:[#allocation4 + $0xa0] sm:$0xff] %vm12837_vm0, %v4174_v57  ;;  %v5928_v16 = vsel %vm12853_vm10, %v5925_v6, %v5927_v10  ;;  %vm12855_vm11 = vsmask.f32 7424  ;;  %v4589_v21 = vrot.slane %v4587_v9, 4  ;;  %v4597_v1 = vor.u32 %v4596_v63, %v4593_v52  ;;  %v2930_v52 = vpop.f32.mrf.mxu0  ;;  %v2694_v63 = vpop.f32.mrf.mxu3 }
 0x348   : > { %3664 = vst [vmem:[#allocation2 + $0x68] sm:$0x8] %v3663_v38  ;;  %v5154_v4 = vsel %vm12855_vm11, %v5149_v19, %v10926_v35  ;;  %v5568_v14 = vrot.slane %v10902_v22, 1  ;;  %v3124_v25 = vsel %vm3052_vm6, %v3016_v54, %v3088_v37  ;;  %v2372_v6 = vadd.f32 %v2322_v28, %v10199_v20  ;;  %v4279_v54 = vld [vmem:[#allocation4 + $0x71] sm:$0xff]  ;;  %vm12856_vm6 = vmmov %vm12853_vm10  ;;  %v4280_v19 = vld [vmem:[#allocation4 + $0x79] sm:$0xff] }
 0x349   : > { %3598 = vst.msk [vmem:[#allocation2 + $0x6c] sm:$0xf] %vm226_vm9, %v3429_v45  ;;  %v4457_v44 = vpack.c.bf16 %v4421_v31, %v4421_v31  ;;  %v4458_v13 = vpack.c.bf16 %v4422_v56, %v4422_v56  ;;  %v10962_v40 = vsel %vm1790_vm3, %v3894_v18, %v3896_v62  ;;  %8636 = vmatmul.msk.bf16.gmra.mxu0 %vm12837_vm0, %v5928_v16  ;;  %vm12857_vm10 = vmmov %vm12837_vm0  ;;  %v4315_v38 = vmul.f32 2.0, %v4279_v54  ;;  %v4243_v16 = vld [vmem:[#allocation4 + $0x70] sm:$0xff] }
 0x34a   : > { %v3160_v46 = vpack.c.bf16 %v3124_v25, %v3124_v25  ;;  %v4598_v9 = vsel %vm9891_vm15, %v4589_v21, %v4597_v1  ;;  %4889 = vst.msk [vmem:[#allocation3 + $0x30] sm:$0xf] %vm226_vm9, %v4588_v34  ;;  %v5569_v20 = vsel %vm12856_vm6, %v5566_v53, %v5568_v14  ;;  %v2741_v18 = vadd.f32 %v2691_v15, %v2372_v6  ;;  %v2325_v34 = vpop.f32.mrf.mxu2  ;;  %vm12859_vm6 = vmmov %vm12858_vm1 }
 0x34b   : > { %4890 = vst.msk [vmem:[#allocation3 + $0x34] sm:$0xf] %vm226_vm9, %v4598_v9  ;;  %v4601_v27 = vshrl.u32 %v4457_v44, 16  ;;  %v4604_v57 = vshll.u32 %v4457_v44, 16  ;;  %8513 = vmatmul.msk.bf16.gmra.mxu1 %vm12857_vm10, %v5154_v4  ;;  %8550 = vmatmul.msk.bf16.gmra.mxu3 %vm12858_vm1, %v5569_v20  ;;  %v4611_v3 = vshrl.u32 %v4458_v13, 16  ;;  %v4614_v23 = vshll.u32 %v4458_v13, 16 }
 0x34c   : > { %v3432_v55 = vshrl.u32 %v3160_v46, 16  ;;  %v3435_v12 = vshll.u32 %v3160_v46, 16  ;;  %v2977_v28 = vadd.f32 %v10908_v32, %v2741_v18  ;;  %v4316_v21 = vmul.f32 2.0, %v4280_v19  ;;  %v4244_v18 = vld [vmem:[#allocation4 + $0x78] sm:$0xff] }
 0x34d   : > { %v4603_v31 = vrot.slane %v4601_v27, 6  ;;  %v4606_v56 = vrot.slane %v4604_v57, 7  ;;  %v4613_v53 = vrot.slane %v4611_v3, 6  ;;  %v4616_v15 = vrot.slane %v4614_v23, 7 }
 0x34e   : > { %v3434_v47 = vrot.slane %v3432_v55, 6  ;;  %v3437_v45 = vrot.slane %v3435_v12, 7  ;;  %v3017_v37 = vadd.f32 %v10795_v30, %v2977_v28  ;;  %v4351_v25 = vadd.f32 %v4315_v38, %v4243_v16 }
 0x34f   : > { %v4607_v4 = vor.u32 %v4606_v56, %v4603_v31  ;;  %v3430_v6 = vrot.slane %v10928_v5, 4  ;;  %v2373_v32 = vadd.f32 %v2325_v34, %v10202_v8  ;;  %v4599_v46 = vrot.slane %v4597_v1, 4  ;;  %v4387_v1 = vld [vmem:[#allocation4 + $0x72] sm:$0xff]  ;;  %v10995_v38 = vpop.f32.mrf.mxu0 }
 0x350   : > { %v3665_v44 = vld [vmem:[#allocation2 + $0x6c] sm:$0x1]  ;;  %v10979_v13 = vor.u32 %v3437_v45, %v3434_v47  ;;  %vm3053_vm11 = vcmp.gt.f32.partialorder %v3017_v37, 0.0  ;;  %v3089_v54 = vmul.f32 0.2, %v3017_v37  ;;  %v10984_v20 = vor.u32 %v4616_v15, %v4613_v53  ;;  %v4388_v45 = vld [vmem:[#allocation4 + $0x7a] sm:$0xff] }
 0x351   : > { %v3666_v9 = vsel %vm10219_vm13, 0, %v3665_v44  ;;  %v2742_v57 = vadd.f32 %v2694_v63, %v2373_v32  ;;  %v4608_v55 = vsel %vm9891_vm15, %v4599_v46, %v4607_v4  ;;  %v4609_v8 = vrot.slane %v4607_v4, 4  ;;  %v2696_v63 = vpop.f32.mrf.mxu3  ;;  %v4281_v53 = vld [vmem:[#allocation4 + $0x81] sm:$0xff] }
 0x352   : > { %3667 = vst [vmem:[#allocation2 + $0x6c] sm:$0x1] %v3666_v9  ;;  %v3439_v27 = vsel %vm9891_vm15, %v3430_v6, %v10979_v13  ;;  %v4933_v5 = vld [vmem:[#allocation3 + $0x34] sm:$0x6]  ;;  %v3125_v3 = vsel %vm3053_vm11, %v3017_v37, %v3089_v54  ;;  %v4352_v23 = vadd.f32 %v4316_v21, %v4244_v18  ;;  %v4423_v19 = vadd.f32 %v4387_v1, %v4351_v25  ;;  %v2327_v6 = vpop.f32.mrf.mxu2 }
 0x353   : > { %3599 = vst.msk [vmem:[#allocation2 + $0x70] sm:$0xf] %vm226_vm9, %v3439_v27  ;;  %v4934_v12 = vsel %vm9945_vm5, 0, %v4933_v5  ;;  %v5155_v28 = vshrl.u32 %v10902_v22, 16  ;;  %v3161_v31 = vpack.c.bf16 %v3125_v3, %v3125_v3  ;;  %v2978_v56 = vadd.f32 %v2930_v52, %v2742_v57  ;;  %v4282_v9 = vld [vmem:[#allocation4 + $0x89] sm:$0xff] }
 0x354   : > { %4935 = vst [vmem:[#allocation3 + $0x34] sm:$0x6] %v4934_v12  ;;  %v4618_v47 = vsel %vm9891_vm15, %v4609_v8, %v10984_v20  ;;  %v3982_v15 = vadd.f32 %v10710_v49, %v10935_v43  ;;  %v3983_v16 = vadd.f32 %v10804_v41, %v10962_v40  ;;  %v4424_v37 = vadd.f32 %v4388_v45, %v4352_v23 }
 0x355   : > { %4891 = vst.msk [vmem:[#allocation3 + $0x38] sm:$0xf] %vm226_vm9, %v4608_v55  ;;  %v4459_v34 = vpack.c.bf16 %v4423_v19, %v4423_v19  ;;  %v5157_v52 = vor.u32 %v5155_v28, %v10926_v35  ;;  %v3442_v4 = vshrl.u32 %v3161_v31, 16  ;;  %v3445_v21 = vshll.u32 %v3161_v31, 16 }
 0x356   : > { %v3018_v25 = vadd.f32 %v10795_v30, %v2978_v56  ;;  %4892 = vst.msk [vmem:[#allocation3 + $0x3c] sm:$0xf] %vm226_vm9, %v4618_v47  ;;  %v11008_v44 = vpack.c.bf16 %v4424_v37, %v4424_v37  ;;  %v4317_v43 = vmul.f32 2.0, %v4281_v53  ;;  %v3440_v35 = vrot.slane %v10979_v13, 4 }
 0x357   : > { %v4621_v32 = vshrl.u32 %v4459_v34, 16  ;;  %v4624_v49 = vshll.u32 %v4459_v34, 16  ;;  %v3444_v46 = vrot.slane %v3442_v4, 6  ;;  %v3447_v41 = vrot.slane %v3445_v21, 7 }
 0x358   : > { %vm3054_vm0 = vcmp.gt.f32.partialorder %v3018_v25, 0.0  ;;  %v3090_v40 = vmul.f32 0.2, %v3018_v25  ;;  %v2374_v18 = vadd.f32 %v2327_v6, %v10531_v7  ;;  %v4619_v19 = vrot.slane %v10984_v20, 4  ;;  %v11044_v6 = vpop.f32.mrf.mxu0 }
 0x359   : > { %v9022_v54 = vld [vmem:[#allocation2 + $0x68] sm:$0xff]   ;;  %v4623_v27 = vrot.slane %v4621_v32, 6  ;;  %v4626_v5 = vrot.slane %v4624_v49, 7  ;;  %v11016_v8 = vor.u32 %v3447_v41, %v3444_v46  ;;  %v4631_v13 = vshrl.u32 %v11008_v44, 16  ;;  %v2699_v32 = vpop.f32.mrf.mxu3 }
 0x35a   : > { %v11012_v57 = vunpack.c.l.bf16 %v9022_v54  ;;  %v11014_v55 = vunpack.c.h.bf16 %v9022_v54  ;;  %v3126_v1 = vsel %vm3054_vm0, %v3018_v25, %v3090_v40  ;;  %v4318_v28 = vmul.f32 2.0, %v4282_v9  ;;  %v4245_v40 = vld [vmem:[#allocation4 + $0x80] sm:$0xff]  ;;  %vm12863_vm0 = vmmov %vm12859_vm6 }
 0x35b   : > { %v11018_v12 = vld [vmem:[#allocation3 + $0x30] sm:$0xff]  ;;  %v3162_v23 = vpack.c.bf16 %v3126_v1, %v3126_v1  ;;  %v3449_v53 = vsel %vm9891_vm15, %v3440_v35, %v11016_v8  ;;  %v2743_v37 = vadd.f32 %v2696_v63, %v2374_v18  ;;  %vm12860_vm10 = vcmask 1043456  }
 0x35c   : > { %v11020_v3 = vld [vmem:[#allocation3 + $0x30] sm:$0xff]  ;;  %v3800_v7 = vmul.f32 2.0, %v11012_v57  ;;  %v11026_v31 = vmul.f32 2.0, %v11014_v55  ;;  %v4087_v56 = vrot.slane %v11012_v57, 4  ;;  %v4089_v47 = vrot.slane %v11014_v55, 4  ;;  %8533 = vmatmul.msk.bf16.gmra.mxu2 %vm12859_vm6, %v11018_v12  ;;  %vm12861_vm1 = vmmov %vm12860_vm10 }
 0x35d   : > { %v5159_v45 = vshll.u32 %v11018_v12, 16  ;;  %v5929_v20 = vrot.slane %v11020_v3, 1  ;;  %3600 = vst.msk [vmem:[#allocation2 + $0x74] sm:$0xf] %vm226_vm9, %v3449_v53  ;;  %v4936_v25 = vld [vmem:[#allocation3 + $0x3c] sm:$0xc]  ;;  %v11046_v49 = vor.u32 %v4626_v5, %v4623_v27  ;;  %v4353_v27 = vadd.f32 %v4317_v43, %v4245_v40  ;;  %vm12864_vm6 = vmmov %vm12863_vm0 }
 0x35e   : > { %v3898_v34 = vrot.slane %v3800_v7, 2  ;;  %v4088_v4 = vsel %vm12860_vm10, %v4085_v60, %v4087_v56  ;;  %v4090_v21 = vsel %vm12861_vm1, %v4087_v56, %v4089_v47  ;;  %vm12862_vm11 = vcmask 1046528   ;;  %v4246_v18 = vld [vmem:[#allocation4 + $0x88] sm:$0xff]  ;;  %vm12866_vm1 = vmmov %vm12863_vm0 }
 0x35f   : > { %v4175_v63 = vadd.f32 %v4088_v4, %v3982_v15  ;;  %v4176_v46 = vadd.f32 %v4090_v21, %v3983_v16  ;;  %v11048_v41 = vrot.slane %v5159_v45, 1  ;;  %v5930_v60 = vsel %vm12862_vm11, %v5927_v10, %v5929_v20  ;;  %vm12867_vm11 = vmmov %vm12863_vm0  ;;  %v4389_v56 = vld [vmem:[#allocation4 + $0x82] sm:$0xff]  ;;  %v1976_v45 = vpop.f32.mrf.mxu1  ;;  %v4390_v21 = vld [vmem:[#allocation4 + $0x8a] sm:$0xff] }
 0x360   : > { %v3900_v9 = vrot.slane %v11026_v31, 2  ;;  %8637 = vmatmul.msk.bf16.gmra.mxu0 %vm12863_vm0, %v5930_v60  ;;  %v3452_v54 = vshrl.u32 %v3162_v23, 16  ;;  %v3455_v35 = vshll.u32 %v3162_v23, 16  ;;  %vm12865_vm10 = vsmask.f32 7424 }
 0x361   : > { %4213 = vst.msk [vmem:[#allocation4 + $0xa8] sm:$0xff] %vm12864_vm6, %v4175_v63  ;;  %v5162_v15 = vsel %vm12865_vm10, %v5157_v52, %v11048_v41  ;;  %v4937_v16 = vsel %vm10037_vm2, 0, %v4936_v25  ;;  %v4633_v58 = vrot.slane %v4631_v13, 6  ;;  %v4354_v5 = vadd.f32 %v4318_v28, %v4246_v18  ;;  %vm12869_vm6 = vmmov %vm12866_vm1  ;;  %v11104_v18 = vpop.f32.mrf.mxu0 }
 0x362   : > { %4214 = vst.msk [vmem:[#allocation4 + $0xb0] sm:$0xff] %vm12866_vm1, %v4176_v46  ;;  %8514 = vmatmul.msk.bf16.gmra.mxu1 %vm12867_vm11, %v5162_v15  ;;  %v3450_v10 = vrot.slane %v11016_v8, 4  ;;  %v3454_v1 = vrot.slane %v3452_v54, 6  ;;  %v3457_v23 = vrot.slane %v3455_v35, 7  ;;  %v5570_v43 = vrot.slane %v11018_v12, 1  ;;  %vm12871_vm11 = vmmov %vm12869_vm6 }
 0x363   : > { %v3899_v7 = vsel %vm1790_vm3, %v3896_v62, %v3898_v34  ;;  %4938 = vst [vmem:[#allocation3 + $0x3c] sm:$0xc] %v4937_v16  ;;  %v2979_v52 = vadd.f32 %v10995_v38, %v2743_v37  ;;  %v4628_v13 = vsel %vm9891_vm15, %v4619_v19, %v11046_v49  ;;  %v4634_v28 = vshll.u32 %v11008_v44, 16  ;;  %v2330_v62 = vpop.f32.mrf.mxu2  ;;  %v4283_v16 = vld [vmem:[#allocation4 + $0x91] sm:$0xff] }
 0x364   : > { %v3901_v8 = vsel %vm1790_vm3, %v3898_v34, %v3900_v9  ;;  %v11077_v53 = vor.u32 %v3457_v23, %v3454_v1  ;;  %vm12868_vm0 = vcmask 1046528   ;;  %4893 = vst.msk [vmem:[#allocation3 + $0x40] sm:$0xf] %vm226_vm9, %v4628_v13  ;;  %v4425_v38 = vadd.f32 %v4389_v56, %v4353_v27  ;;  %v3668_v19 = vld [vmem:[#allocation2 + $0x74] sm:$0x3]  ;;  %v11106_v27 = vpop.f32.mrf.mxu3 }
 0x365   : > { %v5571_v39 = vsel %vm12868_vm0, %v5568_v14, %v5570_v43  ;;  %v3019_v44 = vadd.f32 %v10795_v30, %v2979_v52  ;;  %v2375_v37 = vadd.f32 %v2330_v62, %v10534_v51  ;;  %v4629_v34 = vrot.slane %v11046_v49, 4  ;;  %v12870_v51 = vld [vmem:[#allocation5_spill] sm:$0xff] }
 0x366   : > { %8551 = vmatmul.msk.bf16.gmra.mxu3 %vm12869_vm6, %v5571_v39  ;;  %v4636_v4 = vrot.slane %v4634_v28, 7  ;;  %v3669_v22 = vsel %vm10306_vm14, 0, %v3668_v19  ;;  %v3459_v14 = vsel %vm9891_vm15, %v3450_v10, %v11077_v53  ;;  %v4426_v25 = vadd.f32 %v4390_v21, %v4354_v5 }
 0x367   : > { %v4461_v63 = vpack.c.bf16 %v4425_v38, %v4425_v38  ;;  %3670 = vst [vmem:[#allocation2 + $0x74] sm:$0x3] %v3669_v22  ;;  %vm3055_vm10 = vcmp.gt.f32.partialorder %v3019_v44, 0.0  ;;  %v3091_v46 = vmul.f32 0.2, %v3019_v44  ;;  %v2744_v60 = vadd.f32 %v2699_v32, %v2375_v37  ;;  %v1979_v19 = vpop.f32.mrf.mxu1 }
 0x368   : > { %v11094_v40 = vor.u32 %v4636_v4, %v4633_v58  ;;  %v11097_v54 = vadd.f32 %v1976_v45, %v12870_v51  ;;  %v11100_v49 = vadd.f32 %v10806_v29, %v3899_v7  ;;  %3601 = vst.msk [vmem:[#allocation2 + $0x78] sm:$0xf] %vm226_vm9, %v3459_v14  ;;  %v5163_v35 = vshrl.u32 %v11018_v12, 16 }
 0x369   : > { %v4641_v15 = vshrl.u32 %v4461_v63, 16  ;;  %v3127_v5 = vsel %vm3055_vm10, %v3019_v44, %v3091_v46  ;;  %v2980_v32 = vadd.f32 %v11044_v6, %v2744_v60  ;;  %v4644_v10 = vshll.u32 %v4461_v63, 16 }
 0x36a   : > { %v4638_v58 = vsel %vm9891_vm15, %v4629_v34, %v11094_v40  ;;  %v3985_v29 = vadd.f32 %v10898_v50, %v3901_v8  ;;  %v3460_v1 = vrot.slane %v11077_v53, 4  ;;  %v11114_v23 = vld [vmem:[#allocation3 + $0x38] sm:$0xff]  ;;  %v5165_v7 = vor.u32 %v5163_v35, %v11048_v41 }
 0x36b   : > { %v3163_v52 = vpack.c.bf16 %v3127_v5, %v3127_v5  ;;  %v11117_v13 = vld [vmem:[#allocation3 + $0x38] sm:$0xff]  ;;  %4894 = vst.msk [vmem:[#allocation3 + $0x44] sm:$0xf] %vm226_vm9, %v4638_v58  ;;  %v3020_v6 = vadd.f32 %v10795_v30, %v2980_v32  ;;  %v11121_v28 = vpack.c.bf16 %v4426_v25, %v4426_v25  ;;  %v4639_v56 = vrot.slane %v11094_v40, 4  ;;  %v2332_v46 = vpop.f32.mrf.mxu2 }
 0x36c   : > { %v4319_v45 = vmul.f32 2.0, %v4283_v16  ;;  %v5167_v50 = vshll.u32 %v11114_v23, 16  ;;  %v5931_v39 = vrot.slane %v11117_v13, 1  ;;  %v4643_v62 = vrot.slane %v4641_v15, 6  ;;  %8534 = vmatmul.msk.bf16.gmra.mxu2 %vm12871_vm11, %v11114_v23  ;;  %v4284_v16 = vld [vmem:[#allocation4 + $0x99] sm:$0xff] }
 0x36d   : > { %v3462_v8 = vshrl.u32 %v3163_v52, 16  ;;  %v3465_v53 = vshll.u32 %v3163_v52, 16  ;;  %vm3056_vm1 = vcmp.gt.f32.partialorder %v3020_v6, 0.0  ;;  %v3092_v41 = vmul.f32 0.2, %v3020_v6 }
 0x36e   : > { %v4646_v38 = vrot.slane %v4644_v10, 7  ;;  %v9023_v44 = vld [vmem:[#allocation2 + $0x70] sm:$0xff]   ;;  %v11128_v37 = vrot.slane %v5167_v50, 1  ;;  %v5572_v21 = vrot.slane %v11114_v23, 1  ;;  %v5932_v25 = vsel %vm12868_vm0, %v5929_v20, %v5931_v39  ;;  %v11154_v50 = vpop.f32.mrf.mxu0 }
 0x36f   : > { %v3464_v34 = vrot.slane %v3462_v8, 6  ;;  %v3467_v4 = vrot.slane %v3465_v53, 7  ;;  %v11131_v22 = vunpack.c.l.bf16 %v9023_v44  ;;  %v11133_v14 = vunpack.c.h.bf16 %v9023_v44  ;;  %v2704_v8 = vpop.f32.mrf.mxu3 }
 0x370   : > { %v3128_v63 = vsel %vm3056_vm1, %v3020_v6, %v3092_v41  ;;  %8638 = vmatmul.msk.bf16.gmra.mxu0 %vm12869_vm6, %v5932_v25  ;;  %v4651_v35 = vshrl.u32 %v11121_v28, 16  ;;  %v4654_v15 = vshll.u32 %v11121_v28, 16  ;;  %vm12872_vm10 = vsmask.f32 7424  ;;  %vm12873_vm1 = vmmov %vm12869_vm6 }
 0x371   : > { %v3468_v60 = vor.u32 %v3467_v4, %v3464_v34  ;;  %v3164_v51 = vpack.c.bf16 %v3128_v63, %v3128_v63  ;;  %v3802_v5 = vmul.f32 2.0, %v11131_v22  ;;  %v4091_v32 = vrot.slane %v11131_v22, 4  ;;  %v4247_v63 = vld [vmem:[#allocation4 + $0x90] sm:$0xff] }
 0x372   : > { %v4093_v58 = vrot.slane %v11133_v14, 4  ;;  %v5170_v3 = vsel %vm12872_vm10, %v5165_v7, %v11128_v37  ;;  %v11149_v20 = vmul.f32 2.0, %v11133_v14  ;;  %v4939_v28 = vld [vmem:[#allocation3 + $0x44] sm:$0x8]  ;;  %vm12874_vm11 = vcmask 1043456   ;;  %vm12877_vm10 = vmmov %vm12873_vm1 }
 0x373   : > { %8515 = vmatmul.msk.bf16.gmra.mxu1 %vm12873_vm1, %v5170_v3  ;;  %v3469_v10 = vsel %vm9891_vm15, %v3460_v1, %v3468_v60  ;;  %v3472_v52 = vshrl.u32 %v3164_v51, 16  ;;  %v3475_v6 = vshll.u32 %v3164_v51, 16  ;;  %v4092_v53 = vsel %vm12874_vm11, %v4089_v47, %v4091_v32  ;;  %vm12875_vm0 = vmmov %vm12874_vm11 }
 0x374   : > { %v4094_v7 = vsel %vm12875_vm0, %v4091_v32, %v4093_v58  ;;  %3602 = vst.msk [vmem:[#allocation2 + $0x7c] sm:$0xf] %vm226_vm9, %v3469_v10  ;;  %vm12876_vm6 = vcmask 1046528   ;;  %v4320_v41 = vmul.f32 2.0, %v4284_v16  ;;  %v4177_v44 = vadd.f32 %v4092_v53, %v11100_v49  ;;  %vm12878_vm11 = vmmov %vm12873_vm1 }
 0x375   : > { %v5573_v1 = vsel %vm12876_vm6, %v5570_v43, %v5572_v21  ;;  %v4178_v34 = vadd.f32 %v4094_v7, %v3985_v29  ;;  %v3474_v4 = vrot.slane %v3472_v52, 6  ;;  %v3477_v25 = vrot.slane %v3475_v6, 7  ;;  %v4248_v29 = vld [vmem:[#allocation4 + $0x98] sm:$0xff]  ;;  %vm12881_vm6 = vmmov %vm12873_vm1 }
 0x376   : > { %v3470_v47 = vrot.slane %v3468_v60, 4  ;;  %v4940_v51 = vsel %vm10141_vm4, 0, %v4939_v28  ;;  %8552 = vmatmul.msk.bf16.gmra.mxu3 %vm12877_vm10, %v5573_v1  ;;  %v2376_v32 = vadd.f32 %v2332_v46, %v10644_v48  ;;  %v4355_v3 = vadd.f32 %v4319_v45, %v4247_v63  ;;  %4215 = vst.msk [vmem:[#allocation4 + $0xb8] sm:$0xff] %vm12873_vm1, %v4177_v44  ;;  %v12879_v28 = vld [vmem:[#allocation6_spill] sm:$0xff]  ;;  %v1981_v48 = vpop.f32.mrf.mxu1  ;;  %v12880_v63 = vld [vmem:[#allocation7_spill] sm:$0xff] }
 0x377   : > { %v3902_v10 = vrot.slane %v3802_v5, 2  ;;  %v3904_v12 = vrot.slane %v11149_v20, 2  ;;  %v11175_v43 = vor.u32 %v3477_v25, %v3474_v4  ;;  %v4647_v49 = vor.u32 %v4646_v38, %v4643_v62  ;;  %4216 = vst.msk [vmem:[#allocation4 + $0xc0] sm:$0xff] %vm12878_vm11, %v4178_v34  ;;  %v4391_v46 = vld [vmem:[#allocation4 + $0x92] sm:$0xff]  ;;  %v11201_v34 = vpop.f32.mrf.mxu0 }
 0x378   : > { %v2745_v60 = vadd.f32 %v11106_v27, %v2376_v32  ;;  %v4653_v16 = vrot.slane %v4651_v35, 6  ;;  %v4656_v52 = vrot.slane %v4654_v15, 7  ;;  %v4356_v6 = vadd.f32 %v4320_v41, %v4248_v29  ;;  %4941 = vst [vmem:[#allocation3 + $0x44] sm:$0x8] %v4940_v51  ;;  %v4392_v27 = vld [vmem:[#allocation4 + $0x9a] sm:$0xff] }
 0x379   : > { %v11180_v53 = vadd.f32 %v1979_v19, %v12879_v28  ;;  %v3479_v45 = vsel %vm9891_vm15, %v3470_v47, %v11175_v43  ;;  %v4648_v62 = vsel %vm9891_vm15, %v4639_v56, %v4647_v49  ;;  %v4649_v38 = vrot.slane %v4647_v49, 4  ;;  %v2335_v19 = vpop.f32.mrf.mxu2 }
 0x37a   : > { %3603 = vst.msk [vmem:[#allocation2 + $0x80] sm:$0xf] %vm226_vm9, %v3479_v45  ;;  %v2981_v35 = vadd.f32 %v11104_v18, %v2745_v60  ;;  %v11191_v15 = vor.u32 %v4656_v52, %v4653_v16  ;;  %v4427_v5 = vadd.f32 %v4391_v46, %v4355_v3  ;;  %v4428_v7 = vadd.f32 %v4392_v27, %v4356_v6  ;;  %v11203_v18 = vpop.f32.mrf.mxu3  ;;  %v4285_v3 = vld [vmem:[#allocation4 + $0xa1] sm:$0xff] }
 0x37b   : > { %v3903_v1 = vsel %vm1790_vm3, %v3900_v9, %v3902_v10  ;;  %v3905_v40 = vsel %vm1790_vm3, %v3902_v10, %v3904_v12  ;;  %v3671_v56 = vld [vmem:[#allocation2 + $0x7c] sm:$0x6]  ;;  %v5171_v41 = vshrl.u32 %v11114_v23, 16  ;;  %v2377_v44 = vadd.f32 %v2335_v19, %v10847_v33  ;;  %4895 = vst.msk [vmem:[#allocation3 + $0x48] sm:$0xf] %vm226_vm9, %v4648_v62 }
 0x37c   : > { %v3672_v31 = vsel %vm9945_vm5, 0, %v3671_v56  ;;  %v3021_v9 = vadd.f32 %v10795_v30, %v2981_v35  ;;  %v4658_v4 = vsel %vm9891_vm15, %v4649_v38, %v11191_v15  ;;  %v4463_v25 = vpack.c.bf16 %v4427_v5, %v4427_v5 }
 0x37d   : > { %v11213_v47 = vadd.f32 %v1981_v48, %v12880_v63  ;;  %3673 = vst [vmem:[#allocation2 + $0x7c] sm:$0x6] %v3672_v31  ;;  %v5173_v33 = vor.u32 %v5171_v41, %v11128_v37  ;;  %v2746_v51 = vadd.f32 %v2704_v8, %v2377_v44  ;;  %v11216_v32 = vpack.c.bf16 %v4428_v7, %v4428_v7 }
 0x37e   : > { %v11219_v10 = vadd.f32 %v10900_v36, %v3903_v1  ;;  %vm3057_vm0 = vcmp.gt.f32.partialorder %v3021_v9, 0.0  ;;  %v3093_v49 = vmul.f32 0.2, %v3021_v9  ;;  %4896 = vst.msk [vmem:[#allocation3 + $0x4c] sm:$0xf] %vm226_vm9, %v4658_v4  ;;  %v4661_v29 = vshrl.u32 %v4463_v25, 16  ;;  %v11231_v62 = vpop.f32.mrf.mxu1 }
 0x37f   : > { %v3987_v60 = vadd.f32 %v11012_v57, %v3905_v40  ;;  %v3480_v16 = vrot.slane %v11175_v43, 4  ;;  %v2982_v52 = vadd.f32 %v11154_v50, %v2746_v51  ;;  %v4664_v6 = vshll.u32 %v4463_v25, 16  ;;  %v11225_v37 = vld [vmem:[#allocation3 + $0x40] sm:$0xff]  ;;  %v11257_v13 = vpop.f32.mrf.mxu0 }
 0x380   : > { %v3129_v8 = vsel %vm3057_vm0, %v3021_v9, %v3093_v49  ;;  %v11227_v28 = vld [vmem:[#allocation3 + $0x40] sm:$0xff]  ;;  %v4659_v36 = vrot.slane %v11191_v15, 4  ;;  %v4671_v48 = vshrl.u32 %v11216_v32, 16  ;;  %v4321_v45 = vmul.f32 2.0, %v4285_v3  ;;  %8535 = vmatmul.msk.bf16.gmra.mxu2 %vm12881_vm6, %v11225_v37  ;;  %vm12884_vm0 = vmmov %vm12881_vm6 }
 0x381   : > { %v3165_v38 = vpack.c.bf16 %v3129_v8, %v3129_v8  ;;  %v3022_v57 = vadd.f32 %v10795_v30, %v2982_v52  ;;  %v4663_v46 = vrot.slane %v4661_v29, 6  ;;  %v4674_v43 = vshll.u32 %v11216_v32, 16  ;;  %v2337_v5 = vpop.f32.mrf.mxu2  ;;  %v4286_v30 = vld [vmem:[#allocation4 + $0xa9] sm:$0xff] }
 0x382   : > { %v5175_v50 = vshll.u32 %v11225_v37, 16  ;;  %v5933_v27 = vrot.slane %v11227_v28, 1  ;;  %v4942_v35 = vld [vmem:[#allocation3 + $0x48] sm:$0x1]  ;;  %v5574_v19 = vrot.slane %v11225_v37, 1  ;;  %v4666_v7 = vrot.slane %v4664_v6, 7 }
 0x383   : > { %v3482_v1 = vshrl.u32 %v3165_v38, 16  ;;  %v3485_v40 = vshll.u32 %v3165_v38, 16  ;;  %vm3058_vm10 = vcmp.gt.f32.partialorder %v3022_v57, 0.0  ;;  %v3094_v56 = vmul.f32 0.2, %v3022_v57 }
 0x384   : > { %v9024_v41 = vld [vmem:[#allocation2 + $0x78] sm:$0xff]   ;;  %v5177_v44 = vrot.slane %v5175_v50, 1  ;;  %vm12882_vm1 = vcmask 1046528   ;;  %v4943_v9 = vsel %vm10219_vm13, 0, %v4942_v35  ;;  %vm12885_vm6 = vsmask.f32 7424 }
 0x385   : > { %v5934_v31 = vsel %vm12882_vm1, %v5931_v39, %v5933_v27  ;;  %vm12883_vm11 = vmmov %vm12882_vm1  ;;  %v11252_v25 = vunpack.c.l.bf16 %v9024_v41  ;;  %v11254_v63 = vunpack.c.h.bf16 %v9024_v41  ;;  %v3484_v51 = vrot.slane %v3482_v1, 6  ;;  %4944 = vst [vmem:[#allocation3 + $0x48] sm:$0x1] %v4943_v9  ;;  %v2709_v39 = vpop.f32.mrf.mxu3 }
 0x386   : > { %v5575_v4 = vsel %vm12883_vm11, %v5572_v21, %v5574_v19  ;;  %v3487_v3 = vrot.slane %v3485_v40, 7  ;;  %8639 = vmatmul.msk.bf16.gmra.mxu0 %vm12884_vm0, %v5934_v31  ;;  %v5178_v49 = vsel %vm12885_vm6, %v5173_v33, %v5177_v44  ;;  %v3130_v29 = vsel %vm3058_vm10, %v3022_v57, %v3094_v56  ;;  %vm12886_vm1 = vmmov %vm12884_vm0  ;;  %v4249_v33 = vld [vmem:[#allocation4 + $0xa0] sm:$0xff] }
 0x387   : > { %8553 = vmatmul.msk.bf16.gmra.mxu3 %vm12886_vm1, %v5575_v4  ;;  %v2378_v23 = vadd.f32 %v2337_v5, %v11097_v54  ;;  %v11263_v21 = vmul.f32 2.0, %v4286_v30  ;;  %v3804_v52 = vmul.f32 2.0, %v11252_v25  ;;  %v11267_v6 = vmul.f32 2.0, %v11254_v63  ;;  %vm12887_vm11 = vmmov %vm12884_vm0  ;;  %v11287_v4 = vpop.f32.mrf.mxu1 }
 0x388   : > { %v4095_v8 = vrot.slane %v11252_v25, 4  ;;  %v4097_v38 = vrot.slane %v11254_v63, 4  ;;  %8516 = vmatmul.msk.bf16.gmra.mxu1 %vm12887_vm11, %v5178_v49  ;;  %v3488_v50 = vor.u32 %v3487_v3, %v3484_v51  ;;  %v3166_v57 = vpack.c.bf16 %v3130_v29, %v3130_v29  ;;  %vm12890_vm6 = vmmov %vm12886_vm1 }
 0x389   : > { %v2747_v35 = vadd.f32 %v11203_v18, %v2378_v23  ;;  %v11273_v1 = vadd.f32 %v4321_v45, %v4249_v33  ;;  %v3906_v54 = vrot.slane %v3804_v52, 2  ;;  %vm12888_vm10 = vcmask 1043456   ;;  %v2340_v45 = vpop.f32.mrf.mxu2 }
 0x38a   : > { %v4096_v5 = vsel %vm12888_vm10, %v4093_v58, %v4095_v8  ;;  %vm12889_vm0 = vmmov %vm12888_vm10  ;;  %v4667_v56 = vor.u32 %v4666_v7, %v4663_v46  ;;  %v3489_v31 = vsel %vm9891_vm15, %v3480_v16, %v3488_v50  ;;  %v5179_v18 = vshrl.u32 %v11225_v37, 16 }
 0x38b   : > { %v4098_v40 = vsel %vm12889_vm0, %v4095_v8, %v4097_v38  ;;  %v4179_v30 = vadd.f32 %v4096_v5, %v11219_v10  ;;  %v3908_v9 = vrot.slane %v11267_v6, 2  ;;  %3604 = vst.msk [vmem:[#allocation2 + $0x84] sm:$0xf] %vm226_vm9, %v3489_v31  ;;  %v3492_v58 = vshrl.u32 %v3166_v57, 16  ;;  %vm12892_vm0 = vmmov %vm12886_vm1 }
 0x38c   : > { %v4180_v41 = vadd.f32 %v4098_v40, %v3987_v60  ;;  %v3495_v51 = vshll.u32 %v3166_v57, 16  ;;  %v4673_v3 = vrot.slane %v4671_v48, 6  ;;  %v3490_v46 = vrot.slane %v3488_v50, 4  ;;  %v11290_v10 = vld [vmem:[#allocation3 + $0x48] sm:$0xff] }
 0x38d   : > { %4217 = vst.msk [vmem:[#allocation4 + $0xc8] sm:$0xff] %vm12890_vm6, %v4179_v30  ;;  %v5181_v60 = vor.u32 %v5179_v18, %v5177_v44  ;;  %v2983_v16 = vadd.f32 %v11201_v34, %v2747_v35  ;;  %v11293_v7 = vld [vmem:[#allocation3 + $0x48] sm:$0xff]  ;;  %v2379_v49 = vadd.f32 %v2340_v45, %v11180_v53  ;;  %v3907_v29 = vsel %vm1790_vm3, %v3904_v12, %v3906_v54  ;;  %v11308_v34 = vld [vmem:[%s12704_s2] ss:$0 sm:$0xff]  ;;  %v2711_v33 = vpop.f32.mrf.mxu3 }
 0x38e   : > { %4218 = vst.msk [vmem:[#allocation4 + $0xd0] sm:$0xff] %vm12886_vm1, %v4180_v41  ;;  %v3494_v23 = vrot.slane %v3492_v58, 6  ;;  %v3497_v48 = vrot.slane %v3495_v51, 7  ;;  %v4668_v52 = vsel %vm9891_vm15, %v4659_v36, %v4667_v56  ;;  %v5183_v44 = vshll.u32 %v11290_v10, 16  ;;  %v11318_v36 = vpop.f32.mrf.mxu0  ;;  %v4250_v51 = vld [vmem:[#allocation4 + $0xa8] sm:$0xff] }
 0x38f   : > { %v3023_v20 = vadd.f32 %v11308_v34, %v2983_v16  ;;  %v5935_v12 = vrot.slane %v11293_v7, 1  ;;  %v2748_v53 = vadd.f32 %v2709_v39, %v2379_v49  ;;  %4897 = vst.msk [vmem:[#allocation3 + $0x50] sm:$0xf] %vm226_vm9, %v4668_v52  ;;  %v3909_v15 = vsel %vm1790_vm3, %v3906_v54, %v3908_v9  ;;  %v4394_v52 = vld [vmem:[#allocation4 + $0xaa] sm:$0xff] }
 0x390   : > { %v11316_v8 = vor.u32 %v3497_v48, %v3494_v23  ;;  %v4669_v50 = vrot.slane %v4667_v56, 4  ;;  %v4676_v57 = vrot.slane %v4674_v43, 7  ;;  %v5185_v35 = vrot.slane %v5183_v44, 1  ;;  %8536 = vmatmul.msk.bf16.gmra.mxu2 %vm12892_vm0, %v11290_v10 }
 0x391   : > { %vm3059_vm11 = vcmp.gt.f32.partialorder %v3023_v20, 0.0  ;;  %v3095_v5 = vmul.f32 0.2, %v3023_v20  ;;  %v5576_v39 = vrot.slane %v11290_v10, 1  ;;  %v11324_v40 = vadd.f32 %v11014_v55, %v3907_v29  ;;  %v2342_v48 = vpop.f32.mrf.mxu2 }
 0x392   : > { %v3499_v54 = vsel %vm9891_vm15, %v3490_v46, %v11316_v8  ;;  %v2984_v30 = vadd.f32 %v11257_v13, %v2748_v53  ;;  %v11330_v41 = vor.u32 %v4676_v57, %v4673_v3  ;;  %v11333_v56 = vadd.f32 %v11131_v22, %v3909_v15  ;;  %v3674_v32 = vld [vmem:[#allocation2 + $0x84] sm:$0xc]  ;;  %v11345_v22 = vpop.f32.mrf.mxu1  ;;  %v4393_v3 = vld [vmem:[#allocation4 + $0xa2] sm:$0xff] }
 0x393   : > { %3605 = vst.msk [vmem:[#allocation2 + $0x88] sm:$0xf] %vm226_vm9, %v3499_v54  ;;  %v3131_v43 = vsel %vm3059_vm11, %v3023_v20, %v3095_v5  ;;  %vm12891_vm10 = vcmask 1046528   ;;  %v5187_v31 = vshrl.u32 %v11290_v10, 16  ;;  %v3675_v13 = vsel %vm10037_vm2, 0, %v3674_v32  ;;  %vm12895_vm11 = vmmov %vm12892_vm0  ;;  %v4287_v54 = vld [vmem:[#allocation4 + $0xb1] sm:$0xff] }
 0x394   : > { %v5936_v55 = vsel %vm12891_vm10, %v5933_v27, %v5935_v12  ;;  %v3167_v18 = vpack.c.bf16 %v3131_v43, %v3131_v43  ;;  %v3024_v45 = vadd.f32 %v11308_v34, %v2984_v30  ;;  %v4678_v58 = vsel %vm9891_vm15, %v4669_v50, %v11330_v41  ;;  %3676 = vst [vmem:[#allocation2 + $0x84] sm:$0xc] %v3675_v13  ;;  %vm12894_vm1 = vmmov %vm12891_vm10  ;;  %v4288_v30 = vld [vmem:[#allocation4 + $0xb9] sm:$0xff]  ;;  %v4289_v10 = vld [vmem:[#allocation4 + $0xc1] sm:$0xff] }
 0x395   : > { %vm12893_vm6 = vsmask.f32 7424  ;;  %v5577_v27 = vsel %vm12894_vm1, %v5574_v19, %v5576_v39  ;;  %v4358_v46 = vadd.f32 %v11263_v21, %v4250_v51  ;;  %v4429_v16 = vadd.f32 %v4393_v3, %v11273_v1  ;;  %4898 = vst.msk [vmem:[#allocation3 + $0x54] sm:$0xf] %vm226_vm9, %v4678_v58  ;;  %v11372_v43 = vpop.f32.mrf.mxu3 }
 0x396   : > { %v5186_v28 = vsel %vm12893_vm6, %v5181_v60, %v5185_v35  ;;  %v3502_v49 = vshrl.u32 %v3167_v18, 16  ;;  %v3505_v29 = vshll.u32 %v3167_v18, 16  ;;  %8640 = vmatmul.msk.bf16.gmra.mxu0 %vm12895_vm11, %v5936_v55  ;;  %vm3060_vm10 = vcmp.gt.f32.partialorder %v3024_v45, 0.0  ;;  %v4945_v44 = vld [vmem:[#allocation3 + $0x50] sm:$0x3]  ;;  %vm12896_vm6 = vmmov %vm12892_vm0 }
 0x397   : > { %v3096_v23 = vmul.f32 0.2, %v3024_v45  ;;  %v3500_v60 = vrot.slane %v11316_v8, 4  ;;  %8554 = vmatmul.msk.bf16.gmra.mxu3 %vm12892_vm0, %v5577_v27  ;;  %v2380_v37 = vadd.f32 %v2342_v48, %v11213_v47  ;;  %v4430_v19 = vadd.f32 %v4394_v52, %v4358_v46  ;;  %v11370_v47 = vpop.f32.mrf.mxu0 }
 0x398   : > { %v4465_v21 = vpack.c.bf16 %v4429_v16, %v4429_v16  ;;  %8517 = vmatmul.msk.bf16.gmra.mxu1 %vm12896_vm6, %v5186_v28  ;;  %v3504_v1 = vrot.slane %v3502_v49, 6  ;;  %v3507_v20 = vrot.slane %v3505_v29, 7  ;;  %v4946_v15 = vsel %vm10306_vm14, 0, %v4945_v44  ;;  %vm12899_vm6 = vmmov %vm12892_vm0 }
 0x399   : > { %v3132_v53 = vsel %vm3060_vm10, %v3024_v45, %v3096_v23  ;;  %4947 = vst [vmem:[#allocation3 + $0x50] sm:$0x3] %v4946_v15  ;;  %v11368_v8 = vor.u32 %v5187_v31, %v5185_v35  ;;  %v2749_v57 = vadd.f32 %v2711_v33, %v2380_v37  ;;  %v11374_v55 = vpack.c.bf16 %v4430_v19, %v4430_v19 }
 0x39a   : > { %v3168_v50 = vpack.c.bf16 %v3132_v53, %v3132_v53  ;;  %v4681_v5 = vshrl.u32 %v4465_v21, 16  ;;  %v3508_v32 = vor.u32 %v3507_v20, %v3504_v1  ;;  %v4679_v13 = vrot.slane %v11330_v41, 4  ;;  %v11388_v23 = vpop.f32.mrf.mxu1 }
 0x39b   : > { %v4684_v18 = vshll.u32 %v4465_v21, 16  ;;  %v2985_v51 = vadd.f32 %v11318_v36, %v2749_v57  ;;  %v9025_v31 = vld [vmem:[#allocation2 + $0x80] sm:$0xff]   ;;  %v4323_v28 = vmul.f32 2.0, %v4287_v54  ;;  %v11380_v27 = vmul.f32 2.0, %v4288_v30  ;;  %v5463_v54 = vpop.f32.mrf.mxu2 }
 0x39c   : > { %v3512_v45 = vshrl.u32 %v3168_v50, 16  ;;  %v3515_v58 = vshll.u32 %v3168_v50, 16  ;;  %v4683_v35 = vrot.slane %v4681_v5, 6  ;;  %v3509_v33 = vsel %vm9891_vm15, %v3500_v60, %v3508_v32 }
 0x39d   : > { %v4686_v3 = vrot.slane %v4684_v18, 7  ;;  %v11382_v46 = vunpack.c.l.bf16 %v9025_v31  ;;  %v11384_v16 = vunpack.c.h.bf16 %v9025_v31  ;;  %3606 = vst.msk [vmem:[#allocation2 + $0x8c] sm:$0xf] %vm226_vm9, %v3509_v33  ;;  %v3510_v29 = vrot.slane %v3508_v32, 4 }
 0x39e   : > { %v3514_v41 = vrot.slane %v3512_v45, 6  ;;  %v3517_v49 = vrot.slane %v3515_v58, 7  ;;  %v3025_v36 = vadd.f32 %v11308_v34, %v2985_v51  ;;  %v4691_v52 = vshrl.u32 %v11374_v55, 16 }
 0x39f   : > { %v11390_v48 = vor.u32 %v4686_v3, %v4683_v35  ;;  %v3806_v60 = vmul.f32 2.0, %v11382_v46  ;;  %v11395_v44 = vmul.f32 2.0, %v11384_v16  ;;  %v4099_v37 = vrot.slane %v11382_v46, 4  ;;  %v11421_v18 = vpop.f32.mrf.mxu0  ;;  %v11427_v35 = vpop.f32.mrf.mxu3 }
 0x3a0   : > { %v4101_v19 = vrot.slane %v11384_v16, 4  ;;  %v11399_v21 = vor.u32 %v3517_v49, %v3514_v41  ;;  %v11401_v1 = vld [vmem:[#allocation3 + $0x50] sm:$0xff]  ;;  %vm3061_vm1 = vcmp.gt.f32.partialorder %v3025_v36, 0.0  ;;  %v3097_v34 = vmul.f32 0.2, %v3025_v36 }
 0x3a1   : > { %v11403_v20 = vld [vmem:[#allocation3 + $0x50] sm:$0xff]  ;;  %v4688_v53 = vsel %vm9891_vm15, %v4679_v13, %v11390_v48  ;;  %v3910_v15 = vrot.slane %v3806_v60, 2  ;;  %v3912_v50 = vrot.slane %v11395_v44, 2  ;;  %vm12897_vm11 = vcmask 1043456   ;;  %8537 = vmatmul.msk.bf16.gmra.mxu2 %vm12899_vm6, %v11401_v1  ;;  %vm12903_vm6 = vmmov %vm12892_vm0 }
 0x3a2   : > { %v4100_v57 = vsel %vm12897_vm11, %v4097_v38, %v4099_v37  ;;  %vm12898_vm10 = vmmov %vm12897_vm11  ;;  %4899 = vst.msk [vmem:[#allocation3 + $0x58] sm:$0xf] %vm226_vm9, %v4688_v53  ;;  %v3519_v13 = vsel %vm9891_vm15, %v3510_v29, %v11399_v21  ;;  %v4694_v45 = vshll.u32 %v11374_v55, 16  ;;  %v4251_v38 = vld [vmem:[#allocation4 + $0xb0] sm:$0xff]  ;;  %v5191_v58 = vshll.u32 %v11401_v1, 16  ;;  %v4252_v53 = vld [vmem:[#allocation4 + $0xb8] sm:$0xff] }
 0x3a3   : > { %v4102_v5 = vsel %vm12898_vm10, %v4099_v37, %v4101_v19  ;;  %v4181_v30 = vadd.f32 %v4100_v57, %v11324_v40  ;;  %3607 = vst.msk [vmem:[#allocation2 + $0x90] sm:$0xf] %vm226_vm9, %v3519_v13  ;;  %v3133_v51 = vsel %vm3061_vm1, %v3025_v36, %v3097_v34  ;;  %v4693_v40 = vrot.slane %v4691_v52, 6  ;;  %vm12900_vm1 = vmmov %vm12892_vm0  ;;  %v11461_v57 = vld [vmem:[#allocation2 + $0xa0] sm:$0x7]  ;;  %v4396_v13 = vld [vmem:[#allocation4 + $0xba] sm:$0xff] }
 0x3a4   : > { %v4182_v32 = vadd.f32 %v4102_v5, %v11333_v56  ;;  %v4359_v31 = vadd.f32 %v4323_v28, %v4251_v38  ;;  %v3911_v56 = vsel %vm1790_vm3, %v3908_v9, %v3910_v15  ;;  %v3913_v33 = vsel %vm1790_vm3, %v3910_v15, %v3912_v50  ;;  %v3677_v55 = vld [vmem:[#allocation2 + $0x8c] sm:$0x8] }
 0x3a5   : > { %4219 = vst.msk [vmem:[#allocation4 + $0xd8] sm:$0xff] %vm12892_vm0, %v4181_v30  ;;  %v3169_v3 = vpack.c.bf16 %v3133_v51, %v3133_v51  ;;  %v5937_v41 = vrot.slane %v11403_v20, 1  ;;  %v3678_v6 = vsel %vm10141_vm4, 0, %v3677_v55  ;;  %v5193_v28 = vrot.slane %v5191_v58, 1  ;;  %v5465_v51 = vpop.f32.mrf.mxu2 }
 0x3a6   : > { %4220 = vst.msk [vmem:[#allocation4 + $0xe0] sm:$0xff] %vm12900_vm1, %v4182_v32  ;;  %v5464_v9 = vadd.f32 %v5463_v54, %v11231_v62  ;;  %v4689_v49 = vrot.slane %v11390_v48, 4  ;;  %vm12901_vm11 = vcmask 1046528   ;;  %v4696_v60 = vrot.slane %v4694_v45, 7  ;;  %v4395_v32 = vld [vmem:[#allocation4 + $0xb2] sm:$0xff] }
 0x3a7   : > { %3679 = vst [vmem:[#allocation2 + $0x8c] sm:$0x8] %v3678_v6  ;;  %v3522_v29 = vshrl.u32 %v3169_v3, 16  ;;  %v3525_v36 = vshll.u32 %v3169_v3, 16  ;;  %v5938_v52 = vsel %vm12901_vm11, %v5935_v12, %v5937_v41  ;;  %v3520_v37 = vrot.slane %v11399_v21, 4  ;;  %v11463_v21 = vpop.f32.mrf.mxu1  ;;  %vm12904_vm1 = vmmov %vm12901_vm11  ;;  %v11486_v55 = vpop.f32.mrf.mxu0 }
 0x3a8   : > { %vm12902_vm10 = vsmask.f32 7424  ;;  %8641 = vmatmul.msk.bf16.gmra.mxu0 %vm12892_vm0, %v5938_v52  ;;  %v11454_v62 = vadd.f32 %v11372_v43, %v5464_v9  ;;  %v5578_v48 = vrot.slane %v11401_v1, 1  ;;  %v11458_v15 = vadd.f32 %v11133_v14, %v3911_v56  ;;  %vm12905_vm11 = vmmov %vm12892_vm0  ;;  %v5667_v3 = vpop.f32.mrf.mxu3 }
 0x3a9   : > { %v5194_v34 = vsel %vm12902_vm10, %v11368_v8, %v5193_v28  ;;  %v3524_v7 = vrot.slane %v3522_v29, 6  ;;  %v3527_v12 = vrot.slane %v3525_v36, 7  ;;  %v11465_v8 = vor.u32 %v4696_v60, %v4693_v40  ;;  %v4948_v5 = vld [vmem:[#allocation3 + $0x58] sm:$0x6] }
 0x3aa   : > { %8518 = vmatmul.msk.bf16.gmra.mxu1 %vm12903_vm6, %v5194_v34  ;;  %v3991_v43 = vadd.f32 %v11252_v25, %v3913_v33  ;;  %v4949_v54 = vsel %vm9945_vm5, 0, %v4948_v5  ;;  %v5579_v14 = vsel %vm12904_vm1, %v5576_v39, %v5578_v48  ;;  %v4360_v30 = vadd.f32 %v11380_v27, %v4252_v53  ;;  %v3680_v45 = vld [vmem:[#allocation2 + $0x90] sm:$0x1]  ;;  %v3609_v27 = vld [vmem:[#allocation2 + $0x98] sm:$0x3]  ;;  %v4290_v36 = vld [vmem:[#allocation4 + $0xc9] sm:$0xff] }
 0x3ab   : > { %v3528_v38 = vor.u32 %v3527_v12, %v3524_v7  ;;  %v4698_v58 = vsel %vm9891_vm15, %v4689_v49, %v11465_v8  ;;  %4950 = vst [vmem:[#allocation3 + $0x58] sm:$0x6] %v4949_v54  ;;  %v5195_v25 = vshrl.u32 %v11401_v1, 16  ;;  %8555 = vmatmul.msk.bf16.gmra.mxu3 %vm12905_vm11, %v5579_v14  ;;  %v4431_v40 = vadd.f32 %v4395_v32, %v4359_v31  ;;  %vm12909_vm1 = vmmov %vm12903_vm6 }
 0x3ac   : > { %v3681_v39 = vsel %vm10219_vm13, 0, %v3680_v45  ;;  %v4005_v56 = vunpack.c.l.bf16 %v11461_v57  ;;  %4900 = vst.msk [vmem:[#allocation3 + $0x5c] sm:$0xf] %vm226_vm9, %v4698_v58  ;;  %v5466_v33 = vadd.f32 %v5465_v51, %v11287_v4  ;;  %v4432_v6 = vadd.f32 %v4396_v13, %v4360_v30  ;;  %vm12910_vm11 = vmmov %vm12909_vm1 }
 0x3ad   : > { %3682 = vst [vmem:[#allocation2 + $0x90] sm:$0x1] %v3681_v39  ;;  %v3529_v9 = vsel %vm9891_vm15, %v3520_v37, %v3528_v38  ;;  %v3530_v31 = vrot.slane %v3528_v38, 4  ;;  %v11490_v49 = vor.u32 %v5195_v25, %v5193_v28  ;;  %v4467_v29 = vpack.c.bf16 %v4431_v40, %v4431_v40  ;;  %v4253_v38 = vld [vmem:[#allocation4 + $0xc0] sm:$0xff] }
 0x3ae   : > { %v9026_v52 = vld [vmem:[#allocation2 + $0x88] sm:$0xff]   ;;  %3608 = vst.msk [vmem:[#allocation2 + $0x94] sm:$0xf] %vm226_vm9, %v3529_v9  ;;  %v11494_v60 = vadd.f32 %v11427_v35, %v5466_v33  ;;  %v4468_v4 = vpack.c.bf16 %v4432_v6, %v4432_v6  ;;  %v4699_v34 = vrot.slane %v11465_v8, 4  ;;  %v4325_v53 = vmul.f32 2.0, %v4289_v10 }
 0x3af   : > { %v11497_v7 = vunpack.c.l.bf16 %v9026_v52  ;;  %v11499_v12 = vunpack.c.h.bf16 %v9026_v52  ;;  %v3610_v28 = vsel %vm9778_vm12, %v3530_v31, %v3609_v27  ;;  %v4701_v5 = vshrl.u32 %v4467_v29, 16  ;;  %v11517_v9 = vpop.f32.mrf.mxu1 }
 0x3b0   : > { %3611 = vst [vmem:[#allocation2 + $0x98] sm:$0x3] %v3610_v28  ;;  %v4704_v54 = vshll.u32 %v4467_v29, 16  ;;  %v4711_v14 = vshrl.u32 %v4468_v4, 16  ;;  %v4714_v30 = vshll.u32 %v4468_v4, 16  ;;  %v11503_v32 = vmul.f32 2.0, %v4290_v36  ;;  %v5468_v29 = vpop.f32.mrf.mxu2  ;;  %v11525_v28 = vpop.f32.mrf.mxu3 }
 0x3b1   : > { %v3808_v35 = vmul.f32 2.0, %v11497_v7  ;;  %v3809_v13 = vmul.f32 2.0, %v11499_v12  ;;  %v4103_v8 = vrot.slane %v11497_v7, 4  ;;  %v4105_v45 = vrot.slane %v11499_v12, 4 }
 0x3b2   : > { %v4703_v58 = vrot.slane %v4701_v5, 6  ;;  %v4706_v25 = vrot.slane %v4704_v54, 7  ;;  %v4713_v51 = vrot.slane %v4711_v14, 6  ;;  %v11509_v40 = vadd.f32 %v4325_v53, %v4253_v38  ;;  %v11523_v53 = vpop.f32.mrf.mxu0 }
 0x3b3   : > { %v3914_v10 = vrot.slane %v3808_v35, 2  ;;  %v3916_v39 = vrot.slane %v3809_v13, 2  ;;  %vm12907_vm10 = vcmask 1043456   ;;  %v11515_v6 = vld [vmem:[#allocation3 + $0x58] sm:$0xff]  ;;  %v5469_v4 = vadd.f32 %v5468_v29, %v11345_v22 }
 0x3b4   : > { %v4104_v27 = vsel %vm12907_vm10, %v4101_v19, %v4103_v8  ;;  %vm12908_vm0 = vmmov %vm12907_vm10  ;;  %v11519_v31 = vld [vmem:[#allocation3 + $0x58] sm:$0xff]  ;;  %v4707_v5 = vor.u32 %v4706_v25, %v4703_v58  ;;  %v5199_v35 = vshll.u32 %v11515_v6, 16  ;;  %v4716_v13 = vrot.slane %v4714_v30, 7  ;;  %8538 = vmatmul.msk.bf16.gmra.mxu2 %vm12903_vm6, %v11515_v6 }
 0x3b5   : > { %v4106_v33 = vsel %vm12908_vm0, %v4103_v8, %v4105_v45  ;;  %v4183_v36 = vadd.f32 %v4104_v27, %v11458_v15  ;;  %v3915_v19 = vsel %vm1790_vm3, %v3912_v50, %v3914_v10  ;;  %v3917_v54 = vsel %vm1790_vm3, %v3914_v10, %v3916_v39  ;;  %v9027_v14 = vld [vmem:[#allocation2 + $0x90] sm:$0xff]  }
 0x3b6   : > { %v4184_v52 = vadd.f32 %v4106_v33, %v3991_v43  ;;  %v8997_v22 = vunpack.c.l.bf16 %v9027_v14  ;;  %v8998_v15 = vunpack.c.h.bf16 %v9027_v14  ;;  %v3992_v43 = vadd.f32 %v11254_v63, %v3915_v19  ;;  %v11563_v19 = vld [vmem:[#allocation2 + $0x90] sm:$0x1] }
 0x3b7   : > { %4221 = vst.msk [vmem:[#allocation4 + $0xe8] sm:$0xff] %vm12909_vm1, %v4183_v36  ;;  %v3993_v8 = vadd.f32 %v11382_v46, %v3917_v54  ;;  %v3683_v44 = vld [vmem:[#allocation2 + $0x98] sm:$0x3]  ;;  %v5201_v50 = vrot.slane %v5199_v35, 1  ;;  %v5939_v38 = vrot.slane %v11519_v31, 1  ;;  %v11539_v58 = vadd.f32 %v5667_v3, %v5469_v4 }
 0x3b8   : > { %4222 = vst.msk [vmem:[#allocation4 + $0xf0] sm:$0xff] %vm12910_vm11, %v4184_v52  ;;  %v4708_v30 = vsel %vm9891_vm15, %v4699_v34, %v4707_v5  ;;  %v3684_v25 = vsel %vm10306_vm14, 0, %v3683_v44  ;;  %v3810_v10 = vmul.f32 2.0, %v8997_v22  ;;  %v11545_v27 = vmul.f32 2.0, %v8998_v15  ;;  %vm12914_vm11 = vmmov %vm12909_vm1  ;;  %v11572_v35 = vpop.f32.mrf.mxu1 }
 0x3b9   : > { %v4107_v63 = vrot.slane %v8997_v22, 4  ;;  %4901 = vst.msk [vmem:[#allocation3 + $0x60] sm:$0xf] %vm226_vm9, %v4708_v30  ;;  %v11548_v46 = vrot.slane %v8998_v15, 4  ;;  %vm12911_vm10 = vsmask.f32 7424  ;;  %v11561_v4 = vor.u32 %v4716_v13, %v4713_v51  ;;  %v5672_v30 = vpop.f32.mrf.mxu3 }
 0x3ba   : > { %3685 = vst [vmem:[#allocation2 + $0x98] sm:$0x3] %v3684_v25  ;;  %v5202_v33 = vsel %vm12911_vm10, %v11490_v49, %v5201_v50  ;;  %vm12912_vm0 = vcmask 1046528   ;;  %v4709_v34 = vrot.slane %v4707_v5, 4  ;;  %v3918_v29 = vrot.slane %v3810_v10, 2  ;;  %v5470_v5 = vpop.f32.mrf.mxu2  ;;  %v11577_v13 = vpop.f32.mrf.mxu0  ;;  %v4291_v22 = vld [vmem:[#allocation4 + $0xd1] sm:$0xff] }
 0x3bb   : > { %v5940_v3 = vsel %vm12912_vm0, %v5937_v41, %v5939_v38  ;;  %v3920_v36 = vrot.slane %v11545_v27, 2  ;;  %vm12913_vm6 = vcmask 1043456   ;;  %8519 = vmatmul.msk.bf16.gmra.mxu1 %vm12909_vm1, %v5202_v33  ;;  %v5580_v41 = vrot.slane %v11515_v6, 1  ;;  %v4292_v15 = vld [vmem:[#allocation4 + $0xd9] sm:$0xff]  ;;  %vm12916_vm0 = vmmov %vm12909_vm1  ;;  %v4254_v25 = vld [vmem:[#allocation4 + $0xc8] sm:$0xff] }
 0x3bc   : > { %v4108_v52 = vsel %vm12913_vm6, %v4105_v45, %v4107_v63  ;;  %8642 = vmatmul.msk.bf16.gmra.mxu0 %vm12914_vm11, %v5940_v3  ;;  %vm12915_vm10 = vmmov %vm12913_vm6  ;;  %v3919_v54 = vsel %vm1790_vm3, %v3916_v39, %v3918_v29  ;;  %v4718_v51 = vsel %vm9891_vm15, %v4709_v34, %v11561_v4  ;;  %v11582_v39 = vrot.slane %v4005_v56, 4  ;;  %v4397_v10 = vld [vmem:[#allocation4 + $0xc2] sm:$0xff]  ;;  %v4398_v56 = vld [vmem:[#allocation4 + $0xca] sm:$0xff] }
 0x3bd   : > { %v4110_v49 = vsel %vm12915_vm10, %v4107_v63, %v11548_v46  ;;  %v4185_v20 = vadd.f32 %v4108_v52, %v3992_v43  ;;  %v3921_v45 = vsel %vm1790_vm3, %v3918_v29, %v3920_v36  ;;  %v3994_v43 = vadd.f32 %v11384_v16, %v3919_v54  ;;  %vm12918_vm1 = vmmov %vm12916_vm0  ;;  %4902 = vst.msk [vmem:[#allocation3 + $0x64] sm:$0xf] %vm226_vm9, %v4718_v51 }
 0x3be   : > { %v4186_v14 = vadd.f32 %v4110_v49, %v3993_v8  ;;  %v5203_v8 = vshrl.u32 %v11515_v6, 16  ;;  %vm12917_vm6 = vcmask 1046528   ;;  %v3767_v63 = vunpack.c.l.bf16 %v11563_v19  ;;  %vm12919_vm11 = vmmov %vm12916_vm0 }
 0x3bf   : > { %4223 = vst.msk [vmem:[#allocation4 + $0xf8] sm:$0xff] %vm12916_vm0, %v4185_v20  ;;  %v5581_v44 = vsel %vm12917_vm6, %v5578_v48, %v5580_v41  ;;  %v5471_v16 = vadd.f32 %v5470_v5, %v11388_v23  ;;  %v4362_v57 = vadd.f32 %v11503_v32, %v4254_v25  ;;  %v4433_v33 = vadd.f32 %v4397_v10, %v11509_v40  ;;  %v4255_v40 = vld [vmem:[#allocation4 + $0xd0] sm:$0xff]  ;;  %vm12920_vm0 = vmmov %vm12915_vm10 }
 0x3c0   : > { %4224 = vst.msk [vmem:[#allocation4 + $0x100] sm:$0xff] %vm12918_vm1, %v4186_v14  ;;  %8556 = vmatmul.msk.bf16.gmra.mxu3 %vm12919_vm11, %v5581_v44  ;;  %v3995_v1 = vadd.f32 %v11497_v7, %v3921_v45  ;;  %v4951_v48 = vld [vmem:[#allocation3 + $0x60] sm:$0xc]  ;;  %v11599_v3 = vor.u32 %v5203_v8, %v5201_v50  ;;  %v4327_v34 = vmul.f32 2.0, %v4291_v22  ;;  %v4328_v29 = vmul.f32 2.0, %v4292_v15  ;;  %v4256_v15 = vld [vmem:[#allocation4 + $0xd8] sm:$0xff]  ;;  %vm12921_vm6 = vmmov %vm12920_vm0 }
 0x3c1   : > { %v3771_v52 = vld [vmem:[#allocation2 + $0x98] sm:$0x3]  ;;  %v4952_v49 = vsel %vm10037_vm2, 0, %v4951_v48  ;;  %v11604_v23 = vadd.f32 %v11525_v28, %v5471_v16  ;;  %v4434_v32 = vadd.f32 %v4398_v56, %v4362_v57  ;;  %v4469_v20 = vpack.c.bf16 %v4433_v33, %v4433_v33  ;;  %v11607_v16 = vpop.f32.mrf.mxu1  ;;  %vm12922_vm11 = vmmov %vm12918_vm1 }
 0x3c2   : > { %v9028_v19 = vld [vmem:[#allocation2 + $0x98] sm:$0xff]   ;;  %v3775_v5 = vunpack.c.l.bf16 %v3771_v52  ;;  %4953 = vst [vmem:[#allocation3 + $0x60] sm:$0xc] %v4952_v49  ;;  %v4363_v45 = vadd.f32 %v4327_v34, %v4255_v40  ;;  %v4719_v14 = vrot.slane %v11561_v4, 4  ;;  %v5473_v10 = vpop.f32.mrf.mxu2  ;;  %v4364_v28 = vadd.f32 %v4328_v29, %v4256_v15  ;;  %v11610_v56 = vpop.f32.mrf.mxu0  ;;  %v4399_v52 = vld [vmem:[#allocation4 + $0xd2] sm:$0xff] }
 0x3c3   : > { %v9001_v7 = vunpack.c.l.bf16 %v9028_v19  ;;  %v9002_v54 = vunpack.c.h.bf16 %v9028_v19  ;;  %v4470_v50 = vpack.c.bf16 %v4434_v32, %v4434_v32  ;;  %v4721_v51 = vshrl.u32 %v4469_v20, 16  ;;  %v5674_v32 = vpop.f32.mrf.mxu3  ;;  %v4400_v15 = vld [vmem:[#allocation4 + $0xda] sm:$0xff] }
 0x3c4   : > { %v4724_v22 = vshll.u32 %v4469_v20, 16  ;;  %v3812_v8 = vmul.f32 2.0, %v3775_v5  ;;  %v5474_v57 = vadd.f32 %v5473_v10, %v11463_v21  ;;  %v4435_v20 = vadd.f32 %v4399_v52, %v4363_v45 }
 0x3c5   : > { %v4111_v44 = vrot.slane %v9001_v7, 4  ;;  %v4113_v25 = vrot.slane %v9002_v54, 4  ;;  %v4723_v33 = vrot.slane %v4721_v51, 6  ;;  %v4731_v34 = vshrl.u32 %v4470_v50, 16 }
 0x3c6   : > { %v4726_v48 = vrot.slane %v4724_v22, 7  ;;  %v3922_v19 = vrot.slane %v3812_v8, 2  ;;  %v11615_v5 = vadd.f32 %v5672_v30, %v5474_v57  ;;  %v4734_v22 = vshll.u32 %v4470_v50, 16  ;;  %v4293_v8 = vld [vmem:[#allocation4 + $0xe1] sm:$0xff] }
 0x3c7   : > { %v4112_v4 = vsel %vm12915_vm10, %v11548_v46, %v4111_v44  ;;  %v4114_v49 = vsel %vm12920_vm0, %v4111_v44, %v4113_v25  ;;  %v4733_v51 = vrot.slane %v4731_v34, 6  ;;  %v4116_v44 = vsel %vm12921_vm6, %v4113_v25, %v11582_v39  ;;  %vm12923_vm10 = vmmov %vm12918_vm1 }
 0x3c8   : > { %v4187_v40 = vadd.f32 %v4112_v4, %v3994_v43  ;;  %v4188_v29 = vadd.f32 %v4114_v49, %v3995_v1  ;;  %v4727_v7 = vor.u32 %v4726_v48, %v4723_v33  ;;  %v3923_v21 = vsel %vm1790_vm3, %v3920_v36, %v3922_v19  ;;  %vm12925_vm6 = vmmov %vm12918_vm1 }
 0x3c9   : > { %v3997_v54 = vadd.f32 %v3922_v19, %v3767_v63  ;;  %v3996_v46 = vadd.f32 %v11499_v12, %v3923_v21  ;;  %v11624_v43 = vld [vmem:[#allocation3 + $0x60] sm:$0xff]  ;;  %v4436_v36 = vadd.f32 %v4400_v15, %v4364_v28  ;;  %v4736_v45 = vrot.slane %v4734_v22, 7 }
 0x3ca   : > { %4225 = vst.msk [vmem:[#allocation4 + $0x108] sm:$0xff] %vm12918_vm1, %v4187_v40  ;;  %v11626_v30 = vld [vmem:[#allocation3 + $0x60] sm:$0xff]  ;;  %v4728_v27 = vsel %vm9891_vm15, %v4719_v14, %v4727_v7  ;;  %v4729_v1 = vrot.slane %v4727_v7, 4  ;;  %v4471_v12 = vpack.c.bf16 %v4435_v20, %v4435_v20  ;;  %v5207_v25 = vshll.u32 %v11624_v43, 16  ;;  %8539 = vmatmul.msk.bf16.gmra.mxu2 %vm12923_vm10, %v11624_v43  ;;  %v5475_v28 = vpop.f32.mrf.mxu2  ;;  %v11648_v4 = vpop.f32.mrf.mxu0  ;;  %v4294_v20 = vld [vmem:[#allocation4 + $0xe9] sm:$0xff] }
 0x3cb   : > { %v4190_v63 = vadd.f32 %v11582_v39, %v3997_v54  ;;  %4226 = vst.msk [vmem:[#allocation4 + $0x110] sm:$0xff] %vm12922_vm11, %v4188_v29  ;;  %v4189_v50 = vadd.f32 %v4116_v44, %v3996_v46  ;;  %v5941_v10 = vrot.slane %v11626_v30, 1  ;;  %v4329_v57 = vmul.f32 2.0, %v4293_v8  ;;  %vm12927_vm11 = vmmov %vm12925_vm6  ;;  %v5677_v31 = vpop.f32.mrf.mxu3  ;;  %v4296_v21 = vld [vmem:[#allocation4 + $0xf9] sm:$0xff]  ;;  %v11661_v54 = vpop.f32.mrf.mxu1 }
 0x3cc   : > { %4903 = vst.msk [vmem:[#allocation3 + $0x68] sm:$0xf] %vm226_vm9, %v4728_v27  ;;  %vm12924_vm0 = vcmask 58368   ;;  %v4737_v14 = vor.u32 %v4736_v45, %v4733_v51  ;;  %v5582_v39 = vrot.slane %v11624_v43, 1  ;;  %v4472_v33 = vpack.c.bf16 %v4436_v36, %v4436_v36  ;;  %v4258_v36 = vld [vmem:[#allocation4 + $0xe8] sm:$0xff] }
 0x3cd   : > { %4228 = vst.msk [vmem:[#allocation4 + $0x120] sm:$0x3] %vm12924_vm0, %v4190_v63  ;;  %v4741_v48 = vshrl.u32 %v4471_v12, 16  ;;  %v11640_v34 = vrot.slane %v5207_v25, 1  ;;  %vm12926_vm1 = vcmask 1046528   ;;  %v5476_v19 = vadd.f32 %v5475_v28, %v11517_v9  ;;  %v4401_v63 = vld [vmem:[#allocation4 + $0xe2] sm:$0xff] }
 0x3ce   : > { %4227 = vst.msk [vmem:[#allocation4 + $0x118] sm:$0xff] %vm12925_vm6, %v4189_v50  ;;  %v5942_v52 = vsel %vm12926_vm1, %v5939_v38, %v5941_v10  ;;  %v4744_v49 = vshll.u32 %v4471_v12, 16  ;;  %v4738_v40 = vsel %vm9891_vm15, %v4729_v1, %v4737_v14  ;;  %vm12928_vm10 = vmmov %vm12926_vm1  ;;  %v4295_v38 = vld [vmem:[#allocation4 + $0xf1] sm:$0xff]  ;;  %vm12929_vm0 = vsmask.f32 7424 }
 0x3cf   : > { %8643 = vmatmul.msk.bf16.gmra.mxu0 %vm12927_vm11, %v5942_v52  ;;  %v5583_v29 = vsel %vm12928_vm10, %v5580_v41, %v5582_v39  ;;  %v4743_v7 = vrot.slane %v4741_v48, 6  ;;  %v5210_v9 = vsel %vm12929_vm0, %v11599_v3, %v11640_v34  ;;  %4904 = vst.msk [vmem:[#allocation3 + $0x6c] sm:$0xf] %vm226_vm9, %v4738_v40  ;;  %v5211_v51 = vshrl.u32 %v11624_v43, 16  ;;  %v4257_v41 = vld [vmem:[#allocation4 + $0xe0] sm:$0xff]  ;;  %vm12930_vm1 = vmmov %vm12925_vm6  ;;  %v4259_v48 = vld [vmem:[#allocation4 + $0xf0] sm:$0xff] }
 0x3d0   : > { %8557 = vmatmul.msk.bf16.gmra.mxu3 %vm12925_vm6, %v5583_v29  ;;  %v11666_v22 = vadd.f32 %v5674_v32, %v5476_v19  ;;  %v4746_v6 = vrot.slane %v4744_v49, 7  ;;  %8520 = vmatmul.msk.bf16.gmra.mxu1 %vm12930_vm1, %v5210_v9  ;;  %v4751_v15 = vshrl.u32 %v4472_v33, 16  ;;  %v4754_v8 = vshll.u32 %v4472_v33, 16  ;;  %v4260_v49 = vld [vmem:[#allocation4 + $0xf8] sm:$0xff]  ;;  %vm12931_vm11 = vmmov %vm12930_vm1 }
 0x3d1   : > { %v4330_v46 = vmul.f32 2.0, %v4294_v20  ;;  %v4365_v44 = vadd.f32 %v4329_v57, %v4257_v41  ;;  %v4739_v27 = vrot.slane %v4737_v14, 4  ;;  %v4331_v1 = vmul.f32 2.0, %v4295_v38  ;;  %v4297_v52 = vld [vmem:[#allocation4 + $0x101] sm:$0xff]  ;;  %v4402_v14 = vld [vmem:[#allocation4 + $0xea] sm:$0xff]  ;;  %vm12932_vm0 = vmmov %vm12928_vm10 }
 0x3d2   : > { %v4747_v3 = vor.u32 %v4746_v6, %v4743_v7  ;;  %v4332_v45 = vmul.f32 2.0, %v4296_v21  ;;  %v4753_v50 = vrot.slane %v4751_v15, 6  ;;  %v4756_v25 = vrot.slane %v4754_v8, 7  ;;  %v4298_v40 = vld [vmem:[#allocation4 + $0x109] sm:$0xff]  ;;  %v5478_v29 = vpop.f32.mrf.mxu2  ;;  %v4403_v6 = vld [vmem:[#allocation4 + $0xf2] sm:$0xff]  ;;  %vm12933_vm6 = vmmov %vm12930_vm1 }
 0x3d3   : > { %v4954_v12 = vld [vmem:[#allocation3 + $0x68] sm:$0x8]  ;;  %v4366_v28 = vadd.f32 %v4330_v46, %v4258_v36  ;;  %v4437_v32 = vadd.f32 %v4401_v63, %v4365_v44  ;;  %v4367_v20 = vadd.f32 %v4331_v1, %v4259_v48  ;;  %v5479_v41 = vadd.f32 %v5478_v29, %v11572_v35  ;;  %v11681_v35 = vpop.f32.mrf.mxu0 }
 0x3d4   : > { %v4955_v19 = vsel %vm10141_vm4, 0, %v4954_v12  ;;  %v4748_v33 = vsel %vm9891_vm15, %v4739_v27, %v4747_v3  ;;  %v4749_v57 = vrot.slane %v4747_v3, 4  ;;  %v4757_v7 = vor.u32 %v4756_v25, %v4753_v50  ;;  %v5679_v27 = vpop.f32.mrf.mxu3  ;;  %v4404_v12 = vld [vmem:[#allocation4 + $0xfa] sm:$0xff] }
 0x3d5   : > { %4956 = vst [vmem:[#allocation3 + $0x68] sm:$0x8] %v4955_v19  ;;  %v4438_v38 = vadd.f32 %v4402_v14, %v4366_v28  ;;  %v4473_v21 = vpack.c.bf16 %v4437_v32, %v4437_v32  ;;  %v4368_v9 = vadd.f32 %v4332_v45, %v4260_v49  ;;  %v4439_v15 = vadd.f32 %v4403_v6, %v4367_v20  ;;  %v4261_v32 = vld [vmem:[#allocation4 + $0x100] sm:$0xff]  ;;  %v11684_v14 = vpop.f32.mrf.mxu1 }
 0x3d6   : > { %4905 = vst.msk [vmem:[#allocation3 + $0x70] sm:$0xf] %vm226_vm9, %v4748_v33  ;;  %v4333_v8 = vmul.f32 2.0, %v4297_v52  ;;  %v4334_v46 = vmul.f32 2.0, %v4298_v40  ;;  %v4957_v44 = vld [vmem:[#allocation3 + $0x6c] sm:$0x1]  ;;  %v4758_v3 = vsel %vm9891_vm15, %v4749_v57, %v4757_v7  ;;  %v11679_v50 = vadd.f32 %v5677_v31, %v5479_v41 }
 0x3d7   : > { %v4474_v36 = vpack.c.bf16 %v4438_v38, %v4438_v38  ;;  %v4759_v63 = vrot.slane %v4757_v7, 4  ;;  %v4761_v1 = vshrl.u32 %v4473_v21, 16  ;;  %v4958_v45 = vsel %vm10219_vm13, 0, %v4957_v44  ;;  %4906 = vst.msk [vmem:[#allocation3 + $0x74] sm:$0xf] %vm226_vm9, %v4758_v3  ;;  %v4262_v57 = vld [vmem:[#allocation4 + $0x108] sm:$0xff] }
 0x3d8   : > { %v4764_v25 = vshll.u32 %v4473_v21, 16  ;;  %v4440_v28 = vadd.f32 %v4404_v12, %v4368_v9  ;;  %4959 = vst [vmem:[#allocation3 + $0x6c] sm:$0x1] %v4958_v45  ;;  %v4475_v33 = vpack.c.bf16 %v4439_v15, %v4439_v15  ;;  %v4369_v40 = vadd.f32 %v4333_v8, %v4261_v32  ;;  %v4405_v41 = vld [vmem:[#allocation4 + $0x102] sm:$0xff]  ;;  %v4406_v3 = vld [vmem:[#allocation4 + $0x10a] sm:$0xff] }
 0x3d9   : > { %v4763_v48 = vrot.slane %v4761_v1, 6  ;;  %v4771_v52 = vshrl.u32 %v4474_v36, 16  ;;  %v4774_v19 = vshll.u32 %v4474_v36, 16  ;;  %v4370_v31 = vadd.f32 %v4334_v46, %v4262_v57 }
 0x3da   : > { %v4766_v49 = vrot.slane %v4764_v25, 7  ;;  %v4476_v20 = vpack.c.bf16 %v4440_v28, %v4440_v28  ;;  %v4781_v38 = vshrl.u32 %v4475_v33, 16  ;;  %v4784_v6 = vshll.u32 %v4475_v33, 16  ;;  %v5480_v12 = vpop.f32.mrf.mxu2 }
 0x3db   : > { %v4773_v29 = vrot.slane %v4771_v52, 6  ;;  %v4776_v7 = vrot.slane %v4774_v19, 7  ;;  %v4441_v1 = vadd.f32 %v4405_v41, %v4369_v40  ;;  %v4442_v61 = vadd.f32 %v4406_v3, %v4370_v31  ;;  %v4299_v41 = vld [vmem:[#allocation4 + $0x111] sm:$0xff] }
 0x3dc   : > { %v4767_v21 = vor.u32 %v4766_v49, %v4763_v48  ;;  %v4791_v9 = vshrl.u32 %v4476_v20, 16  ;;  %v4794_v44 = vshll.u32 %v4476_v20, 16  ;;  %v4783_v15 = vrot.slane %v4781_v38, 6  ;;  %v5682_v52 = vpop.f32.mrf.mxu3 }
 0x3dd   : > { %v4777_v36 = vor.u32 %v4776_v7, %v4773_v29  ;;  %v4786_v45 = vrot.slane %v4784_v6, 7  ;;  %v5481_v25 = vadd.f32 %v5480_v12, %v11607_v16  ;;  %v4477_v57 = vpack.c.bf16 %v4441_v1, %v4441_v1 }
 0x3de   : > { %v4768_v8 = vsel %vm9891_vm15, %v4759_v63, %v4767_v21  ;;  %v4769_v46 = vrot.slane %v4767_v21, 4  ;;  %v4793_v28 = vrot.slane %v4791_v9, 6  ;;  %v4960_v32 = vld [vmem:[#allocation3 + $0x74] sm:$0x3]  ;;  %v4796_v33 = vrot.slane %v4794_v44, 7 }
 0x3df   : > { %4907 = vst.msk [vmem:[#allocation3 + $0x78] sm:$0xf] %vm226_vm9, %v4768_v8  ;;  %v4779_v48 = vrot.slane %v4777_v36, 4  ;;  %v4787_v19 = vor.u32 %v4786_v45, %v4783_v15  ;;  %v11690_v49 = vld [vmem:[#allocation3 + $0x68] sm:$0xff]  ;;  %v4961_v16 = vsel %vm10306_vm14, 0, %v4960_v32  ;;  %v11696_v40 = vadd.f32 %v5679_v27, %v5481_v25  ;;  %v11705_v27 = vpop.f32.mrf.mxu0  ;;  %v11723_v25 = vpop.f32.mrf.mxu1 }
 0x3e0   : > { %v11692_v20 = vld [vmem:[#allocation3 + $0x68] sm:$0xff]  ;;  %v4778_v63 = vsel %vm9891_vm15, %v4769_v46, %v4777_v36  ;;  %v4478_v31 = vpack.c.bf16 %v4442_v61, %v4442_v61  ;;  %4962 = vst [vmem:[#allocation3 + $0x74] sm:$0x3] %v4961_v16  ;;  %v4797_v38 = vor.u32 %v4796_v33, %v4793_v28  ;;  %v4801_v6 = vshrl.u32 %v4477_v57, 16  ;;  %8540 = vmatmul.msk.bf16.gmra.mxu2 %vm12931_vm11, %v11690_v49 }
 0x3e1   : > { %v4788_v29 = vsel %vm9891_vm15, %v4779_v48, %v4787_v19  ;;  %v4789_v7 = vrot.slane %v4787_v19, 4  ;;  %v5215_v21 = vshll.u32 %v11690_v49, 16  ;;  %v5943_v9 = vrot.slane %v11692_v20, 1  ;;  %4908 = vst.msk [vmem:[#allocation3 + $0x7c] sm:$0xf] %vm226_vm9, %v4778_v63  ;;  %v4300_v61 = vld [vmem:[#allocation4 + $0x119] sm:$0xff] }
 0x3e2   : > { %v5584_v44 = vrot.slane %v11690_v49, 1  ;;  %v5213_v3 = vor.u32 %v5211_v51, %v11640_v34  ;;  %4909 = vst.msk [vmem:[#allocation3 + $0x80] sm:$0xf] %vm226_vm9, %v4788_v29  ;;  %v4803_v12 = vrot.slane %v4801_v6, 6  ;;  %v4804_v36 = vshll.u32 %v4477_v57, 16  ;;  %v5483_v8 = vpop.f32.mrf.mxu2  ;;  %v4263_v19 = vld [vmem:[#allocation4 + $0x110] sm:$0xff] }
 0x3e3   : > { %v4798_v1 = vsel %vm9891_vm15, %v4789_v7, %v4797_v38  ;;  %v11716_v15 = vrot.slane %v5215_v21, 1  ;;  %v5944_v45 = vsel %vm12928_vm10, %v5941_v10, %v5943_v9  ;;  %v4811_v51 = vshrl.u32 %v4478_v31, 16  ;;  %vm12935_vm10 = vmmov %vm12930_vm1  ;;  %v4264_v29 = vld [vmem:[#allocation4 + $0x118] sm:$0xff] }
 0x3e4   : > { %v5585_v34 = vsel %vm12932_vm0, %v5582_v39, %v5584_v44  ;;  %4910 = vst.msk [vmem:[#allocation3 + $0x84] sm:$0xf] %vm226_vm9, %v4798_v1  ;;  %8644 = vmatmul.msk.bf16.gmra.mxu0 %vm12933_vm6, %v5944_v45  ;;  %v4806_v46 = vrot.slane %v4804_v36, 7  ;;  %v4814_v30 = vshll.u32 %v4478_v31, 16  ;;  %v4335_v28 = vmul.f32 2.0, %v4299_v41  ;;  %v5684_v39 = vpop.f32.mrf.mxu3  ;;  %v4407_v6 = vld [vmem:[#allocation4 + $0x112] sm:$0xff]  ;;  %vm12938_vm6 = vmmov %vm12932_vm0 }
 0x3e5   : > { %8558 = vmatmul.msk.bf16.gmra.mxu3 %vm12930_vm1, %v5585_v34  ;;  %v4336_v10 = vmul.f32 2.0, %v4300_v61  ;;  %vm12934_vm11 = vsmask.f32 7424  ;;  %v5484_v48 = vadd.f32 %v5483_v8, %v11661_v54  ;;  %v4813_v43 = vrot.slane %v4811_v51, 6  ;;  %v4408_v51 = vld [vmem:[#allocation4 + $0x11a] sm:$0xff] }
 0x3e6   : > { %v5218_v32 = vsel %vm12934_vm11, %v5213_v3, %v11716_v15  ;;  %v4799_v33 = vrot.slane %v4797_v38, 4  ;;  %v4807_v57 = vor.u32 %v4806_v46, %v4803_v12  ;;  %v4816_v16 = vrot.slane %v4814_v30, 7 }
 0x3e7   : > { %8521 = vmatmul.msk.bf16.gmra.mxu1 %vm12935_vm10, %v5218_v32  ;;  %v4371_v63 = vadd.f32 %v4335_v28, %v4263_v19  ;;  %v11737_v7 = vld [vmem:[#allocation3 + $0x70] sm:$0xff]  ;;  %v11739_v31 = vadd.f32 %v5682_v52, %v5484_v48  ;;  %v4372_v41 = vadd.f32 %v4336_v10, %v4264_v29  ;;  %v11743_v36 = vpop.f32.mrf.mxu0  ;;  %v5352_v46 = vpop.f32.mrf.mxu1  ;;  %v5219_v48 = vshrl.u32 %v11690_v49, 16  ;;  %vm12940_vm10 = vmmov %vm12930_vm1 }
 0x3e8   : > { %v4963_v21 = vld [vmem:[#allocation3 + $0x7c] sm:$0x6]  ;;  %v4808_v54 = vsel %vm9891_vm15, %v4799_v33, %v4807_v57  ;;  %v4809_v61 = vrot.slane %v4807_v57, 4  ;;  %v4817_v3 = vor.u32 %v4816_v16, %v4813_v43  ;;  %v11748_v12 = vld [vmem:[#allocation3 + $0x70] sm:$0xff]  ;;  %v5223_v8 = vshll.u32 %v11737_v7, 16 }
 0x3e9   : > { %v4443_v1 = vadd.f32 %v4407_v6, %v4371_v63  ;;  %v4964_v38 = vsel %vm9945_vm5, 0, %v4963_v21  ;;  %4911 = vst.msk [vmem:[#allocation3 + $0x88] sm:$0xf] %vm226_vm9, %v4808_v54  ;;  %v4444_v11 = vadd.f32 %v4408_v51, %v4372_v41  ;;  %v5945_v33 = vrot.slane %v11748_v12, 1  ;;  %vm12937_vm5 = vmmov %vm12934_vm11 }
 0x3ea   : > { %4965 = vst [vmem:[#allocation3 + $0x7c] sm:$0x6] %v4964_v38  ;;  %v4818_v45 = vsel %vm9891_vm15, %v4809_v61, %v4817_v3  ;;  %v5485_v28 = vpop.f32.mrf.mxu2  ;;  %v5586_v57 = vrot.slane %v11737_v7, 1  ;;  %v5225_v29 = vrot.slane %v5223_v8, 1  ;;  %v4819_v54 = vrot.slane %v4817_v3, 4  ;;  %vm12939_vm11 = vmmov %vm12930_vm1 }
 0x3eb   : > { %v4966_v52 = vld [vmem:[#allocation3 + $0x84] sm:$0xc]  ;;  %v4479_v34 = vpack.c.bf16 %v4443_v1, %v4443_v1  ;;  %4912 = vst.msk [vmem:[#allocation3 + $0x8c] sm:$0xf] %vm226_vm9, %v4818_v45  ;;  %v5486_v43 = vadd.f32 %v5485_v28, %v11684_v14  ;;  %v4480_v19 = vpack.c.bf16 %v4444_v11, %v4444_v11  ;;  %v5221_v1 = vor.u32 %v5219_v48, %v11716_v15 }
 0x3ec   : > { %v4967_v30 = vsel %vm10037_vm2, 0, %v4966_v52  ;;  %v5687_v16 = vpop.f32.mrf.mxu3  ;;  %vm12936_vm2 = vmmov %vm12930_vm1  ;;  %v5946_v3 = vsel %vm12932_vm0, %v5943_v9, %v5945_v33  ;;  %v5587_v15 = vsel %vm12938_vm6, %v5584_v44, %v5586_v57 }
 0x3ed   : > { %4968 = vst [vmem:[#allocation3 + $0x84] sm:$0xc] %v4967_v30  ;;  %v4821_v10 = vshrl.u32 %v4479_v34, 16  ;;  %v4824_v32 = vshll.u32 %v4479_v34, 16  ;;  %v11760_v6 = vadd.f32 %v5684_v39, %v5486_v43  ;;  %v4831_v41 = vshrl.u32 %v4480_v19, 16 }
 0x3ee   : > { %v4834_v21 = vshll.u32 %v4480_v19, 16  ;;  %v5226_v39 = vsel %vm12937_vm5, %v5221_v1, %v5225_v29  ;;  %v7481_v1 = vld [vmem:[#allocation3 + $0x10] sm:$0x8] }
 0x3ef   : > { %v4823_v63 = vrot.slane %v4821_v10, 6  ;;  %v4826_v24 = vrot.slane %v4824_v32, 7  ;;  %v11765_v14 = vpop.f32.mrf.mxu0  ;;  %v4833_v52 = vrot.slane %v4831_v41, 6  ;;  %v7485_v2 = vunpack.c.l.b16 %v7481_v1 }
 0x3f0   : > { %8541 = vmatmul.msk.bf16.gmra.mxu2 %vm12936_vm2, %v11737_v7  ;;  %v4836_v45 = vrot.slane %v4834_v21, 7  ;;  %v5355_v34 = vpop.f32.mrf.mxu1  ;;  %vm12945_vm2 = vmmov %vm12930_vm1 }
 0x3f1   : > { %v4827_v61 = vor.u32 %v4826_v24, %v4823_v63  ;;  %v8882_v44 = vld [vmem:[#allocation3 + $0x78] sm:$0xff]  ;;  %v5227_v24 = vshrl.u32 %v11737_v7, 16 }
 0x3f2   : > { %v4969_v38 = vld [vmem:[#allocation3 + $0x8c] sm:$0x8]  ;;  %v5488_v51 = vpop.f32.mrf.mxu2  ;;  %v11783_v49 = vor.u32 %v4836_v45, %v4833_v52  ;;  %v5231_v17 = vshll.u32 %v8882_v44, 16  ;;  %v8898_v10 = vld [vmem:[#allocation3 + $0x78] sm:$0xff] }
 0x3f3   : > { %v4828_v12 = vsel %vm9891_vm15, %v4819_v54, %v4827_v61  ;;  %v4970_v8 = vsel %vm10141_vm4, 0, %v4969_v38  ;;  %v4829_v30 = vrot.slane %v4827_v61, 4  ;;  %v5489_v20 = vadd.f32 %v5488_v51, %v11723_v25  ;;  %vm12943_vm4 = vmmov %vm12932_vm0 }
 0x3f4   : > { %8645 = vmatmul.msk.bf16.gmra.mxu0 %vm12930_vm1, %v5946_v3  ;;  %4913 = vst.msk [vmem:[#allocation3 + $0x90] sm:$0xf] %vm226_vm9, %v4828_v12  ;;  %v5689_v9 = vpop.f32.mrf.mxu3  ;;  %v5233_v41 = vrot.slane %v5231_v17, 1  ;;  %v5947_v21 = vrot.slane %v8898_v10, 1  ;;  %v5588_v54 = vrot.slane %v8882_v44, 1  ;;  %v5229_v12 = vor.u32 %v5227_v24, %v5225_v29 }
 0x3f5   : > { %8559 = vmatmul.msk.bf16.gmra.mxu3 %vm12939_vm11, %v5587_v15  ;;  %4971 = vst [vmem:[#allocation3 + $0x8c] sm:$0x8] %v4970_v8  ;;  %v11785_v11 = vadd.f32 %v5687_v16, %v5489_v20  ;;  %v4838_v28 = vsel %vm9891_vm15, %v4829_v30, %v11783_v49  ;;  %v11795_v16 = vld [vmem:[#allocation3 + $0x14] sm:$0xf]  ;;  %vm12942_vm15 = vmmov %vm12937_vm5  ;;  %v8883_v20 = vld [vmem:[#allocation3 + $0x80] sm:$0xff] }
 0x3f6   : > { %4914 = vst.msk [vmem:[#allocation3 + $0x94] sm:$0xf] %vm226_vm9, %v4838_v28  ;;  %v12728_v38 = vunpack.c.l.b16 %v11795_v16  ;;  %vm12941_vm9 = vmmov %vm12930_vm1  ;;  %v5948_v52 = vsel %vm12943_vm4, %v5945_v33, %v5947_v21  ;;  %v8899_v28 = vld [vmem:[#allocation3 + $0x80] sm:$0xff]  ;;  %v5239_v10 = vshll.u32 %v8883_v20, 16 }
 0x3f7   : > { %8522 = vmatmul.msk.bf16.gmra.mxu1 %vm12940_vm10, %v5226_v39  ;;  %v11791_v48 = vpop.f32.mrf.mxu0  ;;  %vm12946_vm5 = vmmov %vm12930_vm1  ;;  %v11807_v39 = vld [vmem:[#allocation3 + $0x18] sm:$0xff] }
 0x3f8   : > { %v5357_v19 = vpop.f32.mrf.mxu1  ;;  %v7486_v3 = vpack.c.b16 %v12728_v38, %v7485_v2  ;;  %v7488_v30 = vrot.slane %v11807_v39, 3 }
 0x3fa   : > { %v5490_v25 = vpop.f32.mrf.mxu2 }
 0x3fb   : > { %v4972_v32 = vld [vmem:[#allocation3 + $0x90] sm:$0x1]  ;;  %v5491_v63 = vadd.f32 %v5490_v25, %v5352_v46  ;;  %v5234_v46 = vsel %vm12942_vm15, %v5229_v12, %v5233_v41  ;;  %v5241_v12 = vrot.slane %v5239_v10, 1 }
 0x3fc   : > { %v4973_v43 = vsel %vm10219_vm13, 0, %v4972_v32  ;;  %v5692_v26 = vpop.f32.mrf.mxu3  ;;  %vm12944_vm13 = vmmov %vm12932_vm0 }
 0x3fd   : > { %4974 = vst [vmem:[#allocation3 + $0x90] sm:$0x1] %v4973_v43  ;;  %v11798_v61 = vadd.f32 %v5689_v9, %v5491_v63  ;;  %v5589_v45 = vsel %vm12944_vm13, %v5586_v57, %v5588_v54  ;;  %vm12947_vm0 = vmmov %vm12930_vm1  ;;  %v7487_v57 = vrot.slane %v7486_v3, 3  ;;  %v5949_v43 = vrot.slane %v8899_v28, 1  ;;  %v11846_v28 = vld [vmem:[#allocation3 + $0x88] sm:$0xff] }
 0x3fe   : > { %v5590_v63 = vrot.slane %v8883_v20, 1  ;;  %vm12949_vm6 = vmmov %vm12947_vm0  ;;  %vm12955_vm13 = vcmask 1043456  }
 0x3ff   : > { %v11818_v9 = vsel %vm2756_vm8, %v7487_v57, %v7488_v30  ;;  %vm12950_vm1 = vmmov %vm12943_vm4  ;;  %v11844_v57 = vld [vmem:[#allocation3 + $0x20] sm:$0xff] }
 0x400   : > { %8542 = vmatmul.msk.bf16.gmra.mxu2 %vm12941_vm9, %v8882_v44  ;;  %12948 = vst [vmem:[#allocation8_spill] sm:$0xff] %v11818_v9  ;;  %vm12951_vm11 = vmmov %vm12950_vm1 }
 0x401   : > { %vm12952_vm10 = vmmov %vm12947_vm0 }
 0x402   : > { %v5493_v7 = vpop.f32.mrf.mxu2  ;;  %vm12953_vm9 = vmmov %vm12947_vm0 }
 0x403   : > { %v5494_v29 = vadd.f32 %v5493_v7, %v5355_v34  ;;  %v11812_v15 = vpop.f32.mrf.mxu0  ;;  %vm12954_vm4 = vmmov %vm12947_vm0 }
 0x404   : > { %8646 = vmatmul.msk.bf16.gmra.mxu0 %vm12945_vm2, %v5948_v52  ;;  %v5694_v51 = vpop.f32.mrf.mxu3  ;;  %v5591_v52 = vsel %vm12951_vm11, %v5588_v54, %v5590_v63  ;;  %vm12956_vm2 = vmmov %vm12955_vm13  ;;  %v11885_v9 = vld [vmem:[#allocation3 + $0x90] sm:$0xff] }
 0x405   : > { %8560 = vmatmul.msk.bf16.gmra.mxu3 %vm12946_vm5, %v5589_v45  ;;  %v5360_v8 = vpop.f32.mrf.mxu1  ;;  %v11814_v33 = vadd.f32 %v5692_v26, %v5494_v29  ;;  %v5235_v26 = vshrl.u32 %v8882_v44, 16  ;;  %v8670_v44 = vld [vmem:[%s12705_s3 + $0x14] sm:$0xf]  ;;  %vm12957_vm5 = vmmov %vm12956_vm2 }
 0x406   : > { %v6615_v29 = vsel %vm12955_vm13, %v8670_v44, 0  ;;  %v5592_v44 = vrot.slane %v11846_v28, 1  ;;  %vm12962_vm11 = vmmov %vm12947_vm0 }
 0x407   : > { %8523 = vmatmul.msk.bf16.gmra.mxu1 %vm12947_vm0, %v5234_v46  ;;  %v5237_v2 = vor.u32 %v5235_v26, %v5233_v41  ;;  %v5950_v46 = vsel %vm12950_vm1, %v5947_v21, %v5949_v43  ;;  %v8689_v41 = vld [vmem:[%s12705_s3 + $0x18] sm:$0xf]  ;;  %6624 = vmatpush.bf16.msra.mxu2 %v6615_v29  ;;  %v5243_v29 = vshrl.u32 %v8883_v20, 16  ;;  %vm12973_vm13 = vmmov %vm12950_vm1 }
 0x409   : > { %v5242_v45 = vsel %vm12942_vm15, %v5237_v2, %v5241_v12  ;;  %v5247_v2 = vshll.u32 %v11846_v28, 16 }
 0x40a   : > { %v5495_v17 = vpop.f32.mrf.mxu2 }
 0x40b   : > { %v5496_v32 = vadd.f32 %v5495_v17, %v5357_v19  ;;  %v11822_v1 = vpop.f32.mrf.mxu0 }
 0x40c   : > { %v5697_v34 = vpop.f32.mrf.mxu3 }
 0x40d   : > { %v5362_v25 = vpop.f32.mrf.mxu1  ;;  %v11820_v24 = vadd.f32 %v5694_v51, %v5496_v32  ;;  %v6976_v51 = vsel %vm12956_vm2, %v8689_v41, 0  ;;  %v11851_v32 = vld [vmem:[#allocation3 + $0x88] sm:$0xff] }
 0x40e   : > { %6985 = vmatpush.bf16.msra.mxu3 %v6976_v51  ;;  %v5249_v51 = vrot.slane %v5247_v2, 1 }
 0x410   : > { %8543 = vmatmul.msk.bf16.gmra.mxu2 %vm12949_vm6, %v8883_v20  ;;  %vm12961_vm6 = vmmov %vm12950_vm1 }
 0x412   : > { %v5498_v19 = vpop.f32.mrf.mxu2 }
 0x413   : > { %v5499_v7 = vadd.f32 %v5498_v19, %v5360_v8  ;;  %v8776_v8 = vld [vmem:[%s12705_s3 + $0x1c] sm:$0xf]  ;;  %v11849_v10 = vpop.f32.mrf.mxu0 }
 0x414   : > { %8647 = vmatmul.msk.bf16.gmra.mxu0 %vm12952_vm10, %v5950_v46  ;;  %v5699_v3 = vpop.f32.mrf.mxu3  ;;  %v7344_v17 = vsel %vm12957_vm5, %v8776_v8, 0  ;;  %12958 = vst [vmem:[#allocation9_spill] sm:$0xff] %v11849_v10  ;;  %v5015_v8 = vld [vmem:[#allocation3 + $0x90] sm:$0x1]  ;;  %vm12964_vm10 = vmmov %vm12947_vm0 }
 0x415   : > { %8561 = vmatmul.msk.bf16.gmra.mxu3 %vm12953_vm9, %v5591_v52  ;;  %v5365_v21 = vpop.f32.mrf.mxu1  ;;  %v11837_v54 = vadd.f32 %v5697_v34, %v5499_v7  ;;  %7353 = vmatpush.bf16.msra.mxu0 %v7344_v17  ;;  %v7490_v34 = vrot.slane %v11844_v57, 3  ;;  %v5951_v7 = vrot.slane %v11851_v32, 1  ;;  %v5245_v17 = vor.u32 %v5243_v29, %v5241_v12  ;;  %vm12965_vm9 = vmmov %vm12942_vm15  ;;  %v4915_v12 = vld [vmem:[#allocation3 + $0x98] sm:$0x3] }
 0x416   : > { %v5091_v20 = vunpack.c.l.b16 %v5015_v8  ;;  %vm12966_vm15 = vmmov %vm12947_vm0 }
 0x417   : > { %8524 = vmatmul.msk.bf16.gmra.mxu1 %vm12954_vm4, %v5242_v45  ;;  %v11856_v52 = vsel %vm2756_vm8, %v7488_v30, %v7490_v34  ;;  %v5593_v30 = vsel %vm12950_vm1, %v5590_v63, %v5592_v44  ;;  %v4839_v63 = vrot.slane %v11783_v49, 4  ;;  %vm12968_vm4 = vmmov %vm12956_vm2 }
 0x418   : > { %12959 = vst [vmem:[#allocation11_spill] sm:$0xff] %v11856_v52  ;;  %vm12974_vm2 = vmmov %vm12950_vm1 }
 0x419   : > { %vm12975_vm5 = vmmov %vm12947_vm0 }
 0x41a   : > { %v5500_v26 = vpop.f32.mrf.mxu2  ;;  %vm12977_vm1 = vmmov %vm12947_vm0 }
 0x41b   : > { %v5501_v46 = vadd.f32 %v5500_v26, %v5362_v25  ;;  %v5952_v25 = vsel %vm12961_vm6, %v5949_v43, %v5951_v7  ;;  %v11867_v26 = vpop.f32.mrf.mxu0  ;;  %v8795_v43 = vld [vmem:[%s12705_s3 + $0x20] sm:$0xf]  ;;  %vm12976_vm6 = vmmov %vm12965_vm9 }
 0x41c   : > { %v5702_v19 = vpop.f32.mrf.mxu3  ;;  %12963 = vst [vmem:[#allocation13_spill] sm:$0xff] %v11867_v26  ;;  %v5251_v26 = vshrl.u32 %v11846_v28, 16 }
 0x41d   : > { %v5367_v45 = vpop.f32.mrf.mxu1  ;;  %v11860_v41 = vadd.f32 %v5699_v3, %v5501_v46  ;;  %v5250_v3 = vsel %vm12965_vm9, %v5245_v17, %v5249_v51  ;;  %v6517_v46 = vld [vmem:[#allocation3 + $0x8] sm:$0xc]  ;;  %vm12986_vm9 = vmmov %vm12947_vm0 }
 0x41e   : > { %v6521_v8 = vunpack.c.l.b16 %v6517_v46  ;;  %v11881_v17 = vld [vmem:[#allocation3 + $0x28] sm:$0xff] }
 0x41f   : > { %12960 = vst [vmem:[#allocation12_spill] sm:$0xff] %v11860_v41  ;;  %v7492_v49 = vrot.slane %v11881_v17, 3 }
 0x420   : > { %8544 = vmatmul.msk.bf16.gmra.mxu2 %vm12947_vm0, %v11846_v28 }
 0x421   : > { %v11889_v37 = vsel %vm2756_vm8, %v7490_v34, %v7492_v49 }
 0x422   : > { %v5503_v32 = vpop.f32.mrf.mxu2  ;;  %12970 = vst [vmem:[#allocation19_spill] sm:$0xff] %v11889_v37 }
 0x423   : > { %v5504_v2 = vadd.f32 %v5503_v32, %v5365_v21  ;;  %v4916_v21 = vsel %vm9778_vm12, %v4839_v63, %v4915_v12  ;;  %v5110_v32 = vpack.c.b16 %v5091_v20, %v5091_v20  ;;  %v5953_v20 = vrot.slane %v11885_v9, 1  ;;  %vm12972_vm12 = vmmov %vm12947_vm0 }
 0x424   : > { %8648 = vmatmul.msk.bf16.gmra.mxu0 %vm12962_vm11, %v5952_v25  ;;  %v5704_v38 = vpop.f32.mrf.mxu3  ;;  %4917 = vst [vmem:[#allocation3 + $0x98] sm:$0x3] %v4916_v21  ;;  %vm12984_vm11 = vmmov %vm12974_vm2 }
 0x425   : > { %8562 = vmatmul.msk.bf16.gmra.mxu3 %vm12964_vm10, %v5593_v30  ;;  %v11876_v25 = vadd.f32 %v5702_v19, %v5504_v2  ;;  %v7579_v30 = vsel %vm12968_vm4, %v8795_v43, 0  ;;  %v9053_v2 = vld [vmem:[#allocation3 + $0x10] sm:$0xff]  ;;  %v5255_v43 = vshll.u32 %v5110_v32, 16  ;;  %v11891_v46 = vpop.f32.mrf.mxu0  ;;  %v5594_v12 = vrot.slane %v5110_v32, 1  ;;  %vm12985_vm10 = vmmov %vm12947_vm0 }
 0x426   : > { %7588 = vmatpush.bf16.msra.mxu1 %v7579_v30  ;;  %v5954_v9 = vsel %vm12973_vm13, %v5951_v7, %v5953_v20  ;;  %v6164_v7 = vshrl.u32 %v9053_v2, 16  ;;  %vm12989_vm4 = vmmov %vm12947_vm0 }
 0x427   : > { %8525 = vmatmul.msk.bf16.gmra.mxu1 %vm12966_vm15, %v5250_v3  ;;  %v5370_v29 = vpop.f32.mrf.mxu1  ;;  %12967 = vst [vmem:[#allocation10_spill] sm:$0xff] %v11876_v25  ;;  %v12969_v3 = vunpack.c.l.b16 %v10559_v0  ;;  %v6524_v25 = vrot.slane %v9053_v2, 2  ;;  %v5257_v41 = vrot.slane %v5255_v43, 1  ;;  %vm12987_vm15 = vsmask.f32 6400  ;;  %vm12993_vm13 = vmmov %vm12947_vm0 }
 0x429   : > { %v6522_v52 = vpack.c.b16 %v12969_v3, %v6521_v8 }
 0x42a   : > { %v5505_v19 = vpop.f32.mrf.mxu2 }
 0x42b   : > { %v5506_v30 = vadd.f32 %v5505_v19, %v5367_v45  ;;  %v6523_v63 = vrot.slane %v6522_v52, 2  ;;  %v4975_v8 = vld [vmem:[#allocation3 + $0x98] sm:$0x3]  ;;  %v5253_v52 = vor.u32 %v5251_v26, %v5249_v51  ;;  %v11911_v26 = vld [vmem:[#allocation3 + $0x30] sm:$0xff] }
 0x42c   : > { %v4976_v34 = vsel %vm10306_vm14, 0, %v4975_v8  ;;  %vm12983_vm14 = vmmov %vm12947_vm0 }
 0x42d   : > { %v11894_v0 = vadd.f32 %v5704_v38, %v5506_v30  ;;  %v6525_v3 = vsel %vm1790_vm3, %v6523_v63, %v6524_v25  ;;  %4977 = vst [vmem:[#allocation3 + $0x98] sm:$0x3] %v4976_v34  ;;  %v5595_v38 = vsel %vm12974_vm2, %v5592_v44, %v5594_v12  ;;  %v5258_v28 = vsel %vm12976_vm6, %v5253_v52, %v5257_v41  ;;  %v11909_v43 = vpop.f32.mrf.mxu0  ;;  %v9054_v52 = vld [vmem:[#allocation3 + $0x18] sm:$0xff]  ;;  %vm12994_vm2 = vmmov %vm12947_vm0 }
 0x42e   : > { %v5707_v21 = vpop.f32.mrf.mxu3  ;;  %12979 = vst [vmem:[#allocation14_spill] sm:$0xff] %v11909_v43  ;;  %v6167_v44 = vshll.u32 %v9053_v2, 16  ;;  %v6828_v63 = vunpack.c.l.b16 %v6752_v59  ;;  %v6156_v12 = vshrl.u32 %v10613_v42, 16  ;;  %v6159_v41 = vshll.u32 %v10613_v42, 16  ;;  %vm13000_vm6 = vmmov %vm12947_vm0 }
 0x42f   : > { %12971 = vst [vmem:[#allocation20_spill] sm:$0xff] %v11894_v0  ;;  %v5372_v10 = vpop.f32.mrf.mxu1  ;;  %v6885_v42 = vrot.slane %v11807_v39, 2  ;;  %v11925_v0 = vld [vmem:[#allocation3 + $0x38] sm:$0xff] }
 0x430   : > { %8671 = vmatmul.msk.bf16.vlgmr.msra.gmra.mxu2 %vm12972_vm12, %v6525_v3  ;;  %v6158_v37 = vrot.slane %v6156_v12, 1  ;;  %vm12992_vm12 = vmmov %vm12947_vm0 }
 0x432   : > { %v5508_v45 = vpop.f32.mrf.mxu2 }
 0x433   : > { %v5509_v32 = vadd.f32 %v5508_v45, %v5370_v29  ;;  %v7494_v29 = vrot.slane %v11911_v26, 3  ;;  %v6169_v45 = vrot.slane %v6167_v44, 2 }
 0x434   : > { %8649 = vmatmul.msk.bf16.gmra.mxu0 %vm12975_vm5, %v5954_v9  ;;  %v5824_v30 = vld [vmem:[#allocation3 + $0x98] sm:$0x1]  ;;  %v6526_v9 = vrot.slane %v9054_v52, 2  ;;  %vm12995_vm5 = vmmov %vm12987_vm15 }
 0x435   : > { %8563 = vmatmul.msk.bf16.gmra.mxu3 %vm12947_vm0, %v5595_v38  ;;  %v11907_v19 = vadd.f32 %v5707_v21, %v5509_v32  ;;  %v5900_v8 = vunpack.c.l.b16 %v5824_v30  ;;  %v6166_v38 = vrot.slane %v6164_v7, 1  ;;  %v11919_v59 = vsel %vm2756_vm8, %v7492_v49, %v7494_v29 }
 0x436   : > { %v5709_v51 = vpop.f32.mrf.mxu3  ;;  %12981 = vst [vmem:[#allocation15_spill] sm:$0xff] %v11919_v59  ;;  %v6161_v30 = vrot.slane %v6159_v41, 2  ;;  %v7496_v41 = vrot.slane %v11925_v0, 3 }
 0x437   : > { %8526 = vmatmul.msk.bf16.gmra.mxu1 %vm12977_vm1, %v5258_v28  ;;  %12978 = vst [vmem:[#allocation21_spill] sm:$0xff] %v11907_v19  ;;  %v5919_v34 = vpack.c.b16 %v5900_v8, %v5900_v8  ;;  %v12980_v28 = vunpack.c.l.b16 %v11795_v16  ;;  %v6527_v8 = vsel %vm1790_vm3, %v6524_v25, %v6526_v9  ;;  %v6170_v7 = vor.u32 %v6169_v45, %v6166_v38  ;;  %vm13002_vm1 = vmmov %vm12947_vm0 }
 0x438   : > { %v5375_v3 = vpop.f32.mrf.mxu1  ;;  %v11937_v38 = vsel %vm2756_vm8, %v7494_v29, %v7496_v41  ;;  %v6173_v45 = vshrl.u32 %v9054_v52, 16 }
 0x439   : > { %v6865_v32 = vpack.c.b16 %v12980_v28, %v6828_v63  ;;  %v5955_v19 = vrot.slane %v5919_v34, 1  ;;  %v11928_v16 = vpop.f32.mrf.mxu0  ;;  %v6162_v63 = vor.u32 %v6161_v30, %v6158_v37  ;;  %12988 = vst [vmem:[#allocation18_spill] sm:$0xff] %v11937_v38  ;;  %v7128_v37 = vshrl.u32 %v11807_v39, 16 }
 0x43a   : > { %v5510_v21 = vpop.f32.mrf.mxu2  ;;  %v6176_v28 = vshll.u32 %v9054_v52, 16 }
 0x43b   : > { %v5511_v2 = vadd.f32 %v5510_v21, %v5372_v10  ;;  %v6884_v44 = vrot.slane %v6865_v32, 2  ;;  %v5956_v49 = vsel %vm12984_vm11, %v5953_v20, %v5955_v19  ;;  %v7131_v20 = vshll.u32 %v11807_v39, 16  ;;  %vm13004_vm11 = vmmov %vm12995_vm5 }
 0x43c   : > { %v7123_v30 = vshll.u32 %v6865_v32, 16 }
 0x43d   : > { %v11922_v43 = vadd.f32 %v5709_v51, %v5511_v2  ;;  %v6886_v12 = vsel %vm1790_vm3, %v6884_v44, %v6885_v42  ;;  %v6171_v51 = vsel %vm12987_vm15, %v6162_v63, %v6170_v7  ;;  %v7120_v2 = vshrl.u32 %v6865_v32, 16  ;;  %vm13012_vm15 = vmmov %vm12947_vm0 }
 0x43e   : > { %v7130_v44 = vrot.slane %v7128_v37, 2  ;;  %v7133_v63 = vrot.slane %v7131_v20, 3  ;;  %v7125_v59 = vrot.slane %v7123_v30, 3  ;;  %v11950_v37 = vld [vmem:[#allocation3 + $0x40] sm:$0xff] }
 0x43f   : > { %12982 = vst [vmem:[#allocation16_spill] sm:$0xff] %v11922_v43  ;;  %v7122_v38 = vrot.slane %v7120_v2, 2 }
 0x440   : > { %8672 = vmatmul.msk.bf16.gmra.mxu2 %vm12983_vm14, %v6527_v8  ;;  %v5377_v34 = vpop.f32.mrf.mxu1  ;;  %vm13003_vm14 = vmmov %vm12947_vm0 }
 0x442   : > { %v5513_v25 = vpop.f32.mrf.mxu2 }
 0x443   : > { %v5712_v10 = vpop.f32.mrf.mxu3  ;;  %v5514_v21 = vadd.f32 %v5513_v25, %v5375_v3  ;;  %v6175_v3 = vrot.slane %v6173_v45, 1 }
 0x444   : > { %8650 = vmatmul.msk.bf16.gmra.mxu0 %vm12985_vm10, %v5956_v49  ;;  %v11944_v49 = vpop.f32.mrf.mxu0  ;;  %vm13005_vm10 = vmmov %vm12947_vm0 }
 0x445   : > { %8758 = vmatmul.msk.bf16.vlgmr.msra.gmra.mxu3 %vm12986_vm9, %v6886_v12  ;;  %v11942_v19 = vadd.f32 %v5712_v10, %v5514_v21  ;;  %v9055_v12 = vld [vmem:[#allocation3 + $0x20] sm:$0xff]  ;;  %v7134_v10 = vor.u32 %v7133_v63, %v7130_v44  ;;  %v6887_v21 = vrot.slane %v11844_v57, 2  ;;  %vm13009_vm9 = vmmov %vm12947_vm0 }
 0x446   : > { %v6528_v25 = vrot.slane %v9055_v12, 2  ;;  %v6182_v63 = vshrl.u32 %v9055_v12, 16 }
 0x447   : > { %8652 = vmatmul.msk.bf16.vlgmr.msrb.gmra.mxu1 %vm12989_vm4, %v6171_v51  ;;  %12990 = vst [vmem:[#allocation5_spill] sm:$0xff] %v11942_v19  ;;  %v6178_v51 = vrot.slane %v6176_v28, 2  ;;  %v7126_v19 = vor.u32 %v7125_v59, %v7122_v38  ;;  %v6888_v28 = vsel %vm1790_vm3, %v6885_v42, %v6887_v21  ;;  %v7137_v42 = vshrl.u32 %v11844_v57, 16  ;;  %vm13013_vm4 = vmmov %vm12947_vm0 }
 0x448   : > { %v6529_v32 = vsel %vm1790_vm3, %v6526_v9, %v6528_v25  ;;  %v7140_v38 = vshll.u32 %v11844_v57, 16 }
 0x449   : > { %v6179_v20 = vor.u32 %v6178_v51, %v6175_v3  ;;  %v7135_v45 = vsel %vm2387_vm7, %v7126_v19, %v7134_v10  ;;  %v6185_v3 = vshll.u32 %v9055_v12, 16 }
 0x44a   : > { %v5515_v29 = vpop.f32.mrf.mxu2  ;;  %v7142_v51 = vrot.slane %v7140_v38, 3 }
 0x44b   : > { %v5714_v8 = vpop.f32.mrf.mxu3  ;;  %v5516_v43 = vadd.f32 %v5515_v29, %v5377_v34  ;;  %v7498_v34 = vrot.slane %v11950_v37, 3  ;;  %v6180_v9 = vsel %vm12995_vm5, %v6170_v7, %v6179_v20  ;;  %v7139_v29 = vrot.slane %v7137_v42, 2 }
 0x44c   : > { %v11963_v59 = vpop.f32.mrf.mxu0 }
 0x44d   : > { %v5380_v39 = vpop.f32.mrf.mxu1  ;;  %v11947_v52 = vadd.f32 %v5714_v8, %v5516_v43  ;;  %v11960_v8 = vsel %vm2756_vm8, %v7496_v41, %v7498_v34  ;;  %v6184_v41 = vrot.slane %v6182_v63, 1 }
 0x44e   : > { %12996 = vst [vmem:[#allocation7_spill] sm:$0xff] %v11960_v8  ;;  %v7143_v8 = vor.u32 %v7142_v51, %v7139_v29 }
 0x44f   : > { %12991 = vst [vmem:[#allocation6_spill] sm:$0xff] %v11947_v52  ;;  %v6889_v52 = vrot.slane %v11881_v17, 2 }
 0x450   : > { %8673 = vmatmul.msk.bf16.gmra.mxu2 %vm12992_vm12, %v6529_v32  ;;  %v7144_v63 = vsel %vm2387_vm7, %v7134_v10, %v7143_v8  ;;  %v7149_v10 = vshll.u32 %v11881_v17, 16  ;;  %vm13014_vm12 = vmmov %vm12995_vm5 }
 0x451   : > { %vm13019_vm5 = vmmov %vm12947_vm0 }
 0x452   : > { %v5518_v43 = vpop.f32.mrf.mxu2 }
 0x453   : > { %v5717_v2 = vpop.f32.mrf.mxu3  ;;  %v5519_v30 = vadd.f32 %v5518_v43, %v5380_v39  ;;  %v9056_v39 = vld [vmem:[#allocation3 + $0x28] sm:$0xff] }
 0x454   : > { %8777 = vmatmul.msk.bf16.vlgmr.msra.gmra.mxu0 %vm12993_vm13, %v7135_v45  ;;  %v6530_v32 = vrot.slane %v9056_v39, 2  ;;  %v6187_v45 = vrot.slane %v6185_v3, 2  ;;  %vm13015_vm13 = vmmov %vm12947_vm0 }
 0x455   : > { %8759 = vmatmul.msk.bf16.gmra.mxu3 %vm12994_vm2, %v6888_v28  ;;  %v11967_v19 = vadd.f32 %v5717_v2, %v5519_v30  ;;  %v5382_v44 = vpop.f32.mrf.mxu1  ;;  %v11974_v2 = vpop.f32.mrf.mxu0  ;;  %vm13018_vm2 = vmmov %vm12947_vm0 }
 0x456   : > { %12999 = vst [vmem:[#allocation23_spill] sm:$0xff] %v11974_v2  ;;  %v6531_v12 = vsel %vm1790_vm3, %v6528_v25, %v6530_v32  ;;  %v6188_v30 = vor.u32 %v6187_v45, %v6184_v41  ;;  %v7146_v41 = vshrl.u32 %v11881_v17, 16  ;;  %v6891_v17 = vrot.slane %v11911_v26, 2 }
 0x457   : > { %8653 = vmatmul.msk.bf16.gmra.mxu1 %vm12947_vm0, %v6180_v9  ;;  %12997 = vst [vmem:[#allocation17_spill] sm:$0xff] %v11967_v19  ;;  %v11969_v9 = vld [vmem:[#allocation3 + $0x48] sm:$0xff] }
 0x458   : > { %v7500_v42 = vrot.slane %v11969_v9, 3  ;;  %v6189_v25 = vsel %vm13004_vm11, %v6179_v20, %v6188_v30 }
 0x45a   : > { %v5520_v7 = vpop.f32.mrf.mxu2  ;;  %v11982_v3 = vsel %vm2756_vm8, %v7498_v34, %v7500_v42  ;;  %v6194_v34 = vshll.u32 %v9056_v39, 16 }
 0x45b   : > { %v5719_v28 = vpop.f32.mrf.mxu3  ;;  %v5521_v43 = vadd.f32 %v5520_v7, %v5382_v44  ;;  %v6890_v44 = vsel %vm1790_vm3, %v6887_v21, %v6889_v52  ;;  %13001 = vst [vmem:[#allocation24_spill] sm:$0xff] %v11982_v3  ;;  %v6191_v21 = vshrl.u32 %v9056_v39, 16  ;;  %v9057_v3 = vld [vmem:[#allocation3 + $0x30] sm:$0xff] }
 0x45c   : > { %v6532_v20 = vrot.slane %v9057_v3, 2 }
 0x45d   : > { %v11972_v57 = vadd.f32 %v5719_v28, %v5521_v43 }
 0x45e   : > { %v6533_v39 = vsel %vm1790_vm3, %v6530_v32, %v6532_v20 }
 0x45f   : > { %12998 = vst [vmem:[#allocation22_spill] sm:$0xff] %v11972_v57  ;;  %v11994_v57 = vld [vmem:[#allocation3 + $0x50] sm:$0xff] }
 0x460   : > { %8674 = vmatmul.msk.bf16.gmra.mxu2 %vm13000_vm6, %v6531_v12  ;;  %v7148_v12 = vrot.slane %v7146_v41, 2  ;;  %v7502_v41 = vrot.slane %v11994_v57, 3  ;;  %vm13020_vm6 = vmmov %vm13004_vm11 }
 0x461   : > { %v11992_v28 = vpop.f32.mrf.mxu0  ;;  %vm13028_vm11 = vmmov %vm12947_vm0 }
 0x462   : > { %v5523_v29 = vpop.f32.mrf.mxu2  ;;  %13007 = vst [vmem:[#allocation26_spill] sm:$0xff] %v11992_v28  ;;  %v6893_v28 = vrot.slane %v11925_v0, 2 }
 0x464   : > { %v5385_v38 = vpop.f32.mrf.mxu1  ;;  %8778 = vmatmul.msk.bf16.gmra.mxu0 %vm13002_vm1, %v7144_v63  ;;  %v7151_v63 = vrot.slane %v7149_v10, 3  ;;  %vm13021_vm1 = vmmov %vm12947_vm0 }
 0x465   : > { %8760 = vmatmul.msk.bf16.gmra.mxu3 %vm13003_vm14, %v6890_v44  ;;  %v5524_v51 = vadd.f32 %v5523_v29, %v5385_v38  ;;  %v6193_v38 = vrot.slane %v6191_v21, 1  ;;  %v6196_v29 = vrot.slane %v6194_v34, 2  ;;  %v6892_v34 = vsel %vm1790_vm3, %v6889_v52, %v6891_v17  ;;  %vm13026_vm14 = vmmov %vm12947_vm0 }
 0x466   : > { %v7152_v19 = vor.u32 %v7151_v63, %v7148_v12  ;;  %v7158_v52 = vshll.u32 %v11911_v26, 16 }
 0x467   : > { %8654 = vmatmul.msk.bf16.gmra.mxu1 %vm13005_vm10, %v6189_v25  ;;  %vm13029_vm10 = vmmov %vm12947_vm0 }
 0x468   : > { %v5722_v7 = vpop.f32.mrf.mxu3  ;;  %v7153_v21 = vsel %vm2387_vm7, %v7143_v8, %v7152_v19  ;;  %v7155_v8 = vshrl.u32 %v11911_v26, 16 }
 0x469   : > { %v11990_v45 = vadd.f32 %v5722_v7, %v5524_v51  ;;  %v6197_v7 = vor.u32 %v6196_v29, %v6193_v38  ;;  %v12007_v12 = vpop.f32.mrf.mxu0  ;;  %v6203_v29 = vshll.u32 %v9057_v3, 16 }
 0x46a   : > { %v5525_v44 = vpop.f32.mrf.mxu2  ;;  %13011 = vst [vmem:[#allocation29_spill] sm:$0xff] %v12007_v12 }
 0x46b   : > { %13006 = vst [vmem:[#allocation25_spill] sm:$0xff] %v11990_v45 }
 0x46c   : > { %v5387_v43 = vpop.f32.mrf.mxu1 }
 0x46d   : > { %v5526_v25 = vadd.f32 %v5525_v44, %v5387_v43  ;;  %v12005_v43 = vsel %vm2756_vm8, %v7500_v42, %v7502_v41  ;;  %v6200_v42 = vshrl.u32 %v9057_v3, 16 }
 0x46e   : > { %13010 = vst [vmem:[#allocation28_spill] sm:$0xff] %v12005_v43 }
 0x46f   : > { %v6202_v45 = vrot.slane %v6200_v42, 1 }
 0x470   : > { %v5724_v2 = vpop.f32.mrf.mxu3  ;;  %8675 = vmatmul.msk.bf16.gmra.mxu2 %vm13009_vm9, %v6533_v39  ;;  %v7157_v39 = vrot.slane %v7155_v8, 2  ;;  %vm13030_vm9 = vmmov %vm13020_vm6 }
 0x471   : > { %v11997_v51 = vadd.f32 %v5724_v2, %v5526_v25  ;;  %v6198_v2 = vsel %vm13014_vm12, %v6188_v30, %v6197_v7  ;;  %v6205_v30 = vrot.slane %v6203_v29, 2  ;;  %vm13037_vm12 = vmmov %vm12947_vm0 }
 0x472   : > { %v5528_v32 = vpop.f32.mrf.mxu2 }
 0x473   : > { %13008 = vst [vmem:[#allocation27_spill] sm:$0xff] %v11997_v51  ;;  %v6206_v3 = vor.u32 %v6205_v30, %v6202_v45 }
 0x474   : > { %v5390_v10 = vpop.f32.mrf.mxu1  ;;  %8779 = vmatmul.msk.bf16.gmra.mxu0 %vm13012_vm15, %v7153_v21  ;;  %v7160_v21 = vrot.slane %v7158_v52, 3  ;;  %v6894_v52 = vsel %vm1790_vm3, %v6891_v17, %v6893_v28  ;;  %vm13031_vm15 = vmmov %vm12947_vm0 }
 0x475   : > { %8761 = vmatmul.msk.bf16.gmra.mxu3 %vm13013_vm4, %v6892_v34  ;;  %v5529_v63 = vadd.f32 %v5528_v32, %v5390_v10  ;;  %v9058_v34 = vld [vmem:[#allocation3 + $0x38] sm:$0xff]  ;;  %v12017_v32 = vpop.f32.mrf.mxu0  ;;  %v6207_v42 = vsel %vm13020_vm6, %v6197_v7, %v6206_v3  ;;  %vm13036_vm4 = vmmov %vm12947_vm0 }
 0x476   : > { %v6534_v51 = vrot.slane %v9058_v34, 2 }
 0x477   : > { %8655 = vmatmul.msk.bf16.gmra.mxu1 %vm13015_vm13, %v6198_v2  ;;  %v7161_v2 = vor.u32 %v7160_v21, %v7157_v39  ;;  %v6209_v39 = vshrl.u32 %v9058_v34, 16  ;;  %v6212_v21 = vshll.u32 %v9058_v34, 16  ;;  %vm13038_vm13 = vmmov %vm12947_vm0 }
 0x478   : > { %v5727_v44 = vpop.f32.mrf.mxu3 }
 0x479   : > { %v12015_v38 = vadd.f32 %v5727_v44, %v5529_v63  ;;  %v6535_v63 = vsel %vm1790_vm3, %v6532_v20, %v6534_v51  ;;  %v7162_v8 = vsel %vm2387_vm7, %v7152_v19, %v7161_v2  ;;  %v7164_v20 = vshrl.u32 %v11925_v0, 16 }
 0x47a   : > { %v5530_v43 = vpop.f32.mrf.mxu2 }
 0x47b   : > { %13016 = vst [vmem:[#allocation30_spill] sm:$0xff] %v12015_v38  ;;  %v7166_v7 = vrot.slane %v7164_v20, 2 }
 0x47c   : > { %v5392_v25 = vpop.f32.mrf.mxu1 }
 0x47d   : > { %v5531_v10 = vadd.f32 %v5530_v43, %v5392_v25  ;;  %v7167_v25 = vshll.u32 %v11925_v0, 16  ;;  %v12034_v19 = vpop.f32.mrf.mxu0 }
 0x47e   : > { %13022 = vst [vmem:[#allocation32_spill] sm:$0xff] %v12034_v19 }
 0x480   : > { %v5729_v12 = vpop.f32.mrf.mxu3  ;;  %8676 = vmatmul.msk.bf16.gmra.mxu2 %vm13018_vm2, %v6535_v63  ;;  %v7169_v63 = vrot.slane %v7167_v25, 3  ;;  %vm13039_vm2 = vmmov %vm13020_vm6 }
 0x481   : > { %v12020_v26 = vadd.f32 %v5729_v12, %v5531_v10  ;;  %v12030_v12 = vld [vmem:[#allocation3 + $0x58] sm:$0xff]  ;;  %vm13045_vm6 = vmmov %vm12947_vm0 }
 0x482   : > { %v5533_v43 = vpop.f32.mrf.mxu2  ;;  %v7504_v30 = vrot.slane %v12030_v12, 3  ;;  %v7170_v38 = vor.u32 %v7169_v63, %v7166_v7  ;;  %v7173_v7 = vshrl.u32 %v11950_v37, 16  ;;  %v7176_v63 = vshll.u32 %v11950_v37, 16 }
 0x483   : > { %13017 = vst [vmem:[#allocation31_spill] sm:$0xff] %v12020_v26  ;;  %v6214_v26 = vrot.slane %v6212_v21, 2 }
 0x484   : > { %v5395_v44 = vpop.f32.mrf.mxu1  ;;  %8780 = vmatmul.msk.bf16.gmra.mxu0 %vm13019_vm5, %v7162_v8  ;;  %v7171_v25 = vsel %vm2387_vm7, %v7161_v2, %v7170_v38  ;;  %vm13041_vm5 = vmmov %vm12947_vm0 }
 0x485   : > { %8762 = vmatmul.msk.bf16.gmra.mxu3 %vm12947_vm0, %v6894_v52  ;;  %v5534_v29 = vadd.f32 %v5533_v43, %v5395_v44  ;;  %v12040_v44 = vsel %vm2756_vm8, %v7502_v41, %v7504_v30  ;;  %v9059_v52 = vld [vmem:[#allocation3 + $0x40] sm:$0xff]  ;;  %v12047_v20 = vpop.f32.mrf.mxu0 }
 0x486   : > { %13024 = vst [vmem:[#allocation34_spill] sm:$0xff] %v12040_v44  ;;  %v6536_v43 = vrot.slane %v9059_v52, 2 }
 0x487   : > { %8656 = vmatmul.msk.bf16.gmra.mxu1 %vm13021_vm1, %v6207_v42  ;;  %v6211_v42 = vrot.slane %v6209_v39, 1  ;;  %13027 = vst [vmem:[#allocation36_spill] sm:$0xff] %v12047_v20  ;;  %vm13046_vm1 = vmmov %vm12947_vm0 }
 0x488   : > { %v5732_v45 = vpop.f32.mrf.mxu3  ;;  %v6537_v34 = vsel %vm1790_vm3, %v6534_v51, %v6536_v43  ;;  %v12055_v51 = vld [vmem:[#allocation3 + $0x60] sm:$0xff] }
 0x489   : > { %v12036_v17 = vadd.f32 %v5732_v45, %v5534_v29  ;;  %v6895_v29 = vrot.slane %v11950_v37, 2 }
 0x48a   : > { %v5535_v8 = vpop.f32.mrf.mxu2 }
 0x48b   : > { %13023 = vst [vmem:[#allocation33_spill] sm:$0xff] %v12036_v17  ;;  %v6215_v17 = vor.u32 %v6214_v26, %v6211_v42  ;;  %v6896_v39 = vsel %vm1790_vm3, %v6893_v28, %v6895_v29  ;;  %v6218_v28 = vshrl.u32 %v9059_v52, 16  ;;  %v7506_v42 = vrot.slane %v12055_v51, 3 }
 0x48c   : > { %v5397_v10 = vpop.f32.mrf.mxu1 }
 0x48d   : > { %v5536_v0 = vadd.f32 %v5535_v8, %v5397_v10  ;;  %v6221_v8 = vshll.u32 %v9059_v52, 16  ;;  %v6220_v44 = vrot.slane %v6218_v28, 1  ;;  %v6897_v52 = vrot.slane %v11969_v9, 2 }
 0x490   : > { %v5734_v19 = vpop.f32.mrf.mxu3  ;;  %8677 = vmatmul.msk.bf16.gmra.mxu2 %vm13026_vm14, %v6537_v34  ;;  %v7175_v34 = vrot.slane %v7173_v7, 2  ;;  %vm13047_vm14 = vmmov %vm13039_vm2 }
 0x491   : > { %v12043_v45 = vadd.f32 %v5734_v19, %v5536_v0  ;;  %v6216_v19 = vsel %vm13030_vm9, %v6206_v3, %v6215_v17  ;;  %v12063_v3 = vsel %vm2756_vm8, %v7504_v30, %v7506_v42  ;;  %vm13053_vm9 = vmmov %vm12947_vm0 }
 0x492   : > { %v5538_v21 = vpop.f32.mrf.mxu2  ;;  %13033 = vst [vmem:[#allocation38_spill] sm:$0xff] %v12063_v3 }
 0x493   : > { %13025 = vst [vmem:[#allocation35_spill] sm:$0xff] %v12043_v45  ;;  %v6223_v45 = vrot.slane %v6221_v8, 2 }
 0x494   : > { %v5400_v41 = vpop.f32.mrf.mxu1  ;;  %8781 = vmatmul.msk.bf16.gmra.mxu0 %vm13028_vm11, %v7171_v25  ;;  %v7178_v25 = vrot.slane %v7176_v63, 3  ;;  %vm13048_vm11 = vmmov %vm12947_vm0 }
 0x495   : > { %8763 = vmatmul.msk.bf16.gmra.mxu3 %vm13029_vm10, %v6896_v39  ;;  %v5539_v10 = vadd.f32 %v5538_v21, %v5400_v41  ;;  %v12065_v41 = vpop.f32.mrf.mxu0  ;;  %v9060_v21 = vld [vmem:[#allocation3 + $0x48] sm:$0xff]  ;;  %v6224_v63 = vor.u32 %v6223_v45, %v6220_v44  ;;  %v7185_v45 = vshll.u32 %v11969_v9, 16  ;;  %vm13052_vm10 = vmmov %vm12947_vm0 }
 0x496   : > { %13034 = vst [vmem:[#allocation39_spill] sm:$0xff] %v12065_v41  ;;  %v6898_v41 = vsel %vm1790_vm3, %v6895_v29, %v6897_v52  ;;  %v12084_v29 = vld [vmem:[#allocation3 + $0x68] sm:$0xff] }
 0x497   : > { %8657 = vmatmul.msk.bf16.gmra.mxu1 %vm13031_vm15, %v6216_v19  ;;  %v6538_v19 = vrot.slane %v9060_v21, 2  ;;  %v6225_v8 = vsel %vm13039_vm2, %v6215_v17, %v6224_v63  ;;  %v7508_v17 = vrot.slane %v12084_v29, 3  ;;  %vm13054_vm15 = vmmov %vm12947_vm0 }
 0x498   : > { %v5737_v26 = vpop.f32.mrf.mxu3 }
 0x499   : > { %v12059_v2 = vadd.f32 %v5737_v26, %v5539_v10  ;;  %v7179_v10 = vor.u32 %v7178_v25, %v7175_v34  ;;  %v6539_v7 = vsel %vm1790_vm3, %v6536_v43, %v6538_v19  ;;  %v7182_v43 = vshrl.u32 %v11969_v9, 16 }
 0x49a   : > { %v5540_v39 = vpop.f32.mrf.mxu2  ;;  %v6227_v25 = vshrl.u32 %v9060_v21, 16 }
 0x49b   : > { %13032 = vst [vmem:[#allocation37_spill] sm:$0xff] %v12059_v2  ;;  %v7180_v3 = vsel %vm2387_vm7, %v7170_v38, %v7179_v10 }
 0x49c   : > { %v5402_v0 = vpop.f32.mrf.mxu1 }
 0x49d   : > { %v5541_v37 = vadd.f32 %v5540_v39, %v5402_v0  ;;  %v12077_v34 = vpop.f32.mrf.mxu0  ;;  %v7184_v39 = vrot.slane %v7182_v43, 2 }
 0x49e   : > { %13040 = vst [vmem:[#allocation41_spill] sm:$0xff] %v12077_v34  ;;  %v12088_v34 = vsel %vm2756_vm8, %v7506_v42, %v7508_v17 }
 0x49f   : > { %13043 = vst [vmem:[#allocation43_spill] sm:$0xff] %v12088_v34 }
 0x4a0   : > { %v5739_v26 = vpop.f32.mrf.mxu3  ;;  %8678 = vmatmul.msk.bf16.gmra.mxu2 %vm13036_vm4, %v6539_v7  ;;  %v9061_v7 = vld [vmem:[#allocation3 + $0x50] sm:$0xff]  ;;  %vm13055_vm4 = vmmov %vm13039_vm2 }
 0x4a1   : > { %v12068_v2 = vadd.f32 %v5739_v26, %v5541_v37  ;;  %v7187_v37 = vrot.slane %v7185_v45, 3  ;;  %vm13060_vm2 = vmmov %vm12947_vm0 }
 0x4a2   : > { %v5543_v28 = vpop.f32.mrf.mxu2 }
 0x4a3   : > { %13035 = vst [vmem:[#allocation40_spill] sm:$0xff] %v12068_v2  ;;  %v7188_v9 = vor.u32 %v7187_v37, %v7184_v39  ;;  %v7194_v37 = vshll.u32 %v11994_v57, 16 }
 0x4a4   : > { %v5405_v30 = vpop.f32.mrf.mxu1  ;;  %8782 = vmatmul.msk.bf16.gmra.mxu0 %vm13037_vm12, %v7180_v3  ;;  %v6230_v3 = vshll.u32 %v9060_v21, 16  ;;  %vm13056_vm12 = vmmov %vm12947_vm0 }
 0x4a5   : > { %8764 = vmatmul.msk.bf16.gmra.mxu3 %vm13038_vm13, %v6898_v41  ;;  %v5544_v0 = vadd.f32 %v5543_v28, %v5405_v30  ;;  %v6540_v30 = vrot.slane %v9061_v7, 2  ;;  %v6229_v28 = vrot.slane %v6227_v25, 1  ;;  %v7189_v25 = vsel %vm2387_vm7, %v7179_v10, %v7188_v9  ;;  %v12107_v10 = vld [vmem:[#allocation3 + $0x70] sm:$0xff]  ;;  %vm13059_vm13 = vmmov %vm12947_vm0 }
 0x4a7   : > { %8658 = vmatmul.msk.bf16.gmra.mxu1 %vm13041_vm5, %v6225_v8  ;;  %v6232_v8 = vrot.slane %v6230_v3, 2  ;;  %v6541_v43 = vsel %vm1790_vm3, %v6538_v19, %v6540_v30  ;;  %v7191_v19 = vshrl.u32 %v11994_v57, 16  ;;  %vm13061_vm5 = vmmov %vm12947_vm0 }
 0x4a8   : > { %v5742_v44 = vpop.f32.mrf.mxu3 }
 0x4a9   : > { %v12082_v38 = vadd.f32 %v5742_v44, %v5544_v0  ;;  %v6899_v44 = vrot.slane %v11994_v57, 2  ;;  %v6233_v45 = vor.u32 %v6232_v8, %v6229_v28  ;;  %v6239_v28 = vshll.u32 %v9061_v7, 16 }
 0x4aa   : > { %v5545_v26 = vpop.f32.mrf.mxu2 }
 0x4ab   : > { %13042 = vst [vmem:[#allocation42_spill] sm:$0xff] %v12082_v38  ;;  %v12091_v38 = vpop.f32.mrf.mxu0  ;;  %v6900_v3 = vsel %vm1790_vm3, %v6897_v52, %v6899_v44  ;;  %v6236_v52 = vshrl.u32 %v9061_v7, 16  ;;  %v6241_v34 = vrot.slane %v6239_v28, 2  ;;  %v6901_v7 = vrot.slane %v12030_v12, 2 }
 0x4ac   : > { %v5407_v41 = vpop.f32.mrf.mxu1 }
 0x4ad   : > { %v5546_v2 = vadd.f32 %v5545_v26, %v5407_v41  ;;  %v6234_v41 = vsel %vm13047_vm14, %v6224_v63, %v6233_v45  ;;  %vm13067_vm14 = vmmov %vm13046_vm1 }
 0x4b0   : > { %v5744_v0 = vpop.f32.mrf.mxu3  ;;  %8679 = vmatmul.msk.bf16.gmra.mxu2 %vm12947_vm0, %v6541_v43  ;;  %v7193_v43 = vrot.slane %v7191_v19, 2  ;;  %vm13062_vm0 = vmmov %vm13055_vm4 }
 0x4b1   : > { %v12093_v21 = vadd.f32 %v5744_v0, %v5546_v2 }
 0x4b2   : > { %v5548_v42 = vpop.f32.mrf.mxu2 }
 0x4b3   : > { %13044 = vst [vmem:[#allocation44_spill] sm:$0xff] %v12093_v21  ;;  %v12109_v8 = vpop.f32.mrf.mxu0 }
 0x4b4   : > { %v5410_v20 = vpop.f32.mrf.mxu1  ;;  %8783 = vmatmul.msk.bf16.gmra.mxu0 %vm13045_vm6, %v7189_v25  ;;  %13050 = vst [vmem:[#allocation46_spill] sm:$0xff] %v12109_v8  ;;  %v7196_v25 = vrot.slane %v7194_v37, 3  ;;  %v6113_v8 = vadd.f32 %v11370_v47, %v11454_v62  ;;  %v7200_v47 = vshrl.u32 %v12030_v12, 16  ;;  %v7203_v62 = vshll.u32 %v12030_v12, 16  ;;  %vm13064_vm6 = vmmov %vm13046_vm1 }
 0x4b5   : > { %8765 = vmatmul.msk.bf16.gmra.mxu3 %vm13046_vm1, %v6900_v3  ;;  %v5549_v39 = vadd.f32 %v5548_v42, %v5410_v20  ;;  %v7510_v20 = vrot.slane %v12107_v10, 3  ;;  %v9062_v3 = vld [vmem:[#allocation3 + $0x58] sm:$0xff] }
 0x4b6   : > { %v6542_v42 = vrot.slane %v9062_v3, 2 }
 0x4b7   : > { %8659 = vmatmul.msk.bf16.gmra.mxu1 %vm13048_vm11, %v6234_v41  ;;  %v6238_v41 = vrot.slane %v6236_v52, 1  ;;  %v12113_v57 = vsel %vm2756_vm8, %v7508_v17, %v7510_v20  ;;  %v6902_v17 = vsel %vm1790_vm3, %v6899_v44, %v6901_v7  ;;  %v12134_v44 = vld [vmem:[#allocation3 + $0x78] sm:$0xff]  ;;  %vm13068_vm11 = vmmov %vm13046_vm1 }
 0x4b8   : > { %v5747_v2 = vpop.f32.mrf.mxu3  ;;  %13051 = vst [vmem:[#allocation47_spill] sm:$0xff] %v12113_v57  ;;  %v6543_v19 = vsel %vm1790_vm3, %v6540_v30, %v6542_v42 }
 0x4b9   : > { %v12105_v26 = vadd.f32 %v5747_v2, %v5549_v39  ;;  %v7197_v39 = vor.u32 %v7196_v25, %v7193_v43  ;;  %v6242_v37 = vor.u32 %v6241_v34, %v6238_v41  ;;  %v6114_v41 = vadd.f32 %v11421_v18, %v11494_v60 }
 0x4ba   : > { %v5550_v63 = vpop.f32.mrf.mxu2  ;;  %v6903_v18 = vrot.slane %v12055_v51, 2 }
 0x4bb   : > { %13049 = vst [vmem:[#allocation45_spill] sm:$0xff] %v12105_v26  ;;  %v7198_v28 = vsel %vm2387_vm7, %v7188_v9, %v7197_v39  ;;  %v6243_v34 = vsel %vm13055_vm4, %v6233_v45, %v6242_v37  ;;  %v7205_v45 = vrot.slane %v7203_v62, 3  ;;  %v12148_v62 = vld [vmem:[#allocation3 + $0x80] sm:$0xff]  ;;  %vm13076_vm4 = vmmov %vm13046_vm1 }
 0x4bc   : > { %v5412_v0 = vpop.f32.mrf.mxu1 }
 0x4bd   : > { %v5551_v21 = vadd.f32 %v5550_v63, %v5412_v0  ;;  %v12124_v0 = vpop.f32.mrf.mxu0  ;;  %v6248_v63 = vshll.u32 %v9062_v3, 16 }
 0x4bf   : > { %v6250_v12 = vrot.slane %v6248_v63, 2 }
 0x4c0   : > { %v5749_v2 = vpop.f32.mrf.mxu3  ;;  %8680 = vmatmul.msk.bf16.gmra.mxu2 %vm13052_vm10, %v6543_v19  ;;  %v7202_v19 = vrot.slane %v7200_v47, 2  ;;  %vm13069_vm10 = vmmov %vm13062_vm0 }
 0x4c1   : > { %v12116_v26 = vadd.f32 %v5749_v2, %v5551_v21 }
 0x4c2   : > { %v6626_v21 = vpop.f32.mrf.mxu2  ;;  %v7206_v57 = vor.u32 %v7205_v45, %v7202_v19  ;;  %v12729_v19 = vrot.slane %v12148_v62, 3 }
 0x4c4   : > { %v6391_v52 = vpop.f32.mrf.mxu1  ;;  %8784 = vmatmul.msk.bf16.gmra.mxu0 %vm13053_vm9, %v7198_v28  ;;  %v7207_v63 = vsel %vm2387_vm7, %v7197_v39, %v7206_v57  ;;  %v7209_v39 = vshrl.u32 %v12055_v51, 16  ;;  %vm13070_vm9 = vmmov %vm13046_vm1 }
 0x4c5   : > { %v6481_v43 = vadd.f32 %v6391_v52, %v6113_v8  ;;  %8766 = vmatmul.msk.bf16.gmra.mxu3 %vm13054_vm15, %v6902_v17  ;;  %v6245_v8 = vshrl.u32 %v9062_v3, 16  ;;  %v7512_v52 = vrot.slane %v12134_v44, 3  ;;  %vm13075_vm15 = vmmov %vm13046_vm1 }
 0x4c7   : > { %8660 = vmatmul.msk.bf16.gmra.mxu1 %vm13056_vm12, %v6243_v34  ;;  %v6716_v30 = vadd.f32 %v6626_v21, %v6481_v43  ;;  %v9063_v43 = vld [vmem:[#allocation3 + $0x60] sm:$0xff]  ;;  %v6247_v34 = vrot.slane %v6245_v8, 1  ;;  %vm13077_vm12 = vmmov %vm13046_vm1 }
 0x4c8   : > { %v6987_v25 = vpop.f32.mrf.mxu3  ;;  %v6544_v21 = vrot.slane %v9063_v43, 2 }
 0x4c9   : > { %v12132_v9 = vadd.f32 %v6987_v25, %v6716_v30  ;;  %v12140_v30 = vsel %vm2756_vm8, %v7510_v20, %v7512_v52  ;;  %v12142_v25 = vpop.f32.mrf.mxu0  ;;  %v6115_v20 = vadd.f32 %v11486_v55, %v11539_v58 }
 0x4ca   : > { %v6628_v17 = vpop.f32.mrf.mxu2  ;;  %13058 = vst [vmem:[#allocation49_spill] sm:$0xff] %v12140_v30  ;;  %v6545_v47 = vsel %vm1790_vm3, %v6542_v42, %v6544_v21 }
 0x4cb   : > { %13057 = vst [vmem:[#allocation48_spill] sm:$0xff] %v12132_v9 }
 0x4cc   : > { %v6393_v2 = vpop.f32.mrf.mxu1 }
 0x4cd   : > { %v6482_v28 = vadd.f32 %v6393_v2, %v6114_v41  ;;  %v6251_v41 = vor.u32 %v6250_v12, %v6247_v34  ;;  %v6904_v2 = vsel %vm1790_vm3, %v6901_v7, %v6903_v18  ;;  %v7212_v7 = vshll.u32 %v12055_v51, 16 }
 0x4ce   : > { %v6254_v12 = vshrl.u32 %v9063_v43, 16 }
 0x4cf   : > { %v6717_v3 = vadd.f32 %v6628_v17, %v6482_v28  ;;  %v12162_v28 = vsel %vm2756_vm8, %v7512_v52, %v12729_v19  ;;  %v7211_v52 = vrot.slane %v7209_v39, 2 }
 0x4d0   : > { %v6989_v9 = vpop.f32.mrf.mxu3  ;;  %8681 = vmatmul.msk.bf16.gmra.mxu2 %vm13059_vm13, %v6545_v47  ;;  %13063 = vst [vmem:[#allocation50_spill] sm:$0xff] %v12162_v28  ;;  %vm13078_vm13 = vmmov %vm13062_vm0 }
 0x4d1   : > { %v12145_v60 = vadd.f32 %v6989_v9, %v6717_v3  ;;  %v6252_v9 = vsel %vm13062_vm0, %v6242_v37, %v6251_v41  ;;  %v12167_v17 = vpop.f32.mrf.mxu0  ;;  %v6257_v3 = vshll.u32 %v9063_v43, 16  ;;  %v6116_v37 = vadd.f32 %v11523_v53, %v11604_v23  ;;  %vm13082_vm0 = vmmov %vm13046_vm1 }
 0x4d2   : > { %v6631_v42 = vpop.f32.mrf.mxu2  ;;  %v6117_v23 = vadd.f32 %v11577_v13, %v11615_v5  ;;  %v7113_v13 = vld [vmem:[#allocation3 + $0xa0] sm:$0x7] }
 0x4d4   : > { %v6396_v8 = vpop.f32.mrf.mxu1  ;;  %8785 = vmatmul.msk.bf16.gmra.mxu0 %vm13060_vm2, %v7207_v63  ;;  %vm13080_vm2 = vmmov %vm13046_vm1 }
 0x4d5   : > { %v6483_v45 = vadd.f32 %v6396_v8, %v6115_v20  ;;  %8767 = vmatmul.msk.bf16.gmra.mxu3 %vm13061_vm5, %v6904_v2  ;;  %v7214_v20 = vrot.slane %v7212_v7, 3  ;;  %v9064_v2 = vld [vmem:[#allocation3 + $0x68] sm:$0xff]  ;;  %vm13081_vm5 = vmmov %vm13046_vm1 }
 0x4d7   : > { %8661 = vmatmul.msk.bf16.gmra.mxu1 %vm13064_vm6, %v6252_v9  ;;  %v6718_v55 = vadd.f32 %v6631_v42, %v6483_v45  ;;  %v6546_v45 = vrot.slane %v9064_v2, 2  ;;  %v6256_v42 = vrot.slane %v6254_v12, 1  ;;  %v6259_v9 = vrot.slane %v6257_v3, 2  ;;  %vm13083_vm6 = vmmov %vm13069_vm10 }
 0x4d8   : > { %v6992_v58 = vpop.f32.mrf.mxu3  ;;  %v7215_v51 = vor.u32 %v7214_v20, %v7211_v52  ;;  %v12194_v52 = vld [vmem:[#allocation3 + $0x98] sm:$0xff] }
 0x4d9   : > { %v12169_v34 = vadd.f32 %v6992_v58, %v6718_v55  ;;  %v6905_v55 = vrot.slane %v12084_v29, 2  ;;  %v6547_v43 = vsel %vm1790_vm3, %v6544_v21, %v6546_v45  ;;  %v6260_v30 = vor.u32 %v6259_v9, %v6256_v42  ;;  %v12178_v53 = vpop.f32.mrf.mxu0 }
 0x4da   : > { %v6633_v63 = vpop.f32.mrf.mxu2  ;;  %v7216_v7 = vsel %vm2387_vm7, %v7206_v57, %v7215_v51  ;;  %v7218_v57 = vshrl.u32 %v12084_v29, 16  ;;  %v6118_v42 = vadd.f32 %v11610_v56, %v11666_v22 }
 0x4db   : > { %13065 = vst [vmem:[#allocation51_spill] sm:$0xff] %v12169_v34  ;;  %v6906_v12 = vsel %vm1790_vm3, %v6903_v18, %v6905_v55  ;;  %v6261_v21 = vsel %vm13069_vm10, %v6251_v41, %v6260_v30  ;;  %v7221_v18 = vshll.u32 %v12084_v29, 16  ;;  %v7117_v41 = vunpack.c.l.b16 %v7113_v13  ;;  %vm13087_vm10 = vmmov %vm13082_vm0 }
 0x4dc   : > { %v6398_v47 = vpop.f32.mrf.mxu1  ;;  %v7520_v29 = vrot.slane %v12194_v52, 3  ;;  %v13072_v13 = vrot.slane %v12148_v62, 3 }
 0x4dd   : > { %v6484_v8 = vadd.f32 %v6398_v47, %v6116_v37  ;;  %v12188_v37 = vld [vmem:[#allocation3 + $0x88] sm:$0xff]  ;;  %v12190_v47 = vld [vmem:[#allocation3 + $0x90] sm:$0xff] }
 0x4de   : > { %v7516_v9 = vrot.slane %v12188_v37, 3 }
 0x4df   : > { %v6719_v19 = vadd.f32 %v6633_v63, %v6484_v8  ;;  %v6263_v8 = vshrl.u32 %v9064_v2, 16  ;;  %v6266_v63 = vshll.u32 %v9064_v2, 16  ;;  %v9065_v2 = vld [vmem:[#allocation3 + $0x70] sm:$0xff] }
 0x4e0   : > { %v6994_v28 = vpop.f32.mrf.mxu3  ;;  %8682 = vmatmul.msk.bf16.gmra.mxu2 %vm13046_vm1, %v6547_v43  ;;  %v7518_v43 = vrot.slane %v12190_v47, 3  ;;  %v12210_v56 = vsel %vm2756_vm8, %v13072_v13, %v7516_v9 }
 0x4e1   : > { %v12174_v58 = vadd.f32 %v6994_v28, %v6719_v19  ;;  %v6265_v22 = vrot.slane %v6263_v8, 1 }
 0x4e2   : > { %v6636_v19 = vpop.f32.mrf.mxu2 }
 0x4e3   : > { %13066 = vst [vmem:[#allocation52_spill] sm:$0xff] %v12174_v58  ;;  %v6907_v58 = vrot.slane %v12107_v10, 2 }
 0x4e4   : > { %v6401_v39 = vpop.f32.mrf.mxu1  ;;  %8786 = vmatmul.msk.bf16.gmra.mxu0 %vm13067_vm14, %v7216_v7  ;;  %v7223_v7 = vrot.slane %v7221_v18, 3  ;;  %vm13085_vm14 = vmmov %vm13082_vm0 }
 0x4e5   : > { %v6485_v3 = vadd.f32 %v6401_v39, %v6117_v23  ;;  %8768 = vmatmul.msk.bf16.gmra.mxu3 %vm13068_vm11, %v6906_v12  ;;  %v7220_v39 = vrot.slane %v7218_v57, 2  ;;  %v12202_v12 = vpack.c.b16 %v7117_v41, %v7117_v41  ;;  %v12213_v57 = vsel %vm2756_vm8, %v7516_v9, %v7518_v43  ;;  %vm13086_vm11 = vmmov %vm13082_vm0 }
 0x4e6   : > { %v12216_v41 = vsel %vm2756_vm8, %v7518_v43, %v7520_v29  ;;  %v6119_v9 = vadd.f32 %v11648_v4, %v11679_v50  ;;  %v7227_v4 = vshrl.u32 %v12107_v10, 16  ;;  %v7230_v50 = vshll.u32 %v12107_v10, 16 }
 0x4e7   : > { %8662 = vmatmul.msk.bf16.gmra.mxu1 %vm13070_vm9, %v6261_v21  ;;  %v6720_v28 = vadd.f32 %v6636_v19, %v6485_v3  ;;  %v12205_v3 = vpop.f32.mrf.mxu0  ;;  %13073 = vst [vmem:[#allocation54_spill] sm:$0xff] %v12216_v41  ;;  %v6909_v10 = vrot.slane %v12134_v44, 2  ;;  %vm13088_vm9 = vmmov %vm13083_vm6 }
 0x4e8   : > { %v6997_v5 = vpop.f32.mrf.mxu3 }
 0x4e9   : > { %v12196_v20 = vadd.f32 %v6997_v5, %v6720_v28  ;;  %v6548_v28 = vrot.slane %v9065_v2, 2  ;;  %v6268_v5 = vrot.slane %v6266_v63, 2 }
 0x4ea   : > { %v6638_v21 = vpop.f32.mrf.mxu2 }
 0x4eb   : > { %13071 = vst [vmem:[#allocation53_spill] sm:$0xff] %v12196_v20  ;;  %v7522_v20 = vrot.slane %v12202_v12, 3  ;;  %v6549_v13 = vsel %vm1790_vm3, %v6546_v45, %v6548_v28  ;;  %v6269_v63 = vor.u32 %v6268_v5, %v6265_v22  ;;  %v6275_v5 = vshll.u32 %v9065_v2, 16 }
 0x4ec   : > { %v6403_v23 = vpop.f32.mrf.mxu1 }
 0x4ed   : > { %v6486_v19 = vadd.f32 %v6403_v23, %v6118_v42  ;;  %v7224_v42 = vor.u32 %v7223_v7, %v7220_v39  ;;  %v12224_v8 = vsel %vm2756_vm8, %v7520_v29, %v7522_v20  ;;  %v6908_v39 = vsel %vm1790_vm3, %v6905_v55, %v6907_v58  ;;  %vm13079_vm8 = vmmov %vm13046_vm1 }
 0x4ee   : > { %13074 = vst [vmem:[#allocation55_spill] sm:$0xff] %v12224_v8  ;;  %v6270_v20 = vsel %vm13078_vm13, %v6260_v30, %v6269_v63  ;;  %v6272_v55 = vshrl.u32 %v9065_v2, 16  ;;  %v7232_v30 = vrot.slane %v7230_v50, 3  ;;  %vm13084_vm1 = vmmov %vm13082_vm0 }
 0x4ef   : > { %v6721_v18 = vadd.f32 %v6638_v21, %v6486_v19  ;;  %v7225_v19 = vsel %vm2387_vm7, %v7215_v51, %v7224_v42  ;;  %v12234_v29 = vpop.f32.mrf.mxu0  ;;  %vm13092_vm13 = vmmov %vm13082_vm0 }
 0x4f0   : > { %v6999_v23 = vpop.f32.mrf.mxu3  ;;  %8683 = vmatmul.msk.bf16.gmra.mxu2 %vm13075_vm15, %v6549_v13  ;;  %v7229_v13 = vrot.slane %v7227_v4, 2  ;;  %vm13089_vm15 = vmmov %vm13082_vm0 }
 0x4f1   : > { %v12220_v34 = vadd.f32 %v6999_v23, %v6721_v18  ;;  %v6120_v18 = vadd.f32 %v11681_v35, %v11696_v40 }
 0x4f2   : > { %v6641_v45 = vpop.f32.mrf.mxu2  ;;  %v7233_v8 = vor.u32 %v7232_v30, %v7229_v13  ;;  %v7236_v13 = vshrl.u32 %v12134_v44, 16 }
 0x4f4   : > { %v6406_v43 = vpop.f32.mrf.mxu1  ;;  %8787 = vmatmul.msk.bf16.gmra.mxu0 %vm13076_vm4, %v7225_v19  ;;  %v9066_v19 = vld [vmem:[#allocation3 + $0x78] sm:$0xff]  ;;  %v7234_v50 = vsel %vm2387_vm7, %v7224_v42, %v7233_v8  ;;  %vm13090_vm4 = vmmov %vm13082_vm0 }
 0x4f5   : > { %v6487_v7 = vadd.f32 %v6406_v43, %v6119_v9  ;;  %8769 = vmatmul.msk.bf16.gmra.mxu3 %vm13077_vm12, %v6908_v39  ;;  %v6550_v39 = vrot.slane %v9066_v19, 2  ;;  %v6281_v42 = vshrl.u32 %v9066_v19, 16  ;;  %vm13091_vm12 = vmmov %vm13082_vm0 }
 0x4f7   : > { %8663 = vmatmul.msk.bf16.gmra.mxu1 %vm13079_vm8, %v6270_v20  ;;  %v6722_v21 = vadd.f32 %v6641_v45, %v6487_v7  ;;  %v6274_v7 = vrot.slane %v6272_v55, 1  ;;  %v6277_v45 = vrot.slane %v6275_v5, 2  ;;  %v6551_v35 = vsel %vm1790_vm3, %v6548_v28, %v6550_v39  ;;  %vm13093_vm8 = vmmov %vm13083_vm6 }
 0x4f8   : > { %v7002_v22 = vpop.f32.mrf.mxu3  ;;  %v6910_v55 = vsel %vm1790_vm3, %v6907_v58, %v6909_v10  ;;  %v6284_v58 = vshll.u32 %v9066_v19, 16 }
 0x4f9   : > { %v12239_v51 = vadd.f32 %v7002_v22, %v6722_v21  ;;  %v12244_v21 = vpop.f32.mrf.mxu0  ;;  %v6278_v40 = vor.u32 %v6277_v45, %v6274_v7  ;;  %v6121_v22 = vadd.f32 %v11705_v27, %v11739_v31  ;;  %v7239_v27 = vshll.u32 %v12134_v44, 16 }
 0x4fa   : > { %v6643_v43 = vpop.f32.mrf.mxu2  ;;  %v7238_v7 = vrot.slane %v7236_v13, 2 }
 0x4fc   : > { %v6408_v23 = vpop.f32.mrf.mxu1 }
 0x4fd   : > { %v6488_v9 = vadd.f32 %v6408_v23, %v6120_v18  ;;  %v6279_v18 = vsel %vm13083_vm6, %v6269_v63, %v6278_v40  ;;  %v7241_v63 = vrot.slane %v7239_v27, 3  ;;  %vm13097_vm6 = vmmov %vm13082_vm0 }
 0x4ff   : > { %v6723_v20 = vadd.f32 %v6643_v43, %v6488_v9  ;;  %v6122_v9 = vadd.f32 %v11743_v36, %v11760_v6  ;;  %v7242_v44 = vor.u32 %v7241_v63, %v7238_v7  ;;  %v6123_v36 = vadd.f32 %v11765_v14, %v11785_v11 }
 0x500   : > { %v7004_v41 = vpop.f32.mrf.mxu3  ;;  %8684 = vmatmul.msk.bf16.gmra.mxu2 %vm13080_vm2, %v6551_v35  ;;  %v9067_v35 = vld [vmem:[#allocation3 + $0x80] sm:$0xff]  ;;  %v7245_v14 = vshrl.u32 %v12148_v62, 16  ;;  %v7248_v11 = vshll.u32 %v12148_v62, 16  ;;  %v6124_v63 = vadd.f32 %v11791_v48, %v11798_v61  ;;  %vm13094_vm2 = vmmov %vm13082_vm0 }
 0x501   : > { %v12246_v2 = vadd.f32 %v7004_v41, %v6723_v20  ;;  %v12262_v30 = vpop.f32.mrf.mxu0  ;;  %v6293_v7 = vshll.u32 %v9067_v35, 16 }
 0x502   : > { %v6646_v41 = vpop.f32.mrf.mxu2 }
 0x504   : > { %v6411_v4 = vpop.f32.mrf.mxu1  ;;  %8788 = vmatmul.msk.bf16.gmra.mxu0 %vm13081_vm5, %v7234_v50  ;;  %v6286_v50 = vrot.slane %v6284_v58, 2  ;;  %vm13095_vm5 = vmmov %vm13082_vm0 }
 0x505   : > { %v6489_v5 = vadd.f32 %v6411_v4, %v6121_v22  ;;  %8770 = vmatmul.msk.bf16.gmra.mxu3 %vm13082_vm0, %v6910_v55  ;;  %v6552_v22 = vrot.slane %v9067_v35, 2  ;;  %v6283_v4 = vrot.slane %v6281_v42, 1 }
 0x507   : > { %8664 = vmatmul.msk.bf16.gmra.mxu1 %vm13084_vm1, %v6279_v18  ;;  %v6724_v28 = vadd.f32 %v6646_v41, %v6489_v5  ;;  %v6911_v41 = vrot.slane %v12148_v62, 2  ;;  %v6553_v18 = vsel %vm1790_vm3, %v6550_v39, %v6552_v22  ;;  %vm13098_vm1 = vmmov %vm13093_vm8 }
 0x508   : > { %v7007_v23 = vpop.f32.mrf.mxu3 }
 0x509   : > { %v12260_v31 = vadd.f32 %v7007_v23, %v6724_v28  ;;  %v6287_v28 = vor.u32 %v6286_v50, %v6283_v4  ;;  %v7243_v23 = vsel %vm2387_vm7, %v7233_v8, %v7242_v44  ;;  %v6912_v13 = vsel %vm1790_vm3, %v6909_v10, %v6911_v41  ;;  %v12275_v27 = vpop.f32.mrf.mxu0 }
 0x50a   : > { %v6648_v20 = vpop.f32.mrf.mxu2  ;;  %v6290_v10 = vshrl.u32 %v9067_v35, 16  ;;  %v7250_v4 = vrot.slane %v7248_v11, 3 }
 0x50b   : > { %v6288_v39 = vsel %vm13088_vm9, %v6278_v40, %v6287_v28  ;;  %vm13105_vm9 = vmmov %vm13082_vm0 }
 0x50c   : > { %v6413_v43 = vpop.f32.mrf.mxu1 }
 0x50d   : > { %v6490_v45 = vadd.f32 %v6413_v43, %v6122_v9 }
 0x50f   : > { %v6725_v55 = vadd.f32 %v6648_v20, %v6490_v45  ;;  %v7247_v20 = vrot.slane %v7245_v14, 2 }
 0x510   : > { %v7009_v5 = vpop.f32.mrf.mxu3  ;;  %8685 = vmatmul.msk.bf16.gmra.mxu2 %vm13085_vm14, %v6553_v18  ;;  %v6292_v18 = vrot.slane %v6290_v10, 1  ;;  %v7257_v10 = vshll.u32 %v12188_v37, 16  ;;  %vm13099_vm14 = vmmov %vm13082_vm0 }
 0x511   : > { %v12267_v19 = vadd.f32 %v7009_v5, %v6725_v55  ;;  %v9068_v55 = vld [vmem:[#allocation3 + $0x88] sm:$0xff]  ;;  %v7251_v62 = vor.u32 %v7250_v4, %v7247_v20  ;;  %v9069_v4 = vld [vmem:[#allocation3 + $0x90] sm:$0xff] }
 0x512   : > { %v6651_v58 = vpop.f32.mrf.mxu2  ;;  %v6554_v5 = vrot.slane %v9068_v55, 2 }
 0x514   : > { %v6416_v6 = vpop.f32.mrf.mxu1  ;;  %8789 = vmatmul.msk.bf16.gmra.mxu0 %vm13086_vm11, %v7243_v23  ;;  %v6555_v48 = vsel %vm1790_vm3, %v6552_v22, %v6554_v5  ;;  %v7254_v22 = vshrl.u32 %v12188_v37, 16  ;;  %vm13102_vm11 = vmmov %vm13082_vm0 }
 0x515   : > { %v6491_v42 = vadd.f32 %v6416_v6, %v6123_v36  ;;  %8771 = vmatmul.msk.bf16.gmra.mxu3 %vm13087_vm10, %v6912_v13  ;;  %v6295_v36 = vrot.slane %v6293_v7, 2  ;;  %v12287_v6 = vpop.f32.mrf.mxu0  ;;  %vm13104_vm10 = vmmov %vm13082_vm0 }
 0x517   : > { %8665 = vmatmul.msk.bf16.gmra.mxu1 %vm13089_vm15, %v6288_v39  ;;  %v6726_v9 = vadd.f32 %v6651_v58, %v6491_v42  ;;  %v6913_v42 = vrot.slane %v12188_v37, 2  ;;  %v6296_v61 = vor.u32 %v6295_v36, %v6292_v18  ;;  %v6125_v58 = vadd.f32 %v11812_v15, %v11814_v33  ;;  %vm13106_vm15 = vmmov %vm13098_vm1 }
 0x518   : > { %v7012_v43 = vpop.f32.mrf.mxu3  ;;  %v6299_v33 = vshrl.u32 %v9068_v55, 16  ;;  %v6915_v36 = vrot.slane %v12190_v47, 2 }
 0x519   : > { %v12283_v8 = vadd.f32 %v7012_v43, %v6726_v9  ;;  %v7252_v9 = vsel %vm2387_vm7, %v7242_v44, %v7251_v62  ;;  %v6914_v43 = vsel %vm1790_vm3, %v6911_v41, %v6913_v42  ;;  %v6297_v11 = vsel %vm13093_vm8, %v6287_v28, %v6296_v61  ;;  %vm13113_vm8 = vmmov %vm13098_vm1 }
 0x51a   : > { %v6653_v40 = vpop.f32.mrf.mxu2  ;;  %v6302_v44 = vshll.u32 %v9068_v55, 16  ;;  %v6126_v41 = vadd.f32 %v11822_v1, %v11820_v24  ;;  %v6556_v28 = vrot.slane %v9069_v4, 2  ;;  %v13096_v24 = vld [vmem:[#allocation9_spill] sm:$0xff] }
 0x51b   : > { %v6127_v1 = vadd.f32 %v13096_v24, %v11837_v54  ;;  %v7266_v54 = vshll.u32 %v12190_v47, 16  ;;  %v6917_v24 = vrot.slane %v12194_v52, 2 }
 0x51c   : > { %v6418_v45 = vpop.f32.mrf.mxu1  ;;  %v6557_v37 = vsel %vm1790_vm3, %v6554_v5, %v6556_v28 }
 0x51d   : > { %v6492_v50 = vadd.f32 %v6418_v45, %v6124_v63  ;;  %v12306_v15 = vpop.f32.mrf.mxu0  ;;  %v7256_v63 = vrot.slane %v7254_v22, 2  ;;  %v7259_v45 = vrot.slane %v7257_v10, 3  ;;  %v6308_v10 = vshrl.u32 %v9069_v4, 16 }
 0x51f   : > { %v6727_v23 = vadd.f32 %v6653_v40, %v6492_v50  ;;  %v6301_v50 = vrot.slane %v6299_v33, 1  ;;  %v6304_v40 = vrot.slane %v6302_v44, 2  ;;  %v7260_v18 = vor.u32 %v7259_v45, %v7256_v63  ;;  %v13100_v33 = vld [vmem:[#allocation12_spill] sm:$0xff] }
 0x520   : > { %v7014_v13 = vpop.f32.mrf.mxu3  ;;  %8686 = vmatmul.msk.bf16.gmra.mxu2 %vm13090_vm4, %v6555_v48  ;;  %v7268_v63 = vrot.slane %v7266_v54, 3  ;;  %vm13107_vm4 = vmmov %vm13082_vm0 }
 0x521   : > { %v12290_v35 = vadd.f32 %v7014_v13, %v6727_v23  ;;  %v6305_v23 = vor.u32 %v6304_v40, %v6301_v50  ;;  %v6149_v13 = vld [vmem:[#allocation3 + $0x98] sm:$0x3]  ;;  %v6310_v40 = vrot.slane %v6308_v10, 1  ;;  %v7275_v10 = vshll.u32 %v12194_v52, 16 }
 0x522   : > { %v6153_v5 = vunpack.c.l.b16 %v6149_v13 }
 0x524   : > { %v6421_v39 = vpop.f32.mrf.mxu1  ;;  %8790 = vmatmul.msk.bf16.gmra.mxu0 %vm13091_vm12, %v7252_v9  ;;  %v6154_v22 = vpack.c.b16 %v6153_v5, %v6153_v5  ;;  %v6918_v5 = vsel %vm1790_vm3, %v6915_v36, %v6917_v24  ;;  %vm13111_vm12 = vmmov %vm13082_vm0 }
 0x525   : > { %v12298_v14 = vadd.f32 %v6421_v39, %v6125_v58  ;;  %8772 = vmatmul.msk.bf16.gmra.mxu3 %vm13092_vm13, %v6914_v43  ;;  %v12315_v55 = vpop.f32.mrf.mxu0  ;;  %v7261_v58 = vsel %vm2387_vm7, %v7251_v62, %v7260_v18  ;;  %v6916_v39 = vsel %vm1790_vm3, %v6913_v42, %v6915_v36  ;;  %v6306_v43 = vsel %vm13098_vm1, %v6296_v61, %v6305_v23  ;;  %v13101_v42 = vld [vmem:[#allocation13_spill] sm:$0xff]  ;;  %vm13112_vm13 = vmmov %vm13082_vm0 }
 0x526   : > { %v6311_v62 = vshll.u32 %v9069_v4, 16  ;;  %v6128_v44 = vadd.f32 %v13101_v42, %v13100_v33  ;;  %v6558_v61 = vrot.slane %v6154_v22, 2  ;;  %v13103_v4 = vld [vmem:[#allocation10_spill] sm:$0xff]  ;;  %v6320_v36 = vshll.u32 %v6154_v22, 16  ;;  %v13108_v33 = vld [vmem:[#allocation20_spill] sm:$0xff]  ;;  %vm13141_vm1 = vmmov %vm13082_vm0 }
 0x527   : > { %8666 = vmatmul.msk.bf16.gmra.mxu1 %vm13094_vm2, %v6297_v11  ;;  %v7263_v11 = vshrl.u32 %v12190_v47, 16  ;;  %v13109_v42 = vld [vmem:[#allocation14_spill] sm:$0xff]  ;;  %vm13114_vm2 = vmmov %vm13082_vm0 }
 0x528   : > { %v6559_v47 = vsel %vm1790_vm3, %v6556_v28, %v6558_v61 }
 0x52c   : > { %v6423_v7 = vpop.f32.mrf.mxu1 }
 0x52d   : > { %v12310_v20 = vadd.f32 %v6423_v7, %v6126_v41  ;;  %v7265_v7 = vrot.slane %v7263_v11, 2  ;;  %v12331_v45 = vpop.f32.mrf.mxu0  ;;  %v6788_v11 = vld [vmem:[#allocation3 + $0xa0] sm:$0x3] }
 0x52f   : > { %v7269_v13 = vor.u32 %v7268_v63, %v7265_v7  ;;  %v7277_v63 = vrot.slane %v7275_v10, 3  ;;  %v7281_v10 = vshrl.u32 %v12202_v12, 16 }
 0x530   : > { %8687 = vmatmul.msk.bf16.gmra.mxu2 %vm13095_vm5, %v6557_v37  ;;  %v6313_v37 = vrot.slane %v6311_v62, 2  ;;  %v6317_v62 = vshrl.u32 %v6154_v22, 16  ;;  %vm13119_vm5 = vmmov %vm13082_vm0 }
 0x534   : > { %v6426_v48 = vpop.f32.mrf.mxu1  ;;  %8791 = vmatmul.msk.bf16.gmra.mxu0 %vm13082_vm0, %v7261_v58 }
 0x535   : > { %v12321_v9 = vadd.f32 %v6426_v48, %v6127_v1  ;;  %8773 = vmatmul.msk.bf16.gmra.mxu3 %vm13097_vm6, %v6916_v39  ;;  %v6314_v1 = vor.u32 %v6313_v37, %v6310_v40  ;;  %v6129_v48 = vadd.f32 %v11891_v46, %v13103_v4  ;;  %v7270_v39 = vsel %vm2387_vm7, %v7260_v18, %v7269_v13  ;;  %v12347_v54 = vpop.f32.mrf.mxu0  ;;  %vm13135_vm6 = vmmov %vm13082_vm0 }
 0x536   : > { %v7272_v46 = vshrl.u32 %v12194_v52, 16  ;;  %v6864_v18 = vunpack.c.l.b16 %v6788_v11  ;;  %v6322_v37 = vrot.slane %v6320_v36, 2  ;;  %v13110_v52 = vld [vmem:[#allocation21_spill] sm:$0xff]  ;;  %v7283_v36 = vrot.slane %v7281_v10, 2 }
 0x537   : > { %8667 = vmatmul.msk.bf16.gmra.mxu1 %vm13099_vm14, %v6306_v43  ;;  %v6315_v28 = vsel %vm13106_vm15, %v6305_v23, %v6314_v1  ;;  %v6319_v23 = vrot.slane %v6317_v62, 1  ;;  %v13115_v62 = vld [vmem:[#allocation16_spill] sm:$0xff]  ;;  %v13127_v10 = vld [vmem:[#allocation29_spill] sm:$0xff]  ;;  %vm13146_vm14 = vmmov %vm13082_vm0 }
 0x538   : > { %v7274_v7 = vrot.slane %v7272_v46, 2  ;;  %v6883_v61 = vpack.c.b16 %v6864_v18, %v6864_v18  ;;  %v7284_v18 = vshll.u32 %v12202_v12, 16 }
 0x53a   : > { %v6919_v4 = vrot.slane %v6883_v61, 2 }
 0x53c   : > { %v6428_v41 = vpop.f32.mrf.mxu1  ;;  %v6920_v11 = vsel %vm1790_vm3, %v6917_v24, %v6919_v4  ;;  %vm13117_vm3 = vmmov %vm13082_vm0 }
 0x53d   : > { %v12333_v50 = vadd.f32 %v6428_v41, %v6128_v44  ;;  %v6130_v44 = vadd.f32 %v13109_v42, %v13108_v33  ;;  %v7286_v33 = vrot.slane %v7284_v18, 3 }
 0x540   : > { %8688 = vmatmul.msk.bf16.gmra.mxu2 %vm13102_vm11, %v6559_v47  ;;  %v7278_v47 = vor.u32 %v7277_v63, %v7274_v7  ;;  %vm13150_vm11 = vmmov %vm13082_vm0 }
 0x544   : > { %v6431_v58 = vpop.f32.mrf.mxu1  ;;  %8792 = vmatmul.msk.bf16.gmra.mxu0 %vm13104_vm10, %v7270_v39  ;;  %v6131_v39 = vadd.f32 %v11928_v16, %v13110_v52  ;;  %vm13154_vm10 = vmmov %vm13082_vm0 }
 0x545   : > { %v12342_v43 = vadd.f32 %v6431_v58, %v6129_v48  ;;  %8774 = vmatmul.msk.bf16.gmra.mxu3 %vm13105_vm9, %v6918_v5  ;;  %v12356_v48 = vpop.f32.mrf.mxu0  ;;  %v6323_v58 = vor.u32 %v6322_v37, %v6319_v23  ;;  %v7279_v5 = vsel %vm2387_vm7, %v7269_v13, %v7278_v47  ;;  %v6132_v13 = vadd.f32 %v11944_v49, %v13115_v62  ;;  %v13118_v23 = vld [vmem:[#allocation8_spill] sm:$0xff]  ;;  %v13120_v49 = vld [vmem:[#allocation6_spill] sm:$0xff]  ;;  %v13121_v37 = vld [vmem:[#allocation23_spill] sm:$0xff] }
 0x546   : > { %v6134_v4 = vadd.f32 %v13121_v37, %v13120_v49  ;;  %v13132_v37 = vld [vmem:[#allocation30_spill] sm:$0xff]  ;;  %vm13157_vm9 = vmmov %vm13082_vm0 }
 0x547   : > { %8668 = vmatmul.msk.bf16.gmra.mxu1 %vm13107_vm4, %v6315_v28  ;;  %v6324_v46 = vsel %vm13113_vm8, %v6314_v1, %v6323_v58  ;;  %vm13158_vm4 = vmmov %vm13082_vm0 }
 0x548   : > { %vm13162_vm8 = vmmov %vm13082_vm0 }
 0x54c   : > { %v6433_v41 = vpop.f32.mrf.mxu1 }
 0x54d   : > { %v12354_v40 = vadd.f32 %v6433_v41, %v6130_v44  ;;  %v12370_v16 = vpop.f32.mrf.mxu0  ;;  %v7287_v44 = vor.u32 %v7286_v33, %v7283_v36  ;;  %v13116_v41 = vld [vmem:[#allocation5_spill] sm:$0xff] }
 0x54e   : > { %v6133_v1 = vadd.f32 %v11963_v59, %v13116_v41  ;;  %v13123_v59 = vld [vmem:[#allocation26_spill] sm:$0xff]  ;;  %v13129_v41 = vld [vmem:[#allocation19_spill] sm:$0xff] }
 0x54f   : > { %v7288_v63 = vsel %vm2387_vm7, %v7278_v47, %v7287_v44  ;;  %vm13125_vm7 = vmmov %vm13082_vm0 }
 0x554   : > { %v6436_v22 = vpop.f32.mrf.mxu1  ;;  %8793 = vmatmul.msk.bf16.gmra.mxu0 %vm13111_vm12, %v7279_v5 }
 0x555   : > { %v12362_v28 = vadd.f32 %v6436_v22, %v6131_v39  ;;  %8775 = vmatmul.msk.bf16.gmra.mxu3 %vm13112_vm13, %v6920_v11  ;;  %v12379_v61 = vpop.f32.mrf.mxu0  ;;  %v13122_v39 = vld [vmem:[#allocation17_spill] sm:$0xff]  ;;  %v13124_v11 = vld [vmem:[#allocation11_spill] sm:$0xff]  ;;  %vm13160_vm13 = vmmov %vm13082_vm0 }
 0x556   : > { %v6135_v22 = vadd.f32 %v13123_v59, %v13122_v39 }
 0x557   : > { %8669 = vmatmul.msk.bf16.gmra.mxu1 %vm13114_vm2, %v6324_v46  ;;  %v13126_v46 = vld [vmem:[#allocation22_spill] sm:$0xff] }
 0x558   : > { %v6136_v18 = vadd.f32 %v13127_v10, %v13126_v46 }
 0x55c   : > { %v6438_v24 = vpop.f32.mrf.mxu1 }
 0x55d   : > { %v12374_v42 = vadd.f32 %v6438_v24, %v6132_v13  ;;  %v13128_v24 = vld [vmem:[#allocation25_spill] sm:$0xff] }
 0x55e   : > { %v6137_v36 = vadd.f32 %v12017_v32, %v13128_v24  ;;  %v13136_v32 = vld [vmem:[#allocation31_spill] sm:$0xff] }
 0x564   : > { %v6441_v7 = vpop.f32.mrf.mxu1  ;;  %8794 = vmatmul.msk.bf16.gmra.mxu0 %vm13117_vm3, %v7288_v63  ;;  %vm13164_vm3 = vmmov %vm13082_vm0 }
 0x565   : > { %v12381_v12 = vadd.f32 %v6441_v7, %v6133_v1  ;;  %v13130_v1 = vld [vmem:[#allocation27_spill] sm:$0xff]  ;;  %v13131_v7 = vld [vmem:[#allocation32_spill] sm:$0xff] }
 0x566   : > { %v6138_v63 = vadd.f32 %v13131_v7, %v13130_v1  ;;  %v13142_v1 = vld [vmem:[#allocation35_spill] sm:$0xff] }
 0x567   : > { %8796 = vmatmul.msk.bf16.vlgmr.msra.gmra.mxu1 %vm13119_vm5, %v13118_v23  ;;  %v6142_v7 = vadd.f32 %v12091_v38, %v13142_v1  ;;  %v13151_v1 = vld [vmem:[#allocation44_spill] sm:$0xff] }
 0x56c   : > { %v6443_v58 = vpop.f32.mrf.mxu1 }
 0x56d   : > { %v12388_v52 = vadd.f32 %v6443_v58, %v6134_v4  ;;  %v13133_v4 = vld [vmem:[#allocation36_spill] sm:$0xff] }
 0x56e   : > { %v6139_v58 = vadd.f32 %v13133_v4, %v13132_v37  ;;  %v13143_v37 = vld [vmem:[#allocation37_spill] sm:$0xff]  ;;  %v13144_v4 = vld [vmem:[#allocation46_spill] sm:$0xff] }
 0x574   : > { %v6446_v5 = vpop.f32.mrf.mxu1 }
 0x575   : > { %v12392_v47 = vadd.f32 %v6446_v5, %v6135_v22  ;;  %v13134_v22 = vld [vmem:[#allocation15_spill] sm:$0xff] }
 0x576   : > { %v13137_v5 = vld [vmem:[#allocation39_spill] sm:$0xff] }
 0x577   : > { %8797 = vmatmul.msk.bf16.gmra.mxu1 %vm13125_vm7, %v13124_v11  ;;  %v6140_v11 = vadd.f32 %v13137_v5, %v13136_v32  ;;  %v13145_v32 = vld [vmem:[#allocation7_spill] sm:$0xff]  ;;  %v13147_v5 = vld [vmem:[#allocation40_spill] sm:$0xff]  ;;  %vm13166_vm7 = vmmov %vm13082_vm0 }
 0x57c   : > { %v6448_v62 = vpop.f32.mrf.mxu1 }
 0x57d   : > { %v12398_v13 = vadd.f32 %v6448_v62, %v6136_v18  ;;  %v13138_v18 = vld [vmem:[#allocation33_spill] sm:$0xff] }
 0x57e   : > { %v13139_v62 = vld [vmem:[#allocation41_spill] sm:$0xff] }
 0x57f   : > { %v6141_v24 = vadd.f32 %v13139_v62, %v13138_v18  ;;  %v13148_v62 = vld [vmem:[#allocation42_spill] sm:$0xff] }
 0x580   : > { %v6145_v38 = vadd.f32 %v12142_v25, %v13148_v62  ;;  %v6148_v25 = vadd.f32 %v12205_v3, %v12116_v26  ;;  %v12465_v62 = vld [vmem:[%s12706_s4] ss:$0 sm:$0xff] }
 0x584   : > { %v6451_v33 = vpop.f32.mrf.mxu1 }
 0x585   : > { %v12402_v44 = vadd.f32 %v6451_v33, %v6137_v36 }
 0x587   : > { %8798 = vmatmul.msk.bf16.gmra.mxu1 %vm13082_vm0, %v13129_v41  ;;  %v13140_v41 = vld [vmem:[#allocation18_spill] sm:$0xff] }
 0x58c   : > { %v6453_v23 = vpop.f32.mrf.mxu1 }
 0x58d   : > { %v12408_v49 = vadd.f32 %v6453_v23, %v6138_v63 }
 0x594   : > { %v6456_v39 = vpop.f32.mrf.mxu1 }
 0x595   : > { %v12412_v59 = vadd.f32 %v6456_v39, %v6139_v58  ;;  %v6143_v58 = vadd.f32 %v13144_v4, %v13143_v37  ;;  %v13152_v4 = vld [vmem:[#allocation45_spill] sm:$0xff] }
 0x597   : > { %8799 = vmatmul.msk.bf16.gmra.mxu1 %vm13135_vm6, %v13134_v22 }
 0x59c   : > { %v6458_v46 = vpop.f32.mrf.mxu1 }
 0x59d   : > { %v12418_v10 = vadd.f32 %v6458_v46, %v6140_v11  ;;  %v6144_v11 = vadd.f32 %v12124_v0, %v13147_v5  ;;  %v6147_v0 = vadd.f32 %v12178_v53, %v13152_v4 }
 0x5a4   : > { %v6461_v36 = vpop.f32.mrf.mxu1 }
 0x5a5   : > { %v12422_v33 = vadd.f32 %v6461_v36, %v6141_v24 }
 0x5a7   : > { %8800 = vmatmul.msk.bf16.gmra.mxu1 %vm13141_vm1, %v13140_v41  ;;  %v13149_v41 = vld [vmem:[#allocation24_spill] sm:$0xff]  ;;  %vm13168_vm1 = vmmov %vm13082_vm0 }
 0x5ac   : > { %v6463_v63 = vpop.f32.mrf.mxu1 }
 0x5ad   : > { %v12428_v23 = vadd.f32 %v6463_v63, %v6142_v7  ;;  %v6146_v7 = vadd.f32 %v12167_v17, %v13151_v1  ;;  %v7446_v1 = vadd.f32 %v12244_v21, %v12145_v60 }
 0x5b4   : > { %v6466_v39 = vpop.f32.mrf.mxu1 }
 0x5b5   : > { %v12432_v22 = vadd.f32 %v6466_v39, %v6143_v58 }
 0x5b7   : > { %8801 = vmatmul.msk.bf16.gmra.mxu1 %vm13146_vm14, %v13145_v32  ;;  %v13153_v32 = vld [vmem:[#allocation28_spill] sm:$0xff] }
 0x5bc   : > { %v6468_v46 = vpop.f32.mrf.mxu1 }
 0x5bd   : > { %v12438_v18 = vadd.f32 %v6468_v46, %v6144_v11  ;;  %v13155_v46 = vld [vmem:[#allocation48_spill] sm:$0xff] }
 0x5be   : > { %v7445_v17 = vadd.f32 %v12234_v29, %v13155_v46 }
 0x5c4   : > { %v6471_v24 = vpop.f32.mrf.mxu1 }
 0x5c5   : > { %v12442_v36 = vadd.f32 %v6471_v24, %v6145_v38 }
 0x5c7   : > { %8802 = vmatmul.msk.bf16.gmra.mxu1 %vm13150_vm11, %v13149_v41  ;;  %v13156_v41 = vld [vmem:[#allocation34_spill] sm:$0xff]  ;;  %vm13169_vm11 = vmmov %vm13082_vm0 }
 0x5cc   : > { %v6473_v63 = vpop.f32.mrf.mxu1 }
 0x5cd   : > { %v12448_v37 = vadd.f32 %v6473_v63, %v6146_v7 }
 0x5d4   : > { %v6476_v58 = vpop.f32.mrf.mxu1 }
 0x5d5   : > { %v12452_v39 = vadd.f32 %v6476_v58, %v6147_v0  ;;  %v13159_v58 = vld [vmem:[#allocation51_spill] sm:$0xff] }
 0x5d7   : > { %8803 = vmatmul.msk.bf16.gmra.mxu1 %vm13154_vm10, %v13153_v32  ;;  %v7447_v32 = vadd.f32 %v12262_v30, %v13159_v58  ;;  %vm13171_vm10 = vmmov %vm13082_vm0 }
 0x5dc   : > { %v6478_v5 = vpop.f32.mrf.mxu1 }
 0x5dd   : > { %v12458_v11 = vadd.f32 %v6478_v5, %v6148_v25 }
 0x5e4   : > { %v7590_v53 = vpop.f32.mrf.mxu1 }
 0x5e5   : > { %v7680_v38 = vadd.f32 %v7590_v53, %v7445_v17  ;;  %v13161_v17 = vld [vmem:[#allocation38_spill] sm:$0xff]  ;;  %v13163_v53 = vld [vmem:[#allocation52_spill] sm:$0xff] }
 0x5e7   : > { %v7720_v24 = vadd.f32 %v12465_v62, %v7680_v38  ;;  %8804 = vmatmul.msk.bf16.gmra.mxu1 %vm13157_vm9, %v13156_v41  ;;  %v7448_v38 = vadd.f32 %v12275_v27, %v13163_v53  ;;  %v12490_v27 = vpop.f32.mrf.mxu2 }
 0x5e9   : > { %vm7756_vm15 = vcmp.gt.f32.partialorder %v7720_v24, 0.0  ;;  %v7792_v26 = vmul.f32 0.2, %v7720_v24 }
 0x5eb   : > { %v7828_v3 = vsel %vm7756_vm15, %v7720_v24, %v7792_v26  ;;  %vm13172_vm15 = vmmov %vm13082_vm0 }
 0x5ec   : > { %7864 = vst.msk [vmem:[#allocation4] sm:$0xff] %vm13158_vm4, %v7828_v3  ;;  %v7592_v29 = vpop.f32.mrf.mxu1  ;;  %vm13173_vm4 = vmmov %vm13082_vm0 }
 0x5ed   : > { %v7681_v7 = vadd.f32 %v7592_v29, %v7446_v1  ;;  %v13165_v1 = vld [vmem:[#allocation53_spill] sm:$0xff] }
 0x5ee   : > { %v7449_v29 = vadd.f32 %v12287_v6, %v13165_v1 }
 0x5ef   : > { %v7721_v63 = vadd.f32 %v12465_v62, %v7681_v7 }
 0x5f1   : > { %vm7757_vm12 = vcmp.gt.f32.partialorder %v7721_v63, 0.0  ;;  %v7793_v4 = vmul.f32 0.2, %v7721_v63 }
 0x5f3   : > { %v7829_v0 = vsel %vm7757_vm12, %v7721_v63, %v7793_v4 }
 0x5f4   : > { %7865 = vst.msk [vmem:[#allocation4 + $0x8] sm:$0xff] %vm13160_vm13, %v7829_v0  ;;  %v7595_v25 = vpop.f32.mrf.mxu1  ;;  %v13167_v0 = vld [vmem:[#allocation43_spill] sm:$0xff]  ;;  %vm13174_vm13 = vmmov %vm13082_vm0 }
 0x5f5   : > { %v7682_v5 = vadd.f32 %v7595_v25, %v7447_v32  ;;  %v7450_v25 = vadd.f32 %v12306_v15, %v12220_v34  ;;  %v7451_v34 = vadd.f32 %v12315_v55, %v12239_v51  ;;  %v12502_v15 = vpop.f32.mrf.mxu0 }
 0x5f7   : > { %v7722_v46 = vadd.f32 %v12465_v62, %v7682_v5  ;;  %8805 = vmatmul.msk.bf16.gmra.mxu1 %vm13162_vm8, %v13161_v17  ;;  %vm13176_vm8 = vmmov %vm13082_vm0 }
 0x5f9   : > { %vm7758_vm2 = vcmp.gt.f32.partialorder %v7722_v46, 0.0  ;;  %v7794_v60 = vmul.f32 0.2, %v7722_v46 }
 0x5fb   : > { %v7830_v21 = vsel %vm7758_vm2, %v7722_v46, %v7794_v60  ;;  %v7900_v46 = vld [vmem:[#allocation4] ss:$2 sm:$0xff]  ;;  %v7902_v17 = vld [vmem:[#allocation4 + $0x1] ss:$2 sm:$0xff] }
 0x5fc   : > { %7866 = vst.msk [vmem:[#allocation4 + $0x10] sm:$0xff] %vm13164_vm3, %v7830_v21  ;;  %v7597_v24 = vpop.f32.mrf.mxu1  ;;  %v12496_v21 = vpop.f32.mrf.mxu3  ;;  %vm13177_vm3 = vmmov %vm13082_vm0 }
 0x5fd   : > { %v7683_v41 = vadd.f32 %v7597_v24, %v7448_v38  ;;  %v7903_v38 = vadd.f32 %v7902_v17, %v7900_v46  ;;  %v12498_v24 = vpop.f32.mrf.mxu2  ;;  %v12523_v46 = vpop.f32.mrf.mxu0 }
 0x5ff   : > { %v7723_v30 = vadd.f32 %v12465_v62, %v7683_v41 }
 0x601   : > { %vm7759_vm5 = vcmp.gt.f32.partialorder %v7723_v30, 0.0  ;;  %v7795_v26 = vmul.f32 0.2, %v7723_v30 }
 0x603   : > { %v7831_v3 = vsel %vm7759_vm5, %v7723_v30, %v7795_v26 }
 0x604   : > { %7867 = vst.msk [vmem:[#allocation4 + $0x18] sm:$0xff] %vm13166_vm7, %v7831_v3  ;;  %v7600_v7 = vpop.f32.mrf.mxu1  ;;  %vm13178_vm7 = vmmov %vm13082_vm0 }
 0x605   : > { %v7684_v63 = vadd.f32 %v7600_v7, %v7449_v29 }
 0x607   : > { %v7724_v4 = vadd.f32 %v12465_v62, %v7684_v63  ;;  %8806 = vmatmul.msk.bf16.gmra.mxu1 %vm13082_vm0, %v13167_v0  ;;  %v12514_v0 = vpop.f32.mrf.mxu3 }
 0x609   : > { %vm7760_vm6 = vcmp.gt.f32.partialorder %v7724_v4, 0.0  ;;  %v7796_v58 = vmul.f32 0.2, %v7724_v4 }
 0x60b   : > { %v7832_v32 = vsel %vm7760_vm6, %v7724_v4, %v7796_v58  ;;  %v13170_v4 = vld [vmem:[#allocation47_spill] sm:$0xff] }
 0x60c   : > { %7868 = vst.msk [vmem:[#allocation4 + $0x20] sm:$0xff] %vm13168_vm1, %v7832_v32  ;;  %v7602_v6 = vpop.f32.mrf.mxu1  ;;  %v7452_v32 = vadd.f32 %v12331_v45, %v12246_v2  ;;  %vm13180_vm1 = vmmov %vm13082_vm0 }
 0x60d   : > { %v7685_v5 = vadd.f32 %v7602_v6, %v7450_v25  ;;  %v12521_v6 = vpop.f32.mrf.mxu2 }
 0x60f   : > { %v7725_v60 = vadd.f32 %v12465_v62, %v7685_v5 }
 0x611   : > { %vm7761_vm14 = vcmp.gt.f32.partialorder %v7725_v60, 0.0  ;;  %v7797_v53 = vmul.f32 0.2, %v7725_v60 }
 0x613   : > { %v7905_v41 = vld [vmem:[#allocation4 + $0x12] ss:$2 sm:$0xff]  ;;  %v7833_v30 = vsel %vm7761_vm14, %v7725_v60, %v7797_v53  ;;  %v7908_v1 = vld [vmem:[#allocation4 + $0x13] ss:$2 sm:$0xff]  ;;  %vm13181_vm14 = vmmov %vm13082_vm0 }
 0x614   : > { %v7906_v26 = vadd.f32 %v7905_v41, %v7903_v38  ;;  %7869 = vst.msk [vmem:[#allocation4 + $0x28] sm:$0xff] %vm13169_vm11, %v7833_v30  ;;  %v7605_v3 = vpop.f32.mrf.mxu1  ;;  %v7453_v38 = vadd.f32 %v12347_v54, %v12260_v31  ;;  %v12528_v41 = vpop.f32.mrf.mxu3  ;;  %v7454_v31 = vadd.f32 %v12356_v48, %v12267_v19  ;;  %v7455_v48 = vadd.f32 %v12370_v16, %v12283_v8 }
 0x615   : > { %v7686_v29 = vadd.f32 %v7605_v3, %v7451_v34  ;;  %v12531_v30 = vpop.f32.mrf.mxu2  ;;  %v12536_v3 = vpop.f32.mrf.mxu0  ;;  %v6728_v8 = vadd.f32 %v12490_v27, %v12298_v14  ;;  %v6729_v14 = vadd.f32 %v12498_v24, %v12310_v20  ;;  %v6730_v24 = vadd.f32 %v12521_v6, %v12321_v9 }
 0x616   : > { %v7909_v7 = vadd.f32 %v7908_v1, %v7906_v26  ;;  %v13175_v26 = vld [vmem:[#allocation49_spill] sm:$0xff]  ;;  %v6731_v9 = vadd.f32 %v12531_v30, %v12333_v50 }
 0x617   : > { %v7726_v63 = vadd.f32 %v12465_v62, %v7686_v29  ;;  %8807 = vmatmul.msk.bf16.gmra.mxu1 %vm13171_vm10, %v13170_v4  ;;  %vm13182_vm10 = vmmov %vm13082_vm0 }
 0x618   : > { %v7910_v51 = vmul.f32 0.25, %v7909_v7 }
 0x619   : > { %vm7762_vm9 = vcmp.gt.f32.partialorder %v7726_v63, 0.0  ;;  %v7798_v55 = vmul.f32 0.2, %v7726_v63 }
 0x61a   : > { %7911 = vst.msk [vmem:[%s12509_s27] sm:$0xff] %vm13172_vm15, %v7910_v51 }
 0x61b   : > { %v7834_v58 = vsel %vm7762_vm9, %v7726_v63, %v7798_v55  ;;  %vm13183_vm9 = vmmov %vm13082_vm0 }
 0x61c   : > { %7870 = vst.msk [vmem:[#allocation4 + $0x30] sm:$0xff] %vm13173_vm4, %v7834_v58  ;;  %v7607_v25 = vpop.f32.mrf.mxu1  ;;  %v12541_v63 = vpop.f32.mrf.mxu3  ;;  %vm13184_vm4 = vmmov %vm13082_vm0 }
 0x61d   : > { %v7687_v5 = vadd.f32 %v7607_v25, %v7452_v32  ;;  %v12544_v58 = vpop.f32.mrf.mxu2  ;;  %v12546_v25 = vpop.f32.mrf.mxu0 }
 0x61f   : > { %v7727_v17 = vadd.f32 %v12465_v62, %v7687_v5 }
 0x621   : > { %vm7763_vm12 = vcmp.gt.f32.partialorder %v7727_v17, 0.0  ;;  %v7799_v60 = vmul.f32 0.2, %v7727_v17 }
 0x623   : > { %v7835_v53 = vsel %vm7763_vm12, %v7727_v17, %v7799_v60  ;;  %v7913_v4 = vld [vmem:[#allocation4 + $0x24] ss:$2 sm:$0xff]  ;;  %v7915_v51 = vld [vmem:[#allocation4 + $0x25] ss:$2 sm:$0xff] }
 0x624   : > { %7871 = vst.msk [vmem:[#allocation4 + $0x38] sm:$0xff] %vm13174_vm13, %v7835_v53  ;;  %v7610_v2 = vpop.f32.mrf.mxu1  ;;  %v7916_v5 = vadd.f32 %v7915_v51, %v7913_v4  ;;  %vm13185_vm13 = vmmov %vm13082_vm0 }
 0x625   : > { %v7688_v45 = vadd.f32 %v7610_v2, %v7453_v38  ;;  %v12560_v16 = vpop.f32.mrf.mxu2  ;;  %v12564_v4 = vpop.f32.mrf.mxu0 }
 0x627   : > { %v7728_v34 = vadd.f32 %v12465_v62, %v7688_v45  ;;  %8808 = vmatmul.msk.bf16.gmra.mxu1 %vm13176_vm8, %v13175_v26  ;;  %v13179_v26 = vld [vmem:[#allocation50_spill] sm:$0xff]  ;;  %vm13186_vm8 = vmmov %vm13082_vm0 }
 0x629   : > { %vm7764_vm2 = vcmp.gt.f32.partialorder %v7728_v34, 0.0  ;;  %v7800_v1 = vmul.f32 0.2, %v7728_v34 }
 0x62b   : > { %v7836_v29 = vsel %vm7764_vm2, %v7728_v34, %v7800_v1  ;;  %v12554_v1 = vpop.f32.mrf.mxu3 }
 0x62c   : > { %7872 = vst.msk [vmem:[#allocation4 + $0x40] sm:$0xff] %vm13177_vm3, %v7836_v29  ;;  %v7612_v54 = vpop.f32.mrf.mxu1  ;;  %vm13187_vm3 = vmmov %vm13082_vm0 }
 0x62d   : > { %v7689_v7 = vadd.f32 %v7612_v54, %v7454_v31 }
 0x62f   : > { %v7729_v55 = vadd.f32 %v12465_v62, %v7689_v7  ;;  %v7456_v7 = vadd.f32 %v12379_v61, %v12290_v35 }
 0x631   : > { %vm7765_vm5 = vcmp.gt.f32.partialorder %v7729_v55, 0.0  ;;  %v7801_v32 = vmul.f32 0.2, %v7729_v55 }
 0x633   : > { %v7918_v17 = vld [vmem:[#allocation4 + $0x36] ss:$2 sm:$0xff]  ;;  %v7837_v19 = vsel %vm7765_vm5, %v7729_v55, %v7801_v32  ;;  %v7921_v38 = vld [vmem:[#allocation4 + $0x37] ss:$2 sm:$0xff]  ;;  %v7089_v32 = vadd.f32 %v12496_v21, %v6728_v8  ;;  %v7090_v21 = vadd.f32 %v12514_v0, %v6729_v14  ;;  %v7091_v0 = vadd.f32 %v12528_v41, %v6730_v24 }
 0x634   : > { %v7919_v60 = vadd.f32 %v7918_v17, %v7916_v5  ;;  %7873 = vst.msk [vmem:[#allocation4 + $0x48] sm:$0xff] %vm13178_vm7, %v7837_v19  ;;  %v7615_v53 = vpop.f32.mrf.mxu1  ;;  %v12569_v19 = vpop.f32.mrf.mxu3  ;;  %v7092_v41 = vadd.f32 %v12541_v63, %v6731_v9  ;;  %v6732_v14 = vadd.f32 %v12544_v58, %v12342_v43  ;;  %vm13188_vm7 = vmmov %vm13082_vm0  ;;  %v6733_v58 = vadd.f32 %v12560_v16, %v12354_v40 }
 0x635   : > { %v7690_v2 = vadd.f32 %v7615_v53, %v7455_v48  ;;  %v7457_v35 = vadd.f32 %v12502_v15, %v7089_v32  ;;  %v12575_v48 = vpop.f32.mrf.mxu2  ;;  %v12577_v53 = vpop.f32.mrf.mxu0 }
 0x636   : > { %v7922_v45 = vadd.f32 %v7921_v38, %v7919_v60  ;;  %v6734_v40 = vadd.f32 %v12575_v48, %v12362_v28 }
 0x637   : > { %v7730_v34 = vadd.f32 %v12465_v62, %v7690_v2  ;;  %8809 = vmatmul.msk.bf16.gmra.mxu1 %vm13082_vm0, %v13179_v26  ;;  %v7458_v2 = vadd.f32 %v12523_v46, %v7090_v21  ;;  %v7459_v46 = vadd.f32 %v12536_v3, %v7091_v0 }
 0x638   : > { %v7923_v29 = vmul.f32 0.25, %v7922_v45 }
 0x639   : > { %vm7766_vm6 = vcmp.gt.f32.partialorder %v7730_v34, 0.0  ;;  %v7802_v31 = vmul.f32 0.2, %v7730_v34 }
 0x63a   : > { %7924 = vst.msk [vmem:[%s12509_s27 + $0x8] sm:$0xff] %vm13180_vm1, %v7923_v29 }
 0x63b   : > { %v7838_v54 = vsel %vm7766_vm6, %v7730_v34, %v7802_v31  ;;  %vm13190_vm6 = vmmov %vm13082_vm0 }
 0x63c   : > { %7874 = vst.msk [vmem:[#allocation4 + $0x50] sm:$0xff] %vm13181_vm14, %v7838_v54  ;;  %v7617_v51 = vpop.f32.mrf.mxu1  ;;  %v12586_v45 = vpop.f32.mrf.mxu3  ;;  %vm13191_vm14 = vmmov %vm13082_vm0 }
 0x63d   : > { %v7691_v55 = vadd.f32 %v7617_v51, %v7456_v7  ;;  %v12590_v29 = vpop.f32.mrf.mxu2  ;;  %v12593_v31 = vpop.f32.mrf.mxu0 }
 0x63f   : > { %v7731_v5 = vadd.f32 %v12465_v62, %v7691_v55 }
 0x641   : > { %vm7767_vm11 = vcmp.gt.f32.partialorder %v7731_v5, 0.0  ;;  %v7803_v17 = vmul.f32 0.2, %v7731_v5 }
 0x643   : > { %v7839_v27 = vsel %vm7767_vm11, %v7731_v5, %v7803_v17  ;;  %v7926_v55 = vld [vmem:[#allocation4 + $0x48] ss:$2 sm:$0xff]  ;;  %v7928_v32 = vld [vmem:[#allocation4 + $0x49] ss:$2 sm:$0xff] }
 0x644   : > { %7875 = vst.msk [vmem:[#allocation4 + $0x58] sm:$0xff] %vm13182_vm10, %v7839_v27  ;;  %v7620_v61 = vpop.f32.mrf.mxu1  ;;  %v7034_v51 = vpop.f32.mrf.mxu3  ;;  %v7929_v3 = vadd.f32 %v7928_v32, %v7926_v55  ;;  %v7095_v32 = vadd.f32 %v12586_v45, %v6734_v40  ;;  %vm13192_vm10 = vmmov %vm13082_vm0 }
 0x645   : > { %v7692_v60 = vadd.f32 %v7620_v61, %v7457_v35  ;;  %v12603_v17 = vpop.f32.mrf.mxu2  ;;  %v12605_v30 = vpop.f32.mrf.mxu0  ;;  %v7460_v35 = vadd.f32 %v12546_v25, %v7092_v41 }
 0x646   : > { %v7463_v28 = vadd.f32 %v12593_v31, %v7095_v32  ;;  %v6736_v31 = vadd.f32 %v12603_v17, %v12381_v12 }
 0x647   : > { %v7732_v38 = vadd.f32 %v12465_v62, %v7692_v60  ;;  %8810 = vmatmul.msk.bf16.gmra.mxu1 %vm13183_vm9, %v12210_v56  ;;  %vm13194_vm9 = vmmov %vm13082_vm0 }
 0x649   : > { %vm7768_vm15 = vcmp.gt.f32.partialorder %v7732_v38, 0.0  ;;  %v7804_v20 = vmul.f32 0.2, %v7732_v38 }
 0x64b   : > { %v7840_v15 = vsel %vm7768_vm15, %v7732_v38, %v7804_v20  ;;  %v7093_v20 = vadd.f32 %v12554_v1, %v6732_v14 }
 0x64c   : > { %7876 = vst.msk [vmem:[#allocation4 + $0x60] sm:$0xff] %vm13184_vm4, %v7840_v15  ;;  %v7622_v34 = vpop.f32.mrf.mxu1  ;;  %v7037_v15 = vpop.f32.mrf.mxu3  ;;  %vm13195_vm4 = vmmov %vm13082_vm0 }
 0x64d   : > { %v7693_v26 = vadd.f32 %v7622_v34, %v7458_v2  ;;  %v6678_v25 = vpop.f32.mrf.mxu2  ;;  %v7405_v0 = vpop.f32.mrf.mxu0 }
 0x64f   : > { %v7733_v56 = vadd.f32 %v12465_v62, %v7693_v26  ;;  %v7461_v26 = vadd.f32 %v12564_v4, %v7093_v20 }
 0x651   : > { %vm7769_vm12 = vcmp.gt.f32.partialorder %v7733_v56, 0.0  ;;  %v7805_v8 = vmul.f32 0.2, %v7733_v56 }
 0x653   : > { %v7841_v6 = vsel %vm7769_vm12, %v7733_v56, %v7805_v8  ;;  %v7094_v8 = vadd.f32 %v12569_v19, %v6733_v58 }
 0x654   : > { %7877 = vst.msk [vmem:[#allocation4 + $0x68] sm:$0xff] %vm13185_vm13, %v7841_v6  ;;  %v7625_v54 = vpop.f32.mrf.mxu1  ;;  %v13189_v6 = vld [vmem:[#allocation54_spill] sm:$0xff]  ;;  %vm13196_vm13 = vmmov %vm13082_vm0 }
 0x655   : > { %v7694_v7 = vadd.f32 %v7625_v54, %v7459_v46  ;;  %v7039_v54 = vpop.f32.mrf.mxu3  ;;  %v7462_v4 = vadd.f32 %v12577_v53, %v7094_v8  ;;  %v6681_v41 = vpop.f32.mrf.mxu2 }
 0x656   : > { %v7407_v19 = vpop.f32.mrf.mxu0  ;;  %v6738_v32 = vadd.f32 %v6681_v41, %v12392_v47 }
 0x657   : > { %v7734_v5 = vadd.f32 %v12465_v62, %v7694_v7  ;;  %8811 = vmatmul.msk.bf16.gmra.mxu1 %vm13186_vm8, %v12213_v57  ;;  %vm13197_vm8 = vmmov %vm13082_vm0 }
 0x659   : > { %vm7770_vm2 = vcmp.gt.f32.partialorder %v7734_v5, 0.0  ;;  %v7806_v50 = vmul.f32 0.2, %v7734_v5 }
 0x65b   : > { %v7931_v27 = vld [vmem:[#allocation4 + $0x5a] ss:$2 sm:$0xff]  ;;  %v7842_v63 = vsel %vm7770_vm2, %v7734_v5, %v7806_v50  ;;  %v7934_v57 = vld [vmem:[#allocation4 + $0x5b] ss:$2 sm:$0xff] }
 0x65c   : > { %v7932_v61 = vadd.f32 %v7931_v27, %v7929_v3  ;;  %7878 = vst.msk [vmem:[#allocation4 + $0x70] sm:$0xff] %vm13187_vm3, %v7842_v63  ;;  %v7627_v60 = vpop.f32.mrf.mxu1  ;;  %v6735_v3 = vadd.f32 %v12590_v29, %v12374_v42  ;;  %vm13198_vm3 = vmmov %vm13082_vm0 }
 0x65d   : > { %v7695_v21 = vadd.f32 %v7627_v60, %v7460_v35  ;;  %v7042_v48 = vpop.f32.mrf.mxu3  ;;  %v6683_v35 = vpop.f32.mrf.mxu2 }
 0x65e   : > { %v7935_v38 = vadd.f32 %v7934_v57, %v7932_v61  ;;  %v7096_v63 = vadd.f32 %v7034_v51, %v6735_v3  ;;  %v13193_v57 = vld [vmem:[#allocation55_spill] sm:$0xff] }
 0x65f   : > { %v7735_v24 = vadd.f32 %v12465_v62, %v7695_v21  ;;  %v7410_v21 = vpop.f32.mrf.mxu0 }
 0x660   : > { %v7936_v2 = vmul.f32 0.25, %v7935_v38  ;;  %v7464_v51 = vadd.f32 %v12605_v30, %v7096_v63  ;;  %v6737_v30 = vadd.f32 %v6678_v25, %v12388_v52 }
 0x661   : > { %vm7771_vm5 = vcmp.gt.f32.partialorder %v7735_v24, 0.0  ;;  %v7807_v43 = vmul.f32 0.2, %v7735_v24 }
 0x662   : > { %7937 = vst.msk [vmem:[%s12509_s27 + $0x10] sm:$0xff] %vm13188_vm7, %v7936_v2  ;;  %vm13199_vm7 = vmmov %vm13082_vm0 }
 0x663   : > { %v7843_v34 = vsel %vm7771_vm5, %v7735_v24, %v7807_v43 }
 0x664   : > { %7879 = vst.msk [vmem:[#allocation4 + $0x78] sm:$0xff] %vm13082_vm0, %v7843_v34  ;;  %v7630_v56 = vpop.f32.mrf.mxu1 }
 0x665   : > { %v7696_v1 = vadd.f32 %v7630_v56, %v7461_v26  ;;  %v7044_v34 = vpop.f32.mrf.mxu3  ;;  %v7097_v56 = vadd.f32 %v7037_v15, %v6736_v31 }
 0x667   : > { %v7736_v9 = vadd.f32 %v12465_v62, %v7696_v1  ;;  %8812 = vmatmul.msk.bf16.gmra.mxu1 %vm13190_vm6, %v13189_v6  ;;  %v7412_v17 = vpop.f32.mrf.mxu0  ;;  %vm13200_vm6 = vmmov %vm13198_vm3 }
 0x669   : > { %vm7772_vm1 = vcmp.gt.f32.partialorder %v7736_v9, 0.0  ;;  %v7808_v46 = vmul.f32 0.2, %v7736_v9 }
 0x66b   : > { %v7844_v16 = vsel %vm7772_vm1, %v7736_v9, %v7808_v46  ;;  %v7939_v61 = vld [vmem:[#allocation4 + $0x6c] ss:$2 sm:$0xff]  ;;  %v7941_v60 = vld [vmem:[#allocation4 + $0x6d] ss:$2 sm:$0xff]  ;;  %v6686_v9 = vpop.f32.mrf.mxu2  ;;  %v7465_v46 = vadd.f32 %v7405_v0, %v7097_v56  ;;  %v7099_v0 = vadd.f32 %v7042_v48, %v6738_v32 }
 0x66c   : > { %7880 = vst.msk [vmem:[#allocation4 + $0x80] sm:$0xff] %vm13191_vm14, %v7844_v16  ;;  %v7632_v7 = vpop.f32.mrf.mxu1  ;;  %v7942_v29 = vadd.f32 %v7941_v60, %v7939_v61  ;;  %vm13201_vm14 = vmmov %vm13198_vm3 }
 0x66d   : > { %v7697_v55 = vadd.f32 %v7632_v7, %v7462_v4  ;;  %v7098_v4 = vadd.f32 %v7039_v54, %v6737_v30  ;;  %v7047_v7 = vpop.f32.mrf.mxu3  ;;  %v7467_v61 = vadd.f32 %v7410_v21, %v7099_v0 }
 0x66f   : > { %v7737_v5 = vadd.f32 %v12465_v62, %v7697_v55  ;;  %v7466_v3 = vadd.f32 %v7407_v19, %v7098_v4 }
 0x671   : > { %vm7773_vm11 = vcmp.gt.f32.partialorder %v7737_v5, 0.0  ;;  %v7809_v50 = vmul.f32 0.2, %v7737_v5 }
 0x673   : > { %v7845_v14 = vsel %vm7773_vm11, %v7737_v5, %v7809_v50  ;;  %v6688_v5 = vpop.f32.mrf.mxu2 }
 0x674   : > { %7881 = vst.msk [vmem:[#allocation4 + $0x88] sm:$0xff] %vm13192_vm10, %v7845_v14  ;;  %v7635_v53 = vpop.f32.mrf.mxu1  ;;  %v7415_v14 = vpop.f32.mrf.mxu0  ;;  %vm13202_vm10 = vmmov %vm13198_vm3 }
 0x675   : > { %v7698_v27 = vadd.f32 %v7635_v53, %v7463_v28  ;;  %v7049_v53 = vpop.f32.mrf.mxu3 }
 0x677   : > { %v7738_v45 = vadd.f32 %v12465_v62, %v7698_v27  ;;  %8813 = vmatmul.msk.bf16.gmra.mxu1 %vm13194_vm9, %v13193_v57  ;;  %v6739_v27 = vadd.f32 %v6683_v35, %v12398_v13  ;;  %vm13203_vm9 = vmmov %vm13198_vm3 }
 0x679   : > { %vm7774_vm15 = vcmp.gt.f32.partialorder %v7738_v45, 0.0  ;;  %v7810_v42 = vmul.f32 0.2, %v7738_v45 }
 0x67b   : > { %v7944_v38 = vld [vmem:[#allocation4 + $0x7e] ss:$2 sm:$0xff]  ;;  %v7846_v20 = vsel %vm7774_vm15, %v7738_v45, %v7810_v42  ;;  %v7947_v43 = vld [vmem:[#allocation4 + $0x7f] ss:$2 sm:$0xff]  ;;  %v6691_v41 = vpop.f32.mrf.mxu2  ;;  %v7100_v45 = vadd.f32 %v7044_v34, %v6739_v27  ;;  %v6740_v42 = vadd.f32 %v6686_v9, %v12402_v44 }
 0x67c   : > { %v7945_v24 = vadd.f32 %v7944_v38, %v7942_v29  ;;  %7882 = vst.msk [vmem:[#allocation4 + $0x90] sm:$0xff] %vm13195_vm4, %v7846_v20  ;;  %v7637_v2 = vpop.f32.mrf.mxu1  ;;  %v7417_v60 = vpop.f32.mrf.mxu0  ;;  %vm13204_vm4 = vmmov %vm13198_vm3 }
 0x67d   : > { %v7699_v58 = vadd.f32 %v7637_v2, %v7464_v51  ;;  %v7468_v31 = vadd.f32 %v7412_v17, %v7100_v45  ;;  %v7052_v38 = vpop.f32.mrf.mxu3  ;;  %v7101_v21 = vadd.f32 %v7047_v7, %v6740_v42  ;;  %v6742_v7 = vadd.f32 %v6691_v41, %v12412_v59 }
 0x67e   : > { %v7948_v26 = vadd.f32 %v7947_v43, %v7945_v24 }
 0x67f   : > { %v7739_v1 = vadd.f32 %v12465_v62, %v7699_v58 }
 0x680   : > { %v7949_v8 = vmul.f32 0.25, %v7948_v26  ;;  %v6741_v26 = vadd.f32 %v6688_v5, %v12408_v49 }
 0x681   : > { %vm7775_vm12 = vcmp.gt.f32.partialorder %v7739_v1, 0.0  ;;  %v7811_v12 = vmul.f32 0.2, %v7739_v1 }
 0x682   : > { %7950 = vst.msk [vmem:[%s12509_s27 + $0x18] sm:$0xff] %vm13196_vm13, %v7949_v8  ;;  %vm13205_vm13 = vmmov %vm13198_vm3 }
 0x683   : > { %v7847_v6 = vsel %vm7775_vm12, %v7739_v1, %v7811_v12  ;;  %v6693_v20 = vpop.f32.mrf.mxu2  ;;  %v7469_v1 = vadd.f32 %v7415_v14, %v7101_v21 }
 0x684   : > { %7883 = vst.msk [vmem:[#allocation4 + $0x98] sm:$0xff] %vm13197_vm8, %v7847_v6  ;;  %v7640_v40 = vpop.f32.mrf.mxu1  ;;  %v7420_v43 = vpop.f32.mrf.mxu0  ;;  %v6743_v0 = vadd.f32 %v6693_v20, %v12418_v10 }
 0x685   : > { %v7700_v16 = vadd.f32 %v7640_v40, %v7465_v46  ;;  %v7054_v30 = vpop.f32.mrf.mxu3  ;;  %v7102_v46 = vadd.f32 %v7049_v53, %v6741_v26 }
 0x687   : > { %v7740_v15 = vadd.f32 %v12465_v62, %v7700_v16  ;;  %v7470_v32 = vadd.f32 %v7417_v60, %v7102_v46 }
 0x689   : > { %vm7776_vm2 = vcmp.gt.f32.partialorder %v7740_v15, 0.0  ;;  %v7812_v55 = vmul.f32 0.2, %v7740_v15 }
 0x68b   : > { %v7848_v50 = vsel %vm7776_vm2, %v7740_v15, %v7812_v55  ;;  %v7952_v51 = vld [vmem:[#allocation4 + $0x90] ss:$2 sm:$0xff]  ;;  %v7954_v24 = vld [vmem:[#allocation4 + $0x91] ss:$2 sm:$0xff]  ;;  %v6696_v4 = vpop.f32.mrf.mxu2  ;;  %vm13206_vm2 = vmmov %vm13198_vm3 }
 0x68c   : > { %7884 = vst.msk [vmem:[#allocation4 + $0xa0] sm:$0xff] %vm13198_vm3, %v7848_v50  ;;  %v7642_v52 = vpop.f32.mrf.mxu1  ;;  %v7955_v34 = vadd.f32 %v7954_v24, %v7952_v51  ;;  %v7422_v49 = vpop.f32.mrf.mxu0  ;;  %v6744_v60 = vadd.f32 %v6696_v4, %v12422_v33 }
 0x68d   : > { %v7701_v25 = vadd.f32 %v7642_v52, %v7466_v3  ;;  %v7103_v3 = vadd.f32 %v7052_v38, %v6742_v7  ;;  %v7057_v52 = vpop.f32.mrf.mxu3 }
 0x68f   : > { %v7741_v28 = vadd.f32 %v12465_v62, %v7701_v25  ;;  %v7471_v53 = vadd.f32 %v7420_v43, %v7103_v3 }
 0x691   : > { %vm7777_vm5 = vcmp.gt.f32.partialorder %v7741_v28, 0.0  ;;  %v7813_v54 = vmul.f32 0.2, %v7741_v28 }
 0x693   : > { %v7849_v63 = vsel %vm7777_vm5, %v7741_v28, %v7813_v54  ;;  %v6698_v28 = vpop.f32.mrf.mxu2  ;;  %vm13207_vm5 = vmmov %vm13206_vm2 }
 0x694   : > { %7885 = vst.msk [vmem:[#allocation4 + $0xa8] sm:$0xff] %vm13199_vm7, %v7849_v63  ;;  %v7645_v47 = vpop.f32.mrf.mxu1  ;;  %v7425_v27 = vpop.f32.mrf.mxu0  ;;  %v6745_v51 = vadd.f32 %v6698_v28, %v12428_v23  ;;  %vm13208_vm7 = vmmov %vm13206_vm2 }
 0x695   : > { %v7702_v19 = vadd.f32 %v7645_v47, %v7467_v61  ;;  %v7104_v61 = vadd.f32 %v7054_v30, %v6743_v0 }
 0x697   : > { %v7742_v57 = vadd.f32 %v12465_v62, %v7702_v19  ;;  %v7059_v19 = vpop.f32.mrf.mxu3 }
 0x699   : > { %vm7778_vm0 = vcmp.gt.f32.partialorder %v7742_v57, 0.0  ;;  %v7814_v48 = vmul.f32 0.2, %v7742_v57 }
 0x69b   : > { %v7850_v29 = vsel %vm7778_vm0, %v7742_v57, %v7814_v48  ;;  %v7472_v57 = vadd.f32 %v7422_v49, %v7104_v61  ;;  %v6701_v48 = vpop.f32.mrf.mxu2 }
 0x69c   : > { %7886 = vst.msk [vmem:[#allocation4 + $0xb0] sm:$0xff] %vm13200_vm6, %v7850_v29  ;;  %v7647_v13 = vpop.f32.mrf.mxu1  ;;  %v7427_v29 = vpop.f32.mrf.mxu0  ;;  %v6746_v30 = vadd.f32 %v6701_v48, %v12432_v22  ;;  %vm13209_vm6 = vmmov %vm13206_vm2 }
 0x69d   : > { %v7703_v35 = vadd.f32 %v7647_v13, %v7468_v31  ;;  %v7105_v31 = vadd.f32 %v7057_v52, %v6744_v60 }
 0x69f   : > { %v7743_v2 = vadd.f32 %v12465_v62, %v7703_v35  ;;  %v7062_v43 = vpop.f32.mrf.mxu3 }
 0x6a1   : > { %vm7779_vm1 = vcmp.gt.f32.partialorder %v7743_v2, 0.0  ;;  %v7815_v58 = vmul.f32 0.2, %v7743_v2 }
 0x6a3   : > { %v7957_v44 = vld [vmem:[#allocation4 + $0xa2] ss:$2 sm:$0xff]  ;;  %v7851_v56 = vsel %vm7779_vm1, %v7743_v2, %v7815_v58  ;;  %v7960_v12 = vld [vmem:[#allocation4 + $0xa3] ss:$2 sm:$0xff]  ;;  %v7473_v2 = vadd.f32 %v7425_v27, %v7105_v31 }
 0x6a4   : > { %v7958_v8 = vadd.f32 %v7957_v44, %v7955_v34  ;;  %7887 = vst.msk [vmem:[#allocation4 + $0xb8] sm:$0xff] %vm13201_vm14, %v7851_v56  ;;  %v7650_v9 = vpop.f32.mrf.mxu1  ;;  %vm13210_vm14 = vmmov %vm13206_vm2 }
 0x6a5   : > { %v7704_v17 = vadd.f32 %v7650_v9, %v7469_v1  ;;  %v7106_v1 = vadd.f32 %v7059_v19, %v6745_v51 }
 0x6a6   : > { %v7961_v6 = vadd.f32 %v7960_v12, %v7958_v8  ;;  %v6703_v8 = vpop.f32.mrf.mxu2  ;;  %v7430_v12 = vpop.f32.mrf.mxu0 }
 0x6a7   : > { %v7744_v40 = vadd.f32 %v12465_v62, %v7704_v17  ;;  %v7474_v46 = vadd.f32 %v7427_v29, %v7106_v1  ;;  %v7064_v4 = vpop.f32.mrf.mxu3 }
 0x6a8   : > { %v7962_v16 = vmul.f32 0.25, %v7961_v6 }
 0x6a9   : > { %vm7780_vm11 = vcmp.gt.f32.partialorder %v7744_v40, 0.0  ;;  %v7816_v15 = vmul.f32 0.2, %v7744_v40 }
 0x6aa   : > { %7963 = vst.msk [vmem:[%s12509_s27 + $0x20] sm:$0xff] %vm13202_vm10, %v7962_v16  ;;  %vm13211_vm10 = vmmov %vm13206_vm2 }
 0x6ab   : > { %v7852_v55 = vsel %vm7780_vm11, %v7744_v40, %v7816_v15  ;;  %v7107_v15 = vadd.f32 %v7062_v43, %v6746_v30 }
 0x6ac   : > { %7888 = vst.msk [vmem:[#allocation4 + $0xc0] sm:$0xff] %vm13203_vm9, %v7852_v55  ;;  %v7652_v5 = vpop.f32.mrf.mxu1 }
 0x6ad   : > { %v7705_v50 = vadd.f32 %v7652_v5, %v7470_v32  ;;  %v6747_v5 = vadd.f32 %v6703_v8, %v12438_v18  ;;  %v7475_v3 = vadd.f32 %v7430_v12, %v7107_v15 }
 0x6ae   : > { %v6706_v7 = vpop.f32.mrf.mxu2  ;;  %v7432_v32 = vpop.f32.mrf.mxu0 }
 0x6af   : > { %v7745_v14 = vadd.f32 %v12465_v62, %v7705_v50  ;;  %v7108_v52 = vadd.f32 %v7064_v4, %v6747_v5  ;;  %v7067_v0 = vpop.f32.mrf.mxu3 }
 0x6b1   : > { %vm7781_vm15 = vcmp.gt.f32.partialorder %v7745_v14, 0.0  ;;  %v7817_v25 = vmul.f32 0.2, %v7745_v14 }
 0x6b3   : > { %v7853_v54 = vsel %vm7781_vm15, %v7745_v14, %v7817_v25  ;;  %v7965_v38 = vld [vmem:[#allocation4 + $0xb4] ss:$2 sm:$0xff]  ;;  %v7967_v13 = vld [vmem:[#allocation4 + $0xb5] ss:$2 sm:$0xff]  ;;  %vm13212_vm15 = vmmov %vm13206_vm2 }
 0x6b4   : > { %7889 = vst.msk [vmem:[#allocation4 + $0xc8] sm:$0xff] %vm13204_vm4, %v7853_v54  ;;  %v7655_v59 = vpop.f32.mrf.mxu1  ;;  %v7968_v20 = vadd.f32 %v7967_v13, %v7965_v38  ;;  %v6748_v54 = vadd.f32 %v6706_v7, %v12442_v36 }
 0x6b5   : > { %v7706_v63 = vadd.f32 %v7655_v59, %v7471_v53  ;;  %v7476_v59 = vadd.f32 %v7432_v32, %v7108_v52 }
 0x6b6   : > { %v6708_v53 = vpop.f32.mrf.mxu2 }
 0x6b7   : > { %v7746_v47 = vadd.f32 %v12465_v62, %v7706_v63  ;;  %v7435_v63 = vpop.f32.mrf.mxu0  ;;  %v7069_v60 = vpop.f32.mrf.mxu3 }
 0x6b9   : > { %vm7782_vm12 = vcmp.gt.f32.partialorder %v7746_v47, 0.0  ;;  %v7818_v41 = vmul.f32 0.2, %v7746_v47 }
 0x6bb   : > { %v7854_v45 = vsel %vm7782_vm12, %v7746_v47, %v7818_v41  ;;  %v7109_v47 = vadd.f32 %v7067_v0, %v6748_v54  ;;  %vm13213_vm12 = vmmov %vm13206_vm2 }
 0x6bc   : > { %7890 = vst.msk [vmem:[#allocation4 + $0xd0] sm:$0xff] %vm13205_vm13, %v7854_v45  ;;  %v7657_v10 = vpop.f32.mrf.mxu1  ;;  %v6749_v45 = vadd.f32 %v6708_v53, %v12448_v37  ;;  %vm13214_vm13 = vmmov %vm13206_vm2 }
 0x6bd   : > { %v7707_v42 = vadd.f32 %v7657_v10, %v7472_v57  ;;  %v7477_v10 = vadd.f32 %v7435_v63, %v7109_v47 }
 0x6be   : > { %v6711_v29 = vpop.f32.mrf.mxu2  ;;  %v7110_v31 = vadd.f32 %v7069_v60, %v6749_v45 }
 0x6bf   : > { %v7747_v35 = vadd.f32 %v12465_v62, %v7707_v42  ;;  %v7437_v42 = vpop.f32.mrf.mxu0  ;;  %v6750_v51 = vadd.f32 %v6711_v29, %v12452_v39 }
 0x6c1   : > { %vm7783_vm8 = vcmp.gt.f32.partialorder %v7747_v35, 0.0  ;;  %v7819_v21 = vmul.f32 0.2, %v7747_v35 }
 0x6c3   : > { %v7970_v24 = vld [vmem:[#allocation4 + $0xc6] ss:$2 sm:$0xff]  ;;  %v7855_v33 = vsel %vm7783_vm8, %v7747_v35, %v7819_v21  ;;  %v7973_v26 = vld [vmem:[#allocation4 + $0xc7] ss:$2 sm:$0xff] }
 0x6c4   : > { %v7971_v58 = vadd.f32 %v7970_v24, %v7968_v20  ;;  %7891 = vst.msk [vmem:[#allocation4 + $0xd8] sm:$0xff] %vm13206_vm2, %v7855_v33  ;;  %v7660_v34 = vpop.f32.mrf.mxu1  ;;  %v7478_v33 = vadd.f32 %v7437_v42, %v7110_v31 }
 0x6c5   : > { %v7708_v44 = vadd.f32 %v7660_v34, %v7473_v2  ;;  %v7072_v2 = vpop.f32.mrf.mxu3 }
 0x6c6   : > { %v7974_v56 = vadd.f32 %v7973_v26, %v7971_v58 }
 0x6c7   : > { %v7748_v9 = vadd.f32 %v12465_v62, %v7708_v44  ;;  %v7440_v8 = vpop.f32.mrf.mxu0 }
 0x6c8   : > { %v7975_v17 = vmul.f32 0.25, %v7974_v56  ;;  %v7111_v56 = vadd.f32 %v7072_v2, %v6750_v51 }
 0x6c9   : > { %vm7784_vm3 = vcmp.gt.f32.partialorder %v7748_v9, 0.0  ;;  %v7820_v23 = vmul.f32 0.2, %v7748_v9 }
 0x6ca   : > { %7976 = vst.msk [vmem:[%s12509_s27 + $0x28] sm:$0xff] %vm13207_vm5, %v7975_v17  ;;  %v7479_v30 = vadd.f32 %v7440_v8, %v7111_v56  ;;  %vm13215_vm5 = vmmov %vm13206_vm2 }
 0x6cb   : > { %v7856_v6 = vsel %vm7784_vm3, %v7748_v9, %v7820_v23  ;;  %v6713_v9 = vpop.f32.mrf.mxu2 }
 0x6cc   : > { %7892 = vst.msk [vmem:[#allocation4 + $0xe0] sm:$0xff] %vm13208_vm7, %v7856_v6  ;;  %v7662_v40 = vpop.f32.mrf.mxu1  ;;  %v6751_v17 = vadd.f32 %v6713_v9, %v12458_v11  ;;  %vm13216_vm7 = vmmov %vm13206_vm2 }
 0x6cd   : > { %v7709_v16 = vadd.f32 %v7662_v40, %v7474_v46  ;;  %v7074_v40 = vpop.f32.mrf.mxu3 }
 0x6cf   : > { %v7749_v49 = vadd.f32 %v12465_v62, %v7709_v16  ;;  %v7112_v16 = vadd.f32 %v7074_v40, %v6751_v17 }
 0x6d1   : > { %vm7785_vm0 = vcmp.gt.f32.partialorder %v7749_v49, 0.0  ;;  %v7821_v55 = vmul.f32 0.2, %v7749_v49 }
 0x6d3   : > { %v7857_v50 = vsel %vm7785_vm0, %v7749_v49, %v7821_v55  ;;  %v7978_v38 = vld [vmem:[#allocation4 + $0xd8] ss:$2 sm:$0xff]  ;;  %v7980_v13 = vld [vmem:[#allocation4 + $0xd9] ss:$2 sm:$0xff]  ;;  %v7442_v49 = vpop.f32.mrf.mxu0 }
 0x6d4   : > { %7893 = vst.msk [vmem:[#allocation4 + $0xe8] sm:$0xff] %vm13209_vm6, %v7857_v50  ;;  %v7665_v22 = vpop.f32.mrf.mxu1  ;;  %v7981_v20 = vadd.f32 %v7980_v13, %v7978_v38  ;;  %v7480_v55 = vadd.f32 %v7442_v49, %v7112_v16 }
 0x6d5   : > { %v7710_v14 = vadd.f32 %v7665_v22, %v7475_v3 }
 0x6d7   : > { %v7750_v25 = vadd.f32 %v12465_v62, %v7710_v14 }
 0x6d9   : > { %vm7786_vm1 = vcmp.gt.f32.partialorder %v7750_v25, 0.0  ;;  %v7822_v28 = vmul.f32 0.2, %v7750_v25 }
 0x6db   : > { %v7858_v27 = vsel %vm7786_vm1, %v7750_v25, %v7822_v28 }
 0x6dc   : > { %7894 = vst.msk [vmem:[#allocation4 + $0xf0] sm:$0xff] %vm13210_vm14, %v7858_v27  ;;  %v7667_v18 = vpop.f32.mrf.mxu1 }
 0x6dd   : > { %v7711_v61 = vadd.f32 %v7667_v18, %v7476_v59 }
 0x6df   : > { %v7751_v41 = vadd.f32 %v12465_v62, %v7711_v61 }
 0x6e1   : > { %vm7787_vm11 = vcmp.gt.f32.partialorder %v7751_v41, 0.0  ;;  %v7823_v19 = vmul.f32 0.2, %v7751_v41 }
 0x6e3   : > { %v7859_v57 = vsel %vm7787_vm11, %v7751_v41, %v7823_v19 }
 0x6e4   : > { %7895 = vst.msk [vmem:[#allocation4 + $0xf8] sm:$0xff] %vm13211_vm10, %v7859_v57  ;;  %v7670_v36 = vpop.f32.mrf.mxu1 }
 0x6e5   : > { %v7712_v48 = vadd.f32 %v7670_v36, %v7477_v10 }
 0x6e7   : > { %v7752_v35 = vadd.f32 %v12465_v62, %v7712_v48 }
 0x6e9   : > { %vm7788_vm9 = vcmp.gt.f32.partialorder %v7752_v35, 0.0  ;;  %v7824_v21 = vmul.f32 0.2, %v7752_v35 }
 0x6eb   : > { %v7983_v24 = vld [vmem:[#allocation4 + $0xea] ss:$2 sm:$0xff]  ;;  %v7860_v37 = vsel %vm7788_vm9, %v7752_v35, %v7824_v21  ;;  %v7986_v34 = vld [vmem:[#allocation4 + $0xeb] ss:$2 sm:$0xff] }
 0x6ec   : > { %v7984_v43 = vadd.f32 %v7983_v24, %v7981_v20  ;;  %7896 = vst.msk [vmem:[#allocation4 + $0x100] sm:$0xff] %vm13212_vm15, %v7860_v37  ;;  %v7672_v58 = vpop.f32.mrf.mxu1 }
 0x6ed   : > { %v7713_v26 = vadd.f32 %v7672_v58, %v7478_v33 }
 0x6ee   : > { %v7987_v44 = vadd.f32 %v7986_v34, %v7984_v43 }
 0x6ef   : > { %v7753_v1 = vadd.f32 %v12465_v62, %v7713_v26 }
 0x6f0   : > { %v7988_v12 = vmul.f32 0.25, %v7987_v44 }
 0x6f1   : > { %vm7789_vm4 = vcmp.gt.f32.partialorder %v7753_v1, 0.0  ;;  %v7825_v39 = vmul.f32 0.2, %v7753_v1 }
 0x6f2   : > { %7989 = vst.msk [vmem:[%s12509_s27 + $0x30] sm:$0xff] %vm13213_vm12, %v7988_v12 }
 0x6f3   : > { %v7861_v23 = vsel %vm7789_vm4, %v7753_v1, %v7825_v39 }
 0x6f4   : > { %7897 = vst.msk [vmem:[#allocation4 + $0x108] sm:$0xff] %vm13214_vm13, %v7861_v23  ;;  %v7675_v6 = vpop.f32.mrf.mxu1 }
 0x6f5   : > { %v7714_v46 = vadd.f32 %v7675_v6, %v7479_v30 }
 0x6f7   : > { %v7754_v4 = vadd.f32 %v12465_v62, %v7714_v46 }
 0x6f9   : > { %vm7790_vm8 = vcmp.gt.f32.partialorder %v7754_v4, 0.0  ;;  %v7826_v15 = vmul.f32 0.2, %v7754_v4 }
 0x6fb   : > { %v7862_v7 = vsel %vm7790_vm8, %v7754_v4, %v7826_v15  ;;  %v7991_v22 = vld [vmem:[#allocation4 + $0xfc] ss:$2 sm:$0xff]  ;;  %v7993_v14 = vld [vmem:[#allocation4 + $0xfd] ss:$2 sm:$0xff] }
 0x6fc   : > { %7898 = vst.msk [vmem:[#allocation4 + $0x110] sm:$0xff] %vm13206_vm2, %v7862_v7  ;;  %v7677_v32 = vpop.f32.mrf.mxu1  ;;  %v7994_v52 = vadd.f32 %v7993_v14, %v7991_v22 }
 0x6fd   : > { %v7715_v11 = vadd.f32 %v7677_v32, %v7480_v55 }
 0x6ff   : > { %v7755_v5 = vadd.f32 %v12465_v62, %v7715_v11 }
 0x701   : > { %vm7791_vm3 = vcmp.gt.f32.partialorder %v7755_v5, 0.0  ;;  %v7827_v50 = vmul.f32 0.2, %v7755_v5 }
 0x703   : > { %v7863_v3 = vsel %vm7791_vm3, %v7755_v5, %v7827_v50 }
 0x704   : > { %7899 = vst.msk [vmem:[#allocation4 + $0x118] sm:$0xff] %vm13215_vm5, %v7863_v3 }
 0x70b   : > { %v7996_v25 = vld [vmem:[#allocation4 + $0x10e] ss:$2 sm:$0xff]  ;;  %v7999_v28 = vld [vmem:[#allocation4 + $0x10f] ss:$2 sm:$0xff] }
 0x70c   : > { %v7997_v0 = vadd.f32 %v7996_v25, %v7994_v52 }
 0x70e   : > { %v8000_v54 = vadd.f32 %v7999_v28, %v7997_v0 }
 0x710   : > { %v8001_v53 = vmul.f32 0.25, %v8000_v54 }
 0x712   : > { %8002 = vst.msk [vmem:[%s12509_s27 + $0x38] sm:$0xff] %vm13216_vm7, %v8001_v53 }
 0x713 PF: > { %s15_s18 = sadd.s32 1, %s9076_s18  }
 0x714   : > { %p12_p4 = scmp.ge.s32.totalorder %s15_s18, 4  }
 0x716   :  { %14 = sbr.rel (!%p12_p4) target bundleno = 1 (0x1), region = 117 }

</bundles_post_ra>
